<compile_context>
chip_gen: v7x
topology: tpu7x:2x2x1
jax: 0.10.0
libtpu: 0.0.40
codegen_flags: <defaults>
</compile_context>

<pallas_src>
import functools
import math

import jax
import jax.numpy as jnp
from jax.experimental import pallas as pl
from jax.experimental.pallas import tpu as pltpu


def _round_up(x, m):
    return (x + m - 1) // m * m


def _choose_tk(kp):
    """Largest K tile in {512,384,256,128} that divides kp (kp % 128 == 0)."""
    for tk in (512, 384, 256, 128):
        if kp % tk == 0:
            return tk
    return 128


# ----------------------------------------------------------------------------
# Kernel 1: fused (A @ W) + shift [+ ReLU]  (every conv lowers to this)
# ----------------------------------------------------------------------------
def _mm_kernel(a_ref, w_ref, b_ref, o_ref, acc_ref, *, relu):
    k = pl.program_id(1)

    @pl.when(k == 0)
    def _():
        acc_ref[...] = jnp.zeros_like(acc_ref)

    acc_ref[...] += jnp.dot(a_ref[...], w_ref[...],
                            preferred_element_type=jnp.float32)

    @pl.when(k == pl.num_programs(1) - 1)
    def _():
        y = acc_ref[...] + b_ref[...]
        if relu:
            y = jnp.maximum(y, 0.0)
        o_ref[...] = y.astype(o_ref.dtype)


def fused_matmul(a, w, shift, relu):
    """out = maybe_relu(a @ w + shift).

    a: (M, K); w: (K, N) bf16 (BN scale folded); shift: (N,) or (M, N) f32.
    """
    M, K = a.shape
    K2, N = w.shape
    assert K == K2

    Np = _round_up(N, 128)
    Kp = _round_up(K, 128)
    TK = _choose_tk(Kp)
    TM = 256 if M > 256 else _round_up(max(M, 8), 8)
    Mp = _round_up(M, TM)

    a_p = jnp.pad(a.astype(jnp.bfloat16), ((0, Mp - M), (0, Kp - K)))
    w_p = jnp.pad(w.astype(jnp.bfloat16), ((0, Kp - K), (0, Np - N)))
    if shift.ndim == 1:
        b_p = jnp.pad(shift.astype(jnp.float32), (0, Np - N)).reshape(1, Np)
        b_spec = pl.BlockSpec((1, Np), lambda m, k: (0, 0))
    else:
        b_p = jnp.pad(shift.astype(jnp.float32), ((0, Mp - M), (0, Np - N)))
        b_spec = pl.BlockSpec((TM, Np), lambda m, k: (m, 0))

    out = pl.pallas_call(
        functools.partial(_mm_kernel, relu=relu),
        out_shape=jax.ShapeDtypeStruct((Mp, Np), jnp.bfloat16),
        grid_spec=pltpu.PrefetchScalarGridSpec(
            num_scalar_prefetch=0,
            grid=(Mp // TM, Kp // TK),
            in_specs=[
                pl.BlockSpec((TM, TK), lambda m, k: (m, k)),
                pl.BlockSpec((TK, Np), lambda m, k: (k, 0)),
                b_spec,
            ],
            out_specs=pl.BlockSpec((TM, Np), lambda m, k: (m, 0)),
            scratch_shapes=[pltpu.VMEM((TM, Np), jnp.float32)],
        ),
        compiler_params=pltpu.CompilerParams(
            dimension_semantics=("parallel", "arbitrary")),
    )(a_p, w_p, b_p)
    return out[:M, :N]


# ----------------------------------------------------------------------------
# Kernel 2: fully fused ASPP (center-only branches -> BN/ReLU -> conv1 ->
#           BN + pooled-branch bias -> ReLU), two chained MXU matmuls.
# ----------------------------------------------------------------------------
def _aspp_fused_kernel(a_ref, w1_ref, b1_ref, w2_ref, s2_ref, o_ref):
    h = jnp.dot(a_ref[...], w1_ref[...], preferred_element_type=jnp.float32)
    h = jnp.maximum(h + b1_ref[...], 0.0).astype(jnp.bfloat16)
    y = jnp.dot(h, w2_ref[...], preferred_element_type=jnp.float32)
    o_ref[...] = jnp.maximum(y + s2_ref[...], 0.0).astype(o_ref.dtype)


def aspp_fused_center(x3f, w_branch, b1024, w_conv1, shift_rows):
    """feature = relu(relu(x3f @ w_branch + b1024) @ w_conv1 + shift_rows)."""
    M, K = x3f.shape
    N1 = w_branch.shape[1]      # 1024
    N2 = w_conv1.shape[1]       # 256
    Kp = _round_up(K, 128)
    TM = 256 if M > 256 else _round_up(max(M, 8), 8)
    Mp = _round_up(M, TM)

    a_p = jnp.pad(x3f.astype(jnp.bfloat16), ((0, Mp - M), (0, Kp - K)))
    w1_p = jnp.pad(w_branch.astype(jnp.bfloat16), ((0, Kp - K), (0, 0)))
    b1 = b1024.astype(jnp.float32).reshape(1, N1)
    w2 = w_conv1.astype(jnp.bfloat16)
    s2_p = jnp.pad(shift_rows.astype(jnp.float32), ((0, Mp - M), (0, 0)))

    out = pl.pallas_call(
        _aspp_fused_kernel,
        out_shape=jax.ShapeDtypeStruct((Mp, N2), jnp.bfloat16),
        grid_spec=pltpu.PrefetchScalarGridSpec(
            num_scalar_prefetch=0,
            grid=(Mp // TM,),
            in_specs=[
                pl.BlockSpec((TM, Kp), lambda m: (m, 0)),
                pl.BlockSpec((Kp, N1), lambda m: (0, 0)),
                pl.BlockSpec((1, N1), lambda m: (0, 0)),
                pl.BlockSpec((N1, N2), lambda m: (0, 0)),
                pl.BlockSpec((TM, N2), lambda m: (m, 0)),
            ],
            out_specs=pl.BlockSpec((TM, N2), lambda m: (m, 0)),
        ),
        compiler_params=pltpu.CompilerParams(
            dimension_semantics=("parallel",)),
    )(a_p, w1_p, b1, w2, s2_p)
    return out[:M, :N2]


# ----------------------------------------------------------------------------
# Conv wrappers (im2col glue in bf16 XLA, matmul/BN/ReLU in the Pallas kernel)
# ----------------------------------------------------------------------------
def conv1x1_bn_relu(x_nhwc, w_packed, shift, relu=True):
    n, h, wd, c = x_nhwc.shape
    cout = w_packed.shape[1]
    a = x_nhwc.reshape(n * h * wd, c)
    out = fused_matmul(a, w_packed, shift, relu)
    return out.reshape(n, h, wd, cout)


def conv3x3_bn_relu(x_nhwc, w_packed, shift, dilation, relu=True):
    """w_packed: (9*Cin, Cout) bf16, tap-major (ky, kx, cin), BN scale folded."""
    x_nhwc = x_nhwc.astype(jnp.bfloat16)
    n, h, wd, c = x_nhwc.shape
    cout = w_packed.shape[1]
    d = dilation
    # Skip taps that only sample zero padding (dilation >= H / >= W).
    taps = [(ky, kx) for ky in range(3) for kx in range(3)
            if not ((ky != 1 and d >= h) or (kx != 1 and d >= wd))]
    if taps == [(1, 1)]:
        a = x_nhwc.reshape(n * h * wd, c)
        w_rows = w_packed[4 * c:5 * c]
    else:
        xp = jnp.pad(x_nhwc, ((0, 0), (d, d), (d, d), (0, 0)))
        cols = [xp[:, ky * d:ky * d + h, kx * d:kx * d + wd, :]
                for (ky, kx) in taps]
        a = jnp.concatenate(cols, axis=-1).reshape(n * h * wd, len(taps) * c)
        w_rows = jnp.concatenate(
            [w_packed[(ky * 3 + kx) * c:(ky * 3 + kx + 1) * c]
             for (ky, kx) in taps], axis=0)
    out = fused_matmul(a, w_rows, shift, relu)
    return out.reshape(n, h, wd, cout)


# ----------------------------------------------------------------------------
# Bilinear interpolation (tiny; separable, plain XLA)
# ----------------------------------------------------------------------------
def _interp_matrix(out_size, in_size, align_corners):
    if in_size == 1:
        return jnp.ones((out_size, 1), jnp.float32)
    i = jnp.arange(out_size, dtype=jnp.float32)
    if align_corners:
        src = jnp.zeros_like(i) if out_size == 1 else i * (in_size - 1) / (out_size - 1)
    else:
        src = (i + 0.5) * (in_size / out_size) - 0.5
        src = jnp.clip(src, 0.0, in_size - 1)
    lo = jnp.clip(jnp.floor(src).astype(jnp.int32), 0, in_size - 2)
    hi = lo + 1
    w_hi = src - lo.astype(jnp.float32)
    w_lo = 1.0 - w_hi
    m = jnp.zeros((out_size, in_size), jnp.float32)
    m = m.at[jnp.arange(out_size), lo].add(w_lo)
    m = m.at[jnp.arange(out_size), hi].add(w_hi)
    return m


def bilinear_resize(x_nhwc, out_h, out_w, align_corners):
    n, h, wd, c = x_nhwc.shape
    ry = _interp_matrix(out_h, h, align_corners)          # (out_h, h)
    rx = _interp_matrix(out_w, wd, align_corners)         # (out_w, w)
    x = x_nhwc.astype(jnp.float32)
    t = jnp.einsum('oh,nhwc->nowc', ry, x)
    return jnp.einsum('pw,nowc->nopc', rx, t)


# ----------------------------------------------------------------------------
# Parameter init + weight packing (deterministic, matches initialize_weights)
# ----------------------------------------------------------------------------
def _conv_w(key, cout, cin, k):
    fan_in = cin * k * k
    std = math.sqrt(2.0 / fan_in)                 # kaiming_normal_, nonlinearity='relu'
    return jax.random.normal(key, (cout, cin, k, k), jnp.float32) * std


def _bn_affine(c):
    eps = 1e-5
    gamma = jnp.ones((c,), jnp.float32)
    beta = jnp.full((c,), 1e-4, jnp.float32)
    scale = gamma / jnp.sqrt(1.0 + eps)           # running_var = 1, running_mean = 0
    return scale, beta


def _pack(w_oihw, scale, dtype=jnp.bfloat16):
    """(O,I,kh,kw) -> (kh*kw*I, O), BN scale folded into output channels."""
    o, i, kh, kw = w_oihw.shape
    wm = jnp.transpose(w_oihw, (2, 3, 1, 0)).reshape(kh * kw * i, o)
    return (wm * scale[None, :]).astype(dtype)


def init_params(key, aspp_channels=512, low_level_channels=64, aspp_stride=8):
    assert aspp_stride in (8, 16)
    dilations = (1, 12, 24, 36) if aspp_stride == 8 else (1, 6, 12, 18)
    ks = jax.random.split(key, 9)

    aspp1_w = _conv_w(ks[0], 256, aspp_channels, 1)
    aspp2_w = _conv_w(ks[1], 256, aspp_channels, 3)
    aspp3_w = _conv_w(ks[2], 256, aspp_channels, 3)
    aspp4_w = _conv_w(ks[3], 256, aspp_channels, 3)
    avgpool_w = _conv_w(ks[4], 256, aspp_channels, 1)
    aspp_conv1_w = _conv_w(ks[5], 256, 256 * 5, 1)
    dec_conv1_w = _conv_w(ks[6], 48, low_level_channels, 1)
    dec_out1_w = _conv_w(ks[7], 256, 48 + 256, 3)
    dec_out2_w = _conv_w(ks[8], 256, 256, 3)

    s256, b256 = _bn_affine(256)
    s48, b48 = _bn_affine(48)
    ca = aspp_channels

    aspp1_wp = _pack(aspp1_w, s256)
    aspp2_wp = _pack(aspp2_w, s256)
    aspp3_wp = _pack(aspp3_w, s256)
    aspp4_wp = _pack(aspp4_w, s256)
    # fused ASPP branch weight: [aspp1 | center(aspp2) | center(aspp3) | center(aspp4)]
    fused_branch = jnp.concatenate(
        [aspp1_wp, aspp2_wp[4 * ca:5 * ca],
         aspp3_wp[4 * ca:5 * ca], aspp4_wp[4 * ca:5 * ca]], axis=1)
    conv1_full = _pack(aspp_conv1_w, s256, jnp.float32)          # (1280, 256)

    params = {
        "aspp1_wp": aspp1_wp,
        "aspp2_wp": aspp2_wp, "aspp3_wp": aspp3_wp, "aspp4_wp": aspp4_wp,
        "aspp_branch_fused_wp": fused_branch,                    # (Ca, 1024) bf16
        "avgpool_wp": _pack(avgpool_w, s256, jnp.float32),       # (Ca, 256)  f32 (XLA)
        "aspp_conv1_main_wp": conv1_full[:1024].astype(jnp.bfloat16),
        "aspp_conv1_pool_wp": conv1_full[1024:],                 # (256, 256) f32 (XLA)
        "dec_conv1_wp": _pack(dec_conv1_w, s48),
        "dec_out1_wp": _pack(dec_out1_w, s256),
        "dec_out2_wp": _pack(dec_out2_w, s256),
        "b256": b256, "b48": b48,
        "b1024": jnp.concatenate([b256, b256, b256, b256]),
    }
    return params, dilations


# ----------------------------------------------------------------------------
# DeepLab1 head forward (ASSP + Decoder + feat interpolation)
# ----------------------------------------------------------------------------
@functools.partial(jax.jit, static_argnames=("dilations",))
def deeplab1_forward(params, x_high_nchw, x_low_nchw, *, dilations):
    """x_high = backbone x[3] (N,Ca,Hh,Wh); x_low = backbone x[0] (N,Cl,Hl,Wl)."""
    x3 = jnp.transpose(x_high_nchw, (0, 2, 3, 1))   # NHWC, high-level features
    x0 = jnp.transpose(x_low_nchw, (0, 2, 3, 1))    # NHWC, low-level features
    n, hh, wh, ca = x3.shape
    hl, wl = x0.shape[1], x0.shape[2]
    M = n * hh * wh
    b256, b48, b1024 = params["b256"], params["b48"], params["b1024"]

    # --- ASSP global-avg-pool branch (tiny GEMV, XLA) -------------------------
    pooled = jnp.mean(x3, axis=(1, 2))                            # (N, Ca)
    x5v = jnp.maximum(pooled @ params["avgpool_wp"] + b256, 0.0)  # (N, 256)
    # bilinear upsample of a 1x1 map (align_corners=True) == broadcast; its
    # conv1 contribution becomes a per-image bias (the 1280-wide concat is
    # never materialized).  Folded with BN beta into a per-row epilogue shift.
    extra = x5v @ params["aspp_conv1_pool_wp"]                    # (N, 256)
    shift_rows = (jnp.broadcast_to(extra[:, None, :], (n, hh * wh, 256))
                  .reshape(M, 256) + b256)                        # (M, 256)

    # --- ASSP branches + conv1 -----------------------------------------------
    x3f = x3.reshape(M, ca)
    center_only = all(d >= max(hh, wh) for d in dilations[1:])
    if center_only and _round_up(ca, 128) <= 2048:
        # all dilated 3x3 branches reduce to their center tap -> one fully
        # fused kernel: (Ca->1024) + BN/ReLU + (1024->256) + bias + ReLU.
        feature = aspp_fused_center(x3f, params["aspp_branch_fused_wp"],
                                    b1024, params["aspp_conv1_main_wp"],
                                    shift_rows)
    else:
        if center_only:
            branches = fused_matmul(x3f, params["aspp_branch_fused_wp"],
                                    b1024, relu=True)
        else:
            x1 = fused_matmul(x3f, params["aspp1_wp"], b256, relu=True)
            x2 = conv3x3_bn_relu(x3, params["aspp2_wp"], b256,
                                 dilations[1]).reshape(M, 256)
            x3b = conv3x3_bn_relu(x3, params["aspp3_wp"], b256,
                                  dilations[2]).reshape(M, 256)
            x4 = conv3x3_bn_relu(x3, params["aspp4_wp"], b256,
                                 dilations[3]).reshape(M, 256)
            branches = jnp.concatenate([x1, x2, x3b, x4], axis=-1)  # (M, 1024)
        feature = fused_matmul(branches, params["aspp_conv1_main_wp"],
                               shift_rows, relu=True)
    feature = feature.reshape(n, hh, wh, 256)       # bf16
    # Dropout(0.5): identity in eval mode.

    # --- Decoder --------------------------------------------------------------
    low = conv1x1_bn_relu(x0, params["dec_conv1_wp"], b48, relu=True)   # (N,Hl,Wl,48)
    up = bilinear_resize(feature, hl, wl, align_corners=True)           # (N,Hl,Wl,256)
    dcat = jnp.concatenate([low, up.astype(jnp.bfloat16)], axis=-1)     # (N,Hl,Wl,304)
    y = conv3x3_bn_relu(dcat, params["dec_out1_wp"], b256, 1, relu=True)
    y = conv3x3_bn_relu(y, params["dec_out2_wp"], b256, 1, relu=True)

    # --- feat = interpolate(x[0], size of x[3], bilinear, align_corners=False)
    feat = bilinear_resize(x0, hh, wh, align_corners=False)

    return (jnp.transpose(y, (0, 3, 1, 2)).astype(jnp.float32),
            jnp.transpose(feat, (0, 3, 1, 2)).astype(jnp.float32))


if __name__ == "__main__":
    key = jax.random.PRNGKey(0)
    kp, k0, k3 = jax.random.split(key, 3)

    # ResNet18-style head config: low_level_channels=64, aspp_channels=512
    params, dilations = init_params(kp, aspp_channels=512, low_level_channels=64,
                                    aspp_stride=8)

    x_low = jax.random.normal(k0, (2, 64, 16, 16), jnp.float32)    # backbone x[0]
    x_high = jax.random.normal(k3, (2, 512, 8, 8), jnp.float32)    # backbone x[3]

    # Path 1: aspp_stride=8 dilations -> fully fused ASPP kernel (center taps only).
    y, feat = deeplab1_forward(params, x_high, x_low, dilations=dilations)
    y, feat = jax.block_until_ready((y, feat))
    assert y.shape == (2, 256, 16, 16), y.shape
    assert feat.shape == (2, 64, 8, 8), feat.shape
    assert jnp.all(jnp.isfinite(y)) and jnp.all(jnp.isfinite(feat))

    # Path 2: aspp_stride=16 dilations -> dilated 3x3 branches + per-row-shift conv1.
    y2, feat2 = deeplab1_forward(params, x_high, x_low, dilations=(1, 6, 12, 18))
    y2, feat2 = jax.block_until_ready((y2, feat2))
    assert y2.shape == (2, 256, 16, 16) and feat2.shape == (2, 64, 8, 8)
    assert jnp.all(jnp.isfinite(y2)) and jnp.all(jnp.isfinite(feat2))

    print("KERNEL_OK")
</pallas_src>

<mosaic_0001>
module attributes {stable_mosaic.version = 11 : i64} {
  func.func private @main(%arg0: i32) attributes {dimension_semantics = [#tpu.dimension_semantics<core_parallel>], iteration_bounds = array<i64: 2>, tpu.core_type = #tpu.core_type<sc_scalar_subcore>, window_params = []} {
    return
  }
}

module attributes {stable_mosaic.version = 11 : i64} {
  func.func private @main(%arg0: i32) attributes {dimension_semantics = [#tpu.dimension_semantics<core_parallel>], iteration_bounds = array<i64: 2>, tpu.core_type = #tpu.core_type<sc_scalar_subcore>, window_params = []} {
    return
  }
}

module attributes {stable_mosaic.version = 11 : i64} {
  func.func @_mm_kernel(%arg0: i32, %arg1: i32, %arg2: memref<256x128xbf16, #tpu.memory_space<vmem>>, %arg3: memref<128x128xbf16, #tpu.memory_space<vmem>>, %arg4: memref<1x128xf32, #tpu.memory_space<vmem>>, %arg5: memref<256x128xbf16, #tpu.memory_space<vmem>>, %arg6: memref<256x128xf32, #tpu.memory_space<vmem>>) attributes {dimension_semantics = [#tpu.dimension_semantics<parallel>, #tpu.dimension_semantics<arbitrary>], iteration_bounds = array<i64: 2, 1>, scalar_prefetch = 0 : i64, scratch_operands = 1 : i64, tpu.core_type = #tpu.core_type<tc>, window_params = [{transform_indices = @transform_0, window_bounds = array<i64: 256, 128>}, {transform_indices = @transform_1, window_bounds = array<i64: 128, 128>}, {pipeline_mode = #tpu.pipeline_mode<synchronous>, transform_indices = @transform_2, window_bounds = array<i64: 1, 128>}, {transform_indices = @transform_3, window_bounds = array<i64: 256, 128>}]} {
    %c0_i32 = arith.constant 0 : i32
    %0 = arith.cmpi eq, %arg1, %c0_i32 : i32
    %1 = arith.extui %0 : i1 to i32
    %c0_i32_0 = arith.constant 0 : i32
    %2 = arith.cmpi ne, %1, %c0_i32_0 : i32
    scf.if %2 {
      %cst_10 = arith.constant 0.000000e+00 : f32
      %12 = vector.broadcast %cst_10 : f32 to vector<256x128xf32>
      %c0_11 = arith.constant 0 : index
      %c0_12 = arith.constant 0 : index
      %13 = vector.load %arg6[%c0_11, %c0_12] : memref<256x128xf32, #tpu.memory_space<vmem>>, vector<256x128xf32>
      tpu.vector_store %arg6[%c0_11, %c0_12], %12 {strides = array<i32>} : memref<256x128xf32, #tpu.memory_space<vmem>>, vector<256x128xf32>,
    } else {
    }
    %c0 = arith.constant 0 : index
    %c0_1 = arith.constant 0 : index
    %3 = vector.load %arg6[%c0, %c0_1] : memref<256x128xf32, #tpu.memory_space<vmem>>, vector<256x128xf32>
    %c0_2 = arith.constant 0 : index
    %c0_3 = arith.constant 0 : index
    %4 = vector.load %arg2[%c0_2, %c0_3] : memref<256x128xbf16, #tpu.memory_space<vmem>>, vector<256x128xbf16>
    %c0_4 = arith.constant 0 : index
    %c0_5 = arith.constant 0 : index
    %5 = vector.load %arg3[%c0_4, %c0_5] : memref<128x128xbf16, #tpu.memory_space<vmem>>, vector<128x128xbf16>
    %cst = arith.constant dense<0.000000e+00> : vector<256x128xf32>
    %6 = tpu.matmul %4, %5, %cst {dimension_numbers = #tpu.dot_dimension_numbers<[1], [0], [0], [1], [0, 0, 1, 1], [], []>} : vector<256x128xbf16>, vector<128x128xbf16>, vector<256x128xf32> -> vector<256x128xf32>
    %7 = arith.addf %3, %6 : vector<256x128xf32>
    %c0_6 = arith.constant 0 : index
    %c0_7 = arith.constant 0 : index
    %8 = vector.load %arg6[%c0_6, %c0_7] : memref<256x128xf32, #tpu.memory_space<vmem>>, vector<256x128xf32>
    tpu.vector_store %arg6[%c0_6, %c0_7], %7 {strides = array<i32>} : memref<256x128xf32, #tpu.memory_space<vmem>>, vector<256x128xf32>,
    %c0_i32_8 = arith.constant 0 : i32
    %9 = arith.cmpi eq, %arg1, %c0_i32_8 : i32
    %10 = arith.extui %9 : i1 to i32
    %c0_i32_9 = arith.constant 0 : i32
    %11 = arith.cmpi ne, %10, %c0_i32_9 : i32
    scf.if %11 {
      %c0_10 = arith.constant 0 : index
      %c0_11 = arith.constant 0 : index
      %12 = vector.load %arg6[%c0_10, %c0_11] : memref<256x128xf32, #tpu.memory_space<vmem>>, vector<256x128xf32>
      %c0_12 = arith.constant 0 : index
      %c0_13 = arith.constant 0 : index
      %13 = vector.load %arg4[%c0_12, %c0_13] : memref<1x128xf32, #tpu.memory_space<vmem>>, vector<1x128xf32>
      %14 = vector.broadcast %13 : vector<1x128xf32> to vector<256x128xf32>
      %15 = arith.addf %12, %14 : vector<256x128xf32>
      %cst_14 = arith.constant 0.000000e+00 : f32
      %16 = vector.broadcast %cst_14 : f32 to vector<256x128xf32>
      %17 = arith.maximumf %15, %16 : vector<256x128xf32>
      %18 = arith.truncf %17 : vector<256x128xf32> to vector<256x128xbf16>
      %c0_15 = arith.constant 0 : index
      %c0_16 = arith.constant 0 : index
      %19 = vector.load %arg5[%c0_15, %c0_16] : memref<256x128xbf16, #tpu.memory_space<vmem>>, vector<256x128xbf16>
      tpu.vector_store %arg5[%c0_15, %c0_16], %18 {strides = array<i32>} : memref<256x128xbf16, #tpu.memory_space<vmem>>, vector<256x128xbf16>,
    } else {
    }
    return
  }
  func.func @transform_0(%arg0: i32, %arg1: i32) -> (i32, i32) {
    %c0_i32 = arith.constant 0 : i32
    return %arg0, %arg1 : i32, i32
  }
  func.func @transform_1(%arg0: i32, %arg1: i32) -> (i32, i32) {
    %c0_i32 = arith.constant 0 : i32
    %c0_i32_0 = arith.constant 0 : i32
    return %arg1, %c0_i32 : i32, i32
  }
  func.func @transform_2(%arg0: i32, %arg1: i32) -> (i32, i32) {
    %c0_i32 = arith.constant 0 : i32
    %c0_i32_0 = arith.constant 0 : i32
    %c0_i32_1 = arith.constant 0 : i32
    return %c0_i32, %c0_i32_0 : i32, i32
  }
  func.func @transform_3(%arg0: i32, %arg1: i32) -> (i32, i32) {
    %c0_i32 = arith.constant 0 : i32
    %c0_i32_0 = arith.constant 0 : i32
    return %arg0, %c0_i32 : i32, i32
  }
}

module attributes {stable_mosaic.version = 11 : i64} {
  func.func @_aspp_fused_kernel(%arg0: i32, %arg1: memref<128x512xbf16, #tpu.memory_space<vmem>>, %arg2: memref<512x1024xbf16, #tpu.memory_space<vmem>>, %arg3: memref<1x1024xf32, #tpu.memory_space<vmem>>, %arg4: memref<1024x256xbf16, #tpu.memory_space<vmem>>, %arg5: memref<128x256xf32, #tpu.memory_space<vmem>>, %arg6: memref<128x256xbf16, #tpu.memory_space<vmem>>) attributes {dimension_semantics = [#tpu.dimension_semantics<parallel>], iteration_bounds = array<i64: 1>, scalar_prefetch = 0 : i64, scratch_operands = 0 : i64, tpu.core_type = #tpu.core_type<tc>, window_params = [{transform_indices = @transform_0, window_bounds = array<i64: 128, 512>}, {pipeline_mode = #tpu.pipeline_mode<synchronous>, transform_indices = @transform_1, window_bounds = array<i64: 512, 1024>}, {pipeline_mode = #tpu.pipeline_mode<synchronous>, transform_indices = @transform_2, window_bounds = array<i64: 1, 1024>}, {pipeline_mode = #tpu.pipeline_mode<synchronous>, transform_indices = @transform_3, window_bounds = array<i64: 1024, 256>}, {transform_indices = @transform_4, window_bounds = array<i64: 128, 256>}, {transform_indices = @transform_5, window_bounds = array<i64: 128, 256>}]} {
    %c0 = arith.constant 0 : index
    %c0_0 = arith.constant 0 : index
    %0 = vector.load %arg1[%c0, %c0_0] : memref<128x512xbf16, #tpu.memory_space<vmem>>, vector<128x512xbf16>
    %c0_1 = arith.constant 0 : index
    %c0_2 = arith.constant 0 : index
    %1 = vector.load %arg2[%c0_1, %c0_2] : memref<512x1024xbf16, #tpu.memory_space<vmem>>, vector<512x1024xbf16>
    %cst = arith.constant dense<0.000000e+00> : vector<128x1024xf32>
    %2 = tpu.matmul %0, %1, %cst {dimension_numbers = #tpu.dot_dimension_numbers<[1], [0], [0], [1], [0, 0, 1, 1], [], []>} : vector<128x512xbf16>, vector<512x1024xbf16>, vector<128x1024xf32> -> vector<128x1024xf32>
    %c0_3 = arith.constant 0 : index
    %c0_4 = arith.constant 0 : index
    %3 = vector.load %arg3[%c0_3, %c0_4] : memref<1x1024xf32, #tpu.memory_space<vmem>>, vector<1x1024xf32>
    %4 = vector.broadcast %3 : vector<1x1024xf32> to vector<128x1024xf32>
    %5 = arith.addf %2, %4 : vector<128x1024xf32>
    %cst_5 = arith.constant 0.000000e+00 : f32
    %6 = vector.broadcast %cst_5 : f32 to vector<128x1024xf32>
    %7 = arith.maximumf %5, %6 : vector<128x1024xf32>
    %8 = arith.truncf %7 : vector<128x1024xf32> to vector<128x1024xbf16>
    %c0_6 = arith.constant 0 : index
    %c0_7 = arith.constant 0 : index
    %9 = vector.load %arg4[%c0_6, %c0_7] : memref<1024x256xbf16, #tpu.memory_space<vmem>>, vector<1024x256xbf16>
    %cst_8 = arith.constant dense<0.000000e+00> : vector<128x256xf32>
    %10 = tpu.matmul %8, %9, %cst_8 {dimension_numbers = #tpu.dot_dimension_numbers<[1], [0], [0], [1], [0, 0, 1, 1], [], []>} : vector<128x1024xbf16>, vector<1024x256xbf16>, vector<128x256xf32> -> vector<128x256xf32>
    %c0_9 = arith.constant 0 : index
    %c0_10 = arith.constant 0 : index
    %11 = vector.load %arg5[%c0_9, %c0_10] : memref<128x256xf32, #tpu.memory_space<vmem>>, vector<128x256xf32>
    %12 = arith.addf %10, %11 : vector<128x256xf32>
    %cst_11 = arith.constant 0.000000e+00 : f32
    %13 = vector.broadcast %cst_11 : f32 to vector<128x256xf32>
    %14 = arith.maximumf %12, %13 : vector<128x256xf32>
    %15 = arith.truncf %14 : vector<128x256xf32> to vector<128x256xbf16>
    %c0_12 = arith.constant 0 : index
    %c0_13 = arith.constant 0 : index
    %16 = vector.load %arg6[%c0_12, %c0_13] : memref<128x256xbf16, #tpu.memory_space<vmem>>, vector<128x256xbf16>
    tpu.vector_store %arg6[%c0_12, %c0_13], %15 {strides = array<i32>} : memref<128x256xbf16, #tpu.memory_space<vmem>>, vector<128x256xbf16>,
    return
  }
  func.func @transform_0(%arg0: i32) -> (i32, i32) {
    %c0_i32 = arith.constant 0 : i32
    %c0_i32_0 = arith.constant 0 : i32
    return %arg0, %c0_i32 : i32, i32
  }
  func.func @transform_1(%arg0: i32) -> (i32, i32) {
    %c0_i32 = arith.constant 0 : i32
    %c0_i32_0 = arith.constant 0 : i32
    %c0_i32_1 = arith.constant 0 : i32
    return %c0_i32, %c0_i32_0 : i32, i32
  }
  func.func @transform_2(%arg0: i32) -> (i32, i32) {
    %c0_i32 = arith.constant 0 : i32
    %c0_i32_0 = arith.constant 0 : i32
    %c0_i32_1 = arith.constant 0 : i32
    return %c0_i32, %c0_i32_0 : i32, i32
  }
  func.func @transform_3(%arg0: i32) -> (i32, i32) {
    %c0_i32 = arith.constant 0 : i32
    %c0_i32_0 = arith.constant 0 : i32
    %c0_i32_1 = arith.constant 0 : i32
    return %c0_i32, %c0_i32_0 : i32, i32
  }
  func.func @transform_4(%arg0: i32) -> (i32, i32) {
    %c0_i32 = arith.constant 0 : i32
    %c0_i32_0 = arith.constant 0 : i32
    return %arg0, %c0_i32 : i32, i32
  }
  func.func @transform_5(%arg0: i32) -> (i32, i32) {
    %c0_i32 = arith.constant 0 : i32
    %c0_i32_0 = arith.constant 0 : i32
    return %arg0, %c0_i32 : i32, i32
  }
}

module attributes {stable_mosaic.version = 11 : i64} {
  func.func @_mm_kernel(%arg0: i32, %arg1: i32, %arg2: memref<256x256xbf16, #tpu.memory_space<vmem>>, %arg3: memref<256x256xbf16, #tpu.memory_space<vmem>>, %arg4: memref<1x256xf32, #tpu.memory_space<vmem>>, %arg5: memref<256x256xbf16, #tpu.memory_space<vmem>>, %arg6: memref<256x256xf32, #tpu.memory_space<vmem>>) attributes {dimension_semantics = [#tpu.dimension_semantics<parallel>, #tpu.dimension_semantics<arbitrary>], iteration_bounds = array<i64: 2, 11>, scalar_prefetch = 0 : i64, scratch_operands = 1 : i64, tpu.core_type = #tpu.core_type<tc>, window_params = [{transform_indices = @transform_0, window_bounds = array<i64: 256, 256>}, {transform_indices = @transform_1, window_bounds = array<i64: 256, 256>}, {pipeline_mode = #tpu.pipeline_mode<synchronous>, transform_indices = @transform_2, window_bounds = array<i64: 1, 256>}, {transform_indices = @transform_3, window_bounds = array<i64: 256, 256>}]} {
    %c0_i32 = arith.constant 0 : i32
    %0 = arith.cmpi eq, %arg1, %c0_i32 : i32
    %1 = arith.extui %0 : i1 to i32
    %c0_i32_0 = arith.constant 0 : i32
    %2 = arith.cmpi ne, %1, %c0_i32_0 : i32
    scf.if %2 {
      %cst_9 = arith.constant 0.000000e+00 : f32
      %12 = vector.broadcast %cst_9 : f32 to vector<256x256xf32>
      %c0_10 = arith.constant 0 : index
      %c0_11 = arith.constant 0 : index
      %13 = vector.load %arg6[%c0_10, %c0_11] : memref<256x256xf32, #tpu.memory_space<vmem>>, vector<256x256xf32>
      tpu.vector_store %arg6[%c0_10, %c0_11], %12 {strides = array<i32>} : memref<256x256xf32, #tpu.memory_space<vmem>>, vector<256x256xf32>,
    } else {
    }
    %c0 = arith.constant 0 : index
    %c0_1 = arith.constant 0 : index
    %3 = vector.load %arg6[%c0, %c0_1] : memref<256x256xf32, #tpu.memory_space<vmem>>, vector<256x256xf32>
    %c0_2 = arith.constant 0 : index
    %c0_3 = arith.constant 0 : index
    %4 = vector.load %arg2[%c0_2, %c0_3] : memref<256x256xbf16, #tpu.memory_space<vmem>>, vector<256x256xbf16>
    %c0_4 = arith.constant 0 : index
    %c0_5 = arith.constant 0 : index
    %5 = vector.load %arg3[%c0_4, %c0_5] : memref<256x256xbf16, #tpu.memory_space<vmem>>, vector<256x256xbf16>
    %cst = arith.constant dense<0.000000e+00> : vector<256x256xf32>
    %6 = tpu.matmul %4, %5, %cst {dimension_numbers = #tpu.dot_dimension_numbers<[1], [0], [0], [1], [0, 0, 1, 1], [], []>} : vector<256x256xbf16>, vector<256x256xbf16>, vector<256x256xf32> -> vector<256x256xf32>
    %7 = arith.addf %3, %6 : vector<256x256xf32>
    %c0_6 = arith.constant 0 : index
    %c0_7 = arith.constant 0 : index
    %8 = vector.load %arg6[%c0_6, %c0_7] : memref<256x256xf32, #tpu.memory_space<vmem>>, vector<256x256xf32>
    tpu.vector_store %arg6[%c0_6, %c0_7], %7 {strides = array<i32>} : memref<256x256xf32, #tpu.memory_space<vmem>>, vector<256x256xf32>,
    %c10_i32 = arith.constant 10 : i32
    %9 = arith.cmpi eq, %arg1, %c10_i32 : i32
    %10 = arith.extui %9 : i1 to i32
    %c0_i32_8 = arith.constant 0 : i32
    %11 = arith.cmpi ne, %10, %c0_i32_8 : i32
    scf.if %11 {
      %c0_9 = arith.constant 0 : index
      %c0_10 = arith.constant 0 : index
      %12 = vector.load %arg6[%c0_9, %c0_10] : memref<256x256xf32, #tpu.memory_space<vmem>>, vector<256x256xf32>
      %c0_11 = arith.constant 0 : index
      %c0_12 = arith.constant 0 : index
      %13 = vector.load %arg4[%c0_11, %c0_12] : memref<1x256xf32, #tpu.memory_space<vmem>>, vector<1x256xf32>
      %14 = vector.broadcast %13 : vector<1x256xf32> to vector<256x256xf32>
      %15 = arith.addf %12, %14 : vector<256x256xf32>
      %cst_13 = arith.constant 0.000000e+00 : f32
      %16 = vector.broadcast %cst_13 : f32 to vector<256x256xf32>
      %17 = arith.maximumf %15, %16 : vector<256x256xf32>
      %18 = arith.truncf %17 : vector<256x256xf32> to vector<256x256xbf16>
      %c0_14 = arith.constant 0 : index
      %c0_15 = arith.constant 0 : index
      %19 = vector.load %arg5[%c0_14, %c0_15] : memref<256x256xbf16, #tpu.memory_space<vmem>>, vector<256x256xbf16>
      tpu.vector_store %arg5[%c0_14, %c0_15], %18 {strides = array<i32>} : memref<256x256xbf16, #tpu.memory_space<vmem>>, vector<256x256xbf16>,
    } else {
    }
    return
  }
  func.func @transform_0(%arg0: i32, %arg1: i32) -> (i32, i32) {
    %c0_i32 = arith.constant 0 : i32
    return %arg0, %arg1 : i32, i32
  }
  func.func @transform_1(%arg0: i32, %arg1: i32) -> (i32, i32) {
    %c0_i32 = arith.constant 0 : i32
    %c0_i32_0 = arith.constant 0 : i32
    return %arg1, %c0_i32 : i32, i32
  }
  func.func @transform_2(%arg0: i32, %arg1: i32) -> (i32, i32) {
    %c0_i32 = arith.constant 0 : i32
    %c0_i32_0 = arith.constant 0 : i32
    %c0_i32_1 = arith.constant 0 : i32
    return %c0_i32, %c0_i32_0 : i32, i32
  }
  func.func @transform_3(%arg0: i32, %arg1: i32) -> (i32, i32) {
    %c0_i32 = arith.constant 0 : i32
    %c0_i32_0 = arith.constant 0 : i32
    return %arg0, %c0_i32 : i32, i32
  }
}

module attributes {stable_mosaic.version = 11 : i64} {
  func.func @_mm_kernel(%arg0: i32, %arg1: i32, %arg2: memref<256x384xbf16, #tpu.memory_space<vmem>>, %arg3: memref<384x256xbf16, #tpu.memory_space<vmem>>, %arg4: memref<1x256xf32, #tpu.memory_space<vmem>>, %arg5: memref<256x256xbf16, #tpu.memory_space<vmem>>, %arg6: memref<256x256xf32, #tpu.memory_space<vmem>>) attributes {dimension_semantics = [#tpu.dimension_semantics<parallel>, #tpu.dimension_semantics<arbitrary>], iteration_bounds = array<i64: 2, 6>, scalar_prefetch = 0 : i64, scratch_operands = 1 : i64, tpu.core_type = #tpu.core_type<tc>, window_params = [{transform_indices = @transform_0, window_bounds = array<i64: 256, 384>}, {transform_indices = @transform_1, window_bounds = array<i64: 384, 256>}, {pipeline_mode = #tpu.pipeline_mode<synchronous>, transform_indices = @transform_2, window_bounds = array<i64: 1, 256>}, {transform_indices = @transform_3, window_bounds = array<i64: 256, 256>}]} {
    %c0_i32 = arith.constant 0 : i32
    %0 = arith.cmpi eq, %arg1, %c0_i32 : i32
    %1 = arith.extui %0 : i1 to i32
    %c0_i32_0 = arith.constant 0 : i32
    %2 = arith.cmpi ne, %1, %c0_i32_0 : i32
    scf.if %2 {
      %cst_9 = arith.constant 0.000000e+00 : f32
      %12 = vector.broadcast %cst_9 : f32 to vector<256x256xf32>
      %c0_10 = arith.constant 0 : index
      %c0_11 = arith.constant 0 : index
      %13 = vector.load %arg6[%c0_10, %c0_11] : memref<256x256xf32, #tpu.memory_space<vmem>>, vector<256x256xf32>
      tpu.vector_store %arg6[%c0_10, %c0_11], %12 {strides = array<i32>} : memref<256x256xf32, #tpu.memory_space<vmem>>, vector<256x256xf32>,
    } else {
    }
    %c0 = arith.constant 0 : index
    %c0_1 = arith.constant 0 : index
    %3 = vector.load %arg6[%c0, %c0_1] : memref<256x256xf32, #tpu.memory_space<vmem>>, vector<256x256xf32>
    %c0_2 = arith.constant 0 : index
    %c0_3 = arith.constant 0 : index
    %4 = vector.load %arg2[%c0_2, %c0_3] : memref<256x384xbf16, #tpu.memory_space<vmem>>, vector<256x384xbf16>
    %c0_4 = arith.constant 0 : index
    %c0_5 = arith.constant 0 : index
    %5 = vector.load %arg3[%c0_4, %c0_5] : memref<384x256xbf16, #tpu.memory_space<vmem>>, vector<384x256xbf16>
    %cst = arith.constant dense<0.000000e+00> : vector<256x256xf32>
    %6 = tpu.matmul %4, %5, %cst {dimension_numbers = #tpu.dot_dimension_numbers<[1], [0], [0], [1], [0, 0, 1, 1], [], []>} : vector<256x384xbf16>, vector<384x256xbf16>, vector<256x256xf32> -> vector<256x256xf32>
    %7 = arith.addf %3, %6 : vector<256x256xf32>
    %c0_6 = arith.constant 0 : index
    %c0_7 = arith.constant 0 : index
    %8 = vector.load %arg6[%c0_6, %c0_7] : memref<256x256xf32, #tpu.memory_space<vmem>>, vector<256x256xf32>
    tpu.vector_store %arg6[%c0_6, %c0_7], %7 {strides = array<i32>} : memref<256x256xf32, #tpu.memory_space<vmem>>, vector<256x256xf32>,
    %c5_i32 = arith.constant 5 : i32
    %9 = arith.cmpi eq, %arg1, %c5_i32 : i32
    %10 = arith.extui %9 : i1 to i32
    %c0_i32_8 = arith.constant 0 : i32
    %11 = arith.cmpi ne, %10, %c0_i32_8 : i32
    scf.if %11 {
      %c0_9 = arith.constant 0 : index
      %c0_10 = arith.constant 0 : index
      %12 = vector.load %arg6[%c0_9, %c0_10] : memref<256x256xf32, #tpu.memory_space<vmem>>, vector<256x256xf32>
      %c0_11 = arith.constant 0 : index
      %c0_12 = arith.constant 0 : index
      %13 = vector.load %arg4[%c0_11, %c0_12] : memref<1x256xf32, #tpu.memory_space<vmem>>, vector<1x256xf32>
      %14 = vector.broadcast %13 : vector<1x256xf32> to vector<256x256xf32>
      %15 = arith.addf %12, %14 : vector<256x256xf32>
      %cst_13 = arith.constant 0.000000e+00 : f32
      %16 = vector.broadcast %cst_13 : f32 to vector<256x256xf32>
      %17 = arith.maximumf %15, %16 : vector<256x256xf32>
      %18 = arith.truncf %17 : vector<256x256xf32> to vector<256x256xbf16>
      %c0_14 = arith.constant 0 : index
      %c0_15 = arith.constant 0 : index
      %19 = vector.load %arg5[%c0_14, %c0_15] : memref<256x256xbf16, #tpu.memory_space<vmem>>, vector<256x256xbf16>
      tpu.vector_store %arg5[%c0_14, %c0_15], %18 {strides = array<i32>} : memref<256x256xbf16, #tpu.memory_space<vmem>>, vector<256x256xbf16>,
    } else {
    }
    return
  }
  func.func @transform_0(%arg0: i32, %arg1: i32) -> (i32, i32) {
    %c0_i32 = arith.constant 0 : i32
    return %arg0, %arg1 : i32, i32
  }
  func.func @transform_1(%arg0: i32, %arg1: i32) -> (i32, i32) {
    %c0_i32 = arith.constant 0 : i32
    %c0_i32_0 = arith.constant 0 : i32
    return %arg1, %c0_i32 : i32, i32
  }
  func.func @transform_2(%arg0: i32, %arg1: i32) -> (i32, i32) {
    %c0_i32 = arith.constant 0 : i32
    %c0_i32_0 = arith.constant 0 : i32
    %c0_i32_1 = arith.constant 0 : i32
    return %c0_i32, %c0_i32_0 : i32, i32
  }
  func.func @transform_3(%arg0: i32, %arg1: i32) -> (i32, i32) {
    %c0_i32 = arith.constant 0 : i32
    %c0_i32_0 = arith.constant 0 : i32
    return %arg0, %c0_i32 : i32, i32
  }
}

</mosaic_0001>

<bundles_post_ra>
// kernel: deeplab1_forward.5
= control target key start
LH: loop header
LB: loop body
LE: loop exit
PB: predicated region body
PF: predicated region fallthrough
CT: control target
= control target key end

     0   :  { %s1430_s12 = smov 0   ;;  %s1432_s13 = smov 0   ;;  %s1567_s0 = inlined_call_operand.vmem [shape: bf16[512,128], index: 0, kind: input, shape index: {}]   ;;  %s1568_s1 = inlined_call_operand.vmem [shape: bf16[128,128], index: 1, kind: input, shape index: {}]   ;;  %s1569_s2 = inlined_call_operand.vmem [shape: f32[1,128], index: 2, kind: input, shape index: {}]   ;;  %s1570_s3 = inlined_call_operand.vmem [shape: bf16[512,128], index: 3, kind: output, shape index: {}]  }
   0x1   :  { %s1434_s14 = smov 0  }
   0x2 LB: > { %s25_s15 = sadd.s32 1, %s1404_s13  ;;  %p1059_p0 = scmp.ge.s32.totalorder %s1408_s14, 1  ;;  %s1408_s14 = sphi %s1434_s14, %s13_s14   ;;  %s1404_s13 = sphi %s1432_s13, %s1572_s13   ;;  %s1400_s12 = sphi %s1430_s12, %s1571_s12  }
   0x3   : > { %p27_p1 = scmp.ge.s32.totalorder %s25_s15, 2  ;;  %p166_p2 = scmp.lt.s32.totalorder %s1408_s14, 3 }
   0x5   : > { %s1574_s15 = smov (%p27_p1, %s25_s15), 0  ;;  %p167_p3 = pnand %p1059_p0, %p166_p2 }
   0x6   : > { %v1362_v0 = vld [vmem:[%s1568_s1] sm:$0xff] (!%p167_p3)   ;;  %s1060_s18 = sshll.u32 (!%p167_p3), %s1400_s12, 5  ;;  %v1363_v1 = vld [vmem:[%s1568_s1 + $0x8] sm:$0xff] (!%p167_p3)   ;;  %v1364_v2 = vld [vmem:[%s1568_s1 + $0x10] sm:$0xff] (!%p167_p3)  }
   0x7   : > { %170 = sbr.rel (%p167_p3) target bundleno = 285 (0x11d), region = 32  ;;  %p199_p4 = scmp.lt.s32.totalorder (!%p167_p3), %s1060_s18, 63  ;;  %1274 = vmatprep.subr.bf16.mxu0 (!%p167_p3), %v1362_v0  ;;  %1322 = vmatprep.subr.bf16.mxu1 (!%p167_p3), %v1362_v0  ;;  %v1365_v3 = vld [vmem:[%s1568_s1 + $0x18] sm:$0xff] (!%p167_p3)   ;;  %v1366_v6 = vld [vmem:[%s1568_s1 + $0x20] sm:$0xff] (!%p167_p3)   ;;  %v1367_v7 = vld [vmem:[%s1568_s1 + $0x28] sm:$0xff] (!%p167_p3)  }
   0x8   : > { %1275 = vmatpush3.bf16.msra.mxu0 (!%p167_p3), %v1362_v0  ;;  %1330 = vmatpush3.bf16.msra.mxu1 (!%p167_p3), %v1362_v0  ;;  %v1368_v8 = vld [vmem:[%s1568_s1 + $0x30] sm:$0xff] (!%p167_p3)   ;;  %v1369_v9 = vld [vmem:[%s1568_s1 + $0x38] sm:$0xff] (!%p167_p3)   ;;  %v1501_v24 = vld [vmem:[%s1569_s2] ss:$0 sm:$0xff] (!%p167_p3) }
   0x9   : > { %1276 = vmatprep.subr.bf16.mxu0 (!%p167_p3), %v1363_v1  ;;  %1323 = vmatprep.subr.bf16.mxu1 (!%p167_p3), %v1363_v1 }
   0xc   : > { %1277 = vmatpush3.bf16.msra.mxu0 (!%p167_p3), %v1363_v1  ;;  %1331 = vmatpush3.bf16.msra.mxu1 (!%p167_p3), %v1363_v1 }
   0xd   : > { %1278 = vmatprep.subr.bf16.mxu0 (!%p167_p3), %v1364_v2  ;;  %1324 = vmatprep.subr.bf16.mxu1 (!%p167_p3), %v1364_v2 }
   0xe   : > { %s1576_s18 = smov (!%p199_p4, %s1060_s18), 63 }
   0xf   : > { %s1061_s23 = sshll.u32 %s1576_s18, 2 }
  0x10   : > { %s1465_s26 = scalar_lea.vmem %s1567_s0, %s1061_s23  ;;  %1279 = vmatpush3.bf16.msra.mxu0 %v1364_v2  ;;  %1332 = vmatpush3.bf16.msra.mxu1 %v1364_v2  ;;  %s1516_s17 = scalar_lea.vmem %s1570_s3, %s1061_s23 }
  0x11   : > { %v1370_v4 = vld [vmem:[%s1465_s26] sm:$0xff]   ;;  %1280 = vmatprep.subr.bf16.mxu0 %v1365_v3  ;;  %1325 = vmatprep.subr.bf16.mxu1 %v1365_v3  ;;  %v1372_v10 = vld [vmem:[%s1465_s26 + $0x8] sm:$0xff]   ;;  %v1374_v12 = vld [vmem:[%s1465_s26 + $0x10] sm:$0xff]  }
  0x12   : > { %v1371_v5 = vld [vmem:[%s1465_s26 + $0x40] sm:$0xff]   ;;  %1290 = vmatprep.mubr.bf16.mxu0 %v1370_v4  ;;  %v1373_v11 = vld [vmem:[%s1465_s26 + $0x48] sm:$0xff]   ;;  %v1375_v13 = vld [vmem:[%s1465_s26 + $0x50] sm:$0xff]  }
  0x13   : > { %1306 = vmatprep.mubr.bf16.mxu1 %v1371_v5  ;;  %v1376_v14 = vld [vmem:[%s1465_s26 + $0x18] sm:$0xff]   ;;  %v1378_v16 = vld [vmem:[%s1465_s26 + $0x20] sm:$0xff]   ;;  %v1380_v18 = vld [vmem:[%s1465_s26 + $0x28] sm:$0xff]  }
  0x14   : > { %1281 = vmatpush3.bf16.msra.mxu0 %v1365_v3  ;;  %1333 = vmatpush3.bf16.msra.mxu1 %v1365_v3  ;;  %v1377_v15 = vld [vmem:[%s1465_s26 + $0x58] sm:$0xff]   ;;  %v1379_v17 = vld [vmem:[%s1465_s26 + $0x60] sm:$0xff]   ;;  %v1381_v19 = vld [vmem:[%s1465_s26 + $0x68] sm:$0xff]  }
  0x15   : > { %1282 = vmatprep.subr.bf16.mxu0 %v1366_v6  ;;  %1326 = vmatprep.subr.bf16.mxu1 %v1366_v6  ;;  %v1382_v20 = vld [vmem:[%s1465_s26 + $0x30] sm:$0xff]   ;;  %v1384_v22 = vld [vmem:[%s1465_s26 + $0x38] sm:$0xff]  }
  0x16   : > { %v1383_v21 = vld [vmem:[%s1465_s26 + $0x70] sm:$0xff]   ;;  %v1385_v23 = vld [vmem:[%s1465_s26 + $0x78] sm:$0xff]  }
  0x18   : > { %1283 = vmatpush3.bf16.msra.mxu0 %v1366_v6  ;;  %1334 = vmatpush3.bf16.msra.mxu1 %v1366_v6 }
  0x19   : > { %1284 = vmatprep.subr.bf16.mxu0 %v1367_v7  ;;  %1327 = vmatprep.subr.bf16.mxu1 %v1367_v7 }
  0x1c   : > { %1285 = vmatpush3.bf16.msra.mxu0 %v1367_v7  ;;  %1335 = vmatpush3.bf16.msra.mxu1 %v1367_v7 }
  0x1d   : > { %1286 = vmatprep.subr.bf16.mxu0 %v1368_v8  ;;  %1328 = vmatprep.subr.bf16.mxu1 %v1368_v8 }
  0x20   : > { %1287 = vmatpush3.bf16.msra.mxu0 %v1368_v8  ;;  %1336 = vmatpush3.bf16.msra.mxu1 %v1368_v8 }
  0x21   : > { %1288 = vmatprep.subr.bf16.mxu0 %v1369_v9  ;;  %1329 = vmatprep.subr.bf16.mxu1 %v1369_v9 }
  0x24   : > { %1289 = vmatpush3.bf16.msra.mxu0 %v1369_v9  ;;  %1337 = vmatpush3.bf16.msra.mxu1 %v1369_v9 }
  0x27   : > { %1291 = vmatmul.mubr.bf16.vlgmr.msra.gmra.mrb[0].mxu0 %v1372_v10  ;;  %1307 = vmatmul.mubr.bf16.vlgmr.msra.gmra.mrb[0].mxu1 %v1373_v11 }
  0x28   : > { %1294 = vmatprep.mubr.bf16.mxu0 %v1374_v12  ;;  %1310 = vmatprep.mubr.bf16.mxu1 %v1375_v13 }
  0x2f   : > { %1295 = vmatmul.mubr.bf16.gmra.mrb[4].mxu0 %v1376_v14  ;;  %1311 = vmatmul.mubr.bf16.gmra.mrb[4].mxu1 %v1377_v15 }
  0x30   : > { %1298 = vmatprep.mubr.bf16.mxu0 %v1378_v16  ;;  %1314 = vmatprep.mubr.bf16.mxu1 %v1379_v17 }
  0x37   : > { %1299 = vmatmul.mubr.bf16.gmra.mrb[8].mxu0 %v1380_v18  ;;  %1315 = vmatmul.mubr.bf16.gmra.mrb[8].mxu1 %v1381_v19 }
  0x38   : > { %1302 = vmatprep.mubr.bf16.mxu0 %v1382_v20  ;;  %1318 = vmatprep.mubr.bf16.mxu1 %v1383_v21 }
  0x3f   : > { %1303 = vmatmul.mubr.bf16.gmra.mrb[12].mxu0 %v1384_v22  ;;  %1319 = vmatmul.mubr.bf16.gmra.mrb[12].mxu1 %v1385_v23 }
  0xfa   : > { %v1292_v25 = vpop.f32.mrb[0].mxu0  ;;  %v1308_v26 = vpop.f32.mrb[0].mxu1 }
  0xfb   : > { %v749_v27 = vadd.f32 %v1292_v25, %v1501_v24  ;;  %v765_v28 = vadd.f32 %v1308_v26, %v1501_v24  ;;  %v514_v29 = vpop.f32.mrb[1].mxu0  ;;  %v578_v30 = vpop.f32.mrb[1].mxu1 }
  0xfc   : > { %v747_v31 = vadd.f32 %v1501_v24, %v514_v29  ;;  %v763_v32 = vadd.f32 %v1501_v24, %v578_v30  ;;  %v1293_v33 = vpop.f32.mrb[2].mxu0  ;;  %v1309_v34 = vpop.f32.mrb[2].mxu1 }
  0xfd   : > { %v750_v35 = vadd.f32 %v1293_v33, %v1501_v24  ;;  %v766_v36 = vadd.f32 %v1309_v34, %v1501_v24  ;;  %v517_v37 = vpop.f32.mrb[3].mxu0  ;;  %v581_v38 = vpop.f32.mrb[3].mxu1  ;;  %v781_v41 = vmax.f32 %v749_v27, 0.0  ;;  %v797_v42 = vmax.f32 %v765_v28, 0.0 }
  0xfe   : > { %v748_v39 = vadd.f32 %v1501_v24, %v517_v37  ;;  %v764_v40 = vadd.f32 %v1501_v24, %v581_v38  ;;  %v779_v45 = vmax.f32 %v747_v31, 0.0  ;;  %v795_v46 = vmax.f32 %v763_v32, 0.0 }
  0xff   : > { %v782_v43 = vmax.f32 %v750_v35, 0.0  ;;  %v798_v44 = vmax.f32 %v766_v36, 0.0 }
 0x100   : > { %v780_v47 = vmax.f32 %v748_v39, 0.0  ;;  %v796_v48 = vmax.f32 %v764_v40, 0.0 }
 0x101   : > { %v1163_v49 = vpack.c.bf16 %v782_v43, %v781_v41  ;;  %v1203_v50 = vpack.c.bf16 %v798_v44, %v797_v42 }
 0x102   : > { %v1158_v51 = vpack.c.bf16 %v780_v47, %v779_v45  ;;  %v1198_v52 = vpack.c.bf16 %v796_v48, %v795_v46  ;;  %v1296_v53 = vpop.f32.mrb[4].mxu0  ;;  %v1312_v54 = vpop.f32.mrb[4].mxu1 }
 0x103   : > { %1235 = vst [vmem:[%s1516_s17 + $0x8] sm:$0xff] %v1163_v49   ;;  %1243 = vst [vmem:[%s1516_s17 + $0x48] sm:$0xff] %v1203_v50   ;;  %v753_v55 = vadd.f32 %v1296_v53, %v1501_v24  ;;  %v769_v56 = vadd.f32 %v1312_v54, %v1501_v24  ;;  %v530_v57 = vpop.f32.mrb[5].mxu0  ;;  %v594_v58 = vpop.f32.mrb[5].mxu1 }
 0x104   : > { %1159 = vst [vmem:[%s1516_s17] sm:$0xff] %v1158_v51   ;;  %1242 = vst [vmem:[%s1516_s17 + $0x40] sm:$0xff] %v1198_v52   ;;  %v751_v59 = vadd.f32 %v1501_v24, %v530_v57  ;;  %v767_v60 = vadd.f32 %v1501_v24, %v594_v58  ;;  %v1297_v61 = vpop.f32.mrb[6].mxu0  ;;  %v1313_v62 = vpop.f32.mrb[6].mxu1 }
 0x105   : > { %v754_v63 = vadd.f32 %v1297_v61, %v1501_v24  ;;  %v770_v0 = vadd.f32 %v1313_v62, %v1501_v24  ;;  %v533_v1 = vpop.f32.mrb[7].mxu0  ;;  %v597_v2 = vpop.f32.mrb[7].mxu1  ;;  %v785_v5 = vmax.f32 %v753_v55, 0.0  ;;  %v801_v6 = vmax.f32 %v769_v56, 0.0 }
 0x106   : > { %v752_v3 = vadd.f32 %v1501_v24, %v533_v1  ;;  %v768_v4 = vadd.f32 %v1501_v24, %v597_v2  ;;  %v783_v9 = vmax.f32 %v751_v59, 0.0  ;;  %v799_v10 = vmax.f32 %v767_v60, 0.0 }
 0x107   : > { %v786_v7 = vmax.f32 %v754_v63, 0.0  ;;  %v802_v8 = vmax.f32 %v770_v0, 0.0 }
 0x108   : > { %v784_v11 = vmax.f32 %v752_v3, 0.0  ;;  %v800_v12 = vmax.f32 %v768_v4, 0.0 }
 0x109   : > { %v1173_v13 = vpack.c.bf16 %v786_v7, %v785_v5  ;;  %v1213_v14 = vpack.c.bf16 %v802_v8, %v801_v6 }
 0x10a   : > { %v1168_v15 = vpack.c.bf16 %v784_v11, %v783_v9  ;;  %v1208_v16 = vpack.c.bf16 %v800_v12, %v799_v10  ;;  %v1300_v17 = vpop.f32.mrb[8].mxu0  ;;  %v1316_v18 = vpop.f32.mrb[8].mxu1 }
 0x10b   : > { %1237 = vst [vmem:[%s1516_s17 + $0x18] sm:$0xff] %v1173_v13   ;;  %1245 = vst [vmem:[%s1516_s17 + $0x58] sm:$0xff] %v1213_v14   ;;  %v757_v19 = vadd.f32 %v1300_v17, %v1501_v24  ;;  %v773_v20 = vadd.f32 %v1316_v18, %v1501_v24  ;;  %v546_v21 = vpop.f32.mrb[9].mxu0  ;;  %v610_v22 = vpop.f32.mrb[9].mxu1 }
 0x10c   : > { %1236 = vst [vmem:[%s1516_s17 + $0x10] sm:$0xff] %v1168_v15   ;;  %1244 = vst [vmem:[%s1516_s17 + $0x50] sm:$0xff] %v1208_v16   ;;  %v755_v23 = vadd.f32 %v1501_v24, %v546_v21  ;;  %v771_v25 = vadd.f32 %v1501_v24, %v610_v22  ;;  %v1301_v26 = vpop.f32.mrb[10].mxu0  ;;  %v1317_v27 = vpop.f32.mrb[10].mxu1 }
 0x10d   : > { %v758_v28 = vadd.f32 %v1301_v26, %v1501_v24  ;;  %v774_v29 = vadd.f32 %v1317_v27, %v1501_v24  ;;  %v549_v30 = vpop.f32.mrb[11].mxu0  ;;  %v613_v31 = vpop.f32.mrb[11].mxu1  ;;  %v789_v34 = vmax.f32 %v757_v19, 0.0  ;;  %v805_v35 = vmax.f32 %v773_v20, 0.0 }
 0x10e   : > { %v756_v32 = vadd.f32 %v1501_v24, %v549_v30  ;;  %v772_v33 = vadd.f32 %v1501_v24, %v613_v31  ;;  %v787_v38 = vmax.f32 %v755_v23, 0.0  ;;  %v803_v39 = vmax.f32 %v771_v25, 0.0 }
 0x10f   : > { %v790_v36 = vmax.f32 %v758_v28, 0.0  ;;  %v806_v37 = vmax.f32 %v774_v29, 0.0 }
 0x110   : > { %v788_v40 = vmax.f32 %v756_v32, 0.0  ;;  %v804_v41 = vmax.f32 %v772_v33, 0.0 }
 0x111   : > { %v1183_v42 = vpack.c.bf16 %v790_v36, %v789_v34  ;;  %v1223_v43 = vpack.c.bf16 %v806_v37, %v805_v35 }
 0x112   : > { %v1178_v44 = vpack.c.bf16 %v788_v40, %v787_v38  ;;  %v1218_v45 = vpack.c.bf16 %v804_v41, %v803_v39  ;;  %v1304_v46 = vpop.f32.mrb[12].mxu0  ;;  %v1320_v47 = vpop.f32.mrb[12].mxu1 }
 0x113   : > { %1239 = vst [vmem:[%s1516_s17 + $0x28] sm:$0xff] %v1183_v42   ;;  %1247 = vst [vmem:[%s1516_s17 + $0x68] sm:$0xff] %v1223_v43   ;;  %v761_v48 = vadd.f32 %v1304_v46, %v1501_v24  ;;  %v777_v49 = vadd.f32 %v1320_v47, %v1501_v24  ;;  %v562_v50 = vpop.f32.mrb[13].mxu0  ;;  %v626_v51 = vpop.f32.mrb[13].mxu1 }
 0x114   : > { %1238 = vst [vmem:[%s1516_s17 + $0x20] sm:$0xff] %v1178_v44   ;;  %1246 = vst [vmem:[%s1516_s17 + $0x60] sm:$0xff] %v1218_v45   ;;  %v759_v52 = vadd.f32 %v1501_v24, %v562_v50  ;;  %v775_v53 = vadd.f32 %v1501_v24, %v626_v51  ;;  %v1305_v54 = vpop.f32.mrb[14].mxu0  ;;  %v1321_v55 = vpop.f32.mrb[14].mxu1 }
 0x115   : > { %v762_v56 = vadd.f32 %v1305_v54, %v1501_v24  ;;  %v778_v57 = vadd.f32 %v1321_v55, %v1501_v24  ;;  %v565_v58 = vpop.f32.mrb[15].mxu0  ;;  %v629_v59 = vpop.f32.mrb[15].mxu1  ;;  %v793_v62 = vmax.f32 %v761_v48, 0.0  ;;  %v809_v63 = vmax.f32 %v777_v49, 0.0 }
 0x116   : > { %v760_v60 = vadd.f32 %v1501_v24, %v565_v58  ;;  %v776_v61 = vadd.f32 %v1501_v24, %v629_v59  ;;  %v791_v2 = vmax.f32 %v759_v52, 0.0  ;;  %v807_v3 = vmax.f32 %v775_v53, 0.0 }
 0x117   : > { %v794_v0 = vmax.f32 %v762_v56, 0.0  ;;  %v810_v1 = vmax.f32 %v778_v57, 0.0 }
 0x118   : > { %v792_v4 = vmax.f32 %v760_v60, 0.0  ;;  %v808_v5 = vmax.f32 %v776_v61, 0.0 }
 0x119   : > { %v1193_v6 = vpack.c.bf16 %v794_v0, %v793_v62  ;;  %v1233_v7 = vpack.c.bf16 %v810_v1, %v809_v63 }
 0x11a   : > { %v1188_v8 = vpack.c.bf16 %v792_v4, %v791_v2  ;;  %v1228_v9 = vpack.c.bf16 %v808_v5, %v807_v3 }
 0x11b   : > { %1241 = vst [vmem:[%s1516_s17 + $0x38] sm:$0xff] %v1193_v6   ;;  %1249 = vst [vmem:[%s1516_s17 + $0x78] sm:$0xff] %v1233_v7  }
 0x11c   : > { %1240 = vst [vmem:[%s1516_s17 + $0x30] sm:$0xff] %v1188_v8   ;;  %1248 = vst [vmem:[%s1516_s17 + $0x70] sm:$0xff] %v1228_v9  }
 0x11d PF: > { %s13_s14 = sadd.s32 1, %s1408_s14   ;;  %s1571_s12 = smov %s1404_s13 }
 0x11e   : > { %p10_p5 = scmp.ge.s32.totalorder %s13_s14, 4   ;;  %s1572_s13 = smov %s1574_s15 }
 0x120   :  { %12 = sbr.rel (!%p10_p5) target bundleno = 2 (0x2), region = 73 }

// kernel: deeplab1_forward.4
= control target key start
LH: loop header
LB: loop body
LE: loop exit
PB: predicated region body
PF: predicated region fallthrough
CT: control target
= control target key end

     0   :  { %s7332_s1 = inlined_call_operand.vmem [shape: bf16[512,1024], index: 1, kind: input, shape index: {}]   ;;  %s7333_s0 = inlined_call_operand.vmem [shape: bf16[128,512], index: 0, kind: input, shape index: {}]   ;;  %s7334_s3 = inlined_call_operand.vmem [shape: bf16[1024,256], index: 3, kind: input, shape index: {}]   ;;  %s7335_s2 = inlined_call_operand.vmem [shape: f32[1,1024], index: 2, kind: input, shape index: {}]   ;;  %s7336_s4 = inlined_call_operand.vmem [shape: f32[128,256], index: 4, kind: input, shape index: {}]   ;;  %s7337_s5 = inlined_call_operand.vmem [shape: bf16[128,256], index: 5, kind: output, shape index: {}]  }
   0x1   :  { %v52_v0 = vld [vmem:[%s7332_s1] sm:$0xff]  ;;  %v54_v39 = vld [vmem:[%s7332_s1 + $0x10] sm:$0xff] }
   0x2   :  { %v56_v1 = vld [vmem:[%s7332_s1 + $0x20] sm:$0xff]  ;;  %v58_v40 = vld [vmem:[%s7332_s1 + $0x30] sm:$0xff] }
   0x3   :  { %v60_v2 = vld [vmem:[%s7332_s1 + $0x40] sm:$0xff]  ;;  %v4319_v3 = vcombine.high %v52_v0, %v56_v1  ;;  %v4318_v4 = vcombine.low %v52_v0, %v56_v1  ;;  %v4323_v42 = vcombine.high %v54_v39, %v58_v40  ;;  %v4322_v43 = vcombine.low %v54_v39, %v58_v40  ;;  %v62_v46 = vld [vmem:[%s7332_s1 + $0x50] sm:$0xff] }
   0x4   :  { %v64_v5 = vld [vmem:[%s7332_s1 + $0x60] sm:$0xff]  ;;  %v66_v47 = vld [vmem:[%s7332_s1 + $0x70] sm:$0xff] }
   0x5   :  { %v4327_v6 = vcombine.high %v60_v2, %v64_v5  ;;  %v68_v7 = vld [vmem:[%s7332_s1 + $0x80] sm:$0xff]  ;;  %1790 = vmatprep.subr.bf16.mxu1 %v4319_v3  ;;  %v4326_v9 = vcombine.low %v60_v2, %v64_v5  ;;  %2242 = vmatprep.subr.bf16.mxu0 %v4323_v42  ;;  %v4331_v49 = vcombine.high %v62_v46, %v66_v47  ;;  %v70_v51 = vld [vmem:[%s7332_s1 + $0x90] sm:$0xff] }
   0x6   :  { %v72_v8 = vld [vmem:[%s7332_s1 + $0xa0] sm:$0xff]  ;;  %1791 = vmatpush1.bf16.msra.mxu1 %v4318_v4  ;;  %2243 = vmatpush1.bf16.msra.mxu0 %v4322_v43  ;;  %v4330_v50 = vcombine.low %v62_v46, %v66_v47  ;;  %v74_v52 = vld [vmem:[%s7332_s1 + $0xb0] sm:$0xff] }
   0x7   :  { %1792 = vmatprep.subr.bf16.mxu1 %v4327_v6  ;;  %v4335_v10 = vcombine.high %v68_v7, %v72_v8  ;;  %v76_v11 = vld [vmem:[%s7332_s1 + $0xc0] sm:$0xff]  ;;  %v4334_v13 = vcombine.low %v68_v7, %v72_v8  ;;  %v4339_v54 = vcombine.high %v70_v51, %v74_v52  ;;  %2244 = vmatprep.subr.bf16.mxu0 %v4331_v49  ;;  %v78_v57 = vld [vmem:[%s7332_s1 + $0xd0] sm:$0xff] }
   0x8   :  { %v80_v12 = vld [vmem:[%s7332_s1 + $0xe0] sm:$0xff]  ;;  %v82_v58 = vld [vmem:[%s7332_s1 + $0xf0] sm:$0xff]  ;;  %v4338_v60 = vcombine.low %v70_v51, %v74_v52 }
   0x9   :  { %v4343_v14 = vcombine.high %v76_v11, %v80_v12  ;;  %v84_v15 = vld [vmem:[%s7332_s1 + $0x100] sm:$0xff]  ;;  %v4342_v18 = vcombine.low %v76_v11, %v80_v12  ;;  %v4347_v63 = vcombine.high %v78_v57, %v82_v58  ;;  %v86_v1 = vld [vmem:[%s7332_s1 + $0x110] sm:$0xff]  ;;  %v4346_v4 = vcombine.low %v78_v57, %v82_v58 }
   0xa   :  { %1793 = vmatpush1.bf16.msra.mxu1 %v4326_v9  ;;  %v88_v16 = vld [vmem:[%s7332_s1 + $0x120] sm:$0xff]  ;;  %2245 = vmatpush1.bf16.msra.mxu0 %v4330_v50  ;;  %v90_v2 = vld [vmem:[%s7332_s1 + $0x130] sm:$0xff] }
   0xb   :  { %1794 = vmatprep.subr.bf16.mxu1 %v4335_v10  ;;  %v5118_v17 = vld [vmem:[%s7333_s0 + $0x4] ss:$16 sps:$4 sm:$0xff]   ;;  %v4351_v19 = vcombine.high %v84_v15, %v88_v16  ;;  %v4350_v22 = vcombine.low %v84_v15, %v88_v16  ;;  %2246 = vmatprep.subr.bf16.mxu0 %v4339_v54  ;;  %v4355_v7 = vcombine.high %v86_v1, %v90_v2 }
   0xc   :  { %1822 = vmatprep.mubr.bf16.mxu1 %v5118_v17  ;;  %v92_v20 = vld [vmem:[%s7332_s1 + $0x140] sm:$0xff]  ;;  %2274 = vmatprep.mubr.bf16.mxu0 %v5118_v17  ;;  %v94_v9 = vld [vmem:[%s7332_s1 + $0x150] sm:$0xff]  ;;  %v4354_v12 = vcombine.low %v86_v1, %v90_v2 }
   0xd   :  { %v96_v21 = vld [vmem:[%s7332_s1 + $0x160] sm:$0xff]  ;;  %v98_v10 = vld [vmem:[%s7332_s1 + $0x170] sm:$0xff] }
   0xe   :  { %1795 = vmatpush1.bf16.msra.mxu1 %v4334_v13  ;;  %v4359_v23 = vcombine.high %v92_v20, %v96_v21  ;;  %v100_v24 = vld [vmem:[%s7332_s1 + $0x180] sm:$0xff]  ;;  %v4358_v26 = vcombine.low %v92_v20, %v96_v21  ;;  %2247 = vmatpush1.bf16.msra.mxu0 %v4338_v60  ;;  %v4363_v15 = vcombine.high %v94_v9, %v98_v10  ;;  %v102_v17 = vld [vmem:[%s7332_s1 + $0x190] sm:$0xff] }
   0xf   :  { %1796 = vmatprep.subr.bf16.mxu1 %v4343_v14  ;;  %v104_v25 = vld [vmem:[%s7332_s1 + $0x1a0] sm:$0xff]  ;;  %2248 = vmatprep.subr.bf16.mxu0 %v4347_v63  ;;  %v4362_v20 = vcombine.low %v94_v9, %v98_v10  ;;  %v126_v42 = vld [vmem:[%s7332_s1 + $0x250] sm:$0xff] }
  0x10   :  { %v4367_v27 = vcombine.high %v100_v24, %v104_v25  ;;  %v108_v28 = vld [vmem:[%s7332_s1 + $0x1c0] sm:$0xff]  ;;  %v4366_v30 = vcombine.low %v100_v24, %v104_v25  ;;  %v110_v25 = vld [vmem:[%s7332_s1 + $0x1d0] sm:$0xff] }
  0x11   :  { %v112_v29 = vld [vmem:[%s7332_s1 + $0x1e0] sm:$0xff]  ;;  %v130_v43 = vld [vmem:[%s7332_s1 + $0x270] sm:$0xff] }
  0x12   :  { %1797 = vmatpush1.bf16.msra.mxu1 %v4342_v18  ;;  %v4375_v31 = vcombine.high %v108_v28, %v112_v29  ;;  %v116_v32 = vld [vmem:[%s7332_s1 + $0x200] sm:$0xff]  ;;  %v4374_v34 = vcombine.low %v108_v28, %v112_v29  ;;  %2249 = vmatpush1.bf16.msra.mxu0 %v4346_v4  ;;  %v106_v18 = vld [vmem:[%s7332_s1 + $0x1b0] sm:$0xff]  ;;  %v4395_v50 = vcombine.high %v126_v42, %v130_v43 }
  0x13   :  { %1798 = vmatprep.subr.bf16.mxu1 %v4351_v19  ;;  %v120_v33 = vld [vmem:[%s7332_s1 + $0x220] sm:$0xff]  ;;  %2250 = vmatprep.subr.bf16.mxu0 %v4355_v7  ;;  %v4370_v28 = vcombine.low %v102_v17, %v106_v18  ;;  %v134_v51 = vld [vmem:[%s7332_s1 + $0x290] sm:$0xff] }
  0x14   :  { %v4383_v35 = vcombine.high %v116_v32, %v120_v33  ;;  %v124_v36 = vld [vmem:[%s7332_s1 + $0x240] sm:$0xff]  ;;  %v4382_v38 = vcombine.low %v116_v32, %v120_v33  ;;  %v118_v33 = vld [vmem:[%s7332_s1 + $0x210] sm:$0xff] }
  0x15   :  { %v128_v37 = vld [vmem:[%s7332_s1 + $0x260] sm:$0xff]  ;;  %v138_v52 = vld [vmem:[%s7332_s1 + $0x2b0] sm:$0xff] }
  0x16   :  { %1799 = vmatpush1.bf16.msra.mxu1 %v4350_v22  ;;  %v4391_v41 = vcombine.high %v124_v36, %v128_v37  ;;  %v132_v44 = vld [vmem:[%s7332_s1 + $0x280] sm:$0xff]  ;;  %v4390_v48 = vcombine.low %v124_v36, %v128_v37  ;;  %2251 = vmatpush1.bf16.msra.mxu0 %v4354_v12  ;;  %v4403_v58 = vcombine.high %v134_v51, %v138_v52  ;;  %v142_v60 = vld [vmem:[%s7332_s1 + $0x2d0] sm:$0xff] }
  0x17   :  { %1800 = vmatprep.subr.bf16.mxu1 %v4359_v23  ;;  %v136_v45 = vld [vmem:[%s7332_s1 + $0x2a0] sm:$0xff]  ;;  %2252 = vmatprep.subr.bf16.mxu0 %v4363_v15  ;;  %v4371_v23 = vcombine.high %v102_v17, %v106_v18  ;;  %v4402_v1 = vcombine.low %v134_v51, %v138_v52  ;;  %v162_v15 = vld [vmem:[%s7332_s1 + $0x370] sm:$0xff] }
  0x18   :  { %v4399_v53 = vcombine.high %v132_v44, %v136_v45  ;;  %v140_v55 = vld [vmem:[%s7332_s1 + $0x2c0] sm:$0xff]  ;;  %v4398_v59 = vcombine.low %v132_v44, %v136_v45 }
  0x19   :  { %v144_v56 = vld [vmem:[%s7332_s1 + $0x2e0] sm:$0xff] }
  0x1a   :  { %1801 = vmatpush1.bf16.msra.mxu1 %v4358_v26  ;;  %v4407_v61 = vcombine.high %v140_v55, %v144_v56  ;;  %v148_v62 = vld [vmem:[%s7332_s1 + $0x300] sm:$0xff]  ;;  %v4406_v3 = vcombine.low %v140_v55, %v144_v56  ;;  %v114_v26 = vld [vmem:[%s7332_s1 + $0x1f0] sm:$0xff]  ;;  %2253 = vmatpush1.bf16.msra.mxu0 %v4362_v20  ;;  %v4394_v55 = vcombine.low %v126_v42, %v130_v43 }
  0x1b   :  { %1802 = vmatprep.subr.bf16.mxu1 %v4367_v27  ;;  %v152_v0 = vld [vmem:[%s7332_s1 + $0x320] sm:$0xff]  ;;  %2254 = vmatprep.subr.bf16.mxu0 %v4371_v23  ;;  %v4378_v36 = vcombine.low %v110_v25, %v114_v26  ;;  %v166_v23 = vld [vmem:[%s7332_s1 + $0x390] sm:$0xff] }
  0x1c   :  { %v4415_v5 = vcombine.high %v148_v62, %v152_v0  ;;  %v156_v6 = vld [vmem:[%s7332_s1 + $0x340] sm:$0xff]  ;;  %v4414_v11 = vcombine.low %v148_v62, %v152_v0  ;;  %v182_v42 = vld [vmem:[%s7332_s1 + $0x410] sm:$0xff] }
  0x1d   :  { %v160_v8 = vld [vmem:[%s7332_s1 + $0x360] sm:$0xff]  ;;  %v186_v43 = vld [vmem:[%s7332_s1 + $0x430] sm:$0xff] }
  0x1e   :  { %1803 = vmatpush1.bf16.msra.mxu1 %v4366_v30  ;;  %v4423_v13 = vcombine.high %v156_v6, %v160_v8  ;;  %v164_v14 = vld [vmem:[%s7332_s1 + $0x380] sm:$0xff]  ;;  %v4422_v19 = vcombine.low %v156_v6, %v160_v8  ;;  %2255 = vmatpush1.bf16.msra.mxu0 %v4370_v28  ;;  %v154_v6 = vld [vmem:[%s7332_s1 + $0x330] sm:$0xff] }
  0x1f   :  { %1804 = vmatprep.subr.bf16.mxu1 %v4375_v31  ;;  %v168_v16 = vld [vmem:[%s7332_s1 + $0x3a0] sm:$0xff]  ;;  %v4379_v31 = vcombine.high %v110_v25, %v114_v26 }
  0x20   :  { %v4431_v21 = vcombine.high %v164_v14, %v168_v16  ;;  %v172_v22 = vld [vmem:[%s7332_s1 + $0x3c0] sm:$0xff]  ;;  %v4430_v27 = vcombine.low %v164_v14, %v168_v16  ;;  %v158_v14 = vld [vmem:[%s7332_s1 + $0x350] sm:$0xff] }
  0x21   :  { %v176_v24 = vld [vmem:[%s7332_s1 + $0x3e0] sm:$0xff]  ;;  %2256 = vmatprep.subr.bf16.mxu0 %v4379_v31 }
  0x22   :  { %1805 = vmatpush1.bf16.msra.mxu1 %v4374_v34  ;;  %v4439_v29 = vcombine.high %v172_v22, %v176_v24  ;;  %v180_v30 = vld [vmem:[%s7332_s1 + $0x400] sm:$0xff]  ;;  %v122_v34 = vld [vmem:[%s7332_s1 + $0x230] sm:$0xff]  ;;  %2257 = vmatpush1.bf16.msra.mxu0 %v4378_v36 }
  0x23   :  { %1806 = vmatprep.subr.bf16.mxu1 %v4383_v35  ;;  %v184_v32 = vld [vmem:[%s7332_s1 + $0x420] sm:$0xff]  ;;  %v4438_v35 = vcombine.low %v172_v22, %v176_v24  ;;  %v4386_v47 = vcombine.low %v118_v33, %v122_v34  ;;  %v4427_v22 = vcombine.high %v158_v14, %v162_v15  ;;  %v170_v24 = vld [vmem:[%s7332_s1 + $0x3b0] sm:$0xff] }
  0x24   :  { %v4447_v37 = vcombine.high %v180_v30, %v184_v32  ;;  %v188_v39 = vld [vmem:[%s7332_s1 + $0x440] sm:$0xff]  ;;  %v4446_v44 = vcombine.low %v180_v30, %v184_v32  ;;  %v4435_v30 = vcombine.high %v166_v23, %v170_v24  ;;  %v174_v32 = vld [vmem:[%s7332_s1 + $0x3d0] sm:$0xff] }
  0x25   :  { %v192_v40 = vld [vmem:[%s7332_s1 + $0x460] sm:$0xff] }
  0x26   :  { %1807 = vmatpush1.bf16.msra.mxu1 %v4382_v38  ;;  %v4387_v38 = vcombine.high %v118_v33, %v122_v34  ;;  %v5600_v45 = vld [vmem:[%s7333_s0 + $0x24] ss:$16 sps:$4 sm:$0xff]   ;;  %v4455_v46 = vcombine.high %v188_v39, %v192_v40  ;;  %v5697_v31 = vld [vmem:[%s7333_s0 + $0x60] ss:$16 sps:$4 sm:$0xff]  }
  0x27   :  { %1808 = vmatprep.subr.bf16.mxu1 %v4391_v41  ;;  %v5589_v41 = vld [vmem:[%s7333_s0] ss:$16 sps:$4 sm:$0xff]   ;;  %v5636_v63 = vld [vmem:[%s7333_s0 + $0x44] ss:$16 sps:$4 sm:$0xff]  }
  0x28   :  { %2258 = vmatprep.subr.bf16.mxu0 %v4387_v38  ;;  %v200_v49 = vld [vmem:[%s7332_s1 + $0x4a0] sm:$0xff]  ;;  %v178_v33 = vld [vmem:[%s7332_s1 + $0x3f0] sm:$0xff] }
  0x29   :  { %2259 = vmatpush1.bf16.msra.mxu0 %v4386_v47  ;;  %v204_v56 = vld [vmem:[%s7332_s1 + $0x4c0] sm:$0xff]  ;;  %v4442_v47 = vcombine.low %v174_v32, %v178_v33 }
  0x2a   :  { %1809 = vmatpush1.bf16.msra.mxu1 %v4390_v48  ;;  %v196_v48 = vld [vmem:[%s7332_s1 + $0x480] sm:$0xff]  ;;  %2260 = vmatprep.subr.bf16.mxu0 %v4395_v50  ;;  %v4451_v50 = vcombine.high %v182_v42, %v186_v43 }
  0x2b   :  { %1810 = vmatprep.subr.bf16.mxu1 %v4399_v53  ;;  %v4454_v53 = vcombine.low %v188_v39, %v192_v40  ;;  %v4463_v54 = vcombine.high %v196_v48, %v200_v49  ;;  %v208_v57 = vld [vmem:[%s7332_s1 + $0x4e0] sm:$0xff]  ;;  %v4462_v62 = vcombine.low %v196_v48, %v200_v49  ;;  %v4443_v40 = vcombine.high %v174_v32, %v178_v33 }
  0x2c   :  { %v4471_v0 = vcombine.high %v204_v56, %v208_v57  ;;  %v212_v2 = vld [vmem:[%s7332_s1 + $0x500] sm:$0xff]  ;;  %v4470_v7 = vcombine.low %v204_v56, %v208_v57 }
  0x2d   :  { %2261 = vmatpush1.bf16.msra.mxu0 %v4394_v55  ;;  %v220_v10 = vld [vmem:[%s7332_s1 + $0x540] sm:$0xff]  ;;  %v194_v55 = vld [vmem:[%s7332_s1 + $0x470] sm:$0xff] }
  0x2e   :  { %1811 = vmatpush1.bf16.msra.mxu1 %v4398_v59  ;;  %v5625_v59 = vld [vmem:[%s7333_s0 + $0x20] ss:$16 sps:$4 sm:$0xff]   ;;  %2262 = vmatprep.subr.bf16.mxu0 %v4403_v58  ;;  %v5672_v17 = vld [vmem:[%s7333_s0 + $0x64] ss:$16 sps:$4 sm:$0xff]  }
  0x2f   :  { %1812 = vmatprep.subr.bf16.mxu1 %v4407_v61  ;;  %v146_v61 = vld [vmem:[%s7332_s1 + $0x2f0] sm:$0xff]  ;;  %v228_v20 = vld [vmem:[%s7332_s1 + $0x580] sm:$0xff] }
  0x30   :  { %v4411_v4 = vcombine.high %v142_v60, %v146_v61  ;;  %v4410_v9 = vcombine.low %v142_v60, %v146_v61  ;;  %v236_v28 = vld [vmem:[%s7332_s1 + $0x5c0] sm:$0xff]  ;;  %v4450_v60 = vcombine.low %v182_v42, %v186_v43 }
  0x31   :  { %2263 = vmatpush1.bf16.msra.mxu0 %v4402_v1  ;;  %v244_v38 = vld [vmem:[%s7332_s1 + $0x600] sm:$0xff]  ;;  %v202_v1 = vld [vmem:[%s7332_s1 + $0x4b0] sm:$0xff] }
  0x32   :  { %1813 = vmatpush1.bf16.msra.mxu1 %v4406_v3  ;;  %v216_v3 = vld [vmem:[%s7332_s1 + $0x520] sm:$0xff]  ;;  %2264 = vmatprep.subr.bf16.mxu0 %v4411_v4 }
  0x33   :  { %1814 = vmatprep.subr.bf16.mxu1 %v4415_v5  ;;  %v150_v5 = vld [vmem:[%s7332_s1 + $0x310] sm:$0xff]  ;;  %v4479_v8 = vcombine.high %v212_v2, %v216_v3  ;;  %v4478_v16 = vcombine.low %v212_v2, %v216_v3  ;;  %v248_v39 = vld [vmem:[%s7332_s1 + $0x620] sm:$0xff] }
  0x34   :  { %v4419_v12 = vcombine.high %v150_v5, %v154_v6  ;;  %v252_v48 = vld [vmem:[%s7332_s1 + $0x640] sm:$0xff]  ;;  %v4510_v52 = vcombine.low %v244_v38, %v248_v39 }
  0x35   :  { %2265 = vmatpush1.bf16.msra.mxu0 %v4410_v9  ;;  %v256_v49 = vld [vmem:[%s7332_s1 + $0x660] sm:$0xff]  ;;  %v206_v9 = vld [vmem:[%s7332_s1 + $0x4d0] sm:$0xff] }
  0x36   :  { %1815 = vmatpush1.bf16.msra.mxu1 %v4414_v11  ;;  %v224_v11 = vld [vmem:[%s7332_s1 + $0x560] sm:$0xff]  ;;  %2266 = vmatprep.subr.bf16.mxu0 %v4419_v12  ;;  %v4519_v56 = vcombine.high %v252_v48, %v256_v49 }
  0x37   :  { %1816 = vmatprep.subr.bf16.mxu1 %v4423_v13  ;;  %v5661_v13 = vld [vmem:[%s7333_s0 + $0x40] ss:$16 sps:$4 sm:$0xff]   ;;  %v4487_v18 = vcombine.high %v220_v10, %v224_v11  ;;  %v4486_v25 = vcombine.low %v220_v10, %v224_v11 }
  0x38   :  { %v5733_v51 = vld [vmem:[%s7333_s0 + $0x80] ss:$16 sps:$4 sm:$0xff]  }
  0x39   :  { %v260_v57 = vld [vmem:[%s7332_s1 + $0x680] sm:$0xff] }
  0x3a   :  { %1817 = vmatpush1.bf16.msra.mxu1 %v4422_v19  ;;  %v4418_v19 = vcombine.low %v150_v5, %v154_v6  ;;  %v264_v58 = vld [vmem:[%s7332_s1 + $0x6a0] sm:$0xff] }
  0x3b   :  { %1818 = vmatprep.subr.bf16.mxu1 %v4431_v21  ;;  %v232_v21 = vld [vmem:[%s7332_s1 + $0x5a0] sm:$0xff]  ;;  %v4527_v2 = vcombine.high %v260_v57, %v264_v58 }
  0x3c   :  { %v4495_v26 = vcombine.high %v228_v20, %v232_v21  ;;  %2267 = vmatpush1.bf16.msra.mxu0 %v4418_v19  ;;  %v4494_v34 = vcombine.low %v228_v20, %v232_v21  ;;  %v268_v3 = vld [vmem:[%s7332_s1 + $0x6c0] sm:$0xff]  ;;  %v218_v19 = vld [vmem:[%s7332_s1 + $0x530] sm:$0xff] }
  0x3d   :  { %2268 = vmatprep.subr.bf16.mxu0 %v4427_v22  ;;  %v272_v4 = vld [vmem:[%s7332_s1 + $0x6e0] sm:$0xff] }
  0x3e   :  { %1819 = vmatpush1.bf16.msra.mxu1 %v4430_v27  ;;  %v4426_v27 = vcombine.low %v158_v14, %v162_v15  ;;  %v5771_v6 = vld [vmem:[%s7333_s0 + $0xa0] ss:$16 sps:$4 sm:$0xff]   ;;  %v4535_v10 = vcombine.high %v268_v3, %v272_v4 }
  0x3f   :  { %1820 = vmatprep.subr.bf16.mxu1 %v4439_v29  ;;  %v240_v29 = vld [vmem:[%s7332_s1 + $0x5e0] sm:$0xff] }
  0x40   :  { %v4503_v36 = vcombine.high %v236_v28, %v240_v29  ;;  %2269 = vmatpush1.bf16.msra.mxu0 %v4426_v27  ;;  %v276_v11 = vld [vmem:[%s7332_s1 + $0x700] sm:$0xff]  ;;  %v222_v27 = vld [vmem:[%s7332_s1 + $0x550] sm:$0xff] }
  0x41   :  { %2270 = vmatprep.subr.bf16.mxu0 %v4435_v30  ;;  %v280_v12 = vld [vmem:[%s7332_s1 + $0x720] sm:$0xff] }
  0x42   :  { %1821 = vmatpush1.bf16.msra.mxu1 %v4438_v35  ;;  %v5708_v35 = vld [vmem:[%s7333_s0 + $0x84] ss:$16 sps:$4 sm:$0xff]   ;;  %v4543_v20 = vcombine.high %v276_v11, %v280_v12  ;;  %v5847_v43 = vld [vmem:[%s7333_s0 + $0xe0] ss:$16 sps:$4 sm:$0xff]  }
  0x43   :  { %1903 = vmatprep.subr.bf16.mxu1 %v4447_v37  ;;  %v4434_v37 = vcombine.low %v166_v23, %v170_v24  ;;  %v284_v21 = vld [vmem:[%s7332_s1 + $0x740] sm:$0xff] }
  0x44   :  { %v288_v22 = vld [vmem:[%s7332_s1 + $0x760] sm:$0xff] }
  0x45   :  { %1823 = vmatmul.mubr.bf16.vlgmr.msra.gmra.mrb[0].mxu1 %v5589_v41  ;;  %2271 = vmatpush1.bf16.msra.mxu0 %v4434_v37  ;;  %v5809_v24 = vld [vmem:[%s7333_s0 + $0xc0] ss:$16 sps:$4 sm:$0xff]  }
  0x46   :  { %1904 = vmatpush1.bf16.msra.mxu1 %v4446_v44  ;;  %1832 = vmatprep.mubr.bf16.mxu1 %v5600_v45  ;;  %v4502_v44 = vcombine.low %v236_v28, %v240_v29  ;;  %v4551_v28 = vcombine.high %v284_v21, %v288_v22  ;;  %v292_v29 = vld [vmem:[%s7332_s1 + $0x780] sm:$0xff]  ;;  %v234_v37 = vld [vmem:[%s7332_s1 + $0x5b0] sm:$0xff] }
  0x47   :  { %1905 = vmatprep.subr.bf16.mxu1 %v4455_v46  ;;  %v4511_v46 = vcombine.high %v244_v38, %v248_v39  ;;  %2272 = vmatprep.subr.bf16.mxu0 %v4443_v40  ;;  %v296_v30 = vld [vmem:[%s7332_s1 + $0x7a0] sm:$0xff] }
  0x48   :  { %v4559_v38 = vcombine.high %v292_v29, %v296_v30  ;;  %v300_v39 = vld [vmem:[%s7332_s1 + $0x7c0] sm:$0xff] }
  0x49   :  { %2273 = vmatpush1.bf16.msra.mxu0 %v4442_v47  ;;  %v304_v40 = vld [vmem:[%s7332_s1 + $0x7e0] sm:$0xff]  ;;  %v238_v47 = vld [vmem:[%s7332_s1 + $0x5d0] sm:$0xff] }
  0x4a   :  { %1906 = vmatpush1.bf16.msra.mxu1 %v4454_v53  ;;  %v5738_v53 = vld [vmem:[%s7333_s0 + $0xa4] ss:$16 sps:$4 sm:$0xff]   ;;  %2355 = vmatprep.subr.bf16.mxu0 %v4451_v50  ;;  %v57_v50 = vld [vmem:[%s7332_s1 + $0x28] sm:$0xff] }
  0x4b   :  { %1907 = vmatprep.subr.bf16.mxu1 %v4463_v54  ;;  %v190_v54 = vld [vmem:[%s7332_s1 + $0x450] sm:$0xff] }
  0x4c   :  { %v4459_v61 = vcombine.high %v190_v54, %v194_v55  ;;  %2275 = vmatmul.mubr.bf16.vlgmr.msra.gmra.mrb[0].mxu0 %v5589_v41  ;;  %v4458_v5 = vcombine.low %v190_v54, %v194_v55  ;;  %v4526_v41 = vcombine.low %v260_v57, %v264_v58  ;;  %v4566_v55 = vcombine.low %v300_v39, %v304_v40  ;;  %v250_v57 = vld [vmem:[%s7332_s1 + $0x630] sm:$0xff] }
  0x4d   :  { %1833 = vmatmul.mubr.bf16.gmra.mrb[4].mxu1 %v5625_v59  ;;  %2356 = vmatpush1.bf16.msra.mxu0 %v4450_v60  ;;  %v61_v60 = vld [vmem:[%s7332_s1 + $0x48] sm:$0xff] }
  0x4e   :  { %1908 = vmatpush1.bf16.msra.mxu1 %v4462_v62  ;;  %1842 = vmatprep.mubr.bf16.mxu1 %v5636_v63  ;;  %v4518_v62 = vcombine.low %v252_v48, %v256_v49  ;;  %v4567_v48 = vcombine.high %v300_v39, %v304_v40  ;;  %v53_v49 = vld [vmem:[%s7332_s1 + $0x8] sm:$0xff]  ;;  %v286_v39 = vld [vmem:[%s7332_s1 + $0x750] sm:$0xff] }
  0x4f   :  { %1909 = vmatprep.subr.bf16.mxu1 %v4471_v0  ;;  %v198_v0 = vld [vmem:[%s7332_s1 + $0x490] sm:$0xff]  ;;  %2284 = vmatprep.mubr.bf16.mxu0 %v5600_v45  ;;  %v4321_v58 = vcombine.high %v53_v49, %v57_v50 }
  0x50   :  { %2357 = vmatprep.subr.bf16.mxu0 %v4459_v61  ;;  %v210_v45 = vld [vmem:[%s7332_s1 + $0x4f0] sm:$0xff]  ;;  %v4466_v14 = vcombine.low %v198_v0, %v202_v1  ;;  %v65_v61 = vld [vmem:[%s7332_s1 + $0x68] sm:$0xff] }
  0x51   :  { %2358 = vmatpush1.bf16.msra.mxu0 %v4458_v5  ;;  %v4475_v15 = vcombine.high %v206_v9, %v210_v45  ;;  %v4474_v23 = vcombine.low %v206_v9, %v210_v45  ;;  %v69_v5 = vld [vmem:[%s7332_s1 + $0x88] sm:$0xff]  ;;  %v4328_v45 = vcombine.low %v61_v60, %v65_v61 }
  0x52   :  { %1910 = vmatpush1.bf16.msra.mxu1 %v4470_v7  ;;  %v4467_v7 = vcombine.high %v198_v0, %v202_v1  ;;  %v5885_v0 = vld [vmem:[%s7333_s0 + $0x8] ss:$16 sps:$4 sm:$0xff]  }
  0x53   :  { %1911 = vmatprep.subr.bf16.mxu1 %v4479_v8  ;;  %v5776_v8 = vld [vmem:[%s7333_s0 + $0xc4] ss:$16 sps:$4 sm:$0xff]  }
  0x54   :  { %2359 = vmatprep.subr.bf16.mxu0 %v4467_v7  ;;  %2285 = vmatmul.mubr.bf16.gmra.mrb[4].mxu0 %v5625_v59  ;;  %v4542_v59 = vcombine.low %v276_v11, %v280_v12  ;;  %v73_v7 = vld [vmem:[%s7332_s1 + $0xa8] sm:$0xff]  ;;  %v266_v11 = vld [vmem:[%s7332_s1 + $0x6b0] sm:$0xff] }
  0x55   :  { %1843 = vmatmul.mubr.bf16.gmra.mrb[8].mxu1 %v5661_v13  ;;  %2360 = vmatpush1.bf16.msra.mxu0 %v4466_v14  ;;  %v4337_v12 = vcombine.high %v69_v5, %v73_v7  ;;  %v77_v14 = vld [vmem:[%s7332_s1 + $0xc8] sm:$0xff] }
  0x56   :  { %1912 = vmatpush1.bf16.msra.mxu1 %v4478_v16  ;;  %1852 = vmatprep.mubr.bf16.mxu1 %v5672_v17  ;;  %v4534_v16 = vcombine.low %v268_v3, %v272_v4  ;;  %v254_v3 = vld [vmem:[%s7332_s1 + $0x650] sm:$0xff]  ;;  %v4329_v4 = vcombine.high %v61_v60, %v65_v61 }
  0x57   :  { %1913 = vmatprep.subr.bf16.mxu1 %v4487_v18  ;;  %v214_v18 = vld [vmem:[%s7332_s1 + $0x510] sm:$0xff]  ;;  %2294 = vmatprep.mubr.bf16.mxu0 %v5636_v63 }
  0x58   :  { %2361 = vmatprep.subr.bf16.mxu0 %v4475_v15  ;;  %v226_v63 = vld [vmem:[%s7332_s1 + $0x570] sm:$0xff]  ;;  %v4482_v32 = vcombine.low %v214_v18, %v218_v19  ;;  %v81_v15 = vld [vmem:[%s7332_s1 + $0xe8] sm:$0xff] }
  0x59   :  { %2362 = vmatpush1.bf16.msra.mxu0 %v4474_v23  ;;  %v4491_v33 = vcombine.high %v222_v27, %v226_v63  ;;  %v4490_v42 = vcombine.low %v222_v27, %v226_v63  ;;  %v85_v23 = vld [vmem:[%s7332_s1 + $0x108] sm:$0xff]  ;;  %v4344_v63 = vcombine.low %v77_v14, %v81_v15  ;;  %v302_v60 = vld [vmem:[%s7332_s1 + $0x7d0] sm:$0xff] }
  0x5a   :  { %1914 = vmatpush1.bf16.msra.mxu1 %v4486_v25  ;;  %v4483_v25 = vcombine.high %v214_v18, %v218_v19  ;;  %v5923_v18 = vld [vmem:[%s7333_s0 + $0x28] ss:$16 sps:$4 sm:$0xff]  }
  0x5b   :  { %1915 = vmatprep.subr.bf16.mxu1 %v4495_v26  ;;  %v5814_v26 = vld [vmem:[%s7333_s0 + $0xe4] ss:$16 sps:$4 sm:$0xff]  }
  0x5c   :  { %2363 = vmatprep.subr.bf16.mxu0 %v4483_v25  ;;  %2295 = vmatmul.mubr.bf16.gmra.mrb[8].mxu0 %v5661_v13  ;;  %v4558_v13 = vcombine.low %v292_v29, %v296_v30  ;;  %v89_v25 = vld [vmem:[%s7332_s1 + $0x128] sm:$0xff]  ;;  %v282_v29 = vld [vmem:[%s7332_s1 + $0x730] sm:$0xff] }
  0x5d   :  { %1853 = vmatmul.mubr.bf16.gmra.mrb[12].mxu1 %v5697_v31  ;;  %2364 = vmatpush1.bf16.msra.mxu0 %v4482_v32  ;;  %v4353_v30 = vcombine.high %v85_v23, %v89_v25  ;;  %v93_v32 = vld [vmem:[%s7332_s1 + $0x148] sm:$0xff] }
  0x5e   :  { %1916 = vmatpush1.bf16.msra.mxu1 %v4494_v34  ;;  %1862 = vmatprep.mubr.bf16.mxu1 %v5708_v35  ;;  %v4550_v34 = vcombine.low %v284_v21, %v288_v22  ;;  %v270_v21 = vld [vmem:[%s7332_s1 + $0x6d0] sm:$0xff]  ;;  %v4345_v22 = vcombine.high %v77_v14, %v81_v15  ;;  %v5166_v14 = vld [vmem:[%s7334_s3] ss:$8 sps:$4 sm:$0xff]  }
  0x5f   :  { %1917 = vmatprep.subr.bf16.mxu1 %v4503_v36  ;;  %v230_v36 = vld [vmem:[%s7332_s1 + $0x590] sm:$0xff]  ;;  %2304 = vmatprep.mubr.bf16.mxu0 %v5672_v17 }
  0x60   :  { %2365 = vmatprep.subr.bf16.mxu0 %v4491_v33  ;;  %v242_v17 = vld [vmem:[%s7332_s1 + $0x5f0] sm:$0xff]  ;;  %v97_v33 = vld [vmem:[%s7332_s1 + $0x168] sm:$0xff] }
  0x61   :  { %2366 = vmatpush1.bf16.msra.mxu0 %v4490_v42  ;;  %v4507_v54 = vcombine.high %v238_v47, %v242_v17  ;;  %v4361_v40 = vcombine.high %v93_v32, %v97_v33  ;;  %v101_v42 = vld [vmem:[%s7332_s1 + $0x188] sm:$0xff]  ;;  %v5171_v15 = vld [vmem:[%s7334_s3 + $0x14] ss:$8 sps:$4 sm:$0xff]  }
  0x62   :  { %1918 = vmatpush1.bf16.msra.mxu1 %v4502_v44  ;;  %v4499_v44 = vcombine.high %v230_v36, %v234_v37 }
  0x63   :  { %1919 = vmatprep.subr.bf16.mxu1 %v4511_v46  ;;  %v5852_v46 = vld [vmem:[%s7333_s0 + $0xc] ss:$16 sps:$4 sm:$0xff]  }
  0x64   :  { %2367 = vmatprep.subr.bf16.mxu0 %v4499_v44  ;;  %2305 = vmatmul.mubr.bf16.gmra.mrb[12].mxu0 %v5697_v31  ;;  %v4320_v31 = vcombine.low %v53_v49, %v57_v50  ;;  %v105_v44 = vld [vmem:[%s7332_s1 + $0x1a8] sm:$0xff]  ;;  %v298_v49 = vld [vmem:[%s7332_s1 + $0x7b0] sm:$0xff] }
  0x65   :  { %1863 = vmatmul.mubr.bf16.gmra.mrb[16].mxu1 %v5733_v51  ;;  %2314 = vmatprep.mubr.bf16.mxu0 %v5708_v35  ;;  %v258_v35 = vld [vmem:[%s7332_s1 + $0x670] sm:$0xff]  ;;  %v4369_v50 = vcombine.high %v101_v42, %v105_v44 }
  0x66   :  { %1920 = vmatpush1.bf16.msra.mxu1 %v4510_v52  ;;  %1872 = vmatprep.mubr.bf16.mxu1 %v5738_v53  ;;  %v4498_v52 = vcombine.low %v230_v36, %v234_v37  ;;  %v4523_v9 = vcombine.high %v254_v3, %v258_v35  ;;  %v5961_v36 = vld [vmem:[%s7333_s0 + $0x48] ss:$16 sps:$4 sm:$0xff]  }
  0x67   :  { %1921 = vmatprep.subr.bf16.mxu1 %v4519_v56  ;;  %v246_v56 = vld [vmem:[%s7332_s1 + $0x610] sm:$0xff] }
  0x68   :  { %2368 = vmatpush1.bf16.msra.mxu0 %v4498_v52  ;;  %v4515_v1 = vcombine.high %v246_v56, %v250_v57  ;;  %v109_v52 = vld [vmem:[%s7332_s1 + $0x1c8] sm:$0xff] }
  0x69   :  { %2369 = vmatprep.subr.bf16.mxu0 %v4507_v54  ;;  %v113_v54 = vld [vmem:[%s7332_s1 + $0x1e8] sm:$0xff] }
  0x6a   :  { %1922 = vmatpush1.bf16.msra.mxu1 %v4518_v62  ;;  %v4506_v62 = vcombine.low %v238_v47, %v242_v17  ;;  %v4360_v17 = vcombine.low %v93_v32, %v97_v33  ;;  %v4377_v61 = vcombine.high %v109_v52, %v113_v54  ;;  %v157_v33 = vld [vmem:[%s7332_s1 + $0x348] sm:$0xff] }
  0x6b   :  { %1923 = vmatprep.subr.bf16.mxu1 %v4527_v2  ;;  %v5890_v2 = vld [vmem:[%s7333_s0 + $0x2c] ss:$16 sps:$4 sm:$0xff]  }
  0x6c   :  { %2370 = vmatpush1.bf16.msra.mxu0 %v4506_v62  ;;  %v117_v62 = vld [vmem:[%s7332_s1 + $0x208] sm:$0xff] }
  0x6d   :  { %1873 = vmatmul.mubr.bf16.gmra.mrb[20].mxu1 %v5771_v6  ;;  %2371 = vmatprep.subr.bf16.mxu0 %v4515_v1  ;;  %v121_v1 = vld [vmem:[%s7332_s1 + $0x228] sm:$0xff] }
  0x6e   :  { %1924 = vmatpush1.bf16.msra.mxu1 %v4526_v41  ;;  %1882 = vmatprep.mubr.bf16.mxu1 %v5776_v8  ;;  %v4514_v41 = vcombine.low %v246_v56, %v250_v57  ;;  %v5999_v56 = vld [vmem:[%s7333_s0 + $0x68] ss:$16 sps:$4 sm:$0xff]  }
  0x6f   :  { %1925 = vmatprep.subr.bf16.mxu1 %v4535_v10  ;;  %v262_v10 = vld [vmem:[%s7332_s1 + $0x690] sm:$0xff]  ;;  %2315 = vmatmul.mubr.bf16.gmra.mrb[16].mxu0 %v5733_v51  ;;  %v4336_v51 = vcombine.low %v69_v5, %v73_v7  ;;  %v4385_v5 = vcombine.high %v117_v62, %v121_v1  ;;  %v125_v7 = vld [vmem:[%s7332_s1 + $0x248] sm:$0xff] }
  0x70   :  { %2372 = vmatpush1.bf16.msra.mxu0 %v4514_v41  ;;  %2324 = vmatprep.mubr.bf16.mxu0 %v5738_v53  ;;  %v4531_v19 = vcombine.high %v262_v10, %v266_v11  ;;  %v274_v53 = vld [vmem:[%s7332_s1 + $0x6f0] sm:$0xff]  ;;  %v129_v41 = vld [vmem:[%s7332_s1 + $0x268] sm:$0xff] }
  0x71   :  { %2373 = vmatprep.subr.bf16.mxu0 %v4523_v9  ;;  %v4539_v27 = vcombine.high %v270_v21, %v274_v53  ;;  %v6035_v9 = vld [vmem:[%s7333_s0 + $0xac] ss:$16 sps:$4 sm:$0xff]  }
  0x72   :  { %1926 = vmatpush1.bf16.msra.mxu1 %v4534_v16  ;;  %v4522_v16 = vcombine.low %v254_v3, %v258_v35  ;;  %v4376_v35 = vcombine.low %v109_v52, %v113_v54  ;;  %v177_v52 = vld [vmem:[%s7332_s1 + $0x3e8] sm:$0xff]  ;;  %v5181_v54 = vld [vmem:[%s7334_s3 + $0x50] ss:$8 sps:$4 sm:$0xff]  }
  0x73   :  { %1927 = vmatprep.subr.bf16.mxu1 %v4543_v20  ;;  %v5928_v20 = vld [vmem:[%s7333_s0 + $0x4c] ss:$16 sps:$4 sm:$0xff]  }
  0x74   :  { %2374 = vmatpush1.bf16.msra.mxu0 %v4522_v16  ;;  %v4392_v16 = vcombine.low %v125_v7, %v129_v41 }
  0x75   :  { %1883 = vmatmul.mubr.bf16.gmra.mrb[24].mxu1 %v5809_v24  ;;  %2375 = vmatprep.subr.bf16.mxu0 %v4531_v19  ;;  %v141_v19 = vld [vmem:[%s7332_s1 + $0x2c8] sm:$0xff] }
  0x76   :  { %1928 = vmatpush1.bf16.msra.mxu1 %v4542_v59  ;;  %1892 = vmatprep.mubr.bf16.mxu1 %v5814_v26  ;;  %v4530_v59 = vcombine.low %v262_v10, %v266_v11  ;;  %v4384_v10 = vcombine.low %v117_v62, %v121_v1  ;;  %v133_v11 = vld [vmem:[%s7332_s1 + $0x288] sm:$0xff] }
  0x77   :  { %1929 = vmatprep.subr.bf16.mxu1 %v4551_v28  ;;  %v278_v28 = vld [vmem:[%s7332_s1 + $0x710] sm:$0xff]  ;;  %2325 = vmatmul.mubr.bf16.gmra.mrb[20].mxu0 %v5771_v6  ;;  %v4352_v6 = vcombine.low %v85_v23, %v89_v25  ;;  %v6073_v23 = vld [vmem:[%s7333_s0 + $0xcc] ss:$16 sps:$4 sm:$0xff]   ;;  %v5184_v62 = vld [vmem:[%s7334_s3 + $0x60] ss:$8 sps:$4 sm:$0xff]  }
  0x78   :  { %2376 = vmatpush1.bf16.msra.mxu0 %v4530_v59  ;;  %2334 = vmatprep.mubr.bf16.mxu0 %v5776_v8  ;;  %v4547_v37 = vcombine.high %v278_v28, %v282_v29  ;;  %v290_v8 = vld [vmem:[%s7332_s1 + $0x770] sm:$0xff]  ;;  %v5174_v25 = vld [vmem:[%s7334_s3 + $0x24] ss:$8 sps:$4 sm:$0xff]  }
  0x79   :  { %2377 = vmatprep.subr.bf16.mxu0 %v4539_v27  ;;  %v4555_v47 = vcombine.high %v286_v39, %v290_v8  ;;  %v149_v27 = vld [vmem:[%s7332_s1 + $0x308] sm:$0xff] }
  0x7a   :  { %1930 = vmatpush1.bf16.msra.mxu1 %v4550_v34  ;;  %v4538_v34 = vcombine.low %v270_v21, %v274_v53  ;;  %v5169_v21 = vld [vmem:[%s7334_s3 + $0x10] ss:$8 sps:$4 sm:$0xff]  }
  0x7b   :  { %1931 = vmatprep.subr.bf16.mxu1 %v4559_v38  ;;  %v5966_v38 = vld [vmem:[%s7333_s0 + $0x6c] ss:$16 sps:$4 sm:$0xff]   ;;  %v6067_v53 = vld [vmem:[%s7333_s0 + $0xa8] ss:$16 sps:$4 sm:$0xff]  }
  0x7c   :  { %2378 = vmatpush1.bf16.msra.mxu0 %v4538_v34  ;;  %v161_v34 = vld [vmem:[%s7332_s1 + $0x368] sm:$0xff] }
  0x7d   :  { %1893 = vmatmul.mubr.bf16.gmra.mrb[28].mxu1 %v5847_v43  ;;  %2379 = vmatprep.subr.bf16.mxu0 %v4547_v37  ;;  %v5175_v37 = vld [vmem:[%s7334_s3 + $0x30] ss:$8 sps:$4 sm:$0xff]  }
  0x7e   :  { %1932 = vmatpush1.bf16.msra.mxu1 %v4558_v13  ;;  %1935 = vmatprep.mubr.bf16.mxu1 %v5852_v46  ;;  %v4546_v13 = vcombine.low %v278_v28, %v282_v29  ;;  %v5172_v28 = vld [vmem:[%s7334_s3 + $0x20] ss:$8 sps:$4 sm:$0xff]  }
  0x7f   :  { %1933 = vmatprep.subr.bf16.mxu1 %v4567_v48  ;;  %v294_v48 = vld [vmem:[%s7332_s1 + $0x790] sm:$0xff]  ;;  %2335 = vmatmul.mubr.bf16.gmra.mrb[24].mxu0 %v5809_v24  ;;  %v4368_v24 = vcombine.low %v101_v42, %v105_v44  ;;  %v165_v44 = vld [vmem:[%s7332_s1 + $0x388] sm:$0xff] }
  0x80   :  { %2380 = vmatpush1.bf16.msra.mxu0 %v4546_v13  ;;  %2344 = vmatprep.mubr.bf16.mxu0 %v5814_v26  ;;  %v4563_v57 = vcombine.high %v294_v48, %v298_v49  ;;  %v306_v26 = vld [vmem:[%s7332_s1 + $0x7f0] sm:$0xff]  ;;  %v169_v13 = vld [vmem:[%s7332_s1 + $0x3a8] sm:$0xff] }
  0x81   :  { %2381 = vmatprep.subr.bf16.mxu0 %v4555_v47  ;;  %v4571_v3 = vcombine.high %v302_v60, %v306_v26  ;;  %v5178_v47 = vld [vmem:[%s7334_s3 + $0x40] ss:$8 sps:$4 sm:$0xff]  }
  0x82   :  { %1934 = vmatpush1.bf16.msra.mxu1 %v4566_v55  ;;  %v4554_v55 = vcombine.low %v286_v39, %v290_v8  ;;  %v6111_v8 = vld [vmem:[%s7333_s0 + $0xec] ss:$16 sps:$4 sm:$0xff]  }
  0x83   :  { %2016 = vmatprep.subr.bf16.mxu1 %v4321_v58  ;;  %v6004_v58 = vld [vmem:[%s7333_s0 + $0x8c] ss:$16 sps:$4 sm:$0xff]  }
  0x84   :  { %2382 = vmatpush1.bf16.msra.mxu0 %v4554_v55  ;;  %v6143_v55 = vld [vmem:[%s7333_s0 + $0xe8] ss:$16 sps:$4 sm:$0xff]  }
  0x85   :  { %1936 = vmatmul.mubr.bf16.vlgmr.msra.gmra.mrb[0].mxu1 %v5885_v0  ;;  %2383 = vmatprep.subr.bf16.mxu0 %v4563_v57  ;;  %v4433_v57 = vcombine.high %v165_v44, %v169_v13 }
  0x86   :  { %2017 = vmatpush1.bf16.msra.mxu1 %v4320_v31  ;;  %1945 = vmatprep.mubr.bf16.mxu1 %v5890_v2  ;;  %v4562_v31 = vcombine.low %v294_v48, %v298_v49  ;;  %v5183_v48 = vld [vmem:[%s7334_s3 + $0x54] ss:$8 sps:$4 sm:$0xff]   ;;  %v4424_v49 = vcombine.low %v157_v33, %v161_v34 }
  0x87   :  { %2018 = vmatprep.subr.bf16.mxu1 %v4329_v4  ;;  %v6023_v4 = vld [vmem:[%s7333_s0 + $0x88] ss:$16 sps:$4 sm:$0xff]   ;;  %2345 = vmatmul.mubr.bf16.gmra.mrb[28].mxu0 %v5847_v43  ;;  %v5168_v43 = vld [vmem:[%s7334_s3 + $0x4] ss:$8 sps:$4 sm:$0xff]  }
  0x88   :  { %2384 = vmatpush1.bf16.msra.mxu0 %v4562_v31  ;;  %2387 = vmatprep.mubr.bf16.mxu0 %v5852_v46  ;;  %v4393_v46 = vcombine.high %v125_v7, %v129_v41  ;;  %v5189_v31 = vld [vmem:[%s7334_s3 + $0x74] ss:$8 sps:$4 sm:$0xff]   ;;  %v193_v7 = vld [vmem:[%s7332_s1 + $0x468] sm:$0xff]  ;;  %v5187_v41 = vld [vmem:[%s7334_s3 + $0x70] ss:$8 sps:$4 sm:$0xff]  }
  0x89   :  { %2385 = vmatprep.subr.bf16.mxu0 %v4571_v3 }
  0x8a   :  { %2019 = vmatpush1.bf16.msra.mxu1 %v4328_v45  ;;  %v4570_v45 = vcombine.low %v302_v60, %v306_v26  ;;  %v4432_v60 = vcombine.low %v165_v44, %v169_v13  ;;  %v181_v26 = vld [vmem:[%s7332_s1 + $0x408] sm:$0xff]  ;;  %v5199_v44 = vld [vmem:[%s7334_s3 + $0xb0] ss:$8 sps:$4 sm:$0xff]  }
  0x8b   :  { %2020 = vmatprep.subr.bf16.mxu1 %v4337_v12  ;;  %v137_v12 = vld [vmem:[%s7332_s1 + $0x2a8] sm:$0xff] }
  0x8c   :  { %2386 = vmatpush1.bf16.msra.mxu0 %v4570_v45  ;;  %v4400_v59 = vcombine.low %v133_v11, %v137_v12 }
  0x8d   :  { %1946 = vmatmul.mubr.bf16.gmra.mrb[4].mxu1 %v5923_v18  ;;  %3686 = vmatprep.subr.bf16.mxu0 %v5168_v43  ;;  %v5192_v43 = vld [vmem:[%s7334_s3 + $0x84] ss:$8 sps:$4 sm:$0xff]  }
  0x8e   :  { %2021 = vmatpush1.bf16.msra.mxu1 %v4336_v51  ;;  %1955 = vmatprep.mubr.bf16.mxu1 %v5928_v20  ;;  %v145_v51 = vld [vmem:[%s7332_s1 + $0x2e8] sm:$0xff] }
  0x8f   :  { %2022 = vmatprep.subr.bf16.mxu1 %v4345_v22  ;;  %v4401_v22 = vcombine.high %v133_v11, %v137_v12  ;;  %2388 = vmatmul.mubr.bf16.vlgmr.msra.gmra.mrb[0].mxu0 %v5885_v0  ;;  %v4409_v29 = vcombine.high %v141_v19, %v145_v51  ;;  %v4408_v32 = vcombine.low %v141_v19, %v145_v51  ;;  %v197_v11 = vld [vmem:[%s7332_s1 + $0x488] sm:$0xff]  ;;  %v6204_v51 = vld [vmem:[%s7333_s0 + $0x24] ss:$16 sps:$4 sm:$0xff]  }
  0x90   :  { %2397 = vmatprep.mubr.bf16.mxu0 %v5890_v2  ;;  %3687 = vmatpush1.bf16.msra.mxu0 %v5166_v14  ;;  %v201_v12 = vld [vmem:[%s7332_s1 + $0x4a8] sm:$0xff] }
  0x91   :  { %3688 = vmatprep.subr.bf16.mxu0 %v5171_v15  ;;  %v5190_v14 = vld [vmem:[%s7334_s3 + $0x80] ss:$8 sps:$4 sm:$0xff]  }
  0x92   :  { %2023 = vmatpush1.bf16.msra.mxu1 %v4344_v63  ;;  %v153_v63 = vld [vmem:[%s7332_s1 + $0x328] sm:$0xff]  ;;  %v6195_v15 = vld [vmem:[%s7333_s0] ss:$16 sps:$4 sm:$0xff]  }
  0x93   :  { %2024 = vmatprep.subr.bf16.mxu1 %v4353_v30  ;;  %v5177_v30 = vld [vmem:[%s7334_s3 + $0x34] ss:$8 sps:$4 sm:$0xff]   ;;  %v4417_v39 = vcombine.high %v149_v27, %v153_v63  ;;  %v4416_v42 = vcombine.low %v149_v27, %v153_v63  ;;  %v5198_v27 = vld [vmem:[%s7334_s3 + $0xa4] ss:$8 sps:$4 sm:$0xff]   ;;  %v4464_v63 = vcombine.low %v197_v11, %v201_v12 }
  0x94   :  { %3689 = vmatpush1.bf16.msra.mxu0 %v5169_v21  ;;  %v205_v21 = vld [vmem:[%s7332_s1 + $0x4c8] sm:$0xff] }
  0x95   :  { %1956 = vmatmul.mubr.bf16.gmra.mrb[8].mxu1 %v5961_v36  ;;  %3690 = vmatprep.subr.bf16.mxu0 %v5174_v25  ;;  %v5193_v25 = vld [vmem:[%s7334_s3 + $0x90] ss:$8 sps:$4 sm:$0xff]  }
  0x96   :  { %2025 = vmatpush1.bf16.msra.mxu1 %v4352_v6  ;;  %1965 = vmatprep.mubr.bf16.mxu1 %v5966_v38  ;;  %v6105_v6 = vld [vmem:[%s7333_s0 + $0xc8] ss:$16 sps:$4 sm:$0xff]  }
  0x97   :  { %2026 = vmatprep.subr.bf16.mxu1 %v4361_v40  ;;  %2398 = vmatmul.mubr.bf16.gmra.mrb[4].mxu0 %v5923_v18  ;;  %v5180_v40 = vld [vmem:[%s7334_s3 + $0x44] ss:$8 sps:$4 sm:$0xff]  }
  0x98   :  { %2407 = vmatprep.mubr.bf16.mxu0 %v5928_v20  ;;  %3691 = vmatpush1.bf16.msra.mxu0 %v5172_v28  ;;  %v213_v28 = vld [vmem:[%s7332_s1 + $0x508] sm:$0xff] }
  0x99   :  { %3692 = vmatprep.subr.bf16.mxu0 %v5177_v30  ;;  %v5196_v30 = vld [vmem:[%s7334_s3 + $0xa0] ss:$8 sps:$4 sm:$0xff]  }
  0x9a   :  { %2027 = vmatpush1.bf16.msra.mxu1 %v4360_v17  ;;  %v4425_v17 = vcombine.high %v157_v33, %v161_v34  ;;  %v6233_v33 = vld [vmem:[%s7333_s0 + $0x20] ss:$16 sps:$4 sm:$0xff]   ;;  %v5201_v34 = vld [vmem:[%s7334_s3 + $0xb4] ss:$8 sps:$4 sm:$0xff]  }
  0x9b   :  { %2028 = vmatprep.subr.bf16.mxu1 %v4369_v50  ;;  %v173_v50 = vld [vmem:[%s7332_s1 + $0x3c8] sm:$0xff] }
  0x9c   :  { %3693 = vmatpush1.bf16.msra.mxu0 %v5175_v37  ;;  %v4441_v1 = vcombine.high %v173_v50, %v177_v52  ;;  %v4440_v3 = vcombine.low %v173_v50, %v177_v52  ;;  %v5202_v50 = vld [vmem:[%s7334_s3 + $0xc0] ss:$8 sps:$4 sm:$0xff]  }
  0x9d   :  { %1966 = vmatmul.mubr.bf16.gmra.mrb[12].mxu1 %v5999_v56  ;;  %3694 = vmatprep.subr.bf16.mxu0 %v5180_v40  ;;  %v221_v40 = vld [vmem:[%s7332_s1 + $0x548] sm:$0xff] }
  0x9e   :  { %2029 = vmatpush1.bf16.msra.mxu1 %v4368_v24  ;;  %1975 = vmatprep.mubr.bf16.mxu1 %v6004_v58  ;;  %v5186_v24 = vld [vmem:[%s7334_s3 + $0x64] ss:$8 sps:$4 sm:$0xff]  }
  0x9f   :  { %2030 = vmatprep.subr.bf16.mxu1 %v4377_v61  ;;  %2408 = vmatmul.mubr.bf16.gmra.mrb[8].mxu0 %v5961_v36  ;;  %v185_v61 = vld [vmem:[%s7332_s1 + $0x428] sm:$0xff] }
  0xa0   :  { %2417 = vmatprep.mubr.bf16.mxu0 %v5966_v38  ;;  %3695 = vmatpush1.bf16.msra.mxu0 %v5178_v47  ;;  %v4449_v45 = vcombine.high %v181_v26, %v185_v61  ;;  %v5204_v47 = vld [vmem:[%s7334_s3 + $0xc4] ss:$8 sps:$4 sm:$0xff]  }
  0xa1   :  { %3696 = vmatprep.subr.bf16.mxu0 %v5183_v48  ;;  %v229_v48 = vld [vmem:[%s7332_s1 + $0x588] sm:$0xff] }
  0xa2   :  { %2031 = vmatpush1.bf16.msra.mxu1 %v4376_v35  ;;  %v6166_v35 = vld [vmem:[%s7333_s0 + $0x4] ss:$16 sps:$4 sm:$0xff]  }
  0xa3   :  { %2032 = vmatprep.subr.bf16.mxu1 %v4385_v5  ;;  %v189_v5 = vld [vmem:[%s7332_s1 + $0x448] sm:$0xff] }
  0xa4   :  { %3697 = vmatpush1.bf16.msra.mxu0 %v5181_v54  ;;  %v4456_v19 = vcombine.low %v189_v5, %v193_v7  ;;  %v6271_v54 = vld [vmem:[%s7333_s0 + $0x40] ss:$16 sps:$4 sm:$0xff]  }
  0xa5   :  { %1976 = vmatmul.mubr.bf16.gmra.mrb[16].mxu1 %v6023_v4  ;;  %3698 = vmatprep.subr.bf16.mxu0 %v5186_v24 }
  0xa6   :  { %2033 = vmatpush1.bf16.msra.mxu1 %v4384_v10  ;;  %1985 = vmatprep.mubr.bf16.mxu1 %v6035_v9  ;;  %v4448_v10 = vcombine.low %v181_v26, %v185_v61  ;;  %v237_v26 = vld [vmem:[%s7332_s1 + $0x5c8] sm:$0xff] }
  0xa7   :  { %2034 = vmatprep.subr.bf16.mxu1 %v4393_v46  ;;  %2418 = vmatmul.mubr.bf16.gmra.mrb[12].mxu0 %v5999_v56  ;;  %v4457_v46 = vcombine.high %v189_v5, %v193_v7  ;;  %v241_v61 = vld [vmem:[%s7332_s1 + $0x5e8] sm:$0xff] }
  0xa8   :  { %2427 = vmatprep.mubr.bf16.mxu0 %v6004_v58  ;;  %3699 = vmatpush1.bf16.msra.mxu0 %v5184_v62  ;;  %v245_v5 = vld [vmem:[%s7332_s1 + $0x608] sm:$0xff] }
  0xa9   :  { %3700 = vmatprep.subr.bf16.mxu0 %v5189_v31  ;;  %v5210_v31 = vld [vmem:[%s7334_s3 + $0xe4] ss:$8 sps:$4 sm:$0xff]  }
  0xaa   :  { %2035 = vmatpush1.bf16.msra.mxu1 %v4392_v16  ;;  %v5195_v16 = vld [vmem:[%s7334_s3 + $0x94] ss:$8 sps:$4 sm:$0xff]   ;;  %v249_v7 = vld [vmem:[%s7332_s1 + $0x628] sm:$0xff] }
  0xab   :  { %2036 = vmatprep.subr.bf16.mxu1 %v4401_v22  ;;  %v209_v22 = vld [vmem:[%s7332_s1 + $0x4e8] sm:$0xff] }
  0xac   :  { %3701 = vmatpush1.bf16.msra.mxu0 %v5187_v41  ;;  %v4472_v37 = vcombine.low %v205_v21, %v209_v22  ;;  %v5208_v41 = vld [vmem:[%s7334_s3 + $0xe0] ss:$8 sps:$4 sm:$0xff]  }
  0xad   :  { %1986 = vmatmul.mubr.bf16.gmra.mrb[20].mxu1 %v6067_v53  ;;  %3702 = vmatprep.subr.bf16.mxu0 %v5192_v43  ;;  %v6309_v43 = vld [vmem:[%s7333_s0 + $0x60] ss:$16 sps:$4 sm:$0xff]  }
  0xae   :  { %2037 = vmatpush1.bf16.msra.mxu1 %v4400_v59  ;;  %1995 = vmatprep.mubr.bf16.mxu1 %v6073_v23  ;;  %v4465_v59 = vcombine.high %v197_v11, %v201_v12  ;;  %v4504_v11 = vcombine.low %v237_v26, %v241_v61  ;;  %v6318_v12 = vld [vmem:[%s7333_s0 + $0x84] ss:$16 sps:$4 sm:$0xff]  }
  0xaf   :  { %2038 = vmatprep.subr.bf16.mxu1 %v4409_v29  ;;  %2428 = vmatmul.mubr.bf16.gmra.mrb[16].mxu0 %v6023_v4  ;;  %v217_v29 = vld [vmem:[%s7332_s1 + $0x528] sm:$0xff] }
  0xb0   :  { %2437 = vmatprep.mubr.bf16.mxu0 %v6035_v9  ;;  %3703 = vmatpush1.bf16.msra.mxu0 %v5190_v14  ;;  %v4481_v13 = vcombine.high %v213_v28, %v217_v29  ;;  %v253_v14 = vld [vmem:[%s7332_s1 + $0x648] sm:$0xff] }
  0xb1   :  { %3704 = vmatprep.subr.bf16.mxu0 %v5195_v16  ;;  %v5211_v16 = vld [vmem:[%s7334_s3 + $0xf0] ss:$8 sps:$4 sm:$0xff]  }
  0xb2   :  { %2039 = vmatpush1.bf16.msra.mxu1 %v4408_v32  ;;  %v4473_v32 = vcombine.high %v205_v21, %v209_v22  ;;  %v4512_v21 = vcombine.low %v245_v5, %v249_v7 }
  0xb3   :  { %2040 = vmatprep.subr.bf16.mxu1 %v4417_v39  ;;  %v6242_v39 = vld [vmem:[%s7333_s0 + $0x44] ss:$16 sps:$4 sm:$0xff]  }
  0xb4   :  { %3705 = vmatpush1.bf16.msra.mxu0 %v5193_v25  ;;  %v261_v25 = vld [vmem:[%s7332_s1 + $0x688] sm:$0xff] }
  0xb5   :  { %1996 = vmatmul.mubr.bf16.gmra.mrb[24].mxu1 %v6105_v6  ;;  %3706 = vmatprep.subr.bf16.mxu0 %v5198_v27  ;;  %v6340_v27 = vld [vmem:[%s7333_s0 + $0x80] ss:$16 sps:$4 sm:$0xff]  }
  0xb6   :  { %2041 = vmatpush1.bf16.msra.mxu1 %v4416_v42  ;;  %2005 = vmatprep.mubr.bf16.mxu1 %v6111_v8  ;;  %v225_v42 = vld [vmem:[%s7332_s1 + $0x568] sm:$0xff] }
  0xb7   :  { %2042 = vmatprep.subr.bf16.mxu1 %v4425_v17  ;;  %2438 = vmatmul.mubr.bf16.gmra.mrb[20].mxu0 %v6067_v53  ;;  %v4480_v17 = vcombine.low %v213_v28, %v217_v29  ;;  %v4489_v52 = vcombine.high %v221_v40, %v225_v42  ;;  %v4488_v24 = vcombine.low %v221_v40, %v225_v42  ;;  %v6346_v28 = vld [vmem:[%s7333_s0 + $0xa4] ss:$16 sps:$4 sm:$0xff]   ;;  %v277_v40 = vld [vmem:[%s7332_s1 + $0x708] sm:$0xff] }
  0xb8   :  { %2447 = vmatprep.mubr.bf16.mxu0 %v6073_v23  ;;  %3707 = vmatpush1.bf16.msra.mxu0 %v5196_v30  ;;  %v269_v30 = vld [vmem:[%s7332_s1 + $0x6c8] sm:$0xff] }
  0xb9   :  { %3708 = vmatprep.subr.bf16.mxu0 %v5201_v34  ;;  %v281_v42 = vld [vmem:[%s7332_s1 + $0x728] sm:$0xff] }
  0xba   :  { %2043 = vmatpush1.bf16.msra.mxu1 %v4424_v49  ;;  %v233_v49 = vld [vmem:[%s7332_s1 + $0x5a8] sm:$0xff] }
  0xbb   :  { %2044 = vmatprep.subr.bf16.mxu1 %v4433_v57  ;;  %v5207_v57 = vld [vmem:[%s7334_s3 + $0xd4] ss:$8 sps:$4 sm:$0xff]   ;;  %v4497_v62 = vcombine.high %v229_v48, %v233_v49 }
  0xbc   :  { %3709 = vmatpush1.bf16.msra.mxu0 %v5199_v44  ;;  %v6364_v44 = vld [vmem:[%s7333_s0 + $0xa0] ss:$16 sps:$4 sm:$0xff]  }
  0xbd   :  { %2006 = vmatmul.mubr.bf16.gmra.mrb[28].mxu1 %v6143_v55  ;;  %3710 = vmatprep.subr.bf16.mxu0 %v5204_v47  ;;  %v6370_v47 = vld [vmem:[%s7333_s0 + $0xc4] ss:$16 sps:$4 sm:$0xff]  }
  0xbe   :  { %2045 = vmatpush1.bf16.msra.mxu1 %v4432_v60  ;;  %2048 = vmatprep.mubr.bf16.mxu1 %v6166_v35  ;;  %v6280_v60 = vld [vmem:[%s7333_s0 + $0x64] ss:$16 sps:$4 sm:$0xff]  }
  0xbf   :  { %2046 = vmatprep.subr.bf16.mxu1 %v4441_v1  ;;  %2448 = vmatmul.mubr.bf16.gmra.mrb[24].mxu0 %v6105_v6  ;;  %v5205_v1 = vld [vmem:[%s7334_s3 + $0xd0] ss:$8 sps:$4 sm:$0xff]  }
  0xc0   :  { %2457 = vmatprep.mubr.bf16.mxu0 %v6111_v8  ;;  %3711 = vmatpush1.bf16.msra.mxu0 %v5202_v50  ;;  %v4544_v50 = vcombine.low %v277_v40, %v281_v42 }
  0xc1   :  { %3712 = vmatprep.subr.bf16.mxu0 %v5207_v57  ;;  %v293_v57 = vld [vmem:[%s7332_s1 + $0x788] sm:$0xff] }
  0xc2   :  { %2047 = vmatpush1.bf16.msra.mxu1 %v4440_v3  ;;  %v4496_v3 = vcombine.low %v229_v48, %v233_v49  ;;  %v285_v48 = vld [vmem:[%s7332_s1 + $0x748] sm:$0xff] }
  0xc3   :  { %2129 = vmatprep.subr.bf16.mxu1 %v4449_v45  ;;  %v4505_v45 = vcombine.high %v237_v26, %v241_v61  ;;  %v289_v49 = vld [vmem:[%s7332_s1 + $0x768] sm:$0xff]  ;;  %v6388_v26 = vld [vmem:[%s7333_s0 + $0xc0] ss:$16 sps:$4 sm:$0xff]  }
  0xc4   :  { %3713 = vmatpush1.bf16.msra.mxu0 %v5205_v1  ;;  %v4552_v61 = vcombine.low %v285_v48, %v289_v49 }
  0xc5   :  { %2049 = vmatmul.mubr.bf16.vlgmr.msra.gmra.mrb[32].mxu1 %v6195_v15  ;;  %3714 = vmatprep.subr.bf16.mxu0 %v5210_v31  ;;  %v301_v31 = vld [vmem:[%s7332_s1 + $0x7c8] sm:$0xff] }
  0xc6   :  { %2130 = vmatpush1.bf16.msra.mxu1 %v4448_v10  ;;  %2058 = vmatprep.mubr.bf16.mxu1 %v6204_v51  ;;  %v5213_v10 = vld [vmem:[%s7334_s3 + $0xf4] ss:$8 sps:$4 sm:$0xff]  }
  0xc7   :  { %2131 = vmatprep.subr.bf16.mxu1 %v4457_v46  ;;  %v257_v46 = vld [vmem:[%s7332_s1 + $0x668] sm:$0xff]  ;;  %2458 = vmatmul.mubr.bf16.gmra.mrb[28].mxu0 %v6143_v55 }
  0xc8   :  { %3715 = vmatpush1.bf16.msra.mxu0 %v5208_v41  ;;  %v4521_v22 = vcombine.high %v253_v14, %v257_v46  ;;  %v55_v41 = vld [vmem:[%s7332_s1 + $0x18] sm:$0xff] }
  0xc9   :  { %3716 = vmatprep.subr.bf16.mxu0 %v5213_v10  ;;  %v6412_v10 = vld [vmem:[%s7333_s0 + $0xe0] ss:$16 sps:$4 sm:$0xff]  }
  0xca   :  { %2132 = vmatpush1.bf16.msra.mxu1 %v4456_v19  ;;  %v4513_v19 = vcombine.high %v245_v5, %v249_v7 }
  0xcb   :  { %2133 = vmatprep.subr.bf16.mxu1 %v4465_v59  ;;  %v265_v59 = vld [vmem:[%s7332_s1 + $0x6a8] sm:$0xff] }
  0xcc   :  { %3717 = vmatpush1.bf16.msra.mxu0 %v5211_v16  ;;  %v4529_v29 = vcombine.high %v261_v25, %v265_v59  ;;  %v4528_v34 = vcombine.low %v261_v25, %v265_v59  ;;  %v63_v16 = vld [vmem:[%s7332_s1 + $0x58] sm:$0xff] }
  0xcd   :  { %2059 = vmatmul.mubr.bf16.gmra.mrb[36].mxu1 %v6233_v33  ;;  %v71_v25 = vld [vmem:[%s7332_s1 + $0x98] sm:$0xff] }
  0xce   :  { %2134 = vmatpush1.bf16.msra.mxu1 %v4464_v63  ;;  %2068 = vmatprep.mubr.bf16.mxu1 %v6242_v39  ;;  %v4520_v63 = vcombine.low %v253_v14, %v257_v46  ;;  %v6418_v14 = vld [vmem:[%s7333_s0 + $0xc] ss:$16 sps:$4 sm:$0xff]  }
  0xcf   :  { %2135 = vmatprep.subr.bf16.mxu1 %v4473_v32  ;;  %v273_v32 = vld [vmem:[%s7332_s1 + $0x6e8] sm:$0xff]  ;;  %v75_v59 = vld [vmem:[%s7332_s1 + $0xb8] sm:$0xff] }
  0xd2   :  { %2136 = vmatpush1.bf16.msra.mxu1 %v4472_v37  ;;  %v4537_v37 = vcombine.high %v269_v30, %v273_v32 }
  0xd3   :  { %2137 = vmatprep.subr.bf16.mxu1 %v4481_v13  ;;  %v4536_v13 = vcombine.low %v269_v30, %v273_v32  ;;  %v79_v30 = vld [vmem:[%s7332_s1 + $0xd8] sm:$0xff] }
  0xd4   :  { %v83_v32 = vld [vmem:[%s7332_s1 + $0xf8] sm:$0xff] }
  0xd5   :  { %2069 = vmatmul.mubr.bf16.gmra.mrb[40].mxu1 %v6271_v54 }
  0xd6   :  { %2138 = vmatpush1.bf16.msra.mxu1 %v4480_v17  ;;  %2078 = vmatprep.mubr.bf16.mxu1 %v6280_v60  ;;  %v4545_v17 = vcombine.high %v277_v40, %v281_v42  ;;  %v4348_v40 = vcombine.low %v79_v30, %v83_v32 }
  0xd7   :  { %2139 = vmatprep.subr.bf16.mxu1 %v4489_v52  ;;  %v4553_v52 = vcombine.high %v285_v48, %v289_v49 }
  0xda   :  { %2140 = vmatpush1.bf16.msra.mxu1 %v4488_v24  ;;  %v297_v24 = vld [vmem:[%s7332_s1 + $0x7a8] sm:$0xff] }
  0xdb   :  { %2141 = vmatprep.subr.bf16.mxu1 %v4497_v62  ;;  %v6394_v62 = vld [vmem:[%s7333_s0 + $0xe4] ss:$16 sps:$4 sm:$0xff]   ;;  %v4561_v1 = vcombine.high %v293_v57, %v297_v24  ;;  %v4560_v5 = vcombine.low %v293_v57, %v297_v24  ;;  %v111_v57 = vld [vmem:[%s7332_s1 + $0x1d8] sm:$0xff] }
  0xdc   :  { %v115_v24 = vld [vmem:[%s7332_s1 + $0x1f8] sm:$0xff] }
  0xdd   :  { %2079 = vmatmul.mubr.bf16.gmra.mrb[44].mxu1 %v6309_v43 }
  0xde   :  { %2142 = vmatpush1.bf16.msra.mxu1 %v4496_v3  ;;  %2088 = vmatprep.mubr.bf16.mxu1 %v6318_v12  ;;  %v305_v3 = vld [vmem:[%s7332_s1 + $0x7e8] sm:$0xff] }
  0xdf   :  { %2143 = vmatprep.subr.bf16.mxu1 %v4505_v45  ;;  %v4569_v7 = vcombine.high %v301_v31, %v305_v3  ;;  %v59_v45 = vld [vmem:[%s7332_s1 + $0x38] sm:$0xff] }
  0xe0   :  { %v4325_v46 = vcombine.high %v55_v41, %v59_v45 }
  0xe2   :  { %2144 = vmatpush1.bf16.msra.mxu1 %v4504_v11  ;;  %v4568_v11 = vcombine.low %v301_v31, %v305_v3  ;;  %v5216_v31 = vld [vmem:[%s7334_s3 + $0x104] ss:$8 sps:$4 sm:$0xff]   ;;  %v4380_v3 = vcombine.low %v111_v57, %v115_v24 }
  0xe3   :  { %2145 = vmatprep.subr.bf16.mxu1 %v4513_v19  ;;  %v67_v19 = vld [vmem:[%s7332_s1 + $0x78] sm:$0xff]  ;;  %3799 = vmatprep.subr.bf16.mxu0 %v5216_v31 }
  0xe5   :  { %2089 = vmatmul.mubr.bf16.gmra.mrb[48].mxu1 %v6340_v27 }
  0xe6   :  { %2146 = vmatpush1.bf16.msra.mxu1 %v4512_v21  ;;  %2098 = vmatprep.mubr.bf16.mxu1 %v6346_v28  ;;  %v4324_v21 = vcombine.low %v55_v41, %v59_v45  ;;  %v131_v41 = vld [vmem:[%s7332_s1 + $0x278] sm:$0xff] }
  0xe7   :  { %2147 = vmatprep.subr.bf16.mxu1 %v4521_v22  ;;  %v4333_v22 = vcombine.high %v63_v16, %v67_v19 }
  0xea   :  { %2148 = vmatpush1.bf16.msra.mxu1 %v4520_v63  ;;  %v4332_v63 = vcombine.low %v63_v16, %v67_v19  ;;  %v143_v19 = vld [vmem:[%s7332_s1 + $0x2d8] sm:$0xff] }
  0xeb   :  { %2149 = vmatprep.subr.bf16.mxu1 %v4529_v29  ;;  %v4341_v29 = vcombine.high %v71_v25, %v75_v59 }
  0xed   :  { %2099 = vmatmul.mubr.bf16.gmra.mrb[52].mxu1 %v6364_v44 }
  0xee   :  { %2150 = vmatpush1.bf16.msra.mxu1 %v4528_v34  ;;  %2108 = vmatprep.mubr.bf16.mxu1 %v6370_v47  ;;  %v4340_v34 = vcombine.low %v71_v25, %v75_v59 }
  0xef   :  { %2151 = vmatprep.subr.bf16.mxu1 %v4537_v37  ;;  %v4349_v37 = vcombine.high %v79_v30, %v83_v32  ;;  %v163_v30 = vld [vmem:[%s7332_s1 + $0x378] sm:$0xff] }
  0xf2   :  { %2152 = vmatpush1.bf16.msra.mxu1 %v4536_v13  ;;  %v95_v13 = vld [vmem:[%s7332_s1 + $0x158] sm:$0xff] }
  0xf3   :  { %2153 = vmatprep.subr.bf16.mxu1 %v4545_v17  ;;  %v99_v17 = vld [vmem:[%s7332_s1 + $0x178] sm:$0xff] }
  0xf4   :  { %v4365_v49 = vcombine.high %v95_v13, %v99_v17 }
  0xf5   :  { %2109 = vmatmul.mubr.bf16.gmra.mrb[56].mxu1 %v6388_v26 }
  0xf6   :  { %2154 = vmatpush1.bf16.msra.mxu1 %v4544_v50  ;;  %2118 = vmatprep.mubr.bf16.mxu1 %v6394_v62  ;;  %v4364_v50 = vcombine.low %v95_v13, %v99_v17 }
  0xf7   :  { %2155 = vmatprep.subr.bf16.mxu1 %v4553_v52 }
  0xfa   :  { %2156 = vmatpush1.bf16.msra.mxu1 %v4552_v61 }
  0xfb   :  { %2157 = vmatprep.subr.bf16.mxu1 %v4561_v1  ;;  %v4381_v1 = vcombine.high %v111_v57, %v115_v24  ;;  %v207_v24 = vld [vmem:[%s7332_s1 + $0x4d8] sm:$0xff] }
  0xfd   :  { %2119 = vmatmul.mubr.bf16.gmra.mrb[60].mxu1 %v6412_v10 }
  0xfe   :  { %2158 = vmatpush1.bf16.msra.mxu1 %v4560_v5  ;;  %2161 = vmatprep.mubr.bf16.mxu1 %v6418_v14 }
  0xff   :  { %2159 = vmatprep.subr.bf16.mxu1 %v4569_v7  ;;  %v127_v7 = vld [vmem:[%s7332_s1 + $0x258] sm:$0xff] }
 0x100   :  { %v4397_v45 = vcombine.high %v127_v7, %v131_v41 }
 0x102   :  { %2160 = vmatpush1.bf16.msra.mxu1 %v4568_v11  ;;  %v135_v11 = vld [vmem:[%s7332_s1 + $0x298] sm:$0xff] }
 0x103   :  { %2468 = vmatprep.subr.bf16.mxu1 %v4325_v46  ;;  %v4396_v46 = vcombine.low %v127_v7, %v131_v41  ;;  %v223_v7 = vld [vmem:[%s7332_s1 + $0x558] sm:$0xff] }
 0x104   :  { %v227_v41 = vld [vmem:[%s7332_s1 + $0x578] sm:$0xff] }
 0x105   :  { %2162 = vmatmul.mubr.bf16.vlgmr.msra.gmra.mrb[32].mxu1 %v5885_v0  ;;  %v87_v0 = vld [vmem:[%s7332_s1 + $0x118] sm:$0xff] }
 0x106   :  { %2469 = vmatpush1.bf16.msra.mxu1 %v4324_v21  ;;  %2171 = vmatprep.mubr.bf16.mxu1 %v5890_v2  ;;  %v91_v2 = vld [vmem:[%s7332_s1 + $0x138] sm:$0xff] }
 0x107   :  { %2470 = vmatprep.subr.bf16.mxu1 %v4333_v22  ;;  %v4357_v42 = vcombine.high %v87_v0, %v91_v2  ;;  %v4356_v48 = vcombine.low %v87_v0, %v91_v2  ;;  %v147_v21 = vld [vmem:[%s7332_s1 + $0x2f8] sm:$0xff] }
 0x108   :  { %v4413_v25 = vcombine.high %v143_v19, %v147_v21  ;;  %v4412_v59 = vcombine.low %v143_v19, %v147_v21  ;;  %v175_v2 = vld [vmem:[%s7332_s1 + $0x3d8] sm:$0xff]  ;;  %v4492_v21 = vcombine.low %v223_v7, %v227_v41 }
 0x10a   :  { %2471 = vmatpush1.bf16.msra.mxu1 %v4332_v63 }
 0x10b   :  { %2472 = vmatprep.subr.bf16.mxu1 %v4341_v29  ;;  %v159_v29 = vld [vmem:[%s7332_s1 + $0x358] sm:$0xff] }
 0x10d   :  { %2172 = vmatmul.mubr.bf16.gmra.mrb[36].mxu1 %v5923_v18  ;;  %v103_v18 = vld [vmem:[%s7332_s1 + $0x198] sm:$0xff] }
 0x10e   :  { %2473 = vmatpush1.bf16.msra.mxu1 %v4340_v34  ;;  %2181 = vmatprep.mubr.bf16.mxu1 %v5928_v20  ;;  %v107_v20 = vld [vmem:[%s7332_s1 + $0x1b8] sm:$0xff]  ;;  %v4429_v34 = vcombine.high %v159_v29, %v163_v30 }
 0x10f   :  { %2474 = vmatprep.subr.bf16.mxu1 %v4349_v37  ;;  %v4373_v52 = vcombine.high %v103_v18, %v107_v20  ;;  %v4372_v61 = vcombine.low %v103_v18, %v107_v20  ;;  %v4428_v37 = vcombine.low %v159_v29, %v163_v30  ;;  %v195_v18 = vld [vmem:[%s7332_s1 + $0x478] sm:$0xff] }
 0x112   :  { %2475 = vmatpush1.bf16.msra.mxu1 %v4348_v40  ;;  %v179_v40 = vld [vmem:[%s7332_s1 + $0x3f8] sm:$0xff] }
 0x113   :  { %2476 = vmatprep.subr.bf16.mxu1 %v4357_v42  ;;  %v4445_v13 = vcombine.high %v175_v2, %v179_v40  ;;  %v4444_v17 = vcombine.low %v175_v2, %v179_v40 }
 0x115   :  { %2182 = vmatmul.mubr.bf16.gmra.mrb[40].mxu1 %v5961_v36  ;;  %v119_v36 = vld [vmem:[%s7332_s1 + $0x218] sm:$0xff] }
 0x116   :  { %2477 = vmatpush1.bf16.msra.mxu1 %v4356_v48  ;;  %2191 = vmatprep.mubr.bf16.mxu1 %v5966_v38  ;;  %v123_v38 = vld [vmem:[%s7332_s1 + $0x238] sm:$0xff] }
 0x117   :  { %2478 = vmatprep.subr.bf16.mxu1 %v4365_v49  ;;  %v4389_v5 = vcombine.high %v119_v36, %v123_v38  ;;  %v191_v49 = vld [vmem:[%s7332_s1 + $0x458] sm:$0xff] }
 0x11a   :  { %2479 = vmatpush1.bf16.msra.mxu1 %v4364_v50  ;;  %v4461_v50 = vcombine.high %v191_v49, %v195_v18 }
 0x11b   :  { %2480 = vmatprep.subr.bf16.mxu1 %v4373_v52  ;;  %v4460_v52 = vcombine.low %v191_v49, %v195_v18  ;;  %v255_v49 = vld [vmem:[%s7332_s1 + $0x658] sm:$0xff] }
 0x11c   :  { %v259_v18 = vld [vmem:[%s7332_s1 + $0x678] sm:$0xff] }
 0x11d   :  { %2192 = vmatmul.mubr.bf16.gmra.mrb[44].mxu1 %v5999_v56  ;;  %v4388_v56 = vcombine.low %v119_v36, %v123_v38 }
 0x11e   :  { %2481 = vmatpush1.bf16.msra.mxu1 %v4372_v61  ;;  %2201 = vmatprep.mubr.bf16.mxu1 %v6004_v58  ;;  %v139_v58 = vld [vmem:[%s7332_s1 + $0x2b8] sm:$0xff] }
 0x11f   :  { %2482 = vmatprep.subr.bf16.mxu1 %v4381_v1  ;;  %v4405_v16 = vcombine.high %v135_v11, %v139_v58  ;;  %v4404_v22 = vcombine.low %v135_v11, %v139_v58  ;;  %v211_v61 = vld [vmem:[%s7332_s1 + $0x4f8] sm:$0xff]  ;;  %v310_v1 = vlaneseq  ;;  %v4493_v11 = vcombine.high %v223_v7, %v227_v41 }
 0x120   :  { %v4477_v38 = vcombine.high %v207_v24, %v211_v61  ;;  %v231_v58 = vld [vmem:[%s7332_s1 + $0x598] sm:$0xff] }
 0x121   :  { %v6563_v31 = vshrl.u32 %v310_v1, 7 }
 0x122   :  { %2483 = vmatpush1.bf16.msra.mxu1 %v4380_v3  ;;  %v4476_v3 = vcombine.low %v207_v24, %v211_v61  ;;  %v4525_v61 = vcombine.high %v255_v49, %v259_v18 }
 0x123   :  { %2484 = vmatprep.subr.bf16.mxu1 %v4389_v5 }
 0x125   :  { %2202 = vmatmul.mubr.bf16.gmra.mrb[48].mxu1 %v6023_v4  ;;  %v151_v4 = vld [vmem:[%s7332_s1 + $0x318] sm:$0xff] }
 0x126   :  { %2485 = vmatpush1.bf16.msra.mxu1 %v4388_v56  ;;  %2211 = vmatprep.mubr.bf16.mxu1 %v6035_v9  ;;  %v155_v9 = vld [vmem:[%s7332_s1 + $0x338] sm:$0xff]  ;;  %v312_v56 = vsub.s32 0, %v6563_v31 }
 0x127   :  { %2486 = vmatprep.subr.bf16.mxu1 %v4397_v45  ;;  %v4421_v63 = vcombine.high %v151_v4, %v155_v9  ;;  %v4420_v32 = vcombine.low %v151_v4, %v155_v9  ;;  %v6576_v45 = vld [vmem:[%s7335_s2] sm:$0xff]  ;;  %v239_v4 = vld [vmem:[%s7332_s1 + $0x5d8] sm:$0xff] }
 0x12a   :  { %2487 = vmatpush1.bf16.msra.mxu1 %v4396_v46  ;;  %v235_v46 = vld [vmem:[%s7332_s1 + $0x5b8] sm:$0xff] }
 0x12b   :  { %2488 = vmatprep.subr.bf16.mxu1 %v4405_v16  ;;  %v6587_v16 = vrot.slane %v6576_v45, %v312_v56  ;;  %v4500_v30 = vcombine.low %v231_v58, %v235_v46  ;;  %v4524_v56 = vcombine.low %v255_v49, %v259_v18  ;;  %v5231_v18 = vld [vmem:[%s7334_s3 + $0x154] ss:$8 sps:$4 sm:$0xff]  }
 0x12d   :  { %2212 = vmatmul.mubr.bf16.gmra.mrb[52].mxu1 %v6067_v53  ;;  %v167_v53 = vld [vmem:[%s7332_s1 + $0x398] sm:$0xff] }
 0x12e   :  { %2489 = vmatpush1.bf16.msra.mxu1 %v4404_v22  ;;  %2221 = vmatprep.mubr.bf16.mxu1 %v6073_v23  ;;  %v171_v23 = vld [vmem:[%s7332_s1 + $0x3b8] sm:$0xff]  ;;  %v4501_v22 = vcombine.high %v231_v58, %v235_v46 }
 0x12f   :  { %2490 = vmatprep.subr.bf16.mxu1 %v4413_v25  ;;  %v4437_v0 = vcombine.high %v167_v53, %v171_v23  ;;  %v4436_v42 = vcombine.low %v167_v53, %v171_v23  ;;  %v247_v23 = vld [vmem:[%s7332_s1 + $0x618] sm:$0xff] }
 0x130   :  { %v275_v46 = vld [vmem:[%s7332_s1 + $0x6f8] sm:$0xff] }
 0x132   :  { %2491 = vmatpush1.bf16.msra.mxu1 %v4412_v59 }
 0x133   :  { %2492 = vmatprep.subr.bf16.mxu1 %v4421_v63 }
 0x135   :  { %2222 = vmatmul.mubr.bf16.gmra.mrb[56].mxu1 %v6105_v6  ;;  %v183_v6 = vld [vmem:[%s7332_s1 + $0x418] sm:$0xff] }
 0x136   :  { %2493 = vmatpush1.bf16.msra.mxu1 %v4420_v32  ;;  %2231 = vmatprep.mubr.bf16.mxu1 %v6111_v8  ;;  %v187_v8 = vld [vmem:[%s7332_s1 + $0x438] sm:$0xff] }
 0x137   :  { %2494 = vmatprep.subr.bf16.mxu1 %v4429_v34  ;;  %v4453_v48 = vcombine.high %v183_v6, %v187_v8  ;;  %v4452_v20 = vcombine.low %v183_v6, %v187_v8 }
 0x13a   :  { %2495 = vmatpush1.bf16.msra.mxu1 %v4428_v37  ;;  %v251_v37 = vld [vmem:[%s7332_s1 + $0x638] sm:$0xff] }
 0x13b   :  { %2496 = vmatprep.subr.bf16.mxu1 %v4437_v0  ;;  %v4517_v8 = vcombine.high %v247_v23, %v251_v37 }
 0x13d   :  { %2232 = vmatmul.mubr.bf16.gmra.mrb[60].mxu1 %v6143_v55  ;;  %v199_v55 = vld [vmem:[%s7332_s1 + $0x498] sm:$0xff] }
 0x13e   :  { %2497 = vmatpush1.bf16.msra.mxu1 %v4436_v42  ;;  %2500 = vmatprep.mubr.bf16.mxu1 %v6166_v35  ;;  %v203_v35 = vld [vmem:[%s7332_s1 + $0x4b8] sm:$0xff] }
 0x13f   :  { %2498 = vmatprep.subr.bf16.mxu1 %v4445_v13  ;;  %v4469_v57 = vcombine.high %v199_v55, %v203_v35  ;;  %v4468_v36 = vcombine.low %v199_v55, %v203_v35 }
 0x142   :  { %2499 = vmatpush1.bf16.msra.mxu1 %v4444_v17 }
 0x143   :  { %2581 = vmatprep.subr.bf16.mxu1 %v4453_v48 }
 0x145   :  { %2501 = vmatmul.mubr.bf16.vlgmr.msra.gmra.mrb[64].mxu1 %v6195_v15  ;;  %v215_v15 = vld [vmem:[%s7332_s1 + $0x518] sm:$0xff] }
 0x146   :  { %2582 = vmatpush1.bf16.msra.mxu1 %v4452_v20  ;;  %2510 = vmatprep.mubr.bf16.mxu1 %v6204_v51  ;;  %v219_v51 = vld [vmem:[%s7332_s1 + $0x538] sm:$0xff] }
 0x147   :  { %2583 = vmatprep.subr.bf16.mxu1 %v4461_v50  ;;  %v4485_v5 = vcombine.high %v215_v15, %v219_v51  ;;  %v5219_v50 = vld [vmem:[%s7334_s3 + $0x114] ss:$8 sps:$4 sm:$0xff]  }
 0x14a   :  { %2584 = vmatpush1.bf16.msra.mxu1 %v4460_v52  ;;  %v4516_v52 = vcombine.low %v247_v23, %v251_v37  ;;  %v5228_v37 = vld [vmem:[%s7334_s3 + $0x144] ss:$8 sps:$4 sm:$0xff]  }
 0x14b   :  { %2585 = vmatprep.subr.bf16.mxu1 %v4469_v57 }
 0x14d   :  { %2511 = vmatmul.mubr.bf16.gmra.mrb[68].mxu1 %v6233_v33  ;;  %v4484_v33 = vcombine.low %v215_v15, %v219_v51  ;;  %v5217_v15 = vld [vmem:[%s7334_s3 + $0x110] ss:$8 sps:$4 sm:$0xff]  }
 0x14e   :  { %2586 = vmatpush1.bf16.msra.mxu1 %v4468_v36  ;;  %2520 = vmatprep.mubr.bf16.mxu1 %v6242_v39  ;;  %v316_v39 = vsub.s32 1, %v6563_v31  ;;  %v263_v36 = vld [vmem:[%s7332_s1 + $0x698] sm:$0xff] }
 0x14f   :  { %2587 = vmatprep.subr.bf16.mxu1 %v4477_v38  ;;  %v267_v38 = vld [vmem:[%s7332_s1 + $0x6b8] sm:$0xff] }
 0x150   :  { %v6590_v19 = vrot.slane %v6576_v45, %v316_v39  ;;  %v4533_v39 = vcombine.high %v263_v36, %v267_v38 }
 0x152   :  { %2588 = vmatpush1.bf16.msra.mxu1 %v4476_v3 }
 0x153   :  { %2589 = vmatprep.subr.bf16.mxu1 %v4485_v5  ;;  %v5222_v5 = vld [vmem:[%s7334_s3 + $0x124] ss:$8 sps:$4 sm:$0xff]  }
 0x155   :  { %2521 = vmatmul.mubr.bf16.gmra.mrb[72].mxu1 %v6271_v54  ;;  %v243_v54 = vld [vmem:[%s7332_s1 + $0x5f8] sm:$0xff] }
 0x156   :  { %2590 = vmatpush1.bf16.msra.mxu1 %v4484_v33  ;;  %2530 = vmatprep.mubr.bf16.mxu1 %v6280_v60  ;;  %v4509_v34 = vcombine.high %v239_v4, %v243_v54  ;;  %v4508_v13 = vcombine.low %v239_v4, %v243_v54 }
 0x157   :  { %2591 = vmatprep.subr.bf16.mxu1 %v4493_v11 }
 0x158   :  { %v1937_v25 = vpop.f32.mrb[0].mxu1 }
 0x159   :  { %v4734_v9 = vadd.f32 %v1937_v25, %v6587_v16  ;;  %v1939_v59 = vpop.f32.mrb[1].mxu1  ;;  %v5225_v25 = vld [vmem:[%s7334_s3 + $0x134] ss:$8 sps:$4 sm:$0xff]  }
 0x15a   :  { %v4735_v63 = vadd.f32 %v1939_v59, %v6590_v19  ;;  %v1941_v29 = vpop.f32.mrb[2].mxu1  ;;  %2592 = vmatpush1.bf16.msra.mxu1 %v4492_v21  ;;  %v5220_v21 = vld [vmem:[%s7334_s3 + $0x120] ss:$8 sps:$4 sm:$0xff]  }
 0x15b   :  { %v4736_v60 = vadd.f32 %v1941_v29, %v6587_v16  ;;  %v1943_v32 = vpop.f32.mrb[3].mxu1  ;;  %2593 = vmatprep.subr.bf16.mxu1 %v4501_v22  ;;  %v2694_v0 = vmax.f32 %v4734_v9, 0.0  ;;  %v4532_v9 = vcombine.low %v263_v36, %v267_v38  ;;  %v332_v36 = vsub.s32 5, %v6563_v31 }
 0x15c   :  { %v4737_v53 = vadd.f32 %v1943_v32, %v6590_v19  ;;  %v2695_v40 = vmax.f32 %v4735_v63, 0.0  ;;  %v283_v32 = vld [vmem:[%s7332_s1 + $0x738] sm:$0xff] }
 0x15d   :  { %v2702_v2 = vmax.f32 %v4736_v60, 0.0  ;;  %2531 = vmatmul.mubr.bf16.gmra.mrb[76].mxu1 %v6309_v43  ;;  %v5214_v43 = vld [vmem:[%s7334_s3 + $0x100] ss:$8 sps:$4 sm:$0xff]   ;;  %v279_v60 = vld [vmem:[%s7332_s1 + $0x718] sm:$0xff] }
 0x15e   :  { %v2703_v42 = vmax.f32 %v4737_v53, 0.0  ;;  %2594 = vmatpush1.bf16.msra.mxu1 %v4500_v30  ;;  %2540 = vmatprep.mubr.bf16.mxu1 %v6318_v12 }
 0x15f   :  { %v2822_v6 = vpack.c.bf16 %v2702_v2, %v2694_v0  ;;  %2595 = vmatprep.subr.bf16.mxu1 %v4509_v34  ;;  %v5223_v34 = vld [vmem:[%s7334_s3 + $0x130] ss:$8 sps:$4 sm:$0xff]  }
 0x160   :  { %v2823_v17 = vpack.c.bf16 %v2703_v42, %v2695_v40  ;;  %v1947_v48 = vpop.f32.mrb[4].mxu1 }
 0x161   :  { %v4738_v20 = vadd.f32 %v1947_v48, %v6587_v16  ;;  %v1949_v12 = vpop.f32.mrb[5].mxu1  ;;  %v5226_v48 = vld [vmem:[%s7334_s3 + $0x140] ss:$8 sps:$4 sm:$0xff]  }
 0x162   :  { %v4739_v55 = vadd.f32 %v1949_v12, %v6590_v19  ;;  %v1951_v35 = vpop.f32.mrb[6].mxu1  ;;  %2596 = vmatpush1.bf16.msra.mxu1 %v4508_v13  ;;  %3718 = vmatprep.mubr.bf16.mxu0 %v2823_v17  ;;  %v4549_v13 = vcombine.high %v279_v60, %v283_v32  ;;  %v291_v17 = vld [vmem:[%s7332_s1 + $0x778] sm:$0xff]  ;;  %v4548_v12 = vcombine.low %v279_v60, %v283_v32 }
 0x163   :  { %v4740_v57 = vadd.f32 %v1951_v35, %v6587_v16  ;;  %v1953_v24 = vpop.f32.mrb[7].mxu1  ;;  %3719 = vmatmul.mubr.bf16.vlgmr.msra.gmra.mrb[32].mxu0 %v2822_v6  ;;  %2597 = vmatprep.subr.bf16.mxu1 %v4517_v8  ;;  %v2710_v51 = vmax.f32 %v4738_v20, 0.0 }
 0x164   :  { %v4741_v1 = vadd.f32 %v1953_v24, %v6590_v19  ;;  %3800 = vmatpush1.bf16.msra.mxu0 %v5214_v43  ;;  %v2711_v7 = vmax.f32 %v4739_v55, 0.0  ;;  %v295_v24 = vld [vmem:[%s7332_s1 + $0x798] sm:$0xff] }
 0x165   :  { %v2718_v3 = vmax.f32 %v4740_v57, 0.0  ;;  %2541 = vmatmul.mubr.bf16.gmra.mrb[80].mxu1 %v6340_v27  ;;  %3801 = vmatprep.subr.bf16.mxu0 %v5219_v50  ;;  %v271_v27 = vld [vmem:[%s7332_s1 + $0x6d8] sm:$0xff] }
 0x166   :  { %v2719_v41 = vmax.f32 %v4741_v1, 0.0  ;;  %2598 = vmatpush1.bf16.msra.mxu1 %v4516_v52  ;;  %2550 = vmatprep.mubr.bf16.mxu1 %v6346_v28  ;;  %v4541_v29 = vcombine.high %v271_v27, %v275_v46  ;;  %v4540_v40 = vcombine.low %v271_v27, %v275_v46  ;;  %v328_v52 = vsub.s32 4, %v6563_v31  ;;  %v5229_v1 = vld [vmem:[%s7334_s3 + $0x150] ss:$8 sps:$4 sm:$0xff]  }
 0x167   :  { %v2830_v33 = vpack.c.bf16 %v2718_v3, %v2710_v51  ;;  %2599 = vmatprep.subr.bf16.mxu1 %v4525_v61  ;;  %v299_v61 = vld [vmem:[%s7332_s1 + $0x7b8] sm:$0xff]  ;;  %v5234_v51 = vld [vmem:[%s7334_s3 + $0x164] ss:$8 sps:$4 sm:$0xff]   ;;  %v6716_v27 = vrot.slane %v6576_v45, %v332_v36 }
 0x168   :  { %v2831_v11 = vpack.c.bf16 %v2719_v41, %v2711_v7  ;;  %v1957_v58 = vpop.f32.mrb[8].mxu1  ;;  %3802 = vmatpush1.bf16.msra.mxu0 %v5217_v15 }
 0x169   :  { %v4742_v28 = vadd.f32 %v1957_v58, %v6587_v16  ;;  %v1959_v22 = vpop.f32.mrb[9].mxu1  ;;  %3803 = vmatprep.subr.bf16.mxu0 %v5222_v5  ;;  %v307_v58 = vld [vmem:[%s7332_s1 + $0x7f8] sm:$0xff] }
 0x16a   :  { %v4743_v4 = vadd.f32 %v1959_v22, %v6590_v19  ;;  %v1961_v54 = vpop.f32.mrb[10].mxu1  ;;  %2600 = vmatpush1.bf16.msra.mxu1 %v4524_v56  ;;  %3728 = vmatprep.mubr.bf16.mxu0 %v2831_v11  ;;  %v4565_v56 = vcombine.high %v295_v24, %v299_v61 }
 0x16b   :  { %v4744_v59 = vadd.f32 %v1961_v54, %v6587_v16  ;;  %v1963_v63 = vpop.f32.mrb[11].mxu1  ;;  %3729 = vmatmul.mubr.bf16.gmra.mrb[36].mxu0 %v2830_v33  ;;  %2601 = vmatprep.subr.bf16.mxu1 %v4533_v39  ;;  %v2726_v53 = vmax.f32 %v4742_v28, 0.0  ;;  %v6704_v33 = vrot.slane %v6576_v45, %v328_v52  ;;  %v5237_v28 = vld [vmem:[%s7334_s3 + $0x174] ss:$8 sps:$4 sm:$0xff]   ;;  %v2389_v54 = vpop.f32.mrb[0].mxu0 }
 0x16c   :  { %v4745_v30 = vadd.f32 %v1963_v63, %v6590_v19  ;;  %3804 = vmatpush1.bf16.msra.mxu0 %v5220_v21  ;;  %v2727_v0 = vmax.f32 %v4743_v4, 0.0  ;;  %v4564_v4 = vcombine.low %v295_v24, %v299_v61 }
 0x16d   :  { %v2734_v23 = vmax.f32 %v4744_v59, 0.0  ;;  %2551 = vmatmul.mubr.bf16.gmra.mrb[84].mxu1 %v6364_v44  ;;  %3805 = vmatprep.subr.bf16.mxu0 %v5225_v25  ;;  %v287_v44 = vld [vmem:[%s7332_s1 + $0x758] sm:$0xff] }
 0x16e   :  { %v2735_v2 = vmax.f32 %v4745_v30, 0.0  ;;  %2602 = vmatpush1.bf16.msra.mxu1 %v4532_v9  ;;  %2560 = vmatprep.mubr.bf16.mxu1 %v6370_v47  ;;  %v4557_v35 = vcombine.high %v287_v44, %v291_v17  ;;  %v4556_v7 = vcombine.low %v287_v44, %v291_v17  ;;  %v2391_v30 = vpop.f32.mrb[1].mxu0 }
 0x16f   :  { %v2838_v42 = vpack.c.bf16 %v2734_v23, %v2726_v53  ;;  %2603 = vmatprep.subr.bf16.mxu1 %v4541_v29  ;;  %v4798_v29 = vadd.f32 %v2389_v54, %v6704_v33  ;;  %v4799_v53 = vadd.f32 %v2391_v30, %v6716_v27  ;;  %v2393_v23 = vpop.f32.mrb[2].mxu0  ;;  %v5249_v30 = vld [vmem:[%s7334_s3 + $0x1b4] ss:$8 sps:$4 sm:$0xff]  }
 0x170   :  { %v2839_v6 = vpack.c.bf16 %v2735_v2, %v2727_v0  ;;  %v1967_v8 = vpop.f32.mrb[12].mxu1  ;;  %3806 = vmatpush1.bf16.msra.mxu0 %v5223_v34  ;;  %v5235_v34 = vld [vmem:[%s7334_s3 + $0x170] ss:$8 sps:$4 sm:$0xff]   ;;  %v5240_v2 = vld [vmem:[%s7334_s3 + $0x184] ss:$8 sps:$4 sm:$0xff]  }
 0x171   :  { %v4746_v47 = vadd.f32 %v1967_v8, %v6587_v16  ;;  %v1969_v49 = vpop.f32.mrb[13].mxu1  ;;  %3807 = vmatprep.subr.bf16.mxu0 %v5228_v37  ;;  %v2699_v44 = vmax.f32 %v4799_v53, 0.0 }
 0x172   :  { %v4747_v43 = vadd.f32 %v1969_v49, %v6590_v19  ;;  %v1971_v20 = vpop.f32.mrb[14].mxu1  ;;  %2604 = vmatpush1.bf16.msra.mxu1 %v4540_v40  ;;  %3738 = vmatprep.mubr.bf16.mxu0 %v2839_v6  ;;  %v2698_v40 = vmax.f32 %v4798_v29, 0.0 }
 0x173   :  { %v4748_v50 = vadd.f32 %v1971_v20, %v6587_v16  ;;  %v1973_v55 = vpop.f32.mrb[15].mxu1  ;;  %3739 = vmatmul.mubr.bf16.gmra.mrb[40].mxu0 %v2838_v42  ;;  %2605 = vmatprep.subr.bf16.mxu1 %v4549_v13  ;;  %v2742_v38 = vmax.f32 %v4746_v47, 0.0  ;;  %v4800_v42 = vadd.f32 %v2393_v23, %v6704_v33  ;;  %v2395_v13 = vpop.f32.mrb[3].mxu0 }
 0x174   :  { %v4749_v57 = vadd.f32 %v1973_v55, %v6590_v19  ;;  %3808 = vmatpush1.bf16.msra.mxu0 %v5226_v48  ;;  %v2743_v3 = vmax.f32 %v4747_v43, 0.0  ;;  %v4801_v17 = vadd.f32 %v2395_v13, %v6716_v27  ;;  %v5247_v13 = vld [vmem:[%s7334_s3 + $0x1b0] ss:$8 sps:$4 sm:$0xff]  }
 0x175   :  { %v2750_v15 = vmax.f32 %v4748_v50, 0.0  ;;  %2561 = vmatmul.mubr.bf16.gmra.mrb[88].mxu1 %v6388_v26  ;;  %3809 = vmatprep.subr.bf16.mxu0 %v5231_v18  ;;  %v303_v26 = vld [vmem:[%s7332_s1 + $0x7d8] sm:$0xff]  ;;  %v5238_v18 = vld [vmem:[%s7334_s3 + $0x180] ss:$8 sps:$4 sm:$0xff]  }
 0x176   :  { %v2751_v5 = vmax.f32 %v4749_v57, 0.0  ;;  %2606 = vmatpush1.bf16.msra.mxu1 %v4548_v12  ;;  %2570 = vmatprep.mubr.bf16.mxu1 %v6394_v62  ;;  %v5232_v62 = vld [vmem:[%s7334_s3 + $0x160] ss:$8 sps:$4 sm:$0xff]   ;;  %v4573_v63 = vcombine.high %v303_v26, %v307_v58  ;;  %v4572_v32 = vcombine.low %v303_v26, %v307_v58  ;;  %v2707_v43 = vmax.f32 %v4801_v17, 0.0  ;;  %v2399_v57 = vpop.f32.mrb[4].mxu0 }
 0x177   :  { %v2846_v41 = vpack.c.bf16 %v2750_v15, %v2742_v38  ;;  %2607 = vmatprep.subr.bf16.mxu1 %v4557_v35  ;;  %v2401_v36 = vpop.f32.mrb[5].mxu0  ;;  %v5241_v15 = vld [vmem:[%s7334_s3 + $0x190] ss:$8 sps:$4 sm:$0xff]  }
 0x178   :  { %v2847_v39 = vpack.c.bf16 %v2751_v5, %v2743_v3  ;;  %v1977_v11 = vpop.f32.mrb[16].mxu1  ;;  %3810 = vmatpush1.bf16.msra.mxu0 %v5229_v1  ;;  %v6747_v52 = vpack.c.bf16 %v2707_v43, %v2699_v44  ;;  %v4802_v1 = vadd.f32 %v2399_v57, %v6704_v33  ;;  %v2403_v3 = vpop.f32.mrb[6].mxu0 }
 0x179   :  { %v4750_v46 = vadd.f32 %v1977_v11, %v6587_v16  ;;  %v1979_v21 = vpop.f32.mrb[17].mxu1  ;;  %3811 = vmatprep.subr.bf16.mxu0 %v5234_v51  ;;  %v4803_v51 = vadd.f32 %v2401_v36, %v6716_v27  ;;  %v4804_v11 = vadd.f32 %v2403_v3, %v6704_v33  ;;  %v2405_v26 = vpop.f32.mrb[7].mxu0 }
 0x17a   :  { %v4751_v22 = vadd.f32 %v1979_v21, %v6590_v19  ;;  %v1981_v25 = vpop.f32.mrb[18].mxu1  ;;  %2608 = vmatpush1.bf16.msra.mxu1 %v4556_v7  ;;  %3748 = vmatprep.mubr.bf16.mxu0 %v2847_v39  ;;  %v2714_v39 = vmax.f32 %v4802_v1, 0.0  ;;  %v2409_v23 = vpop.f32.mrb[8].mxu0  ;;  %v5250_v1 = vld [vmem:[%s7334_s3 + $0x1c0] ss:$8 sps:$4 sm:$0xff]  }
 0x17b   :  { %v4752_v9 = vadd.f32 %v1981_v25, %v6587_v16  ;;  %v1983_v59 = vpop.f32.mrb[19].mxu1  ;;  %3749 = vmatmul.mubr.bf16.gmra.mrb[44].mxu0 %v2846_v41  ;;  %2609 = vmatprep.subr.bf16.mxu1 %v4565_v56  ;;  %v2758_v37 = vmax.f32 %v4750_v46, 0.0  ;;  %v5375_v41 = vld [vmem:[%s7333_s0 + $0x8] ss:$16 sps:$4 sm:$0xff]   ;;  %v5246_v56 = vld [vmem:[%s7334_s3 + $0x1a4] ss:$8 sps:$4 sm:$0xff]  }
 0x17c   :  { %v4753_v60 = vadd.f32 %v1983_v59, %v6590_v19  ;;  %3812 = vmatpush1.bf16.msra.mxu0 %v5232_v62  ;;  %v2759_v6 = vmax.f32 %v4751_v22, 0.0  ;;  %v5376_v46 = vld [vmem:[%s7333_s0 + $0x2c] ss:$16 sps:$4 sm:$0xff]   ;;  %v2715_v21 = vmax.f32 %v4803_v51, 0.0  ;;  %v2722_v25 = vmax.f32 %v4804_v11, 0.0 }
 0x17d   :  { %v2766_v0 = vmax.f32 %v4752_v9, 0.0  ;;  %2571 = vmatmul.mubr.bf16.gmra.mrb[92].mxu1 %v6412_v10  ;;  %3813 = vmatprep.subr.bf16.mxu0 %v5237_v28  ;;  %v2706_v10 = vmax.f32 %v4800_v42, 0.0  ;;  %v4805_v28 = vadd.f32 %v2405_v26, %v6716_v27  ;;  %v5244_v9 = vld [vmem:[%s7334_s3 + $0x1a0] ss:$8 sps:$4 sm:$0xff]   ;;  %v5255_v51 = vld [vmem:[%s7334_s3 + $0x1d4] ss:$8 sps:$4 sm:$0xff]  }
 0x17e   :  { %v2767_v8 = vmax.f32 %v4753_v60, 0.0  ;;  %2610 = vmatpush1.bf16.msra.mxu1 %v4564_v4  ;;  %2613 = vmatprep.mubr.bf16.mxu1 %v6418_v14  ;;  %v5243_v14 = vld [vmem:[%s7334_s3 + $0x194] ss:$8 sps:$4 sm:$0xff]   ;;  %v6774_v60 = vpack.c.bf16 %v2722_v25, %v2714_v39 }
 0x17f   :  { %v2854_v48 = vpack.c.bf16 %v2766_v0, %v2758_v37  ;;  %2611 = vmatprep.subr.bf16.mxu1 %v4573_v63  ;;  %v6744_v50 = vpack.c.bf16 %v2706_v10, %v2698_v40  ;;  %v2723_v59 = vmax.f32 %v4805_v28, 0.0  ;;  %v2411_v40 = vpop.f32.mrb[9].mxu0  ;;  %v5252_v10 = vld [vmem:[%s7334_s3 + $0x1c4] ss:$8 sps:$4 sm:$0xff]  }
 0x180   :  { %v2855_v47 = vpack.c.bf16 %v2767_v8, %v2759_v6  ;;  %v1987_v49 = vpop.f32.mrb[20].mxu1  ;;  %3814 = vmatpush1.bf16.msra.mxu0 %v5235_v34  ;;  %v4807_v6 = vadd.f32 %v2411_v40, %v6716_v27  ;;  %v2413_v8 = vpop.f32.mrb[10].mxu0  ;;  %v5261_v40 = vld [vmem:[%s7334_s3 + $0x1f4] ss:$8 sps:$4 sm:$0xff]  }
 0x181   :  { %v4754_v20 = vadd.f32 %v1987_v49, %v6587_v16  ;;  %v1989_v12 = vpop.f32.mrb[21].mxu1  ;;  %3815 = vmatprep.subr.bf16.mxu0 %v5240_v2  ;;  %v6777_v53 = vpack.c.bf16 %v2723_v59, %v2715_v21  ;;  %v4806_v2 = vadd.f32 %v2409_v23, %v6704_v33  ;;  %v4808_v49 = vadd.f32 %v2413_v8, %v6704_v33 }
 0x182   :  { %v4755_v55 = vadd.f32 %v1989_v12, %v6590_v19  ;;  %v1991_v35 = vpop.f32.mrb[22].mxu1  ;;  %2612 = vmatpush1.bf16.msra.mxu1 %v4572_v32  ;;  %3758 = vmatprep.mubr.bf16.mxu0 %v2855_v47  ;;  %v5378_v12 = vld [vmem:[%s7333_s0 + $0x4c] ss:$16 sps:$4 sm:$0xff]  }
 0x183   :  { %v4756_v24 = vadd.f32 %v1991_v35, %v6587_v16  ;;  %v1993_v61 = vpop.f32.mrb[23].mxu1  ;;  %3759 = vmatmul.mubr.bf16.gmra.mrb[48].mxu0 %v2854_v48  ;;  %v2774_v5 = vmax.f32 %v4754_v20, 0.0  ;;  %v5377_v48 = vld [vmem:[%s7333_s0 + $0x28] ss:$16 sps:$4 sm:$0xff]   ;;  %v2730_v47 = vmax.f32 %v4806_v2, 0.0  ;;  %v2738_v57 = vmax.f32 %v4808_v49, 0.0 }
 0x184   :  { %v4757_v38 = vadd.f32 %v1993_v61, %v6590_v19  ;;  %3816 = vmatpush1.bf16.msra.mxu0 %v5238_v18  ;;  %v2775_v58 = vmax.f32 %v4755_v55, 0.0  ;;  %v2415_v18 = vpop.f32.mrb[11].mxu0  ;;  %v5264_v49 = vld [vmem:[%s7334_s3 + $0x204] ss:$8 sps:$4 sm:$0xff]  }
 0x185   :  { %v2782_v7 = vmax.f32 %v4756_v24, 0.0  ;;  %2614 = vmatmul.mubr.bf16.vlgmr.msra.gmra.mrb[64].mxu1 %v5375_v41  ;;  %3817 = vmatprep.subr.bf16.mxu0 %v5243_v14  ;;  %v2731_v14 = vmax.f32 %v4807_v6, 0.0  ;;  %v4809_v55 = vadd.f32 %v2415_v18, %v6716_v27  ;;  %v6804_v3 = vpack.c.bf16 %v2738_v57, %v2730_v47  ;;  %v5381_v47 = vld [vmem:[%s7333_s0 + $0x68] ss:$16 sps:$4 sm:$0xff]  }
 0x186   :  { %v2783_v62 = vmax.f32 %v4757_v38, 0.0  ;;  %2623 = vmatprep.mubr.bf16.mxu1 %v5376_v46  ;;  %v5253_v46 = vld [vmem:[%s7334_s3 + $0x1d0] ss:$8 sps:$4 sm:$0xff]  }
 0x187   :  { %v2862_v22 = vpack.c.bf16 %v2782_v7, %v2774_v5  ;;  %v2739_v36 = vmax.f32 %v4809_v55, 0.0 }
 0x188   :  { %v2863_v4 = vpack.c.bf16 %v2783_v62, %v2775_v58  ;;  %v1997_v54 = vpop.f32.mrb[24].mxu1  ;;  %3818 = vmatpush1.bf16.msra.mxu0 %v5241_v15 }
 0x189   :  { %v4758_v63 = vadd.f32 %v1997_v54, %v6587_v16  ;;  %v1999_v29 = vpop.f32.mrb[25].mxu1  ;;  %3819 = vmatprep.subr.bf16.mxu0 %v5246_v56  ;;  %v6807_v41 = vpack.c.bf16 %v2739_v36, %v2731_v14  ;;  %v2419_v56 = vpop.f32.mrb[12].mxu0 }
 0x18a   :  { %v4759_v32 = vadd.f32 %v1999_v29, %v6590_v19  ;;  %v2001_v34 = vpop.f32.mrb[26].mxu1  ;;  %3768 = vmatprep.mubr.bf16.mxu0 %v2863_v4  ;;  %v4810_v26 = vadd.f32 %v2419_v56, %v6704_v33  ;;  %v2421_v58 = vpop.f32.mrb[13].mxu0  ;;  %v5380_v29 = vld [vmem:[%s7333_s0 + $0x6c] ss:$16 sps:$4 sm:$0xff]  }
 0x18b   :  { %v4760_v37 = vadd.f32 %v2001_v34, %v6587_v16  ;;  %v2003_v0 = vpop.f32.mrb[27].mxu1  ;;  %3769 = vmatmul.mubr.bf16.gmra.mrb[52].mxu0 %v2862_v22  ;;  %v2790_v44 = vmax.f32 %v4758_v63, 0.0  ;;  %v4811_v21 = vadd.f32 %v2421_v58, %v6716_v27  ;;  %v2423_v28 = vpop.f32.mrb[14].mxu0 }
 0x18c   :  { %v4761_v42 = vadd.f32 %v2003_v0, %v6590_v19  ;;  %3820 = vmatpush1.bf16.msra.mxu0 %v5244_v9  ;;  %v2791_v43 = vmax.f32 %v4759_v32, 0.0  ;;  %v2746_v4 = vmax.f32 %v4810_v26, 0.0  ;;  %v4812_v54 = vadd.f32 %v2423_v28, %v6704_v33  ;;  %v2425_v9 = vpop.f32.mrb[15].mxu0  ;;  %v5256_v0 = vld [vmem:[%s7334_s3 + $0x1e0] ss:$8 sps:$4 sm:$0xff]  }
 0x18d   :  { %v2798_v17 = vmax.f32 %v4760_v37, 0.0  ;;  %2624 = vmatmul.mubr.bf16.gmra.mrb[68].mxu1 %v5377_v48  ;;  %3821 = vmatprep.subr.bf16.mxu0 %v5249_v30  ;;  %v2747_v30 = vmax.f32 %v4811_v21, 0.0  ;;  %v4813_v32 = vadd.f32 %v2425_v9, %v6716_v27  ;;  %v2429_v6 = vpop.f32.mrb[16].mxu0 }
 0x18e   :  { %v2799_v20 = vmax.f32 %v4761_v42, 0.0  ;;  %2633 = vmatprep.mubr.bf16.mxu1 %v5378_v12  ;;  %v2754_v23 = vmax.f32 %v4812_v54, 0.0  ;;  %v4814_v8 = vadd.f32 %v2429_v6, %v6704_v33  ;;  %v5382_v12 = vld [vmem:[%s7333_s0 + $0x8c] ss:$16 sps:$4 sm:$0xff]   ;;  %v5385_v54 = vld [vmem:[%s7333_s0 + $0xa8] ss:$16 sps:$4 sm:$0xff]  }
 0x18f   :  { %v2870_v35 = vpack.c.bf16 %v2798_v17, %v2790_v44  ;;  %v2755_v2 = vmax.f32 %v4813_v32, 0.0  ;;  %v2431_v44 = vpop.f32.mrb[17].mxu0  ;;  %v5259_v17 = vld [vmem:[%s7334_s3 + $0x1f0] ss:$8 sps:$4 sm:$0xff]  }
 0x190   :  { %v2871_v24 = vpack.c.bf16 %v2799_v20, %v2791_v43  ;;  %v2007_v61 = vpop.f32.mrb[28].mxu1  ;;  %3822 = vmatpush1.bf16.msra.mxu0 %v5247_v13  ;;  %v6833_v42 = vpack.c.bf16 %v2754_v23, %v2746_v4  ;;  %v4815_v48 = vadd.f32 %v2431_v44, %v6716_v27  ;;  %v2762_v18 = vmax.f32 %v4814_v8, 0.0 }
 0x191   :  { %v4762_v38 = vadd.f32 %v2007_v61, %v6587_v16  ;;  %v2009_v15 = vpop.f32.mrb[29].mxu1  ;;  %3823 = vmatprep.subr.bf16.mxu0 %v5252_v10  ;;  %v6835_v13 = vpack.c.bf16 %v2755_v2, %v2747_v30  ;;  %v2433_v10 = vpop.f32.mrb[18].mxu0 }
 0x192   :  { %v4763_v5 = vadd.f32 %v2009_v15, %v6590_v19  ;;  %v2011_v7 = vpop.f32.mrb[30].mxu1  ;;  %3778 = vmatprep.mubr.bf16.mxu0 %v2871_v24  ;;  %v4816_v43 = vadd.f32 %v2433_v10, %v6704_v33  ;;  %v2435_v20 = vpop.f32.mrb[19].mxu0  ;;  %v2763_v14 = vmax.f32 %v4815_v48, 0.0 }
 0x193   :  { %v4764_v39 = vadd.f32 %v2011_v7, %v6587_v16  ;;  %v2013_v11 = vpop.f32.mrb[31].mxu1  ;;  %3779 = vmatmul.mubr.bf16.gmra.mrb[56].mxu0 %v2870_v35  ;;  %v2806_v22 = vmax.f32 %v4762_v38, 0.0  ;;  %v5379_v16 = vld [vmem:[%s7333_s0 + $0x48] ss:$16 sps:$4 sm:$0xff]   ;;  %v4817_v55 = vadd.f32 %v2435_v20, %v6716_v27 }
 0x194   :  { %v4765_v62 = vadd.f32 %v2013_v11, %v6590_v19  ;;  %3824 = vmatpush1.bf16.msra.mxu0 %v5250_v1  ;;  %v5258_v19 = vld [vmem:[%s7334_s3 + $0x1e4] ss:$8 sps:$4 sm:$0xff]   ;;  %v2807_v59 = vmax.f32 %v4763_v5, 0.0  ;;  %v2770_v35 = vmax.f32 %v4816_v43, 0.0  ;;  %v2439_v1 = vpop.f32.mrb[20].mxu0 }
 0x195   :  { %v2814_v25 = vmax.f32 %v4764_v39, 0.0  ;;  %2634 = vmatmul.mubr.bf16.gmra.mrb[72].mxu1 %v5379_v16  ;;  %3825 = vmatprep.subr.bf16.mxu0 %v5255_v51  ;;  %v2771_v57 = vmax.f32 %v4817_v55, 0.0  ;;  %v4818_v36 = vadd.f32 %v2439_v1, %v6704_v33  ;;  %v2441_v38 = vpop.f32.mrb[21].mxu0  ;;  %v5383_v5 = vld [vmem:[%s7333_s0 + $0x88] ss:$16 sps:$4 sm:$0xff]  }
 0x196   :  { %v2815_v63 = vmax.f32 %v4765_v62, 0.0  ;;  %2643 = vmatprep.mubr.bf16.mxu1 %v5380_v29  ;;  %v6853_v24 = vpack.c.bf16 %v2770_v35, %v2762_v18  ;;  %v4819_v15 = vadd.f32 %v2441_v38, %v6716_v27  ;;  %v2443_v51 = vpop.f32.mrb[22].mxu0  ;;  %v5384_v11 = vld [vmem:[%s7333_s0 + $0xac] ss:$16 sps:$4 sm:$0xff]   ;;  %v5389_v35 = vld [vmem:[%s7333_s0 + $0xe8] ss:$16 sps:$4 sm:$0xff]  }
 0x197   :  { %v2878_v34 = vpack.c.bf16 %v2814_v25, %v2806_v22  ;;  %v6855_v61 = vpack.c.bf16 %v2771_v57, %v2763_v14  ;;  %v2778_v7 = vmax.f32 %v4818_v36, 0.0  ;;  %v4820_v56 = vadd.f32 %v2443_v51, %v6704_v33  ;;  %v2445_v39 = vpop.f32.mrb[23].mxu0  ;;  %v5386_v29 = vld [vmem:[%s7333_s0 + $0xcc] ss:$16 sps:$4 sm:$0xff]  }
 0x198   :  { %v2879_v37 = vpack.c.bf16 %v2815_v63, %v2807_v59  ;;  %3826 = vmatpush1.bf16.msra.mxu0 %v5253_v46  ;;  %v2779_v26 = vmax.f32 %v4819_v15, 0.0  ;;  %v4821_v58 = vadd.f32 %v2445_v39, %v6716_v27  ;;  %v2449_v22 = vpop.f32.mrb[24].mxu0  ;;  %v324_v57 = vsub.s32 3, %v6563_v31 }
 0x199   :  { %3827 = vmatprep.subr.bf16.mxu0 %v5258_v19  ;;  %v2786_v62 = vmax.f32 %v4820_v56, 0.0  ;;  %v4822_v25 = vadd.f32 %v2449_v22, %v6704_v33  ;;  %v2451_v16 = vpop.f32.mrb[25].mxu0 }
 0x19a   :  { %3788 = vmatprep.mubr.bf16.mxu0 %v2879_v37  ;;  %v2787_v46 = vmax.f32 %v4821_v58, 0.0  ;;  %v4823_v19 = vadd.f32 %v2451_v16, %v6716_v27  ;;  %v2453_v4 = vpop.f32.mrb[26].mxu0 }
 0x19b   :  { %3789 = vmatmul.mubr.bf16.gmra.mrb[60].mxu0 %v2878_v34  ;;  %v6867_v21 = vpack.c.bf16 %v2786_v62, %v2778_v7  ;;  %v2794_v9 = vmax.f32 %v4822_v25, 0.0  ;;  %v4824_v59 = vadd.f32 %v2453_v4, %v6704_v33  ;;  %v2455_v63 = vpop.f32.mrb[27].mxu0  ;;  %v5262_v25 = vld [vmem:[%s7334_s3 + $0x200] ss:$8 sps:$4 sm:$0xff]   ;;  %v5267_v4 = vld [vmem:[%s7334_s3 + $0x214] ss:$8 sps:$4 sm:$0xff]  }
 0x19c   :  { %3828 = vmatpush1.bf16.msra.mxu0 %v5256_v0  ;;  %v6869_v28 = vpack.c.bf16 %v2787_v46, %v2779_v26  ;;  %v2795_v30 = vmax.f32 %v4823_v19, 0.0  ;;  %v4825_v32 = vadd.f32 %v2455_v63, %v6716_v27  ;;  %v2459_v2 = vpop.f32.mrb[28].mxu0 }
 0x19d   :  { %2644 = vmatmul.mubr.bf16.gmra.mrb[76].mxu1 %v5381_v47  ;;  %3829 = vmatprep.subr.bf16.mxu0 %v5261_v40  ;;  %v2802_v34 = vmax.f32 %v4824_v59, 0.0  ;;  %v4826_v40 = vadd.f32 %v2459_v2, %v6704_v33  ;;  %v2461_v6 = vpop.f32.mrb[29].mxu0 }
 0x19e   :  { %2653 = vmatprep.mubr.bf16.mxu1 %v5382_v12  ;;  %v2803_v23 = vmax.f32 %v4825_v32, 0.0  ;;  %v4827_v8 = vadd.f32 %v2461_v6, %v6716_v27  ;;  %v2463_v44 = vpop.f32.mrb[30].mxu0 }
 0x19f   :  { %v6881_v37 = vpack.c.bf16 %v2802_v34, %v2794_v9  ;;  %v2810_v48 = vmax.f32 %v4826_v40, 0.0  ;;  %v4828_v10 = vadd.f32 %v2463_v44, %v6704_v33  ;;  %v2465_v47 = vpop.f32.mrb[31].mxu0  ;;  %v320_v33 = vsub.s32 2, %v6563_v31 }
 0x1a0   :  { %3830 = vmatpush1.bf16.msra.mxu0 %v5259_v17  ;;  %v6883_v0 = vpack.c.bf16 %v2803_v23, %v2795_v30  ;;  %v5387_v17 = vld [vmem:[%s7333_s0 + $0xc8] ss:$16 sps:$4 sm:$0xff]   ;;  %v2811_v18 = vmax.f32 %v4827_v8, 0.0  ;;  %v4829_v43 = vadd.f32 %v2465_v47, %v6716_v27  ;;  %v6908_v27 = vrot.slane %v6576_v45, %v324_v57  ;;  %v5270_v23 = vld [vmem:[%s7334_s3 + $0x224] ss:$8 sps:$4 sm:$0xff]  }
 0x1a1   :  { %3912 = vmatprep.subr.bf16.mxu0 %v5264_v49  ;;  %v5388_v49 = vld [vmem:[%s7333_s0 + $0xec] ss:$16 sps:$4 sm:$0xff]   ;;  %v2818_v20 = vmax.f32 %v4828_v10, 0.0  ;;  %v6905_v1 = vrot.slane %v6576_v45, %v320_v33  ;;  %v5265_v30 = vld [vmem:[%s7334_s3 + $0x210] ss:$8 sps:$4 sm:$0xff]  }
 0x1a2   :  { %v2819_v12 = vmax.f32 %v4829_v43, 0.0  ;;  %v5273_v47 = vld [vmem:[%s7334_s3 + $0x234] ss:$8 sps:$4 sm:$0xff]  }
 0x1a3   :  { %v6895_v14 = vpack.c.bf16 %v2818_v20, %v2810_v48 }
 0x1a4   :  { %v6897_v55 = vpack.c.bf16 %v2819_v12, %v2811_v18 }
 0x1a5   :  { %2654 = vmatmul.mubr.bf16.gmra.mrb[80].mxu1 %v5383_v5 }
 0x1a6   :  { %2663 = vmatprep.mubr.bf16.mxu1 %v5384_v11 }
 0x1ad   :  { %2664 = vmatmul.mubr.bf16.gmra.mrb[84].mxu1 %v5385_v54 }
 0x1ae   :  { %2673 = vmatprep.mubr.bf16.mxu1 %v5386_v29 }
 0x1b5   :  { %2674 = vmatmul.mubr.bf16.gmra.mrb[88].mxu1 %v5387_v17  ;;  %v5268_v17 = vld [vmem:[%s7334_s3 + $0x220] ss:$8 sps:$4 sm:$0xff]  }
 0x1b6   :  { %2683 = vmatprep.mubr.bf16.mxu1 %v5388_v49 }
 0x1bd   :  { %2684 = vmatmul.mubr.bf16.gmra.mrb[92].mxu1 %v5389_v35  ;;  %v5271_v35 = vld [vmem:[%s7334_s3 + $0x230] ss:$8 sps:$4 sm:$0xff]  }
 0x1d8   :  { %v2163_v36 = vpop.f32.mrb[32].mxu1 }
 0x1d9   :  { %v4766_v38 = vadd.f32 %v2163_v36, %v6905_v1  ;;  %v2165_v15 = vpop.f32.mrb[33].mxu1  ;;  %v5276_v36 = vld [vmem:[%s7334_s3 + $0x244] ss:$8 sps:$4 sm:$0xff]  }
 0x1da   :  { %v4767_v51 = vadd.f32 %v2165_v15, %v6908_v27  ;;  %v2167_v5 = vpop.f32.mrb[34].mxu1 }
 0x1db   :  { %v4768_v7 = vadd.f32 %v2167_v5, %v6905_v1  ;;  %v2169_v56 = vpop.f32.mrb[35].mxu1  ;;  %v2696_v11 = vmax.f32 %v4766_v38, 0.0 }
 0x1dc   :  { %v4769_v39 = vadd.f32 %v2169_v56, %v6908_v27  ;;  %v2697_v58 = vmax.f32 %v4767_v51, 0.0  ;;  %v5274_v56 = vld [vmem:[%s7334_s3 + $0x240] ss:$8 sps:$4 sm:$0xff]  }
 0x1dd   :  { %v2704_v26 = vmax.f32 %v4768_v7, 0.0 }
 0x1de   :  { %v2705_v62 = vmax.f32 %v4769_v39, 0.0 }
 0x1df   :  { %v2824_v46 = vpack.c.bf16 %v2704_v26, %v2696_v11  ;;  %v5279_v26 = vld [vmem:[%s7334_s3 + $0x254] ss:$8 sps:$4 sm:$0xff]  }
 0x1e0   :  { %v2825_v22 = vpack.c.bf16 %v2705_v62, %v2697_v58  ;;  %v2173_v45 = vpop.f32.mrb[36].mxu1 }
 0x1e1   :  { %v4770_v16 = vadd.f32 %v2173_v45, %v6905_v1  ;;  %v2175_v19 = vpop.f32.mrb[37].mxu1 }
 0x1e2   :  { %v4771_v54 = vadd.f32 %v2175_v19, %v6908_v27  ;;  %v2177_v9 = vpop.f32.mrb[38].mxu1  ;;  %3831 = vmatprep.mubr.bf16.mxu0 %v2825_v22 }
 0x1e3   :  { %v4772_v59 = vadd.f32 %v2177_v9, %v6905_v1  ;;  %v2179_v63 = vpop.f32.mrb[39].mxu1  ;;  %3832 = vmatmul.mubr.bf16.vlgmr.msra.gmra.mrb[32].mxu0 %v2824_v46  ;;  %v2712_v32 = vmax.f32 %v4770_v16, 0.0 }
 0x1e4   :  { %v4773_v29 = vadd.f32 %v2179_v63, %v6908_v27  ;;  %3913 = vmatpush1.bf16.msra.mxu0 %v5262_v25  ;;  %v2713_v2 = vmax.f32 %v4771_v54, 0.0  ;;  %v5277_v25 = vld [vmem:[%s7334_s3 + $0x250] ss:$8 sps:$4 sm:$0xff]  }
 0x1e5   :  { %v2720_v34 = vmax.f32 %v4772_v59, 0.0  ;;  %3914 = vmatprep.subr.bf16.mxu0 %v5267_v4  ;;  %v5282_v4 = vld [vmem:[%s7334_s3 + $0x264] ss:$8 sps:$4 sm:$0xff]  }
 0x1e6   :  { %v2721_v40 = vmax.f32 %v4773_v29, 0.0 }
 0x1e7   :  { %v2832_v6 = vpack.c.bf16 %v2720_v34, %v2712_v32 }
 0x1e8   :  { %v2833_v8 = vpack.c.bf16 %v2721_v40, %v2713_v2  ;;  %v2183_v44 = vpop.f32.mrb[40].mxu1  ;;  %3915 = vmatpush1.bf16.msra.mxu0 %v5265_v30  ;;  %v5280_v30 = vld [vmem:[%s7334_s3 + $0x260] ss:$8 sps:$4 sm:$0xff]  }
 0x1e9   :  { %v4774_v48 = vadd.f32 %v2183_v44, %v6905_v1  ;;  %v2185_v10 = vpop.f32.mrb[41].mxu1  ;;  %3916 = vmatprep.subr.bf16.mxu0 %v5270_v23  ;;  %v5285_v23 = vld [vmem:[%s7334_s3 + $0x274] ss:$8 sps:$4 sm:$0xff]  }
 0x1ea   :  { %v4775_v49 = vadd.f32 %v2185_v10, %v6908_v27  ;;  %v2187_v18 = vpop.f32.mrb[42].mxu1  ;;  %3841 = vmatprep.mubr.bf16.mxu0 %v2833_v8 }
 0x1eb   :  { %v4776_v43 = vadd.f32 %v2187_v18, %v6905_v1  ;;  %v2189_v20 = vpop.f32.mrb[43].mxu1  ;;  %3842 = vmatmul.mubr.bf16.gmra.mrb[36].mxu0 %v2832_v6  ;;  %v2728_v33 = vmax.f32 %v4774_v48, 0.0 }
 0x1ec   :  { %v4777_v12 = vadd.f32 %v2189_v20, %v6908_v27  ;;  %3917 = vmatpush1.bf16.msra.mxu0 %v5268_v17  ;;  %v2729_v38 = vmax.f32 %v4775_v49, 0.0  ;;  %v5283_v17 = vld [vmem:[%s7334_s3 + $0x270] ss:$8 sps:$4 sm:$0xff]  }
 0x1ed   :  { %v2736_v57 = vmax.f32 %v4776_v43, 0.0  ;;  %3918 = vmatprep.subr.bf16.mxu0 %v5273_v47  ;;  %v5288_v47 = vld [vmem:[%s7334_s3 + $0x284] ss:$8 sps:$4 sm:$0xff]  }
 0x1ee   :  { %v2737_v15 = vmax.f32 %v4777_v12, 0.0 }
 0x1ef   :  { %v2840_v51 = vpack.c.bf16 %v2736_v57, %v2728_v33 }
 0x1f0   :  { %v2841_v5 = vpack.c.bf16 %v2737_v15, %v2729_v38  ;;  %v2193_v7 = vpop.f32.mrb[44].mxu1  ;;  %3919 = vmatpush1.bf16.msra.mxu0 %v5271_v35  ;;  %v5286_v35 = vld [vmem:[%s7334_s3 + $0x280] ss:$8 sps:$4 sm:$0xff]  }
 0x1f1   :  { %v4778_v39 = vadd.f32 %v2193_v7, %v6905_v1  ;;  %v2195_v11 = vpop.f32.mrb[45].mxu1  ;;  %3920 = vmatprep.subr.bf16.mxu0 %v5276_v36  ;;  %v5291_v36 = vld [vmem:[%s7334_s3 + $0x294] ss:$8 sps:$4 sm:$0xff]  }
 0x1f2   :  { %v4779_v58 = vadd.f32 %v2195_v11, %v6908_v27  ;;  %v2197_v62 = vpop.f32.mrb[46].mxu1  ;;  %3851 = vmatprep.mubr.bf16.mxu0 %v2841_v5 }
 0x1f3   :  { %v4780_v46 = vadd.f32 %v2197_v62, %v6905_v1  ;;  %v2199_v22 = vpop.f32.mrb[47].mxu1  ;;  %3852 = vmatmul.mubr.bf16.gmra.mrb[40].mxu0 %v2840_v51  ;;  %v2744_v16 = vmax.f32 %v4778_v39, 0.0 }
 0x1f4   :  { %v4781_v45 = vadd.f32 %v2199_v22, %v6908_v27  ;;  %3921 = vmatpush1.bf16.msra.mxu0 %v5274_v56  ;;  %v2745_v54 = vmax.f32 %v4779_v58, 0.0  ;;  %v5289_v56 = vld [vmem:[%s7334_s3 + $0x290] ss:$8 sps:$4 sm:$0xff]  }
 0x1f5   :  { %v2752_v19 = vmax.f32 %v4780_v46, 0.0  ;;  %3922 = vmatprep.subr.bf16.mxu0 %v5279_v26  ;;  %v5294_v26 = vld [vmem:[%s7334_s3 + $0x2a4] ss:$8 sps:$4 sm:$0xff]  }
 0x1f6   :  { %v2753_v9 = vmax.f32 %v4781_v45, 0.0 }
 0x1f7   :  { %v2848_v59 = vpack.c.bf16 %v2752_v19, %v2744_v16 }
 0x1f8   :  { %v2849_v63 = vpack.c.bf16 %v2753_v9, %v2745_v54  ;;  %v2203_v29 = vpop.f32.mrb[48].mxu1  ;;  %3923 = vmatpush1.bf16.msra.mxu0 %v5277_v25  ;;  %v5292_v25 = vld [vmem:[%s7334_s3 + $0x2a0] ss:$8 sps:$4 sm:$0xff]  }
 0x1f9   :  { %v4782_v32 = vadd.f32 %v2203_v29, %v6905_v1  ;;  %v2205_v34 = vpop.f32.mrb[49].mxu1  ;;  %3924 = vmatprep.subr.bf16.mxu0 %v5282_v4  ;;  %v5297_v4 = vld [vmem:[%s7334_s3 + $0x2b4] ss:$8 sps:$4 sm:$0xff]  }
 0x1fa   :  { %v4783_v2 = vadd.f32 %v2205_v34, %v6908_v27  ;;  %v2207_v40 = vpop.f32.mrb[50].mxu1  ;;  %3861 = vmatprep.mubr.bf16.mxu0 %v2849_v63 }
 0x1fb   :  { %v4784_v6 = vadd.f32 %v2207_v40, %v6905_v1  ;;  %v2209_v8 = vpop.f32.mrb[51].mxu1  ;;  %3862 = vmatmul.mubr.bf16.gmra.mrb[44].mxu0 %v2848_v59  ;;  %v2760_v48 = vmax.f32 %v4782_v32, 0.0 }
 0x1fc   :  { %v4785_v44 = vadd.f32 %v2209_v8, %v6908_v27  ;;  %3925 = vmatpush1.bf16.msra.mxu0 %v5280_v30  ;;  %v2761_v49 = vmax.f32 %v4783_v2, 0.0  ;;  %v5295_v30 = vld [vmem:[%s7334_s3 + $0x2b0] ss:$8 sps:$4 sm:$0xff]  }
 0x1fd   :  { %v2768_v10 = vmax.f32 %v4784_v6, 0.0  ;;  %3926 = vmatprep.subr.bf16.mxu0 %v5285_v23  ;;  %v5300_v23 = vld [vmem:[%s7334_s3 + $0x2c4] ss:$8 sps:$4 sm:$0xff]  }
 0x1fe   :  { %v2769_v18 = vmax.f32 %v4785_v44, 0.0 }
 0x1ff   :  { %v2856_v43 = vpack.c.bf16 %v2768_v10, %v2760_v48 }
 0x200   :  { %v2857_v20 = vpack.c.bf16 %v2769_v18, %v2761_v49  ;;  %v2213_v12 = vpop.f32.mrb[52].mxu1  ;;  %3927 = vmatpush1.bf16.msra.mxu0 %v5283_v17  ;;  %v5298_v17 = vld [vmem:[%s7334_s3 + $0x2c0] ss:$8 sps:$4 sm:$0xff]  }
 0x201   :  { %v4786_v33 = vadd.f32 %v2213_v12, %v6905_v1  ;;  %v2215_v57 = vpop.f32.mrb[53].mxu1  ;;  %3928 = vmatprep.subr.bf16.mxu0 %v5288_v47  ;;  %v5303_v47 = vld [vmem:[%s7334_s3 + $0x2d4] ss:$8 sps:$4 sm:$0xff]  }
 0x202   :  { %v4787_v38 = vadd.f32 %v2215_v57, %v6908_v27  ;;  %v2217_v15 = vpop.f32.mrb[54].mxu1  ;;  %3871 = vmatprep.mubr.bf16.mxu0 %v2857_v20 }
 0x203   :  { %v4788_v51 = vadd.f32 %v2217_v15, %v6905_v1  ;;  %v2219_v5 = vpop.f32.mrb[55].mxu1  ;;  %3872 = vmatmul.mubr.bf16.gmra.mrb[48].mxu0 %v2856_v43  ;;  %v2776_v39 = vmax.f32 %v4786_v33, 0.0 }
 0x204   :  { %v4789_v7 = vadd.f32 %v2219_v5, %v6908_v27  ;;  %3929 = vmatpush1.bf16.msra.mxu0 %v5286_v35  ;;  %v2777_v58 = vmax.f32 %v4787_v38, 0.0  ;;  %v5301_v35 = vld [vmem:[%s7334_s3 + $0x2d0] ss:$8 sps:$4 sm:$0xff]   ;;  %v5309_v5 = vld [vmem:[%s7334_s3 + $0x2f4] ss:$8 sps:$4 sm:$0xff]  }
 0x205   :  { %v2784_v11 = vmax.f32 %v4788_v51, 0.0  ;;  %3930 = vmatprep.subr.bf16.mxu0 %v5291_v36  ;;  %v5306_v36 = vld [vmem:[%s7334_s3 + $0x2e4] ss:$8 sps:$4 sm:$0xff]  }
 0x206   :  { %v2785_v62 = vmax.f32 %v4789_v7, 0.0  ;;  %v5307_v7 = vld [vmem:[%s7334_s3 + $0x2f0] ss:$8 sps:$4 sm:$0xff]  }
 0x207   :  { %v2864_v46 = vpack.c.bf16 %v2784_v11, %v2776_v39  ;;  %v5310_v39 = vld [vmem:[%s7334_s3 + $0x300] ss:$8 sps:$4 sm:$0xff]   ;;  %v5315_v11 = vld [vmem:[%s7334_s3 + $0x314] ss:$8 sps:$4 sm:$0xff]  }
 0x208   :  { %v2865_v22 = vpack.c.bf16 %v2785_v62, %v2777_v58  ;;  %v2223_v45 = vpop.f32.mrb[56].mxu1  ;;  %3931 = vmatpush1.bf16.msra.mxu0 %v5289_v56  ;;  %v5312_v56 = vld [vmem:[%s7334_s3 + $0x304] ss:$8 sps:$4 sm:$0xff]   ;;  %v5316_v58 = vld [vmem:[%s7334_s3 + $0x320] ss:$8 sps:$4 sm:$0xff]  }
 0x209   :  { %v4790_v16 = vadd.f32 %v2223_v45, %v6905_v1  ;;  %v2225_v19 = vpop.f32.mrb[57].mxu1  ;;  %3932 = vmatprep.subr.bf16.mxu0 %v5294_v26  ;;  %v5318_v26 = vld [vmem:[%s7334_s3 + $0x324] ss:$8 sps:$4 sm:$0xff]   ;;  %v5328_v45 = vld [vmem:[%s7334_s3 + $0x360] ss:$8 sps:$4 sm:$0xff]  }
 0x20a   :  { %v4791_v54 = vadd.f32 %v2225_v19, %v6908_v27  ;;  %v2227_v9 = vpop.f32.mrb[58].mxu1  ;;  %3881 = vmatprep.mubr.bf16.mxu0 %v2865_v22  ;;  %v5324_v62 = vld [vmem:[%s7334_s3 + $0x344] ss:$8 sps:$4 sm:$0xff]  }
 0x20b   :  { %v4792_v59 = vadd.f32 %v2227_v9, %v6905_v1  ;;  %v2229_v63 = vpop.f32.mrb[59].mxu1  ;;  %3882 = vmatmul.mubr.bf16.gmra.mrb[52].mxu0 %v2864_v46  ;;  %v2792_v32 = vmax.f32 %v4790_v16, 0.0  ;;  %v5322_v46 = vld [vmem:[%s7334_s3 + $0x340] ss:$8 sps:$4 sm:$0xff]   ;;  %v5330_v22 = vld [vmem:[%s7334_s3 + $0x364] ss:$8 sps:$4 sm:$0xff]  }
 0x20c   :  { %v4793_v29 = vadd.f32 %v2229_v63, %v6908_v27  ;;  %3933 = vmatpush1.bf16.msra.mxu0 %v5292_v25  ;;  %v2793_v2 = vmax.f32 %v4791_v54, 0.0  ;;  %v5336_v25 = vld [vmem:[%s7334_s3 + $0x384] ss:$8 sps:$4 sm:$0xff]   ;;  %v5334_v16 = vld [vmem:[%s7334_s3 + $0x380] ss:$8 sps:$4 sm:$0xff]  }
 0x20d   :  { %v2800_v34 = vmax.f32 %v4792_v59, 0.0  ;;  %3934 = vmatprep.subr.bf16.mxu0 %v5297_v4  ;;  %v5342_v19 = vld [vmem:[%s7334_s3 + $0x3a4] ss:$8 sps:$4 sm:$0xff]   ;;  %v5340_v4 = vld [vmem:[%s7334_s3 + $0x3a0] ss:$8 sps:$4 sm:$0xff]   ;;  %v340_v59 = vsub.s32 7, %v6563_v31 }
 0x20e   :  { %v2801_v40 = vmax.f32 %v4793_v29, 0.0  ;;  %v5348_v54 = vld [vmem:[%s7334_s3 + $0x3c4] ss:$8 sps:$4 sm:$0xff]   ;;  %v5346_v9 = vld [vmem:[%s7334_s3 + $0x3c0] ss:$8 sps:$4 sm:$0xff]  }
 0x20f   :  { %v2872_v6 = vpack.c.bf16 %v2800_v34, %v2792_v32  ;;  %v5349_v63 = vld [vmem:[%s7334_s3 + $0x3d0] ss:$8 sps:$4 sm:$0xff]   ;;  %v5390_v29 = vld [vmem:[%s7335_s2] sm:$0xff] }
 0x210   :  { %v2873_v8 = vpack.c.bf16 %v2801_v40, %v2793_v2  ;;  %v2233_v44 = vpop.f32.mrb[60].mxu1  ;;  %3935 = vmatpush1.bf16.msra.mxu0 %v5295_v30  ;;  %v7144_v32 = vrot.slane %v5390_v29, %v340_v59  ;;  %v5357_v2 = vld [vmem:[%s7334_s3 + $0x3f4] ss:$8 sps:$4 sm:$0xff]  }
 0x211   :  { %v4794_v48 = vadd.f32 %v2233_v44, %v6905_v1  ;;  %v2235_v10 = vpop.f32.mrb[61].mxu1  ;;  %3936 = vmatprep.subr.bf16.mxu0 %v5300_v23 }
 0x212   :  { %v4795_v49 = vadd.f32 %v2235_v10, %v6908_v27  ;;  %v2237_v18 = vpop.f32.mrb[62].mxu1  ;;  %3891 = vmatprep.mubr.bf16.mxu0 %v2873_v8 }
 0x213   :  { %v4796_v43 = vadd.f32 %v2237_v18, %v6905_v1  ;;  %v2239_v20 = vpop.f32.mrb[63].mxu1  ;;  %3892 = vmatmul.mubr.bf16.gmra.mrb[56].mxu0 %v2872_v6  ;;  %v2808_v33 = vmax.f32 %v4794_v48, 0.0  ;;  %v5355_v48 = vld [vmem:[%s7334_s3 + $0x3f0] ss:$8 sps:$4 sm:$0xff]  }
 0x214   :  { %v4797_v12 = vadd.f32 %v2239_v20, %v6908_v27  ;;  %3937 = vmatpush1.bf16.msra.mxu0 %v5298_v17  ;;  %v2809_v38 = vmax.f32 %v4795_v49, 0.0  ;;  %v5304_v27 = vld [vmem:[%s7334_s3 + $0x2e0] ss:$8 sps:$4 sm:$0xff]  }
 0x215   :  { %v2816_v57 = vmax.f32 %v4796_v43, 0.0  ;;  %3938 = vmatprep.subr.bf16.mxu0 %v5303_v47 }
 0x216   :  { %v2817_v15 = vmax.f32 %v4797_v12, 0.0 }
 0x217   :  { %v2880_v51 = vpack.c.bf16 %v2816_v57, %v2808_v33 }
 0x218   :  { %v2881_v1 = vpack.c.bf16 %v2817_v15, %v2809_v38  ;;  %3939 = vmatpush1.bf16.msra.mxu0 %v5301_v35 }
 0x219   :  { %3940 = vmatprep.subr.bf16.mxu0 %v5306_v36 }
 0x21a   :  { %3901 = vmatprep.mubr.bf16.mxu0 %v2881_v1 }
 0x21b   :  { %3902 = vmatmul.mubr.bf16.gmra.mrb[60].mxu0 %v2880_v51 }
 0x21c   :  { %3941 = vmatpush1.bf16.msra.mxu0 %v5304_v27  ;;  %3944 = vmatprep.mubr.bf16.mxu0 %v6747_v52  ;;  %v5313_v52 = vld [vmem:[%s7334_s3 + $0x310] ss:$8 sps:$4 sm:$0xff]  }
 0x21d   :  { %3942 = vmatprep.subr.bf16.mxu0 %v5309_v5 }
 0x220   :  { %3943 = vmatpush1.bf16.msra.mxu0 %v5307_v7 }
 0x221   :  { %4025 = vmatprep.subr.bf16.mxu0 %v5312_v56 }
 0x223   :  { %3945 = vmatmul.mubr.bf16.vlgmr.msra.gmra.mrb[32].mxu0 %v6744_v50  ;;  %v5321_v50 = vld [vmem:[%s7334_s3 + $0x334] ss:$8 sps:$4 sm:$0xff]  }
 0x224   :  { %3954 = vmatprep.mubr.bf16.mxu0 %v6777_v53  ;;  %4026 = vmatpush1.bf16.msra.mxu0 %v5310_v39  ;;  %v5319_v53 = vld [vmem:[%s7334_s3 + $0x330] ss:$8 sps:$4 sm:$0xff]  }
 0x225   :  { %4027 = vmatprep.subr.bf16.mxu0 %v5315_v11 }
 0x228   :  { %4028 = vmatpush1.bf16.msra.mxu0 %v5313_v52 }
 0x229   :  { %4029 = vmatprep.subr.bf16.mxu0 %v5318_v26 }
 0x22b   :  { %3955 = vmatmul.mubr.bf16.gmra.mrb[36].mxu0 %v6774_v60  ;;  %v5327_v60 = vld [vmem:[%s7334_s3 + $0x354] ss:$8 sps:$4 sm:$0xff]  }
 0x22c   :  { %3964 = vmatprep.mubr.bf16.mxu0 %v6807_v41  ;;  %4030 = vmatpush1.bf16.msra.mxu0 %v5316_v58  ;;  %v5325_v41 = vld [vmem:[%s7334_s3 + $0x350] ss:$8 sps:$4 sm:$0xff]  }
 0x22d   :  { %4031 = vmatprep.subr.bf16.mxu0 %v5321_v50 }
 0x230   :  { %4032 = vmatpush1.bf16.msra.mxu0 %v5319_v53 }
 0x231   :  { %4033 = vmatprep.subr.bf16.mxu0 %v5324_v62 }
 0x233   :  { %3965 = vmatmul.mubr.bf16.gmra.mrb[40].mxu0 %v6804_v3  ;;  %v5333_v3 = vld [vmem:[%s7334_s3 + $0x374] ss:$8 sps:$4 sm:$0xff]  }
 0x234   :  { %3974 = vmatprep.mubr.bf16.mxu0 %v6835_v13  ;;  %4034 = vmatpush1.bf16.msra.mxu0 %v5322_v46  ;;  %v5331_v13 = vld [vmem:[%s7334_s3 + $0x370] ss:$8 sps:$4 sm:$0xff]  }
 0x235   :  { %4035 = vmatprep.subr.bf16.mxu0 %v5327_v60 }
 0x238   :  { %4036 = vmatpush1.bf16.msra.mxu0 %v5325_v41 }
 0x239   :  { %4037 = vmatprep.subr.bf16.mxu0 %v5330_v22 }
 0x23b   :  { %3975 = vmatmul.mubr.bf16.gmra.mrb[44].mxu0 %v6833_v42  ;;  %v5339_v42 = vld [vmem:[%s7334_s3 + $0x394] ss:$8 sps:$4 sm:$0xff]  }
 0x23c   :  { %3984 = vmatprep.mubr.bf16.mxu0 %v6855_v61  ;;  %4038 = vmatpush1.bf16.msra.mxu0 %v5328_v45  ;;  %v5337_v61 = vld [vmem:[%s7334_s3 + $0x390] ss:$8 sps:$4 sm:$0xff]  }
 0x23d   :  { %4039 = vmatprep.subr.bf16.mxu0 %v5333_v3 }
 0x240   :  { %4040 = vmatpush1.bf16.msra.mxu0 %v5331_v13 }
 0x241   :  { %4041 = vmatprep.subr.bf16.mxu0 %v5336_v25 }
 0x243   :  { %3985 = vmatmul.mubr.bf16.gmra.mrb[48].mxu0 %v6853_v24  ;;  %v5345_v24 = vld [vmem:[%s7334_s3 + $0x3b4] ss:$8 sps:$4 sm:$0xff]  }
 0x244   :  { %3994 = vmatprep.mubr.bf16.mxu0 %v6869_v28  ;;  %4042 = vmatpush1.bf16.msra.mxu0 %v5334_v16  ;;  %v5343_v28 = vld [vmem:[%s7334_s3 + $0x3b0] ss:$8 sps:$4 sm:$0xff]  }
 0x245   :  { %4043 = vmatprep.subr.bf16.mxu0 %v5339_v42 }
 0x248   :  { %4044 = vmatpush1.bf16.msra.mxu0 %v5337_v61 }
 0x249   :  { %4045 = vmatprep.subr.bf16.mxu0 %v5342_v19 }
 0x24b   :  { %3995 = vmatmul.mubr.bf16.gmra.mrb[52].mxu0 %v6867_v21  ;;  %v5351_v21 = vld [vmem:[%s7334_s3 + $0x3d4] ss:$8 sps:$4 sm:$0xff]  }
 0x24c   :  { %4004 = vmatprep.mubr.bf16.mxu0 %v6883_v0  ;;  %4046 = vmatpush1.bf16.msra.mxu0 %v5340_v4  ;;  %v336_v0 = vsub.s32 6, %v6563_v31  ;;  %v5354_v31 = vld [vmem:[%s7334_s3 + $0x3e4] ss:$8 sps:$4 sm:$0xff]  }
 0x24d   :  { %4047 = vmatprep.subr.bf16.mxu0 %v5345_v24 }
 0x24e   :  { %v7139_v30 = vrot.slane %v5390_v29, %v336_v0 }
 0x250   :  { %4048 = vmatpush1.bf16.msra.mxu0 %v5343_v28 }
 0x251   :  { %4049 = vmatprep.subr.bf16.mxu0 %v5348_v54 }
 0x253   :  { %4005 = vmatmul.mubr.bf16.gmra.mrb[56].mxu0 %v6881_v37 }
 0x254   :  { %4014 = vmatprep.mubr.bf16.mxu0 %v6897_v55  ;;  %4050 = vmatpush1.bf16.msra.mxu0 %v5346_v9  ;;  %v5352_v55 = vld [vmem:[%s7334_s3 + $0x3e0] ss:$8 sps:$4 sm:$0xff]  }
 0x255   :  { %4051 = vmatprep.subr.bf16.mxu0 %v5351_v21 }
 0x258   :  { %v2615_v37 = vpop.f32.mrb[64].mxu1  ;;  %4052 = vmatpush1.bf16.msra.mxu0 %v5349_v63 }
 0x259   :  { %v4830_v34 = vadd.f32 %v2615_v37, %v7139_v30  ;;  %v2617_v23 = vpop.f32.mrb[65].mxu1  ;;  %4053 = vmatprep.subr.bf16.mxu0 %v5354_v31 }
 0x25a   :  { %v4831_v40 = vadd.f32 %v2617_v23, %v7144_v32  ;;  %v2619_v6 = vpop.f32.mrb[66].mxu1 }
 0x25b   :  { %v4832_v8 = vadd.f32 %v2619_v6, %v7139_v30  ;;  %v2621_v44 = vpop.f32.mrb[67].mxu1  ;;  %4015 = vmatmul.mubr.bf16.gmra.mrb[60].mxu0 %v6895_v14  ;;  %v2700_v10 = vmax.f32 %v4830_v34, 0.0 }
 0x25c   :  { %v4833_v17 = vadd.f32 %v2621_v44, %v7144_v32  ;;  %4054 = vmatpush1.bf16.msra.mxu0 %v5352_v55  ;;  %v2701_v49 = vmax.f32 %v4831_v40, 0.0 }
 0x25d   :  { %v2708_v47 = vmax.f32 %v4832_v8, 0.0  ;;  %4055 = vmatprep.subr.bf16.mxu0 %v5357_v2 }
 0x25e   :  { %v2709_v18 = vmax.f32 %v4833_v17, 0.0 }
 0x25f   :  { %v2828_v43 = vpack.c.bf16 %v2708_v47, %v2700_v10 }
 0x260   :  { %v2829_v20 = vpack.c.bf16 %v2709_v18, %v2701_v49  ;;  %v2625_v12 = vpop.f32.mrb[68].mxu1  ;;  %4056 = vmatpush1.bf16.msra.mxu0 %v5355_v48 }
 0x261   :  { %v4834_v35 = vadd.f32 %v2625_v12, %v7139_v30  ;;  %v2627_v33 = vpop.f32.mrb[69].mxu1 }
 0x262   :  { %v4835_v14 = vadd.f32 %v2627_v33, %v7144_v32  ;;  %v2629_v57 = vpop.f32.mrb[70].mxu1  ;;  %4057 = vmatprep.mubr.bf16.mxu0 %v2829_v20 }
 0x263   :  { %v4836_v36 = vadd.f32 %v2629_v57, %v7139_v30  ;;  %v2631_v38 = vpop.f32.mrb[71].mxu1  ;;  %4058 = vmatmul.mubr.bf16.vlgmr.msra.gmra.mrb[32].mxu0 %v2828_v43  ;;  %v2716_v51 = vmax.f32 %v4834_v35, 0.0 }
 0x264   :  { %v4837_v15 = vadd.f32 %v2631_v38, %v7144_v32  ;;  %v2717_v27 = vmax.f32 %v4835_v14, 0.0 }
 0x265   :  { %v2724_v1 = vmax.f32 %v4836_v36, 0.0 }
 0x266   :  { %v2725_v5 = vmax.f32 %v4837_v15, 0.0 }
 0x267   :  { %v2836_v7 = vpack.c.bf16 %v2724_v1, %v2716_v51 }
 0x268   :  { %v2837_v56 = vpack.c.bf16 %v2725_v5, %v2717_v27  ;;  %v2635_v39 = vpop.f32.mrb[72].mxu1 }
 0x269   :  { %v4838_v11 = vadd.f32 %v2635_v39, %v7139_v30  ;;  %v2637_v52 = vpop.f32.mrb[73].mxu1 }
 0x26a   :  { %v4839_v26 = vadd.f32 %v2637_v52, %v7144_v32  ;;  %v2639_v58 = vpop.f32.mrb[74].mxu1  ;;  %4067 = vmatprep.mubr.bf16.mxu0 %v2837_v56 }
 0x26b   :  { %v4840_v50 = vadd.f32 %v2639_v58, %v7139_v30  ;;  %v2641_v53 = vpop.f32.mrb[75].mxu1  ;;  %4068 = vmatmul.mubr.bf16.gmra.mrb[36].mxu0 %v2836_v7  ;;  %v2732_v46 = vmax.f32 %v4838_v11, 0.0 }
 0x26c   :  { %v4841_v62 = vadd.f32 %v2641_v53, %v7144_v32  ;;  %v2733_v41 = vmax.f32 %v4839_v26, 0.0 }
 0x26d   :  { %v2740_v60 = vmax.f32 %v4840_v50, 0.0 }
 0x26e   :  { %v2741_v22 = vmax.f32 %v4841_v62, 0.0 }
 0x26f   :  { %v2844_v45 = vpack.c.bf16 %v2740_v60, %v2732_v46 }
 0x270   :  { %v2845_v3 = vpack.c.bf16 %v2741_v22, %v2733_v41  ;;  %v2645_v13 = vpop.f32.mrb[76].mxu1 }
 0x271   :  { %v4842_v25 = vadd.f32 %v2645_v13, %v7139_v30  ;;  %v2647_v16 = vpop.f32.mrb[77].mxu1 }
 0x272   :  { %v4843_v42 = vadd.f32 %v2647_v16, %v7144_v32  ;;  %v2649_v61 = vpop.f32.mrb[78].mxu1  ;;  %4077 = vmatprep.mubr.bf16.mxu0 %v2845_v3 }
 0x273   :  { %v4844_v19 = vadd.f32 %v2649_v61, %v7139_v30  ;;  %v2651_v4 = vpop.f32.mrb[79].mxu1  ;;  %4078 = vmatmul.mubr.bf16.gmra.mrb[40].mxu0 %v2844_v45  ;;  %v2748_v28 = vmax.f32 %v4842_v25, 0.0 }
 0x274   :  { %v4845_v24 = vadd.f32 %v2651_v4, %v7144_v32  ;;  %v2749_v9 = vmax.f32 %v4843_v42, 0.0 }
 0x275   :  { %v2756_v54 = vmax.f32 %v4844_v19, 0.0 }
 0x276   :  { %v2757_v21 = vmax.f32 %v4845_v24, 0.0 }
 0x277   :  { %v2852_v0 = vpack.c.bf16 %v2756_v54, %v2748_v28  ;;  %v3014_v28 = vld [vmem:[%s7336_s4] sm:$0xff] }
 0x278   :  { %v2853_v59 = vpack.c.bf16 %v2757_v21, %v2749_v9  ;;  %v2655_v63 = vpop.f32.mrb[80].mxu1 }
 0x279   :  { %v4846_v29 = vadd.f32 %v2655_v63, %v7139_v30  ;;  %v2657_v31 = vpop.f32.mrb[81].mxu1 }
 0x27a   :  { %v4847_v37 = vadd.f32 %v2657_v31, %v7144_v32  ;;  %v2659_v55 = vpop.f32.mrb[82].mxu1  ;;  %4087 = vmatprep.mubr.bf16.mxu0 %v2853_v59 }
 0x27b   :  { %v4848_v34 = vadd.f32 %v2659_v55, %v7139_v30  ;;  %v2661_v23 = vpop.f32.mrb[83].mxu1  ;;  %4088 = vmatmul.mubr.bf16.gmra.mrb[44].mxu0 %v2852_v0  ;;  %v2764_v40 = vmax.f32 %v4846_v29, 0.0  ;;  %v3017_v0 = vld [vmem:[%s7336_s4 + $0x18] sm:$0xff] }
 0x27c   :  { %v4849_v2 = vadd.f32 %v2661_v23, %v7144_v32  ;;  %v2765_v8 = vmax.f32 %v4847_v37, 0.0 }
 0x27d   :  { %v2772_v6 = vmax.f32 %v4848_v34, 0.0 }
 0x27e   :  { %v2773_v44 = vmax.f32 %v4849_v2, 0.0 }
 0x27f   :  { %v2860_v17 = vpack.c.bf16 %v2772_v6, %v2764_v40  ;;  %v3018_v6 = vld [vmem:[%s7336_s4 + $0x20] sm:$0xff] }
 0x280   :  { %v2861_v48 = vpack.c.bf16 %v2773_v44, %v2765_v8  ;;  %v2665_v10 = vpop.f32.mrb[84].mxu1  ;;  %v3019_v8 = vld [vmem:[%s7336_s4 + $0x28] sm:$0xff] }
 0x281   :  { %v4850_v47 = vadd.f32 %v2665_v10, %v7139_v30  ;;  %v2667_v49 = vpop.f32.mrb[85].mxu1 }
 0x282   :  { %v4851_v18 = vadd.f32 %v2667_v49, %v7144_v32  ;;  %v2669_v43 = vpop.f32.mrb[86].mxu1  ;;  %4097 = vmatprep.mubr.bf16.mxu0 %v2861_v48  ;;  %v3020_v48 = vld [vmem:[%s7336_s4 + $0x30] sm:$0xff]  ;;  %v3021_v49 = vld [vmem:[%s7336_s4 + $0x38] sm:$0xff] }
 0x283   :  { %v4852_v20 = vadd.f32 %v2669_v43, %v7139_v30  ;;  %v2671_v12 = vpop.f32.mrb[87].mxu1  ;;  %4098 = vmatmul.mubr.bf16.gmra.mrb[48].mxu0 %v2860_v17  ;;  %v2780_v33 = vmax.f32 %v4850_v47, 0.0 }
 0x284   :  { %v4853_v35 = vadd.f32 %v2671_v12, %v7144_v32  ;;  %v2781_v57 = vmax.f32 %v4851_v18, 0.0 }
 0x285   :  { %v2788_v14 = vmax.f32 %v4852_v20, 0.0 }
 0x286   :  { %v2789_v36 = vmax.f32 %v4853_v35, 0.0 }
 0x287   :  { %v2868_v38 = vpack.c.bf16 %v2788_v14, %v2780_v33 }
 0x288   :  { %v2869_v15 = vpack.c.bf16 %v2789_v36, %v2781_v57  ;;  %v2675_v51 = vpop.f32.mrb[88].mxu1 }
 0x289   :  { %v4854_v1 = vadd.f32 %v2675_v51, %v7139_v30  ;;  %v2677_v27 = vpop.f32.mrb[89].mxu1  ;;  %v3023_v51 = vld [vmem:[%s7336_s4 + $0x48] sm:$0xff] }
 0x28a   :  { %v4855_v5 = vadd.f32 %v2677_v27, %v7144_v32  ;;  %v2679_v7 = vpop.f32.mrb[90].mxu1  ;;  %4107 = vmatprep.mubr.bf16.mxu0 %v2869_v15  ;;  %v3022_v15 = vld [vmem:[%s7336_s4 + $0x40] sm:$0xff] }
 0x28b   :  { %v4856_v56 = vadd.f32 %v2679_v7, %v7139_v30  ;;  %v2681_v39 = vpop.f32.mrb[91].mxu1  ;;  %4108 = vmatmul.mubr.bf16.gmra.mrb[52].mxu0 %v2868_v38  ;;  %v2796_v52 = vmax.f32 %v4854_v1, 0.0 }
 0x28c   :  { %v4857_v11 = vadd.f32 %v2681_v39, %v7144_v32  ;;  %v2797_v58 = vmax.f32 %v4855_v5, 0.0  ;;  %v3024_v5 = vld [vmem:[%s7336_s4 + $0x50] sm:$0xff]  ;;  %v3025_v39 = vld [vmem:[%s7336_s4 + $0x58] sm:$0xff] }
 0x28d   :  { %v2804_v26 = vmax.f32 %v4856_v56, 0.0 }
 0x28e   :  { %v2805_v50 = vmax.f32 %v4857_v11, 0.0 }
 0x28f   :  { %v2876_v53 = vpack.c.bf16 %v2804_v26, %v2796_v52 }
 0x290   :  { %v2877_v62 = vpack.c.bf16 %v2805_v50, %v2797_v58  ;;  %v2685_v46 = vpop.f32.mrb[92].mxu1 }
 0x291   :  { %v4858_v60 = vadd.f32 %v2685_v46, %v7139_v30  ;;  %v2687_v41 = vpop.f32.mrb[93].mxu1 }
 0x292   :  { %v4859_v22 = vadd.f32 %v2687_v41, %v7144_v32  ;;  %v2689_v45 = vpop.f32.mrb[94].mxu1  ;;  %4117 = vmatprep.mubr.bf16.mxu0 %v2877_v62 }
 0x293   :  { %v4860_v3 = vadd.f32 %v2689_v45, %v7139_v30  ;;  %v2691_v13 = vpop.f32.mrb[95].mxu1  ;;  %4118 = vmatmul.mubr.bf16.gmra.mrb[56].mxu0 %v2876_v53  ;;  %v2812_v16 = vmax.f32 %v4858_v60, 0.0  ;;  %v3015_v30 = vld [vmem:[%s7336_s4 + $0x8] sm:$0xff] }
 0x294   :  { %v4861_v25 = vadd.f32 %v2691_v13, %v7144_v32  ;;  %v2813_v61 = vmax.f32 %v4859_v22, 0.0  ;;  %v3016_v32 = vld [vmem:[%s7336_s4 + $0x10] sm:$0xff]  ;;  %v3026_v22 = vld [vmem:[%s7336_s4 + $0x60] sm:$0xff]  ;;  %v3027_v45 = vld [vmem:[%s7336_s4 + $0x68] sm:$0xff] }
 0x295   :  { %v2820_v42 = vmax.f32 %v4860_v3, 0.0 }
 0x296   :  { %v2821_v19 = vmax.f32 %v4861_v25, 0.0  ;;  %v3028_v25 = vld [vmem:[%s7336_s4 + $0x70] sm:$0xff] }
 0x297   :  { %v2884_v4 = vpack.c.bf16 %v2820_v42, %v2812_v16 }
 0x298   :  { %v2885_v24 = vpack.c.bf16 %v2821_v19, %v2813_v61  ;;  %v3029_v61 = vld [vmem:[%s7336_s4 + $0x78] sm:$0xff] }
 0x29a   :  { %4127 = vmatprep.mubr.bf16.mxu0 %v2885_v24 }
 0x29b   :  { %4128 = vmatmul.mubr.bf16.gmra.mrb[60].mxu0 %v2884_v4 }
 0x336   :  { %v4059_v54 = vpop.f32.mrb[32].mxu0 }
 0x337   :  { %v4862_v9 = vadd.f32 %v4059_v54, %v3014_v28  ;;  %v4061_v21 = vpop.f32.mrb[33].mxu0 }
 0x338   :  { %v4863_v59 = vadd.f32 %v4061_v21, %v3015_v30  ;;  %v4063_v63 = vpop.f32.mrb[34].mxu0 }
 0x339   :  { %v4138_v29 = vmax.f32 %v4862_v9, 0.0  ;;  %v4864_v31 = vadd.f32 %v4063_v63, %v3016_v32  ;;  %v4065_v37 = vpop.f32.mrb[35].mxu0  ;;  %v3031_v63 = vld [vmem:[%s7336_s4 + $0x88] sm:$0xff] }
 0x33a   :  { %v4139_v55 = vmax.f32 %v4863_v59, 0.0  ;;  %v4865_v34 = vadd.f32 %v4065_v37, %v3017_v0  ;;  %v3030_v59 = vld [vmem:[%s7336_s4 + $0x80] sm:$0xff]  ;;  %v3032_v37 = vld [vmem:[%s7336_s4 + $0x90] sm:$0xff] }
 0x33b   :  { %v4140_v23 = vmax.f32 %v4864_v31, 0.0 }
 0x33c   :  { %v4718_v2 = vpack.c.bf16 %v4139_v55, %v4138_v29  ;;  %v4141_v40 = vmax.f32 %v4865_v34, 0.0 }
 0x33e   :  { %4266 = vst [vmem:[%s7337_s5] sm:$0xff] %v4718_v2  ;;  %v4719_v44 = vpack.c.bf16 %v4141_v40, %v4140_v23  ;;  %v4069_v17 = vpop.f32.mrb[36].mxu0  ;;  %v3033_v23 = vld [vmem:[%s7336_s4 + $0x98] sm:$0xff] }
 0x33f   :  { %v4866_v10 = vadd.f32 %v4069_v17, %v3018_v6  ;;  %v4071_v47 = vpop.f32.mrb[37].mxu0 }
 0x340   :  { %4267 = vst [vmem:[%s7337_s5 + $0x8] sm:$0xff] %v4719_v44  ;;  %v4867_v18 = vadd.f32 %v4071_v47, %v3019_v8  ;;  %v4073_v43 = vpop.f32.mrb[38].mxu0 }
 0x341   :  { %v4142_v20 = vmax.f32 %v4866_v10, 0.0  ;;  %v4868_v12 = vadd.f32 %v4073_v43, %v3020_v48  ;;  %v4075_v35 = vpop.f32.mrb[39].mxu0  ;;  %v3035_v43 = vld [vmem:[%s7336_s4 + $0xa8] sm:$0xff] }
 0x342   :  { %v4143_v33 = vmax.f32 %v4867_v18, 0.0  ;;  %v4869_v14 = vadd.f32 %v4075_v35, %v3021_v49  ;;  %v3034_v18 = vld [vmem:[%s7336_s4 + $0xa0] sm:$0xff]  ;;  %v3036_v35 = vld [vmem:[%s7336_s4 + $0xb0] sm:$0xff] }
 0x343   :  { %v4144_v57 = vmax.f32 %v4868_v12, 0.0 }
 0x344   :  { %v4720_v36 = vpack.c.bf16 %v4143_v33, %v4142_v20  ;;  %v4145_v38 = vmax.f32 %v4869_v14, 0.0 }
 0x346   :  { %4268 = vst [vmem:[%s7337_s5 + $0x10] sm:$0xff] %v4720_v36  ;;  %v4721_v1 = vpack.c.bf16 %v4145_v38, %v4144_v57  ;;  %v4079_v27 = vpop.f32.mrb[40].mxu0  ;;  %v3037_v57 = vld [vmem:[%s7336_s4 + $0xb8] sm:$0xff] }
 0x347   :  { %v4870_v7 = vadd.f32 %v4079_v27, %v3022_v15  ;;  %v4081_v56 = vpop.f32.mrb[41].mxu0 }
 0x348   :  { %4269 = vst [vmem:[%s7337_s5 + $0x18] sm:$0xff] %v4721_v1  ;;  %v4871_v11 = vadd.f32 %v4081_v56, %v3023_v51  ;;  %v4083_v52 = vpop.f32.mrb[42].mxu0 }
 0x349   :  { %v4146_v26 = vmax.f32 %v4870_v7, 0.0  ;;  %v4872_v58 = vadd.f32 %v4083_v52, %v3024_v5  ;;  %v4085_v50 = vpop.f32.mrb[43].mxu0  ;;  %v3039_v52 = vld [vmem:[%s7336_s4 + $0xc8] sm:$0xff] }
 0x34a   :  { %v4147_v53 = vmax.f32 %v4871_v11, 0.0  ;;  %v4873_v62 = vadd.f32 %v4085_v50, %v3025_v39  ;;  %v3038_v11 = vld [vmem:[%s7336_s4 + $0xc0] sm:$0xff]  ;;  %v3040_v50 = vld [vmem:[%s7336_s4 + $0xd0] sm:$0xff] }
 0x34b   :  { %v4148_v46 = vmax.f32 %v4872_v58, 0.0 }
 0x34c   :  { %v4722_v60 = vpack.c.bf16 %v4147_v53, %v4146_v26  ;;  %v4149_v41 = vmax.f32 %v4873_v62, 0.0 }
 0x34e   :  { %4270 = vst [vmem:[%s7337_s5 + $0x20] sm:$0xff] %v4722_v60  ;;  %v4723_v3 = vpack.c.bf16 %v4149_v41, %v4148_v46  ;;  %v4089_v13 = vpop.f32.mrb[44].mxu0  ;;  %v3041_v46 = vld [vmem:[%s7336_s4 + $0xd8] sm:$0xff] }
 0x34f   :  { %v4874_v16 = vadd.f32 %v4089_v13, %v3026_v22  ;;  %v4091_v42 = vpop.f32.mrb[45].mxu0 }
 0x350   :  { %4271 = vst [vmem:[%s7337_s5 + $0x28] sm:$0xff] %v4723_v3  ;;  %v4875_v19 = vadd.f32 %v4091_v42, %v3027_v45  ;;  %v4093_v4 = vpop.f32.mrb[46].mxu0 }
 0x351   :  { %v4150_v24 = vmax.f32 %v4874_v16, 0.0  ;;  %v4876_v28 = vadd.f32 %v4093_v4, %v3028_v25  ;;  %v4095_v30 = vpop.f32.mrb[47].mxu0  ;;  %v3043_v4 = vld [vmem:[%s7336_s4 + $0xe8] sm:$0xff] }
 0x352   :  { %v4151_v54 = vmax.f32 %v4875_v19, 0.0  ;;  %v4877_v32 = vadd.f32 %v4095_v30, %v3029_v61  ;;  %v3042_v19 = vld [vmem:[%s7336_s4 + $0xe0] sm:$0xff]  ;;  %v3044_v30 = vld [vmem:[%s7336_s4 + $0xf0] sm:$0xff] }
 0x353   :  { %v4152_v9 = vmax.f32 %v4876_v28, 0.0 }
 0x354   :  { %v4724_v21 = vpack.c.bf16 %v4151_v54, %v4150_v24  ;;  %v4153_v0 = vmax.f32 %v4877_v32, 0.0 }
 0x356   :  { %4272 = vst [vmem:[%s7337_s5 + $0x30] sm:$0xff] %v4724_v21  ;;  %v4725_v29 = vpack.c.bf16 %v4153_v0, %v4152_v9  ;;  %v4099_v31 = vpop.f32.mrb[48].mxu0  ;;  %v3045_v9 = vld [vmem:[%s7336_s4 + $0xf8] sm:$0xff] }
 0x357   :  { %v4878_v55 = vadd.f32 %v4099_v31, %v3030_v59  ;;  %v4101_v34 = vpop.f32.mrb[49].mxu0 }
 0x358   :  { %4273 = vst [vmem:[%s7337_s5 + $0x38] sm:$0xff] %v4725_v29  ;;  %v4879_v2 = vadd.f32 %v4101_v34, %v3031_v63  ;;  %v4103_v40 = vpop.f32.mrb[50].mxu0 }
 0x359   :  { %v4154_v6 = vmax.f32 %v4878_v55, 0.0  ;;  %v4880_v8 = vadd.f32 %v4103_v40, %v3032_v37  ;;  %v4105_v44 = vpop.f32.mrb[51].mxu0 }
 0x35a   :  { %v4155_v17 = vmax.f32 %v4879_v2, 0.0  ;;  %v4881_v48 = vadd.f32 %v4105_v44, %v3033_v23 }
 0x35b   :  { %v4156_v10 = vmax.f32 %v4880_v8, 0.0 }
 0x35c   :  { %v4726_v47 = vpack.c.bf16 %v4155_v17, %v4154_v6  ;;  %v4157_v49 = vmax.f32 %v4881_v48, 0.0 }
 0x35e   :  { %4274 = vst [vmem:[%s7337_s5 + $0x40] sm:$0xff] %v4726_v47  ;;  %v4727_v20 = vpack.c.bf16 %v4157_v49, %v4156_v10  ;;  %v4109_v12 = vpop.f32.mrb[52].mxu0 }
 0x35f   :  { %v4882_v33 = vadd.f32 %v4109_v12, %v3034_v18  ;;  %v4111_v14 = vpop.f32.mrb[53].mxu0 }
 0x360   :  { %4275 = vst [vmem:[%s7337_s5 + $0x48] sm:$0xff] %v4727_v20  ;;  %v4883_v36 = vadd.f32 %v4111_v14, %v3035_v43  ;;  %v4113_v38 = vpop.f32.mrb[54].mxu0 }
 0x361   :  { %v4158_v15 = vmax.f32 %v4882_v33, 0.0  ;;  %v4884_v51 = vadd.f32 %v4113_v38, %v3036_v35  ;;  %v4115_v1 = vpop.f32.mrb[55].mxu0 }
 0x362   :  { %v4159_v27 = vmax.f32 %v4883_v36, 0.0  ;;  %v4885_v5 = vadd.f32 %v4115_v1, %v3037_v57 }
 0x363   :  { %v4160_v7 = vmax.f32 %v4884_v51, 0.0 }
 0x364   :  { %v4728_v56 = vpack.c.bf16 %v4159_v27, %v4158_v15  ;;  %v4161_v39 = vmax.f32 %v4885_v5, 0.0 }
 0x366   :  { %4276 = vst [vmem:[%s7337_s5 + $0x50] sm:$0xff] %v4728_v56  ;;  %v4729_v26 = vpack.c.bf16 %v4161_v39, %v4160_v7  ;;  %v4119_v58 = vpop.f32.mrb[56].mxu0 }
 0x367   :  { %v4886_v53 = vadd.f32 %v4119_v58, %v3038_v11  ;;  %v4121_v62 = vpop.f32.mrb[57].mxu0 }
 0x368   :  { %4277 = vst [vmem:[%s7337_s5 + $0x58] sm:$0xff] %v4729_v26  ;;  %v4887_v60 = vadd.f32 %v4121_v62, %v3039_v52  ;;  %v4123_v41 = vpop.f32.mrb[58].mxu0 }
 0x369   :  { %v4162_v22 = vmax.f32 %v4886_v53, 0.0  ;;  %v4888_v45 = vadd.f32 %v4123_v41, %v3040_v50  ;;  %v4125_v3 = vpop.f32.mrb[59].mxu0 }
 0x36a   :  { %v4163_v13 = vmax.f32 %v4887_v60, 0.0  ;;  %v4889_v25 = vadd.f32 %v4125_v3, %v3041_v46 }
 0x36b   :  { %v4164_v16 = vmax.f32 %v4888_v45, 0.0 }
 0x36c   :  { %v4730_v42 = vpack.c.bf16 %v4163_v13, %v4162_v22  ;;  %v4165_v61 = vmax.f32 %v4889_v25, 0.0 }
 0x36e   :  { %4278 = vst [vmem:[%s7337_s5 + $0x60] sm:$0xff] %v4730_v42  ;;  %v4731_v24 = vpack.c.bf16 %v4165_v61, %v4164_v16  ;;  %v4129_v28 = vpop.f32.mrb[60].mxu0 }
 0x36f   :  { %v4890_v54 = vadd.f32 %v4129_v28, %v3042_v19  ;;  %v4131_v32 = vpop.f32.mrb[61].mxu0 }
 0x370   :  { %4279 = vst [vmem:[%s7337_s5 + $0x68] sm:$0xff] %v4731_v24  ;;  %v4891_v21 = vadd.f32 %v4131_v32, %v3043_v4  ;;  %v4133_v0 = vpop.f32.mrb[62].mxu0 }
 0x371   :  { %v4166_v59 = vmax.f32 %v4890_v54, 0.0  ;;  %v4892_v63 = vadd.f32 %v4133_v0, %v3044_v30  ;;  %v4135_v29 = vpop.f32.mrb[63].mxu0 }
 0x372   :  { %v4167_v31 = vmax.f32 %v4891_v21, 0.0  ;;  %v4893_v37 = vadd.f32 %v4135_v29, %v3045_v9 }
 0x373   :  { %v4168_v55 = vmax.f32 %v4892_v63, 0.0 }
 0x374   :  { %v4732_v34 = vpack.c.bf16 %v4167_v31, %v4166_v59  ;;  %v4169_v23 = vmax.f32 %v4893_v37, 0.0 }
 0x376   :  { %4280 = vst [vmem:[%s7337_s5 + $0x70] sm:$0xff] %v4732_v34  ;;  %v4733_v2 = vpack.c.bf16 %v4169_v23, %v4168_v55 }
 0x378   :  { %4281 = vst [vmem:[%s7337_s5 + $0x78] sm:$0xff] %v4733_v2 }

// kernel: deeplab1_forward.6
= control target key start
LH: loop header
LB: loop body
LE: loop exit
PB: predicated region body
PF: predicated region fallthrough
CT: control target
= control target key end

     0   :  { %s2151_s12 = smov 0   ;;  %s2153_s13 = smov 0   ;;  %s2550_s0 = inlined_call_operand.vmem [shape: bf16[512,2816], index: 0, kind: input, shape index: {}]   ;;  %s2551_s1 = inlined_call_operand.vmem [shape: bf16[2816,256], index: 1, kind: input, shape index: {}]   ;;  %s2552_s2 = inlined_call_operand.vmem [shape: f32[1,256], index: 2, kind: input, shape index: {}]   ;;  %s2553_s3 = inlined_call_operand.vmem [shape: bf16[512,256], index: 3, kind: output, shape index: {}]  }
   0x1   :  { %s2155_s14 = smov 0   ;;  %s2157_s15 = smov 0  }
   0x2   :  { %s2159_s16 = smov 0   ;;  %s2161_s17 = smov 0  }
   0x3   :  { %s2163_s18 = smov 0  }
   0x4 LB: > { %s22_s19 = sadd.s32 1, %s2120_s16  ;;  %s25_s20 = sadd.s32 1, %s2124_s17  ;;  %s2128_s18 = sphi %s2163_s18, %s13_s18   ;;  %s2124_s17 = sphi %s2161_s17, %s2559_s17   ;;  %s2120_s16 = sphi %s2159_s16, %s2558_s16   ;;  %s2116_s15 = sphi %s2157_s15, %s2557_s15   ;;  %s2112_s14 = sphi %s2155_s14, %s2556_s14   ;;  %s2108_s13 = sphi %s2153_s13, %s2555_s13   ;;  %s2104_s12 = sphi %s2151_s12, %s2554_s12  }
   0x5   : > { %p23_p0 = scmp.ge.s32.totalorder %s22_s19, 11  ;;  %p41_p1 = scmp.ne.s32.totalorder %s2108_s13, %s2104_s12 }
   0x6   : > { %p42_p2 = scmp.eq.s32.totalorder %s2128_s18, 0  ;;  %s34_s24 = sadd.s32 1, %s2108_s13 }
   0x7   : > { %s2561_s19 = smov (%p23_p0, %s22_s19), 0  ;;  %s2563_s20 = smov (!%p23_p0, %s25_s20), %s2124_s17 }
   0x8   : > { %p43_p3 = por %p42_p2, %p41_p1  ;;  %p27_p4 = scmp.ge.s32.totalorder %s2563_s20, 2 }
   0x9   : > { %s30_s21 = ssub.s32 %s2120_s16, %s2561_s19  ;;  %p1740_p6 = scmp.ge.s32.totalorder %s2128_s18, 22 }
   0xa   : > { %s2565_s20 = smov (%p27_p4, %s2563_s20), 0 }
   0xb   : > { %s29_s22 = ssub.s32 %s2124_s17, %s2565_s20  ;;  %143 = sbr.rel (%p1740_p6) target bundleno = 42 (0x2a), region = 20 }
   0xc   : > { %s31_s23 = sor.u32 %s30_s21, %s29_s22 }
   0xd   : > { %p32_p5 = scmp.eq.s32.totalorder %s31_s23, 0 }
   0xf   : > { %s2202_s25 = scalar_select %p32_p5, %s2108_s13, %s34_s24  }
  0x12   : > { %146 = sbr.rel (!%p43_p3) target bundleno = 42 (0x2a), region = 24  ;;  %s148_s26 = sand.u32 (%p43_p3), 1, %s2108_s13  }
  0x13   : > { %s1743_s27 = sshll.u32 (%p43_p3), %s2120_s16, 1  ;;  %s1741_s28 = sshll.u32 (%p43_p3), %s148_s26, 8 }
  0x14   : > { %s1920_s29 = smul.u32 (%p43_p3), 704, %s2124_s17  ;;  %s2216_s8 = scalar_lea.vmem (%p43_p3), [#allocation3], %s1741_s28 }
  0x16   : > { %s154_s30 = sadd.s32 (%p43_p3), %s1920_s29, %s1743_s27 }
  0x17   : > { %s1745_s4 = sshll.u32 (%p43_p3), %s154_s30, 2 }
  0x18   : > { %s2211_s7 = scalar_lea.vmem (%p43_p3), %s2550_s0, %s1745_s4 }
  0x19   : > { %v246_v0 = vld [vmem:[%s2211_s7] sm:$0xff]  ;;  %v248_v1 = vld [vmem:[%s2211_s7 + $0x58] sm:$0xff]  ;;  %v250_v2 = vld [vmem:[%s2211_s7 + $0xb0] sm:$0xff] }
  0x1a   : > { %247 = vst [vmem:[%s2216_s8] sm:$0xff] %v246_v0  ;;  %249 = vst [vmem:[%s2216_s8 + $0x8] sm:$0xff] %v248_v1  ;;  %v252_v3 = vld [vmem:[%s2211_s7 + $0x108] sm:$0xff]  ;;  %v254_v4 = vld [vmem:[%s2211_s7 + $0x160] sm:$0xff] }
  0x1b   : > { %251 = vst [vmem:[%s2216_s8 + $0x10] sm:$0xff] %v250_v2  ;;  %v256_v5 = vld [vmem:[%s2211_s7 + $0x1b8] sm:$0xff]  ;;  %253 = vst [vmem:[%s2216_s8 + $0x18] sm:$0xff] %v252_v3  ;;  %v258_v6 = vld [vmem:[%s2211_s7 + $0x210] sm:$0xff] }
  0x1c   : > { %255 = vst [vmem:[%s2216_s8 + $0x20] sm:$0xff] %v254_v4  ;;  %257 = vst [vmem:[%s2216_s8 + $0x28] sm:$0xff] %v256_v5  ;;  %v260_v7 = vld [vmem:[%s2211_s7 + $0x268] sm:$0xff]  ;;  %v262_v8 = vld [vmem:[%s2211_s7 + $0x2c0] sm:$0xff] }
  0x1d   : > { %259 = vst [vmem:[%s2216_s8 + $0x30] sm:$0xff] %v258_v6  ;;  %261 = vst [vmem:[%s2216_s8 + $0x38] sm:$0xff] %v260_v7  ;;  %v264_v9 = vld [vmem:[%s2211_s7 + $0x318] sm:$0xff]  ;;  %v266_v10 = vld [vmem:[%s2211_s7 + $0x370] sm:$0xff] }
  0x1e   : > { %263 = vst [vmem:[%s2216_s8 + $0x40] sm:$0xff] %v262_v8  ;;  %v268_v11 = vld [vmem:[%s2211_s7 + $0x3c8] sm:$0xff]  ;;  %265 = vst [vmem:[%s2216_s8 + $0x48] sm:$0xff] %v264_v9  ;;  %v270_v12 = vld [vmem:[%s2211_s7 + $0x420] sm:$0xff] }
  0x1f   : > { %267 = vst [vmem:[%s2216_s8 + $0x50] sm:$0xff] %v266_v10  ;;  %269 = vst [vmem:[%s2216_s8 + $0x58] sm:$0xff] %v268_v11  ;;  %v272_v13 = vld [vmem:[%s2211_s7 + $0x478] sm:$0xff]  ;;  %v274_v14 = vld [vmem:[%s2211_s7 + $0x4d0] sm:$0xff] }
  0x20   : > { %271 = vst [vmem:[%s2216_s8 + $0x60] sm:$0xff] %v270_v12  ;;  %273 = vst [vmem:[%s2216_s8 + $0x68] sm:$0xff] %v272_v13  ;;  %v276_v15 = vld [vmem:[%s2211_s7 + $0x528] sm:$0xff]  ;;  %v278_v16 = vld [vmem:[%s2211_s7 + $0x580] sm:$0xff] }
  0x21   : > { %275 = vst [vmem:[%s2216_s8 + $0x70] sm:$0xff] %v274_v14  ;;  %v280_v17 = vld [vmem:[%s2211_s7 + $0x5d8] sm:$0xff]  ;;  %277 = vst [vmem:[%s2216_s8 + $0x78] sm:$0xff] %v276_v15  ;;  %v282_v18 = vld [vmem:[%s2211_s7 + $0x630] sm:$0xff] }
  0x22   : > { %279 = vst [vmem:[%s2216_s8 + $0x80] sm:$0xff] %v278_v16  ;;  %281 = vst [vmem:[%s2216_s8 + $0x88] sm:$0xff] %v280_v17  ;;  %v284_v19 = vld [vmem:[%s2211_s7 + $0x688] sm:$0xff]  ;;  %v286_v20 = vld [vmem:[%s2211_s7 + $0x6e0] sm:$0xff] }
  0x23   : > { %283 = vst [vmem:[%s2216_s8 + $0x90] sm:$0xff] %v282_v18  ;;  %285 = vst [vmem:[%s2216_s8 + $0x98] sm:$0xff] %v284_v19  ;;  %v288_v21 = vld [vmem:[%s2211_s7 + $0x738] sm:$0xff]  ;;  %v290_v22 = vld [vmem:[%s2211_s7 + $0x790] sm:$0xff] }
  0x24   : > { %287 = vst [vmem:[%s2216_s8 + $0xa0] sm:$0xff] %v286_v20  ;;  %v292_v23 = vld [vmem:[%s2211_s7 + $0x7e8] sm:$0xff]  ;;  %289 = vst [vmem:[%s2216_s8 + $0xa8] sm:$0xff] %v288_v21  ;;  %v294_v24 = vld [vmem:[%s2211_s7 + $0x840] sm:$0xff] }
  0x25   : > { %291 = vst [vmem:[%s2216_s8 + $0xb0] sm:$0xff] %v290_v22  ;;  %293 = vst [vmem:[%s2216_s8 + $0xb8] sm:$0xff] %v292_v23  ;;  %v296_v25 = vld [vmem:[%s2211_s7 + $0x898] sm:$0xff]  ;;  %v298_v26 = vld [vmem:[%s2211_s7 + $0x8f0] sm:$0xff] }
  0x26   : > { %295 = vst [vmem:[%s2216_s8 + $0xc0] sm:$0xff] %v294_v24  ;;  %297 = vst [vmem:[%s2216_s8 + $0xc8] sm:$0xff] %v296_v25  ;;  %v300_v27 = vld [vmem:[%s2211_s7 + $0x948] sm:$0xff]  ;;  %v302_v28 = vld [vmem:[%s2211_s7 + $0x9a0] sm:$0xff] }
  0x27   : > { %299 = vst [vmem:[%s2216_s8 + $0xd0] sm:$0xff] %v298_v26  ;;  %v304_v29 = vld [vmem:[%s2211_s7 + $0x9f8] sm:$0xff]  ;;  %301 = vst [vmem:[%s2216_s8 + $0xd8] sm:$0xff] %v300_v27  ;;  %v306_v30 = vld [vmem:[%s2211_s7 + $0xa50] sm:$0xff] }
  0x28   : > { %303 = vst [vmem:[%s2216_s8 + $0xe0] sm:$0xff] %v302_v28  ;;  %305 = vst [vmem:[%s2216_s8 + $0xe8] sm:$0xff] %v304_v29  ;;  %v308_v31 = vld [vmem:[%s2211_s7 + $0xaa8] sm:$0xff] }
  0x29   : > { %307 = vst [vmem:[%s2216_s8 + $0xf0] sm:$0xff] %v306_v30  ;;  %309 = vst [vmem:[%s2216_s8 + $0xf8] sm:$0xff] %v308_v31 }
  0x2a PF: > { %p1746_p7 = scmp.ge.s32.totalorder %s2128_s18, 1  ;;  %p324_p8 = scmp.lt.s32.totalorder %s2128_s18, 23 }
  0x2c   : > { %p325_p9 = pnand %p1746_p7, %p324_p8 }
  0x2d   : > { %s331_s9 = sand.u32 (!%p325_p9), 1, %s2104_s12   ;;  %s1748_s10 = sshll.u32 (!%p325_p9), %s2112_s14, 5 }
  0x2e   : > { %328 = sbr.rel (%p325_p9) target bundleno = 462 (0x1ce), region = 66  ;;  %s1747_s11 = sshll.u32 (!%p325_p9), %s331_s9, 8 }
  0x2f   : > { %p364_p10 = scmp.lt.s32.totalorder (!%p325_p9), %s1748_s10, 351  ;;  %s1751_s21 = sshll.u32 (!%p325_p9), %s2116_s15, 5 }
  0x30   : > { %p371_p11 = scmp.lt.s32.totalorder (!%p325_p9), %s1751_s21, 63  ;;  %s2294_s12 = scalar_lea.vmem (!%p325_p9), [#allocation3], %s1747_s11 }
  0x31   : > { %p1754_p12 = scmp.ne.s32.totalorder (!%p325_p9), %s2112_s14, 0 }
  0x35   : > { %s2567_s10 = smov (!%p364_p10, %s1748_s10), 351  ;;  %s2569_s21 = smov (!%p371_p11, %s1751_s21), 63 }
  0x36   : > { %s1854_s22 = sshll.u32 %s2567_s10, 3  ;;  %s1855_s27 = sshll.u32 %s2569_s21, 3  ;;  %v2130_v32 = vmov (!%p1754_p12), 0.0  }
  0x37   : > { %s2287_s26 = scalar_lea.vmem %s2551_s1, %s1854_s22  ;;  %s2292_s30 = scalar_lea.vmem %s2553_s3, %s1855_s27  ;;  %381 = vst [vmem:[#allocation2] sm:$0xff] (!%p1754_p12), %v2130_v32  ;;  %382 = vst [vmem:[#allocation2 + $0x8] sm:$0xff] (!%p1754_p12), %v2130_v32 }
  0x38   : > { %380 = sbr.rel (%p1754_p12) target bundleno = 87 (0x57), region = 74  ;;  %383 = vst [vmem:[#allocation2 + $0x10] sm:$0xff] (!%p1754_p12), %v2130_v32  ;;  %384 = vst [vmem:[#allocation2 + $0x18] sm:$0xff] (!%p1754_p12), %v2130_v32 }
  0x39   : > { %385 = vst [vmem:[#allocation2 + $0x20] sm:$0xff] (!%p1754_p12), %v2130_v32  ;;  %386 = vst [vmem:[#allocation2 + $0x28] sm:$0xff] (!%p1754_p12), %v2130_v32 }
  0x3a   : > { %387 = vst [vmem:[#allocation2 + $0x30] sm:$0xff] (!%p1754_p12), %v2130_v32  ;;  %388 = vst [vmem:[#allocation2 + $0x38] sm:$0xff] (!%p1754_p12), %v2130_v32 }
  0x3b   : > { %389 = vst [vmem:[#allocation2 + $0x40] sm:$0xff] (!%p1754_p12), %v2130_v32  ;;  %390 = vst [vmem:[#allocation2 + $0x48] sm:$0xff] (!%p1754_p12), %v2130_v32 }
  0x3c   : > { %391 = vst [vmem:[#allocation2 + $0x50] sm:$0xff] (!%p1754_p12), %v2130_v32  ;;  %392 = vst [vmem:[#allocation2 + $0x58] sm:$0xff] (!%p1754_p12), %v2130_v32 }
  0x3d   : > { %393 = vst [vmem:[#allocation2 + $0x60] sm:$0xff] (!%p1754_p12), %v2130_v32  ;;  %394 = vst [vmem:[#allocation2 + $0x68] sm:$0xff] (!%p1754_p12), %v2130_v32 }
  0x3e   : > { %395 = vst [vmem:[#allocation2 + $0x70] sm:$0xff] (!%p1754_p12), %v2130_v32  ;;  %396 = vst [vmem:[#allocation2 + $0x78] sm:$0xff] (!%p1754_p12), %v2130_v32 }
  0x3f   : > { %397 = vst [vmem:[#allocation2 + $0x80] sm:$0xff] %v2130_v32  ;;  %398 = vst [vmem:[#allocation2 + $0x88] sm:$0xff] %v2130_v32 }
  0x40   : > { %399 = vst [vmem:[#allocation2 + $0x90] sm:$0xff] %v2130_v32  ;;  %400 = vst [vmem:[#allocation2 + $0x98] sm:$0xff] %v2130_v32 }
  0x41   : > { %401 = vst [vmem:[#allocation2 + $0xa0] sm:$0xff] %v2130_v32  ;;  %402 = vst [vmem:[#allocation2 + $0xa8] sm:$0xff] %v2130_v32 }
  0x42   : > { %403 = vst [vmem:[#allocation2 + $0xb0] sm:$0xff] %v2130_v32  ;;  %404 = vst [vmem:[#allocation2 + $0xb8] sm:$0xff] %v2130_v32 }
  0x43   : > { %405 = vst [vmem:[#allocation2 + $0xc0] sm:$0xff] %v2130_v32  ;;  %406 = vst [vmem:[#allocation2 + $0xc8] sm:$0xff] %v2130_v32 }
  0x44   : > { %407 = vst [vmem:[#allocation2 + $0xd0] sm:$0xff] %v2130_v32  ;;  %408 = vst [vmem:[#allocation2 + $0xd8] sm:$0xff] %v2130_v32 }
  0x45   : > { %409 = vst [vmem:[#allocation2 + $0xe0] sm:$0xff] %v2130_v32  ;;  %410 = vst [vmem:[#allocation2 + $0xe8] sm:$0xff] %v2130_v32 }
  0x46   : > { %411 = vst [vmem:[#allocation2 + $0xf0] sm:$0xff] %v2130_v32  ;;  %412 = vst [vmem:[#allocation2 + $0xf8] sm:$0xff] %v2130_v32 }
  0x47   : > { %413 = vst [vmem:[#allocation2 + $0x100] sm:$0xff] %v2130_v32  ;;  %414 = vst [vmem:[#allocation2 + $0x108] sm:$0xff] %v2130_v32 }
  0x48   : > { %415 = vst [vmem:[#allocation2 + $0x110] sm:$0xff] %v2130_v32  ;;  %416 = vst [vmem:[#allocation2 + $0x118] sm:$0xff] %v2130_v32 }
  0x49   : > { %417 = vst [vmem:[#allocation2 + $0x120] sm:$0xff] %v2130_v32  ;;  %418 = vst [vmem:[#allocation2 + $0x128] sm:$0xff] %v2130_v32 }
  0x4a   : > { %419 = vst [vmem:[#allocation2 + $0x130] sm:$0xff] %v2130_v32  ;;  %420 = vst [vmem:[#allocation2 + $0x138] sm:$0xff] %v2130_v32 }
  0x4b   : > { %421 = vst [vmem:[#allocation2 + $0x140] sm:$0xff] %v2130_v32  ;;  %422 = vst [vmem:[#allocation2 + $0x148] sm:$0xff] %v2130_v32 }
  0x4c   : > { %423 = vst [vmem:[#allocation2 + $0x150] sm:$0xff] %v2130_v32  ;;  %424 = vst [vmem:[#allocation2 + $0x158] sm:$0xff] %v2130_v32 }
  0x4d   : > { %425 = vst [vmem:[#allocation2 + $0x160] sm:$0xff] %v2130_v32  ;;  %426 = vst [vmem:[#allocation2 + $0x168] sm:$0xff] %v2130_v32 }
  0x4e   : > { %427 = vst [vmem:[#allocation2 + $0x170] sm:$0xff] %v2130_v32  ;;  %428 = vst [vmem:[#allocation2 + $0x178] sm:$0xff] %v2130_v32 }
  0x4f   : > { %429 = vst [vmem:[#allocation2 + $0x180] sm:$0xff] %v2130_v32  ;;  %430 = vst [vmem:[#allocation2 + $0x188] sm:$0xff] %v2130_v32 }
  0x50   : > { %431 = vst [vmem:[#allocation2 + $0x190] sm:$0xff] %v2130_v32  ;;  %432 = vst [vmem:[#allocation2 + $0x198] sm:$0xff] %v2130_v32 }
  0x51   : > { %433 = vst [vmem:[#allocation2 + $0x1a0] sm:$0xff] %v2130_v32  ;;  %434 = vst [vmem:[#allocation2 + $0x1a8] sm:$0xff] %v2130_v32 }
  0x52   : > { %435 = vst [vmem:[#allocation2 + $0x1b0] sm:$0xff] %v2130_v32  ;;  %436 = vst [vmem:[#allocation2 + $0x1b8] sm:$0xff] %v2130_v32 }
  0x53   : > { %437 = vst [vmem:[#allocation2 + $0x1c0] sm:$0xff] %v2130_v32  ;;  %438 = vst [vmem:[#allocation2 + $0x1c8] sm:$0xff] %v2130_v32 }
  0x54   : > { %439 = vst [vmem:[#allocation2 + $0x1d0] sm:$0xff] %v2130_v32  ;;  %440 = vst [vmem:[#allocation2 + $0x1d8] sm:$0xff] %v2130_v32 }
  0x55   : > { %441 = vst [vmem:[#allocation2 + $0x1e0] sm:$0xff] %v2130_v32  ;;  %442 = vst [vmem:[#allocation2 + $0x1e8] sm:$0xff] %v2130_v32 }
  0x56   : > { %443 = vst [vmem:[#allocation2 + $0x1f0] sm:$0xff] %v2130_v32  ;;  %444 = vst [vmem:[#allocation2 + $0x1f8] sm:$0xff] %v2130_v32 }
  0x57 PF: > { %v1978_v33 = vld [vmem:[%s2287_s26 + $0x4] ss:$8 sps:$4 sm:$0xff]   ;;  %v1980_v34 = vld [vmem:[%s2287_s26] ss:$8 sps:$4 sm:$0xff]   ;;  %v1981_v35 = vld [vmem:[%s2287_s26 + $0x14] ss:$8 sps:$4 sm:$0xff]  }
  0x58   : > { %893 = vmatprep.subr.bf16.mxu0 %v1978_v33  ;;  %1888 = vmatprep.subr.bf16.mxu1 %v1978_v33  ;;  %v1983_v36 = vld [vmem:[%s2287_s26 + $0x10] ss:$8 sps:$4 sm:$0xff]   ;;  %v1984_v37 = vld [vmem:[%s2287_s26 + $0x24] ss:$8 sps:$4 sm:$0xff]   ;;  %v1986_v38 = vld [vmem:[%s2287_s26 + $0x20] ss:$8 sps:$4 sm:$0xff]  }
  0x59   : > { %894 = vmatpush1.bf16.msra.mxu0 %v1980_v34  ;;  %1904 = vmatpush1.bf16.msra.mxu1 %v1980_v34  ;;  %v1987_v39 = vld [vmem:[%s2287_s26 + $0x34] ss:$8 sps:$4 sm:$0xff]   ;;  %v1989_v40 = vld [vmem:[%s2287_s26 + $0x30] ss:$8 sps:$4 sm:$0xff]   ;;  %v1990_v41 = vld [vmem:[%s2287_s26 + $0x44] ss:$8 sps:$4 sm:$0xff]  }
  0x5a   : > { %895 = vmatprep.subr.bf16.mxu0 %v1981_v35  ;;  %1889 = vmatprep.subr.bf16.mxu1 %v1981_v35  ;;  %v1992_v42 = vld [vmem:[%s2287_s26 + $0x40] ss:$8 sps:$4 sm:$0xff]   ;;  %v1993_v43 = vld [vmem:[%s2287_s26 + $0x54] ss:$8 sps:$4 sm:$0xff]   ;;  %v1995_v44 = vld [vmem:[%s2287_s26 + $0x50] ss:$8 sps:$4 sm:$0xff]  }
  0x5b   : > { %v1996_v45 = vld [vmem:[%s2287_s26 + $0x64] ss:$8 sps:$4 sm:$0xff]   ;;  %v1998_v47 = vld [vmem:[%s2287_s26 + $0x60] ss:$8 sps:$4 sm:$0xff]   ;;  %v1999_v49 = vld [vmem:[%s2287_s26 + $0x74] ss:$8 sps:$4 sm:$0xff]  }
  0x5c   : > { %v2028_v46 = vld [vmem:[%s2294_s12 + $0x4] ss:$8 sps:$4 sm:$0xff]   ;;  %v2001_v50 = vld [vmem:[%s2287_s26 + $0x70] ss:$8 sps:$4 sm:$0xff]   ;;  %v2004_v52 = vld [vmem:[%s2287_s26 + $0x80] ss:$8 sps:$4 sm:$0xff]  }
  0x5d   : > { %896 = vmatpush1.bf16.msra.mxu0 %v1983_v36  ;;  %1905 = vmatpush1.bf16.msra.mxu1 %v1983_v36  ;;  %v2031_v48 = vld [vmem:[%s2294_s12 + $0x84] ss:$8 sps:$4 sm:$0xff]   ;;  %v2005_v53 = vld [vmem:[%s2287_s26 + $0x94] ss:$8 sps:$4 sm:$0xff]   ;;  %v2007_v54 = vld [vmem:[%s2287_s26 + $0x90] ss:$8 sps:$4 sm:$0xff]  }
  0x5e   : > { %897 = vmatprep.subr.bf16.mxu0 %v1984_v37  ;;  %1890 = vmatprep.subr.bf16.mxu1 %v1984_v37  ;;  %v2002_v51 = vld [vmem:[%s2287_s26 + $0x84] ss:$8 sps:$4 sm:$0xff]   ;;  %v2010_v56 = vld [vmem:[%s2287_s26 + $0xa0] ss:$8 sps:$4 sm:$0xff]   ;;  %v2011_v57 = vld [vmem:[%s2287_s26 + $0xb4] ss:$8 sps:$4 sm:$0xff]  }
  0x5f   : > { %925 = vmatprep.mubr.bf16.mxu0 %v2028_v46  ;;  %1005 = vmatprep.mubr.bf16.mxu1 %v2031_v48  ;;  %v2008_v55 = vld [vmem:[%s2287_s26 + $0xa4] ss:$8 sps:$4 sm:$0xff]   ;;  %v2013_v58 = vld [vmem:[%s2287_s26 + $0xb0] ss:$8 sps:$4 sm:$0xff]   ;;  %v2016_v60 = vld [vmem:[%s2287_s26 + $0xc0] ss:$8 sps:$4 sm:$0xff]  }
  0x60   : > { %v2014_v59 = vld [vmem:[%s2287_s26 + $0xc4] ss:$8 sps:$4 sm:$0xff]   ;;  %v2017_v61 = vld [vmem:[%s2287_s26 + $0xd4] ss:$8 sps:$4 sm:$0xff]   ;;  %v2019_v62 = vld [vmem:[%s2287_s26 + $0xd0] ss:$8 sps:$4 sm:$0xff]  }
  0x61   : > { %898 = vmatpush1.bf16.msra.mxu0 %v1986_v38  ;;  %1906 = vmatpush1.bf16.msra.mxu1 %v1986_v38  ;;  %v2020_v63 = vld [vmem:[%s2287_s26 + $0xe4] ss:$8 sps:$4 sm:$0xff]   ;;  %v2022_v0 = vld [vmem:[%s2287_s26 + $0xe0] ss:$8 sps:$4 sm:$0xff]   ;;  %v2023_v1 = vld [vmem:[%s2287_s26 + $0xf4] ss:$8 sps:$4 sm:$0xff]  }
  0x62   : > { %899 = vmatprep.subr.bf16.mxu0 %v1987_v39  ;;  %1891 = vmatprep.subr.bf16.mxu1 %v1987_v39  ;;  %v2025_v2 = vld [vmem:[%s2287_s26 + $0xf0] ss:$8 sps:$4 sm:$0xff]   ;;  %v2026_v3 = vld [vmem:[%s2294_s12] ss:$8 sps:$4 sm:$0xff]   ;;  %v2032_v5 = vld [vmem:[%s2294_s12 + $0x14] ss:$8 sps:$4 sm:$0xff]  }
  0x63   : > { %v2029_v4 = vld [vmem:[%s2294_s12 + $0x80] ss:$8 sps:$4 sm:$0xff]   ;;  %v2034_v6 = vld [vmem:[%s2294_s12 + $0x94] ss:$8 sps:$4 sm:$0xff]   ;;  %v2036_v7 = vld [vmem:[%s2294_s12 + $0x10] ss:$8 sps:$4 sm:$0xff]  }
  0x64   : > { %v2037_v8 = vld [vmem:[%s2294_s12 + $0x90] ss:$8 sps:$4 sm:$0xff]   ;;  %v2038_v9 = vld [vmem:[%s2294_s12 + $0x24] ss:$8 sps:$4 sm:$0xff]   ;;  %v2042_v11 = vld [vmem:[%s2294_s12 + $0x20] ss:$8 sps:$4 sm:$0xff]  }
  0x65   : > { %900 = vmatpush1.bf16.msra.mxu0 %v1989_v40  ;;  %1907 = vmatpush1.bf16.msra.mxu1 %v1989_v40  ;;  %v2040_v10 = vld [vmem:[%s2294_s12 + $0xa4] ss:$8 sps:$4 sm:$0xff]   ;;  %v2043_v12 = vld [vmem:[%s2294_s12 + $0xa0] ss:$8 sps:$4 sm:$0xff]   ;;  %v2044_v13 = vld [vmem:[%s2294_s12 + $0x34] ss:$8 sps:$4 sm:$0xff]  }
  0x66   : > { %901 = vmatprep.subr.bf16.mxu0 %v1990_v41  ;;  %1892 = vmatprep.subr.bf16.mxu1 %v1990_v41  ;;  %v2046_v14 = vld [vmem:[%s2294_s12 + $0xb4] ss:$8 sps:$4 sm:$0xff]   ;;  %v2048_v15 = vld [vmem:[%s2294_s12 + $0x30] ss:$8 sps:$4 sm:$0xff]   ;;  %v2050_v17 = vld [vmem:[%s2294_s12 + $0x44] ss:$8 sps:$4 sm:$0xff]  }
  0x67   : > { %v2049_v16 = vld [vmem:[%s2294_s12 + $0xb0] ss:$8 sps:$4 sm:$0xff]   ;;  %v2052_v18 = vld [vmem:[%s2294_s12 + $0xc4] ss:$8 sps:$4 sm:$0xff]   ;;  %v2054_v19 = vld [vmem:[%s2294_s12 + $0x40] ss:$8 sps:$4 sm:$0xff]  }
  0x68   : > { %v2055_v20 = vld [vmem:[%s2294_s12 + $0xc0] ss:$8 sps:$4 sm:$0xff]   ;;  %v2056_v21 = vld [vmem:[%s2294_s12 + $0x54] ss:$8 sps:$4 sm:$0xff]   ;;  %v2060_v23 = vld [vmem:[%s2294_s12 + $0x50] ss:$8 sps:$4 sm:$0xff]  }
  0x69   : > { %902 = vmatpush1.bf16.msra.mxu0 %v1992_v42  ;;  %1908 = vmatpush1.bf16.msra.mxu1 %v1992_v42  ;;  %v2058_v22 = vld [vmem:[%s2294_s12 + $0xd4] ss:$8 sps:$4 sm:$0xff]   ;;  %v2061_v24 = vld [vmem:[%s2294_s12 + $0xd0] ss:$8 sps:$4 sm:$0xff]   ;;  %v2062_v25 = vld [vmem:[%s2294_s12 + $0x64] ss:$8 sps:$4 sm:$0xff]  }
  0x6a   : > { %903 = vmatprep.subr.bf16.mxu0 %v1993_v43  ;;  %1893 = vmatprep.subr.bf16.mxu1 %v1993_v43  ;;  %v2064_v26 = vld [vmem:[%s2294_s12 + $0xe4] ss:$8 sps:$4 sm:$0xff]   ;;  %v2066_v27 = vld [vmem:[%s2294_s12 + $0x60] ss:$8 sps:$4 sm:$0xff]   ;;  %v2068_v29 = vld [vmem:[%s2294_s12 + $0x74] ss:$8 sps:$4 sm:$0xff]  }
  0x6b   : > { %v2067_v28 = vld [vmem:[%s2294_s12 + $0xe0] ss:$8 sps:$4 sm:$0xff]   ;;  %v2070_v30 = vld [vmem:[%s2294_s12 + $0xf4] ss:$8 sps:$4 sm:$0xff]   ;;  %v2072_v31 = vld [vmem:[%s2294_s12 + $0x70] ss:$8 sps:$4 sm:$0xff]  }
  0x6c   : > { %v2073_v32 = vld [vmem:[%s2294_s12 + $0xf0] ss:$8 sps:$4 sm:$0xff]   ;;  %v445_v33 = vld [vmem:[#allocation2] sm:$0xff]  ;;  %v446_v35 = vld [vmem:[#allocation2 + $0x8] sm:$0xff]  ;;  %p1819_p13 = scmp.ne.s32.totalorder %s2112_s14, 10 }
  0x6d   : > { %904 = vmatpush1.bf16.msra.mxu0 %v1995_v44  ;;  %1909 = vmatpush1.bf16.msra.mxu1 %v1995_v44  ;;  %v477_v34 = vld [vmem:[#allocation2 + $0x100] sm:$0xff]  ;;  %v478_v36 = vld [vmem:[#allocation2 + $0x108] sm:$0xff]  ;;  %v447_v39 = vld [vmem:[#allocation2 + $0x10] sm:$0xff] }
  0x6e   : > { %905 = vmatprep.subr.bf16.mxu0 %v1996_v45  ;;  %1894 = vmatprep.subr.bf16.mxu1 %v1996_v45  ;;  %v479_v40 = vld [vmem:[#allocation2 + $0x110] sm:$0xff]  ;;  %v448_v45 = vld [vmem:[#allocation2 + $0x18] sm:$0xff] }
  0x6f   : > { %v480_v46 = vld [vmem:[#allocation2 + $0x118] sm:$0xff] }
  0x71   : > { %906 = vmatpush1.bf16.msra.mxu0 %v1998_v47  ;;  %1910 = vmatpush1.bf16.msra.mxu1 %v1998_v47 }
  0x72   : > { %907 = vmatprep.subr.bf16.mxu0 %v1999_v49  ;;  %1895 = vmatprep.subr.bf16.mxu1 %v1999_v49 }
  0x75   : > { %908 = vmatpush1.bf16.msra.mxu0 %v2001_v50  ;;  %1911 = vmatpush1.bf16.msra.mxu1 %v2001_v50 }
  0x76   : > { %909 = vmatprep.subr.bf16.mxu0 %v2002_v51  ;;  %1896 = vmatprep.subr.bf16.mxu1 %v2002_v51 }
  0x79   : > { %910 = vmatpush1.bf16.msra.mxu0 %v2004_v52  ;;  %1912 = vmatpush1.bf16.msra.mxu1 %v2004_v52 }
  0x7a   : > { %911 = vmatprep.subr.bf16.mxu0 %v2005_v53  ;;  %1897 = vmatprep.subr.bf16.mxu1 %v2005_v53 }
  0x7d   : > { %912 = vmatpush1.bf16.msra.mxu0 %v2007_v54  ;;  %1913 = vmatpush1.bf16.msra.mxu1 %v2007_v54 }
  0x7e   : > { %913 = vmatprep.subr.bf16.mxu0 %v2008_v55  ;;  %1898 = vmatprep.subr.bf16.mxu1 %v2008_v55 }
  0x81   : > { %914 = vmatpush1.bf16.msra.mxu0 %v2010_v56  ;;  %1914 = vmatpush1.bf16.msra.mxu1 %v2010_v56 }
  0x82   : > { %915 = vmatprep.subr.bf16.mxu0 %v2011_v57  ;;  %1899 = vmatprep.subr.bf16.mxu1 %v2011_v57  ;;  %v449_v57 = vld [vmem:[#allocation2 + $0x20] sm:$0xff] }
  0x85   : > { %916 = vmatpush1.bf16.msra.mxu0 %v2013_v58  ;;  %1915 = vmatpush1.bf16.msra.mxu1 %v2013_v58  ;;  %v481_v58 = vld [vmem:[#allocation2 + $0x120] sm:$0xff] }
  0x86   : > { %917 = vmatprep.subr.bf16.mxu0 %v2014_v59  ;;  %1900 = vmatprep.subr.bf16.mxu1 %v2014_v59  ;;  %v450_v59 = vld [vmem:[#allocation2 + $0x28] sm:$0xff] }
  0x89   : > { %918 = vmatpush1.bf16.msra.mxu0 %v2016_v60  ;;  %1916 = vmatpush1.bf16.msra.mxu1 %v2016_v60  ;;  %v482_v60 = vld [vmem:[#allocation2 + $0x128] sm:$0xff] }
  0x8a   : > { %919 = vmatprep.subr.bf16.mxu0 %v2017_v61  ;;  %1901 = vmatprep.subr.bf16.mxu1 %v2017_v61 }
  0x8d   : > { %920 = vmatpush1.bf16.msra.mxu0 %v2019_v62  ;;  %1917 = vmatpush1.bf16.msra.mxu1 %v2019_v62 }
  0x8e   : > { %921 = vmatprep.subr.bf16.mxu0 %v2020_v63  ;;  %1902 = vmatprep.subr.bf16.mxu1 %v2020_v63  ;;  %v451_v63 = vld [vmem:[#allocation2 + $0x30] sm:$0xff] }
  0x91   : > { %922 = vmatpush1.bf16.msra.mxu0 %v2022_v0  ;;  %1918 = vmatpush1.bf16.msra.mxu1 %v2022_v0  ;;  %v483_v0 = vld [vmem:[#allocation2 + $0x130] sm:$0xff] }
  0x92   : > { %923 = vmatprep.subr.bf16.mxu0 %v2023_v1  ;;  %1903 = vmatprep.subr.bf16.mxu1 %v2023_v1 }
  0x95   : > { %924 = vmatpush1.bf16.msra.mxu0 %v2025_v2  ;;  %1919 = vmatpush1.bf16.msra.mxu1 %v2025_v2 }
  0x98   : > { %926 = vmatmul.mubr.bf16.vlgmr.msra.gmra.mrb[0].mxu0 %v2026_v3  ;;  %1006 = vmatmul.mubr.bf16.vlgmr.msra.gmra.mrb[0].mxu1 %v2029_v4 }
  0x99   : > { %935 = vmatprep.mubr.bf16.mxu0 %v2032_v5  ;;  %1015 = vmatprep.mubr.bf16.mxu1 %v2034_v6  ;;  %v452_v5 = vld [vmem:[#allocation2 + $0x38] sm:$0xff] }
  0x9a   : > { %v484_v6 = vld [vmem:[#allocation2 + $0x138] sm:$0xff] }
  0xa0   : > { %936 = vmatmul.mubr.bf16.gmra.mrb[4].mxu0 %v2036_v7  ;;  %1016 = vmatmul.mubr.bf16.gmra.mrb[4].mxu1 %v2037_v8 }
  0xa1   : > { %945 = vmatprep.mubr.bf16.mxu0 %v2038_v9  ;;  %1025 = vmatprep.mubr.bf16.mxu1 %v2040_v10 }
  0xa8   : > { %946 = vmatmul.mubr.bf16.gmra.mrb[8].mxu0 %v2042_v11  ;;  %1026 = vmatmul.mubr.bf16.gmra.mrb[8].mxu1 %v2043_v12 }
  0xa9   : > { %955 = vmatprep.mubr.bf16.mxu0 %v2044_v13  ;;  %1035 = vmatprep.mubr.bf16.mxu1 %v2046_v14 }
  0xb0   : > { %956 = vmatmul.mubr.bf16.gmra.mrb[12].mxu0 %v2048_v15  ;;  %1036 = vmatmul.mubr.bf16.gmra.mrb[12].mxu1 %v2049_v16 }
  0xb1   : > { %965 = vmatprep.mubr.bf16.mxu0 %v2050_v17  ;;  %1045 = vmatprep.mubr.bf16.mxu1 %v2052_v18  ;;  %v453_v17 = vld [vmem:[#allocation2 + $0x40] sm:$0xff] }
  0xb2   : > { %v485_v18 = vld [vmem:[#allocation2 + $0x140] sm:$0xff] }
  0xb8   : > { %966 = vmatmul.mubr.bf16.gmra.mrb[16].mxu0 %v2054_v19  ;;  %1046 = vmatmul.mubr.bf16.gmra.mrb[16].mxu1 %v2055_v20  ;;  %v454_v19 = vld [vmem:[#allocation2 + $0x48] sm:$0xff] }
  0xb9   : > { %975 = vmatprep.mubr.bf16.mxu0 %v2056_v21  ;;  %1055 = vmatprep.mubr.bf16.mxu1 %v2058_v22  ;;  %v486_v20 = vld [vmem:[#allocation2 + $0x148] sm:$0xff] }
  0xc0   : > { %976 = vmatmul.mubr.bf16.gmra.mrb[20].mxu0 %v2060_v23  ;;  %1056 = vmatmul.mubr.bf16.gmra.mrb[20].mxu1 %v2061_v24  ;;  %v455_v23 = vld [vmem:[#allocation2 + $0x50] sm:$0xff] }
  0xc1   : > { %985 = vmatprep.mubr.bf16.mxu0 %v2062_v25  ;;  %1065 = vmatprep.mubr.bf16.mxu1 %v2064_v26  ;;  %v487_v24 = vld [vmem:[#allocation2 + $0x150] sm:$0xff] }
  0xc8   : > { %986 = vmatmul.mubr.bf16.gmra.mrb[24].mxu0 %v2066_v27  ;;  %1066 = vmatmul.mubr.bf16.gmra.mrb[24].mxu1 %v2067_v28 }
  0xc9   : > { %995 = vmatprep.mubr.bf16.mxu0 %v2068_v29  ;;  %1075 = vmatprep.mubr.bf16.mxu1 %v2070_v30  ;;  %v456_v29 = vld [vmem:[#allocation2 + $0x58] sm:$0xff] }
  0xca   : > { %v488_v30 = vld [vmem:[#allocation2 + $0x158] sm:$0xff] }
  0xd0   : > { %996 = vmatmul.mubr.bf16.gmra.mrb[28].mxu0 %v2072_v31  ;;  %1076 = vmatmul.mubr.bf16.gmra.mrb[28].mxu1 %v2073_v32 }
 0x16b   : > { %v927_v37 = vpop.f32.mrb[0].mxu0  ;;  %v1007_v38 = vpop.f32.mrb[0].mxu1 }
 0x16c   : > { %v1086_v41 = vadd.f32 %v927_v37, %v445_v33  ;;  %v1118_v42 = vadd.f32 %v1007_v38, %v477_v34  ;;  %v929_v43 = vpop.f32.mrb[1].mxu0  ;;  %v1009_v44 = vpop.f32.mrb[1].mxu1 }
 0x16d   : > { %v1087_v47 = vadd.f32 %v929_v43, %v446_v35  ;;  %v1119_v48 = vadd.f32 %v1009_v44, %v478_v36  ;;  %v931_v49 = vpop.f32.mrb[2].mxu0  ;;  %v1011_v50 = vpop.f32.mrb[2].mxu1  ;;  %v458_v43 = vld [vmem:[#allocation2 + $0x68] sm:$0xff] }
 0x16e   : > { %1150 = vst [vmem:[#allocation2] sm:$0xff] %v1086_v41  ;;  %1182 = vst [vmem:[#allocation2 + $0x100] sm:$0xff] %v1118_v42  ;;  %v1088_v51 = vadd.f32 %v931_v49, %v447_v39  ;;  %v1120_v52 = vadd.f32 %v1011_v50, %v479_v40  ;;  %v933_v53 = vpop.f32.mrb[3].mxu0  ;;  %v1013_v54 = vpop.f32.mrb[3].mxu1  ;;  %v457_v41 = vld [vmem:[#allocation2 + $0x60] sm:$0xff]  ;;  %v490_v44 = vld [vmem:[#allocation2 + $0x168] sm:$0xff] }
 0x16f   : > { %1151 = vst [vmem:[#allocation2 + $0x8] sm:$0xff] %v1087_v47  ;;  %1183 = vst [vmem:[#allocation2 + $0x108] sm:$0xff] %v1119_v48  ;;  %v1089_v55 = vadd.f32 %v933_v53, %v448_v45  ;;  %v1121_v56 = vadd.f32 %v1013_v54, %v480_v46  ;;  %v489_v42 = vld [vmem:[#allocation2 + $0x160] sm:$0xff]  ;;  %v459_v47 = vld [vmem:[#allocation2 + $0x70] sm:$0xff] }
 0x170   : > { %1152 = vst [vmem:[#allocation2 + $0x10] sm:$0xff] %v1088_v51  ;;  %1184 = vst [vmem:[#allocation2 + $0x110] sm:$0xff] %v1120_v52  ;;  %v491_v48 = vld [vmem:[#allocation2 + $0x170] sm:$0xff]  ;;  %v460_v53 = vld [vmem:[#allocation2 + $0x78] sm:$0xff] }
 0x171   : > { %1153 = vst [vmem:[#allocation2 + $0x18] sm:$0xff] %v1089_v55  ;;  %1185 = vst [vmem:[#allocation2 + $0x118] sm:$0xff] %v1121_v56  ;;  %v492_v54 = vld [vmem:[#allocation2 + $0x178] sm:$0xff] }
 0x173   : > { %v937_v61 = vpop.f32.mrb[4].mxu0  ;;  %v1017_v62 = vpop.f32.mrb[4].mxu1 }
 0x174   : > { %v1090_v1 = vadd.f32 %v937_v61, %v449_v57  ;;  %v1122_v2 = vadd.f32 %v1017_v62, %v481_v58  ;;  %v939_v3 = vpop.f32.mrb[5].mxu0  ;;  %v1019_v4 = vpop.f32.mrb[5].mxu1 }
 0x175   : > { %v1091_v7 = vadd.f32 %v939_v3, %v450_v59  ;;  %v1123_v8 = vadd.f32 %v1019_v4, %v482_v60  ;;  %v941_v9 = vpop.f32.mrb[6].mxu0  ;;  %v1021_v10 = vpop.f32.mrb[6].mxu1  ;;  %v462_v3 = vld [vmem:[#allocation2 + $0x88] sm:$0xff] }
 0x176   : > { %1154 = vst [vmem:[#allocation2 + $0x20] sm:$0xff] %v1090_v1  ;;  %1186 = vst [vmem:[#allocation2 + $0x120] sm:$0xff] %v1122_v2  ;;  %v1092_v11 = vadd.f32 %v941_v9, %v451_v63  ;;  %v1124_v12 = vadd.f32 %v1021_v10, %v483_v0  ;;  %v943_v13 = vpop.f32.mrb[7].mxu0  ;;  %v1023_v14 = vpop.f32.mrb[7].mxu1  ;;  %v461_v1 = vld [vmem:[#allocation2 + $0x80] sm:$0xff]  ;;  %v494_v4 = vld [vmem:[#allocation2 + $0x188] sm:$0xff] }
 0x177   : > { %1155 = vst [vmem:[#allocation2 + $0x28] sm:$0xff] %v1091_v7  ;;  %1187 = vst [vmem:[#allocation2 + $0x128] sm:$0xff] %v1123_v8  ;;  %v1093_v15 = vadd.f32 %v943_v13, %v452_v5  ;;  %v1125_v16 = vadd.f32 %v1023_v14, %v484_v6  ;;  %v493_v2 = vld [vmem:[#allocation2 + $0x180] sm:$0xff]  ;;  %v463_v7 = vld [vmem:[#allocation2 + $0x90] sm:$0xff] }
 0x178   : > { %1156 = vst [vmem:[#allocation2 + $0x30] sm:$0xff] %v1092_v11  ;;  %1188 = vst [vmem:[#allocation2 + $0x130] sm:$0xff] %v1124_v12  ;;  %v495_v8 = vld [vmem:[#allocation2 + $0x190] sm:$0xff]  ;;  %v464_v13 = vld [vmem:[#allocation2 + $0x98] sm:$0xff] }
 0x179   : > { %1157 = vst [vmem:[#allocation2 + $0x38] sm:$0xff] %v1093_v15  ;;  %1189 = vst [vmem:[#allocation2 + $0x138] sm:$0xff] %v1125_v16  ;;  %v496_v14 = vld [vmem:[#allocation2 + $0x198] sm:$0xff] }
 0x17b   : > { %v947_v21 = vpop.f32.mrb[8].mxu0  ;;  %v1027_v22 = vpop.f32.mrb[8].mxu1 }
 0x17c   : > { %v1094_v25 = vadd.f32 %v947_v21, %v453_v17  ;;  %v1126_v26 = vadd.f32 %v1027_v22, %v485_v18  ;;  %v949_v27 = vpop.f32.mrb[9].mxu0  ;;  %v1029_v28 = vpop.f32.mrb[9].mxu1 }
 0x17d   : > { %v1095_v31 = vadd.f32 %v949_v27, %v454_v19  ;;  %v1127_v32 = vadd.f32 %v1029_v28, %v486_v20  ;;  %v951_v33 = vpop.f32.mrb[10].mxu0  ;;  %v1031_v34 = vpop.f32.mrb[10].mxu1  ;;  %v466_v27 = vld [vmem:[#allocation2 + $0xa8] sm:$0xff] }
 0x17e   : > { %1158 = vst [vmem:[#allocation2 + $0x40] sm:$0xff] %v1094_v25  ;;  %1190 = vst [vmem:[#allocation2 + $0x140] sm:$0xff] %v1126_v26  ;;  %v1096_v35 = vadd.f32 %v951_v33, %v455_v23  ;;  %v1128_v36 = vadd.f32 %v1031_v34, %v487_v24  ;;  %v953_v37 = vpop.f32.mrb[11].mxu0  ;;  %v1033_v38 = vpop.f32.mrb[11].mxu1  ;;  %v465_v25 = vld [vmem:[#allocation2 + $0xa0] sm:$0xff]  ;;  %v498_v28 = vld [vmem:[#allocation2 + $0x1a8] sm:$0xff] }
 0x17f   : > { %1159 = vst [vmem:[#allocation2 + $0x48] sm:$0xff] %v1095_v31  ;;  %1191 = vst [vmem:[#allocation2 + $0x148] sm:$0xff] %v1127_v32  ;;  %v1097_v39 = vadd.f32 %v953_v37, %v456_v29  ;;  %v1129_v40 = vadd.f32 %v1033_v38, %v488_v30  ;;  %v497_v26 = vld [vmem:[#allocation2 + $0x1a0] sm:$0xff]  ;;  %v467_v31 = vld [vmem:[#allocation2 + $0xb0] sm:$0xff] }
 0x180   : > { %1160 = vst [vmem:[#allocation2 + $0x50] sm:$0xff] %v1096_v35  ;;  %1192 = vst [vmem:[#allocation2 + $0x150] sm:$0xff] %v1128_v36  ;;  %v499_v32 = vld [vmem:[#allocation2 + $0x1b0] sm:$0xff]  ;;  %v468_v37 = vld [vmem:[#allocation2 + $0xb8] sm:$0xff] }
 0x181   : > { %1161 = vst [vmem:[#allocation2 + $0x58] sm:$0xff] %v1097_v39  ;;  %1193 = vst [vmem:[#allocation2 + $0x158] sm:$0xff] %v1129_v40  ;;  %v500_v38 = vld [vmem:[#allocation2 + $0x1b8] sm:$0xff] }
 0x183   : > { %v957_v45 = vpop.f32.mrb[12].mxu0  ;;  %v1037_v46 = vpop.f32.mrb[12].mxu1 }
 0x184   : > { %v1098_v49 = vadd.f32 %v957_v45, %v457_v41  ;;  %v1130_v50 = vadd.f32 %v1037_v46, %v489_v42  ;;  %v959_v51 = vpop.f32.mrb[13].mxu0  ;;  %v1039_v52 = vpop.f32.mrb[13].mxu1 }
 0x185   : > { %v1099_v55 = vadd.f32 %v959_v51, %v458_v43  ;;  %v1131_v56 = vadd.f32 %v1039_v52, %v490_v44  ;;  %v961_v57 = vpop.f32.mrb[14].mxu0  ;;  %v1041_v58 = vpop.f32.mrb[14].mxu1  ;;  %v470_v51 = vld [vmem:[#allocation2 + $0xc8] sm:$0xff] }
 0x186   : > { %1162 = vst [vmem:[#allocation2 + $0x60] sm:$0xff] %v1098_v49  ;;  %1194 = vst [vmem:[#allocation2 + $0x160] sm:$0xff] %v1130_v50  ;;  %v1100_v59 = vadd.f32 %v961_v57, %v459_v47  ;;  %v1132_v60 = vadd.f32 %v1041_v58, %v491_v48  ;;  %v963_v61 = vpop.f32.mrb[15].mxu0  ;;  %v1043_v62 = vpop.f32.mrb[15].mxu1  ;;  %v469_v49 = vld [vmem:[#allocation2 + $0xc0] sm:$0xff]  ;;  %v502_v52 = vld [vmem:[#allocation2 + $0x1c8] sm:$0xff] }
 0x187   : > { %1163 = vst [vmem:[#allocation2 + $0x68] sm:$0xff] %v1099_v55  ;;  %1195 = vst [vmem:[#allocation2 + $0x168] sm:$0xff] %v1131_v56  ;;  %v1101_v63 = vadd.f32 %v963_v61, %v460_v53  ;;  %v1133_v0 = vadd.f32 %v1043_v62, %v492_v54  ;;  %v501_v50 = vld [vmem:[#allocation2 + $0x1c0] sm:$0xff]  ;;  %v471_v55 = vld [vmem:[#allocation2 + $0xd0] sm:$0xff] }
 0x188   : > { %1164 = vst [vmem:[#allocation2 + $0x70] sm:$0xff] %v1100_v59  ;;  %1196 = vst [vmem:[#allocation2 + $0x170] sm:$0xff] %v1132_v60  ;;  %v503_v56 = vld [vmem:[#allocation2 + $0x1d0] sm:$0xff]  ;;  %v472_v61 = vld [vmem:[#allocation2 + $0xd8] sm:$0xff] }
 0x189   : > { %1165 = vst [vmem:[#allocation2 + $0x78] sm:$0xff] %v1101_v63  ;;  %1197 = vst [vmem:[#allocation2 + $0x178] sm:$0xff] %v1133_v0  ;;  %v504_v62 = vld [vmem:[#allocation2 + $0x1d8] sm:$0xff] }
 0x18b   : > { %v967_v5 = vpop.f32.mrb[16].mxu0  ;;  %v1047_v6 = vpop.f32.mrb[16].mxu1 }
 0x18c   : > { %v1102_v9 = vadd.f32 %v967_v5, %v461_v1  ;;  %v1134_v10 = vadd.f32 %v1047_v6, %v493_v2  ;;  %v969_v11 = vpop.f32.mrb[17].mxu0  ;;  %v1049_v12 = vpop.f32.mrb[17].mxu1 }
 0x18d   : > { %v1103_v15 = vadd.f32 %v969_v11, %v462_v3  ;;  %v1135_v16 = vadd.f32 %v1049_v12, %v494_v4  ;;  %v971_v17 = vpop.f32.mrb[18].mxu0  ;;  %v1051_v18 = vpop.f32.mrb[18].mxu1  ;;  %v474_v11 = vld [vmem:[#allocation2 + $0xe8] sm:$0xff] }
 0x18e   : > { %1166 = vst [vmem:[#allocation2 + $0x80] sm:$0xff] %v1102_v9  ;;  %1198 = vst [vmem:[#allocation2 + $0x180] sm:$0xff] %v1134_v10  ;;  %v1104_v19 = vadd.f32 %v971_v17, %v463_v7  ;;  %v1136_v20 = vadd.f32 %v1051_v18, %v495_v8  ;;  %v973_v21 = vpop.f32.mrb[19].mxu0  ;;  %v1053_v22 = vpop.f32.mrb[19].mxu1  ;;  %v473_v9 = vld [vmem:[#allocation2 + $0xe0] sm:$0xff]  ;;  %v506_v12 = vld [vmem:[#allocation2 + $0x1e8] sm:$0xff] }
 0x18f   : > { %1167 = vst [vmem:[#allocation2 + $0x88] sm:$0xff] %v1103_v15  ;;  %1199 = vst [vmem:[#allocation2 + $0x188] sm:$0xff] %v1135_v16  ;;  %v1105_v23 = vadd.f32 %v973_v21, %v464_v13  ;;  %v1137_v24 = vadd.f32 %v1053_v22, %v496_v14  ;;  %v505_v10 = vld [vmem:[#allocation2 + $0x1e0] sm:$0xff]  ;;  %v475_v15 = vld [vmem:[#allocation2 + $0xf0] sm:$0xff] }
 0x190   : > { %1168 = vst [vmem:[#allocation2 + $0x90] sm:$0xff] %v1104_v19  ;;  %1200 = vst [vmem:[#allocation2 + $0x190] sm:$0xff] %v1136_v20  ;;  %v507_v16 = vld [vmem:[#allocation2 + $0x1f0] sm:$0xff]  ;;  %v476_v21 = vld [vmem:[#allocation2 + $0xf8] sm:$0xff] }
 0x191   : > { %1169 = vst [vmem:[#allocation2 + $0x98] sm:$0xff] %v1105_v23  ;;  %1201 = vst [vmem:[#allocation2 + $0x198] sm:$0xff] %v1137_v24  ;;  %v508_v22 = vld [vmem:[#allocation2 + $0x1f8] sm:$0xff] }
 0x193   : > { %v977_v29 = vpop.f32.mrb[20].mxu0  ;;  %v1057_v30 = vpop.f32.mrb[20].mxu1 }
 0x194   : > { %v1106_v33 = vadd.f32 %v977_v29, %v465_v25  ;;  %v1138_v34 = vadd.f32 %v1057_v30, %v497_v26  ;;  %v979_v35 = vpop.f32.mrb[21].mxu0  ;;  %v1059_v36 = vpop.f32.mrb[21].mxu1 }
 0x195   : > { %v1107_v39 = vadd.f32 %v979_v35, %v466_v27  ;;  %v1139_v40 = vadd.f32 %v1059_v36, %v498_v28  ;;  %v981_v41 = vpop.f32.mrb[22].mxu0  ;;  %v1061_v42 = vpop.f32.mrb[22].mxu1  ;;  %v1282_v35 = vld [vmem:[%s2552_s2] sm:$0x3] (!%p1819_p13) }
 0x196   : > { %1170 = vst [vmem:[#allocation2 + $0xa0] sm:$0xff] %v1106_v33  ;;  %1202 = vst [vmem:[#allocation2 + $0x1a0] sm:$0xff] %v1138_v34  ;;  %v1108_v43 = vadd.f32 %v981_v41, %v467_v31  ;;  %v1140_v44 = vadd.f32 %v1061_v42, %v499_v32  ;;  %v983_v45 = vpop.f32.mrb[23].mxu0  ;;  %v1063_v46 = vpop.f32.mrb[23].mxu1  ;;  %v1284_v33 = vlaneseq (!%p1819_p13)  ;;  %v1218_v36 = vld [vmem:[#allocation2] sm:$0xff] (!%p1819_p13)  ;;  %v1221_v41 = vld [vmem:[#allocation2 + $0x18] sm:$0xff] (!%p1819_p13) }
 0x197   : > { %1171 = vst [vmem:[#allocation2 + $0xa8] sm:$0xff] %v1107_v39  ;;  %1203 = vst [vmem:[#allocation2 + $0x1a8] sm:$0xff] %v1139_v40  ;;  %v1109_v47 = vadd.f32 %v983_v45, %v468_v37  ;;  %v1141_v48 = vadd.f32 %v1063_v46, %v500_v38  ;;  %v1219_v37 = vld [vmem:[#allocation2 + $0x8] sm:$0xff] (!%p1819_p13)  ;;  %v1220_v40 = vld [vmem:[#allocation2 + $0x10] sm:$0xff] (!%p1819_p13) }
 0x198   : > { %1172 = vst [vmem:[#allocation2 + $0xb0] sm:$0xff] %v1108_v43  ;;  %1204 = vst [vmem:[#allocation2 + $0x1b0] sm:$0xff] %v1140_v44  ;;  %v1285_v34 = vshrl.u32 (!%p1819_p13), %v1284_v33, 7  ;;  %v1222_v42 = vld [vmem:[#allocation2 + $0x20] sm:$0xff] (!%p1819_p13)  ;;  %v1223_v45 = vld [vmem:[#allocation2 + $0x28] sm:$0xff] (!%p1819_p13) }
 0x199   : > { %1173 = vst [vmem:[#allocation2 + $0xb8] sm:$0xff] %v1109_v47  ;;  %1205 = vst [vmem:[#allocation2 + $0x1b8] sm:$0xff] %v1141_v48  ;;  %v1224_v46 = vld [vmem:[#allocation2 + $0x30] sm:$0xff] (!%p1819_p13)  ;;  %v1225_v47 = vld [vmem:[#allocation2 + $0x38] sm:$0xff] (!%p1819_p13) }
 0x19a   : > { %v1286_v38 = vsub.s32 (!%p1819_p13), 0, %v1285_v34  ;;  %v1290_v39 = vsub.s32 (!%p1819_p13), 1, %v1285_v34 }
 0x19b   : > { %v987_v53 = vpop.f32.mrb[24].mxu0  ;;  %v1067_v54 = vpop.f32.mrb[24].mxu1 }
 0x19c   : > { %v1110_v57 = vadd.f32 %v987_v53, %v469_v49  ;;  %v1142_v58 = vadd.f32 %v1067_v54, %v501_v50  ;;  %v989_v59 = vpop.f32.mrb[25].mxu0  ;;  %v1069_v60 = vpop.f32.mrb[25].mxu1  ;;  %v2429_v43 = vrot.slane (!%p1819_p13), %v1282_v35, %v1286_v38  ;;  %v2431_v44 = vrot.slane (!%p1819_p13), %v1282_v35, %v1290_v39 }
 0x19d   : > { %v1111_v63 = vadd.f32 %v989_v59, %v470_v51  ;;  %v1143_v0 = vadd.f32 %v1069_v60, %v502_v52  ;;  %v991_v1 = vpop.f32.mrb[26].mxu0  ;;  %v1071_v2 = vpop.f32.mrb[26].mxu1 }
 0x19e   : > { %1174 = vst [vmem:[#allocation2 + $0xc0] sm:$0xff] %v1110_v57  ;;  %1206 = vst [vmem:[#allocation2 + $0x1c0] sm:$0xff] %v1142_v58  ;;  %v1112_v3 = vadd.f32 %v991_v1, %v471_v55  ;;  %v1144_v4 = vadd.f32 %v1071_v2, %v503_v56  ;;  %v993_v5 = vpop.f32.mrb[27].mxu0  ;;  %v1073_v6 = vpop.f32.mrb[27].mxu1  ;;  %v1294_v48 = vadd.f32 (!%p1819_p13), %v2429_v43, %v1218_v36  ;;  %v1226_v56 = vld [vmem:[#allocation2 + $0x40] sm:$0xff] (!%p1819_p13)  ;;  %v1227_v57 = vld [vmem:[#allocation2 + $0x48] sm:$0xff] (!%p1819_p13) }
 0x19f   : > { %1175 = vst [vmem:[#allocation2 + $0xc8] sm:$0xff] %v1111_v63  ;;  %1207 = vst [vmem:[#allocation2 + $0x1c8] sm:$0xff] %v1143_v0  ;;  %v1113_v7 = vadd.f32 %v993_v5, %v472_v61  ;;  %v1145_v8 = vadd.f32 %v1073_v6, %v504_v62  ;;  %v1295_v49 = vadd.f32 (!%p1819_p13), %v2431_v44, %v1219_v37  ;;  %v1228_v62 = vld [vmem:[#allocation2 + $0x50] sm:$0xff] (!%p1819_p13)  ;;  %v1229_v63 = vld [vmem:[#allocation2 + $0x58] sm:$0xff] (!%p1819_p13) }
 0x1a0   : > { %1176 = vst [vmem:[#allocation2 + $0xd0] sm:$0xff] %v1112_v3  ;;  %1208 = vst [vmem:[#allocation2 + $0x1d0] sm:$0xff] %v1144_v4  ;;  %v1296_v50 = vadd.f32 (!%p1819_p13), %v2429_v43, %v1220_v40  ;;  %v1297_v51 = vadd.f32 (!%p1819_p13), %v2431_v44, %v1221_v41  ;;  %v1298_v52 = vadd.f32 (!%p1819_p13), %v2429_v43, %v1222_v42  ;;  %v1358_v58 = vmax.f32 (!%p1819_p13), %v1294_v48, 0.0  ;;  %v1230_v4 = vld [vmem:[#allocation2 + $0x60] sm:$0xff] (!%p1819_p13)  ;;  %v1231_v5 = vld [vmem:[#allocation2 + $0x68] sm:$0xff] (!%p1819_p13) }
 0x1a1   : > { %1177 = vst [vmem:[#allocation2 + $0xd8] sm:$0xff] %v1113_v7  ;;  %1209 = vst [vmem:[#allocation2 + $0x1d8] sm:$0xff] %v1145_v8  ;;  %v1299_v53 = vadd.f32 (!%p1819_p13), %v2431_v44, %v1223_v45  ;;  %v1300_v54 = vadd.f32 (!%p1819_p13), %v2429_v43, %v1224_v46  ;;  %v1301_v55 = vadd.f32 (!%p1819_p13), %v2431_v44, %v1225_v47  ;;  %v1359_v59 = vmax.f32 (!%p1819_p13), %v1295_v49, 0.0  ;;  %v1239_v33 = vld [vmem:[#allocation2 + $0xa8] sm:$0xff] (!%p1819_p13)  ;;  %v1240_v38 = vld [vmem:[#allocation2 + $0xb0] sm:$0xff] (!%p1819_p13) }
 0x1a2   : > { %v1360_v60 = vmax.f32 (!%p1819_p13), %v1296_v50, 0.0  ;;  %v1361_v61 = vmax.f32 (!%p1819_p13), %v1297_v51, 0.0  ;;  %v1362_v0 = vmax.f32 (!%p1819_p13), %v1298_v52, 0.0  ;;  %v1302_v8 = vadd.f32 (!%p1819_p13), %v2429_v43, %v1226_v56  ;;  %v1241_v39 = vld [vmem:[#allocation2 + $0xb8] sm:$0xff] (!%p1819_p13) }
 0x1a3   : > { %v997_v13 = vpop.f32.mrb[28].mxu0  ;;  %v1077_v14 = vpop.f32.mrb[28].mxu1  ;;  %1217 = sbr.rel (%p1819_p13) target bundleno = 462 (0x1ce), region = 78  ;;  %v1363_v1 = vmax.f32 (!%p1819_p13), %v1299_v53, 0.0  ;;  %v1364_v2 = vmax.f32 (!%p1819_p13), %v1300_v54, 0.0  ;;  %v1365_v3 = vmax.f32 (!%p1819_p13), %v1301_v55, 0.0  ;;  %v1856_v6 = vpack.c.bf16 (!%p1819_p13), %v1359_v59, %v1358_v58 }
 0x1a4   : > { %v1114_v17 = vadd.f32 %v997_v13, %v473_v9  ;;  %v1146_v18 = vadd.f32 %v1077_v14, %v505_v10  ;;  %v999_v19 = vpop.f32.mrb[29].mxu0  ;;  %v1079_v20 = vpop.f32.mrb[29].mxu1  ;;  %v1857_v7 = vpack.c.bf16 (!%p1819_p13), %v1361_v61, %v1360_v60  ;;  %v1303_v9 = vadd.f32 (!%p1819_p13), %v2431_v44, %v1227_v57  ;;  %v1232_v10 = vld [vmem:[#allocation2 + $0x70] sm:$0xff] (!%p1819_p13) }
 0x1a5   : > { %v1115_v23 = vadd.f32 %v999_v19, %v474_v11  ;;  %v1147_v24 = vadd.f32 %v1079_v20, %v506_v12  ;;  %v1001_v25 = vpop.f32.mrb[30].mxu0  ;;  %v1081_v26 = vpop.f32.mrb[30].mxu1  ;;  %v1233_v11 = vld [vmem:[#allocation2 + $0x78] sm:$0xff] (!%p1819_p13)  ;;  %v1858_v12 = vpack.c.bf16 (!%p1819_p13), %v1363_v1, %v1362_v0  ;;  %v1859_v13 = vpack.c.bf16 (!%p1819_p13), %v1365_v3, %v1364_v2  ;;  %1614 = vst [vmem:[%s2292_s30] sm:$0xff] (!%p1819_p13), %v1856_v6  ;;  %v1242_v46 = vld [vmem:[#allocation2 + $0xc0] sm:$0xff] (!%p1819_p13) }
 0x1a6   : > { %1178 = vst [vmem:[#allocation2 + $0xe0] sm:$0xff] %v1114_v17  ;;  %1210 = vst [vmem:[#allocation2 + $0x1e0] sm:$0xff] %v1146_v18  ;;  %v1116_v27 = vadd.f32 %v1001_v25, %v475_v15  ;;  %v1148_v28 = vadd.f32 %v1081_v26, %v507_v16  ;;  %v1003_v29 = vpop.f32.mrb[31].mxu0  ;;  %v1083_v30 = vpop.f32.mrb[31].mxu1  ;;  %v1304_v14 = vadd.f32 (!%p1819_p13), %v2429_v43, %v1228_v62  ;;  %v1234_v16 = vld [vmem:[#allocation2 + $0x80] sm:$0xff] (!%p1819_p13)  ;;  %v1366_v17 = vmax.f32 (!%p1819_p13), %v1302_v8, 0.0 }
 0x1a7   : > { %1179 = vst [vmem:[#allocation2 + $0xe8] sm:$0xff] %v1115_v23  ;;  %1211 = vst [vmem:[#allocation2 + $0x1e8] sm:$0xff] %v1147_v24  ;;  %v1117_v31 = vadd.f32 %v1003_v29, %v476_v21  ;;  %v1149_v32 = vadd.f32 %v1083_v30, %v508_v22  ;;  %v1305_v15 = vadd.f32 (!%p1819_p13), %v2431_v44, %v1229_v63  ;;  %v1367_v18 = vmax.f32 (!%p1819_p13), %v1303_v9, 0.0  ;;  %v1235_v21 = vld [vmem:[#allocation2 + $0x88] sm:$0xff] (!%p1819_p13)  ;;  %v1236_v26 = vld [vmem:[#allocation2 + $0x90] sm:$0xff] (!%p1819_p13) }
 0x1a8   : > { %1180 = vst [vmem:[#allocation2 + $0xf0] sm:$0xff] %v1116_v27  ;;  %1212 = vst [vmem:[#allocation2 + $0x1f0] sm:$0xff] %v1148_v28  ;;  %v1306_v19 = vadd.f32 (!%p1819_p13), %v2429_v43, %v1230_v4  ;;  %v1307_v20 = vadd.f32 (!%p1819_p13), %v2431_v44, %v1231_v5  ;;  %v1368_v22 = vmax.f32 (!%p1819_p13), %v1304_v14, 0.0  ;;  %v1308_v24 = vadd.f32 (!%p1819_p13), %v2429_v43, %v1232_v10  ;;  %v1237_v27 = vld [vmem:[#allocation2 + $0x98] sm:$0xff] (!%p1819_p13)  ;;  %v1243_v51 = vld [vmem:[#allocation2 + $0xc8] sm:$0xff] (!%p1819_p13) }
 0x1a9   : > { %1181 = vst [vmem:[#allocation2 + $0xf8] sm:$0xff] %v1117_v31  ;;  %1213 = vst [vmem:[#allocation2 + $0x1f8] sm:$0xff] %v1149_v32  ;;  %v1369_v23 = vmax.f32 (!%p1819_p13), %v1305_v15, 0.0  ;;  %v1309_v25 = vadd.f32 (!%p1819_p13), %v2431_v44, %v1233_v11  ;;  %v1860_v28 = vpack.c.bf16 (!%p1819_p13), %v1367_v18, %v1366_v17  ;;  %v1310_v31 = vadd.f32 (!%p1819_p13), %v2429_v43, %v1234_v16  ;;  %v1238_v32 = vld [vmem:[#allocation2 + $0xa0] sm:$0xff] (!%p1819_p13)  ;;  %v1244_v56 = vld [vmem:[#allocation2 + $0xd0] sm:$0xff] (!%p1819_p13) }
 0x1aa   : > { %1615 = vst [vmem:[%s2292_s30 + $0x8] sm:$0xff] %v1857_v7  ;;  %1616 = vst [vmem:[%s2292_s30 + $0x10] sm:$0xff] %v1858_v12  ;;  %v1370_v29 = vmax.f32 %v1306_v19, 0.0  ;;  %v1371_v30 = vmax.f32 %v1307_v20, 0.0  ;;  %v1372_v35 = vmax.f32 %v1308_v24, 0.0  ;;  %v1311_v37 = vadd.f32 %v2431_v44, %v1235_v21  ;;  %v1245_v57 = vld [vmem:[#allocation2 + $0xd8] sm:$0xff] }
 0x1ab   : > { %1617 = vst [vmem:[%s2292_s30 + $0x18] sm:$0xff] %v1859_v13  ;;  %v1861_v34 = vpack.c.bf16 %v1369_v23, %v1368_v22  ;;  %v1373_v36 = vmax.f32 %v1309_v25, 0.0  ;;  %1618 = vst [vmem:[%s2292_s30 + $0x20] sm:$0xff] %v1860_v28  ;;  %v1374_v41 = vmax.f32 %v1310_v31, 0.0  ;;  %v1312_v42 = vadd.f32 %v2429_v43, %v1236_v26  ;;  %v1250_v10 = vld [vmem:[#allocation2 + $0x100] sm:$0xff]  ;;  %v1251_v15 = vld [vmem:[#allocation2 + $0x108] sm:$0xff] }
 0x1ac   : > { %v1862_v40 = vpack.c.bf16 %v1371_v30, %v1370_v29  ;;  %v1313_v45 = vadd.f32 %v2431_v44, %v1237_v27  ;;  %v1375_v48 = vmax.f32 %v1311_v37, 0.0  ;;  %v1314_v49 = vadd.f32 %v2429_v43, %v1238_v32  ;;  %v1252_v20 = vld [vmem:[#allocation2 + $0x110] sm:$0xff]  ;;  %v1253_v21 = vld [vmem:[#allocation2 + $0x118] sm:$0xff]  ;;  %v1254_v26 = vld [vmem:[#allocation2 + $0x120] sm:$0xff] }
 0x1ad   : > { %1619 = vst [vmem:[%s2292_s30 + $0x28] sm:$0xff] %v1861_v34  ;;  %v1863_v47 = vpack.c.bf16 %v1373_v36, %v1372_v35  ;;  %v1315_v50 = vadd.f32 %v2431_v44, %v1239_v33  ;;  %v1376_v52 = vmax.f32 %v1312_v42, 0.0  ;;  %v1316_v54 = vadd.f32 %v2429_v43, %v1240_v38  ;;  %v1246_v62 = vld [vmem:[#allocation2 + $0xe0] sm:$0xff]  ;;  %v1255_v27 = vld [vmem:[#allocation2 + $0x128] sm:$0xff]  ;;  %v1256_v32 = vld [vmem:[#allocation2 + $0x130] sm:$0xff] }
 0x1ae   : > { %1620 = vst [vmem:[%s2292_s30 + $0x30] sm:$0xff] %v1862_v40  ;;  %v1377_v53 = vmax.f32 %v1313_v45, 0.0  ;;  %v1317_v55 = vadd.f32 %v2431_v44, %v1241_v39  ;;  %v1864_v58 = vpack.c.bf16 %v1375_v48, %v1374_v41  ;;  %v1378_v59 = vmax.f32 %v1314_v49, 0.0  ;;  %v1247_v63 = vld [vmem:[#allocation2 + $0xe8] sm:$0xff]  ;;  %v1257_v33 = vld [vmem:[#allocation2 + $0x138] sm:$0xff]  ;;  %v1258_v38 = vld [vmem:[#allocation2 + $0x140] sm:$0xff] }
 0x1af   : > { %1621 = vst [vmem:[%s2292_s30 + $0x38] sm:$0xff] %v1863_v47  ;;  %v1379_v60 = vmax.f32 %v1315_v50, 0.0  ;;  %v1318_v61 = vadd.f32 %v2429_v43, %v1242_v46  ;;  %v1380_v1 = vmax.f32 %v1316_v54, 0.0  ;;  %v1319_v3 = vadd.f32 %v2431_v44, %v1243_v51  ;;  %v1248_v4 = vld [vmem:[#allocation2 + $0xf0] sm:$0xff]  ;;  %v1259_v45 = vld [vmem:[#allocation2 + $0x148] sm:$0xff]  ;;  %v1261_v51 = vld [vmem:[#allocation2 + $0x158] sm:$0xff] }
 0x1b0   : > { %v1865_v0 = vpack.c.bf16 %v1377_v53, %v1376_v52  ;;  %v1381_v2 = vmax.f32 %v1317_v55, 0.0  ;;  %v1249_v5 = vld [vmem:[#allocation2 + $0xf8] sm:$0xff]  ;;  %1622 = vst [vmem:[%s2292_s30 + $0x40] sm:$0xff] %v1864_v58  ;;  %v1320_v8 = vadd.f32 %v2429_v43, %v1244_v56  ;;  %v1321_v9 = vadd.f32 %v2431_v44, %v1245_v57  ;;  %v1260_v50 = vld [vmem:[#allocation2 + $0x150] sm:$0xff]  ;;  %v1262_v56 = vld [vmem:[#allocation2 + $0x160] sm:$0xff] }
 0x1b1   : > { %v1866_v6 = vpack.c.bf16 %v1379_v60, %v1378_v59  ;;  %v1382_v7 = vmax.f32 %v1318_v61, 0.0  ;;  %v1383_v12 = vmax.f32 %v1319_v3, 0.0  ;;  %v1322_v13 = vadd.f32 %v2429_v43, %v1246_v62  ;;  %v1263_v57 = vld [vmem:[#allocation2 + $0x168] sm:$0xff]  ;;  %v1264_v62 = vld [vmem:[#allocation2 + $0x170] sm:$0xff] }
 0x1b2   : > { %1623 = vst [vmem:[%s2292_s30 + $0x48] sm:$0xff] %v1865_v0  ;;  %v1867_v11 = vpack.c.bf16 %v1381_v2, %v1380_v1  ;;  %v1323_v14 = vadd.f32 %v2431_v44, %v1247_v63  ;;  %v1384_v16 = vmax.f32 %v1320_v8, 0.0  ;;  %v1385_v17 = vmax.f32 %v1321_v9, 0.0  ;;  %v1265_v63 = vld [vmem:[#allocation2 + $0x178] sm:$0xff]  ;;  %v1267_v9 = vld [vmem:[#allocation2 + $0x188] sm:$0xff] }
 0x1b3   : > { %1624 = vst [vmem:[%s2292_s30 + $0x50] sm:$0xff] %v1866_v6  ;;  %v1324_v18 = vadd.f32 %v2429_v43, %v1248_v4  ;;  %v1325_v19 = vadd.f32 %v2431_v44, %v1249_v5  ;;  %v1868_v22 = vpack.c.bf16 %v1383_v12, %v1382_v7  ;;  %v1386_v23 = vmax.f32 %v1322_v13, 0.0  ;;  %v1266_v4 = vld [vmem:[#allocation2 + $0x180] sm:$0xff] }
 0x1b4   : > { %1625 = vst [vmem:[%s2292_s30 + $0x58] sm:$0xff] %v1867_v11  ;;  %v1387_v24 = vmax.f32 %v1323_v14, 0.0  ;;  %v1326_v25 = vadd.f32 %v2429_v43, %v1250_v10  ;;  %v1869_v28 = vpack.c.bf16 %v1385_v17, %v1384_v16  ;;  %v1327_v31 = vadd.f32 %v2431_v44, %v1251_v15  ;;  %v1268_v14 = vld [vmem:[#allocation2 + $0x190] sm:$0xff]  ;;  %v1269_v15 = vld [vmem:[#allocation2 + $0x198] sm:$0xff] }
 0x1b5   : > { %v1388_v29 = vmax.f32 %v1324_v18, 0.0  ;;  %v1389_v30 = vmax.f32 %v1325_v19, 0.0  ;;  %1626 = vst [vmem:[%s2292_s30 + $0x60] sm:$0xff] %v1868_v22  ;;  %v1328_v36 = vadd.f32 %v2429_v43, %v1252_v20  ;;  %v1329_v37 = vadd.f32 %v2431_v44, %v1253_v21  ;;  %v1270_v20 = vld [vmem:[#allocation2 + $0x1a0] sm:$0xff]  ;;  %v1271_v21 = vld [vmem:[#allocation2 + $0x1a8] sm:$0xff] }
 0x1b6   : > { %v1870_v34 = vpack.c.bf16 %v1387_v24, %v1386_v23  ;;  %v1390_v35 = vmax.f32 %v1326_v25, 0.0  ;;  %1627 = vst [vmem:[%s2292_s30 + $0x68] sm:$0xff] %v1869_v28  ;;  %v1391_v40 = vmax.f32 %v1327_v31, 0.0  ;;  %v1330_v41 = vadd.f32 %v2429_v43, %v1254_v26  ;;  %v1272_v26 = vld [vmem:[#allocation2 + $0x1b0] sm:$0xff] }
 0x1b7   : > { %v1871_v39 = vpack.c.bf16 %v1389_v30, %v1388_v29  ;;  %v1331_v42 = vadd.f32 %v2431_v44, %v1255_v27  ;;  %v1392_v46 = vmax.f32 %v1328_v36, 0.0  ;;  %v1393_v47 = vmax.f32 %v1329_v37, 0.0  ;;  %v1273_v27 = vld [vmem:[#allocation2 + $0x1b8] sm:$0xff]  ;;  %v1275_v37 = vld [vmem:[#allocation2 + $0x1c8] sm:$0xff] }
 0x1b8   : > { %1628 = vst [vmem:[%s2292_s30 + $0x70] sm:$0xff] %v1870_v34  ;;  %v1332_v48 = vadd.f32 %v2429_v43, %v1256_v32  ;;  %v1333_v49 = vadd.f32 %v2431_v44, %v1257_v33  ;;  %v1872_v52 = vpack.c.bf16 %v1391_v40, %v1390_v35  ;;  %v1394_v53 = vmax.f32 %v1330_v41, 0.0  ;;  %v1274_v32 = vld [vmem:[#allocation2 + $0x1c0] sm:$0xff] }
 0x1b9   : > { %1629 = vst [vmem:[%s2292_s30 + $0x78] sm:$0xff] %v1871_v39  ;;  %v1395_v54 = vmax.f32 %v1331_v42, 0.0  ;;  %v1334_v55 = vadd.f32 %v2429_v43, %v1258_v38  ;;  %v1873_v58 = vpack.c.bf16 %v1393_v47, %v1392_v46  ;;  %v1335_v61 = vadd.f32 %v2431_v44, %v1259_v45  ;;  %v1276_v42 = vld [vmem:[#allocation2 + $0x1d0] sm:$0xff]  ;;  %v1277_v45 = vld [vmem:[#allocation2 + $0x1d8] sm:$0xff] }
 0x1ba   : > { %v1396_v59 = vmax.f32 %v1332_v48, 0.0  ;;  %v1397_v60 = vmax.f32 %v1333_v49, 0.0  ;;  %1630 = vst [vmem:[%s2292_s30 + $0x80] sm:$0xff] %v1872_v52  ;;  %v1336_v2 = vadd.f32 %v2429_v43, %v1260_v50  ;;  %v1337_v3 = vadd.f32 %v2431_v44, %v1261_v51  ;;  %v1278_v50 = vld [vmem:[#allocation2 + $0x1e0] sm:$0xff]  ;;  %v1279_v51 = vld [vmem:[#allocation2 + $0x1e8] sm:$0xff] }
 0x1bb   : > { %v1874_v0 = vpack.c.bf16 %v1395_v54, %v1394_v53  ;;  %v1398_v1 = vmax.f32 %v1334_v55, 0.0  ;;  %1631 = vst [vmem:[%s2292_s30 + $0x88] sm:$0xff] %v1873_v58  ;;  %v1399_v6 = vmax.f32 %v1335_v61, 0.0  ;;  %v1338_v7 = vadd.f32 %v2429_v43, %v1262_v56  ;;  %v1280_v56 = vld [vmem:[#allocation2 + $0x1f0] sm:$0xff] }
 0x1bc   : > { %v1875_v5 = vpack.c.bf16 %v1397_v60, %v1396_v59  ;;  %v1339_v8 = vadd.f32 %v2431_v44, %v1263_v57  ;;  %v1400_v10 = vmax.f32 %v1336_v2, 0.0  ;;  %v1401_v11 = vmax.f32 %v1337_v3, 0.0  ;;  %v1281_v57 = vld [vmem:[#allocation2 + $0x1f8] sm:$0xff] }
 0x1bd   : > { %1632 = vst [vmem:[%s2292_s30 + $0x90] sm:$0xff] %v1874_v0  ;;  %v1340_v12 = vadd.f32 %v2429_v43, %v1264_v62  ;;  %v1341_v13 = vadd.f32 %v2431_v44, %v1265_v63  ;;  %v1876_v16 = vpack.c.bf16 %v1399_v6, %v1398_v1  ;;  %v1402_v17 = vmax.f32 %v1338_v7, 0.0 }
 0x1be   : > { %1633 = vst [vmem:[%s2292_s30 + $0x98] sm:$0xff] %v1875_v5  ;;  %v1403_v18 = vmax.f32 %v1339_v8, 0.0  ;;  %v1342_v19 = vadd.f32 %v2429_v43, %v1266_v4  ;;  %v1877_v22 = vpack.c.bf16 %v1401_v11, %v1400_v10  ;;  %v1343_v25 = vadd.f32 %v2431_v44, %v1267_v9 }
 0x1bf   : > { %v1404_v23 = vmax.f32 %v1340_v12, 0.0  ;;  %v1405_v24 = vmax.f32 %v1341_v13, 0.0  ;;  %1634 = vst [vmem:[%s2292_s30 + $0xa0] sm:$0xff] %v1876_v16  ;;  %v1344_v30 = vadd.f32 %v2429_v43, %v1268_v14  ;;  %v1345_v31 = vadd.f32 %v2431_v44, %v1269_v15 }
 0x1c0   : > { %v1878_v28 = vpack.c.bf16 %v1403_v18, %v1402_v17  ;;  %v1406_v29 = vmax.f32 %v1342_v19, 0.0  ;;  %1635 = vst [vmem:[%s2292_s30 + $0xa8] sm:$0xff] %v1877_v22  ;;  %v1407_v34 = vmax.f32 %v1343_v25, 0.0  ;;  %v1346_v35 = vadd.f32 %v2429_v43, %v1270_v20 }
 0x1c1   : > { %v1879_v33 = vpack.c.bf16 %v1405_v24, %v1404_v23  ;;  %v1347_v36 = vadd.f32 %v2431_v44, %v1271_v21  ;;  %v1408_v38 = vmax.f32 %v1344_v30, 0.0  ;;  %v1409_v39 = vmax.f32 %v1345_v31, 0.0 }
 0x1c2   : > { %1636 = vst [vmem:[%s2292_s30 + $0xb0] sm:$0xff] %v1878_v28  ;;  %v1348_v40 = vadd.f32 %v2429_v43, %v1272_v26  ;;  %v1349_v41 = vadd.f32 %v2431_v44, %v1273_v27  ;;  %v1880_v46 = vpack.c.bf16 %v1407_v34, %v1406_v29  ;;  %v1410_v47 = vmax.f32 %v1346_v35, 0.0 }
 0x1c3   : > { %1637 = vst [vmem:[%s2292_s30 + $0xb8] sm:$0xff] %v1879_v33  ;;  %v1411_v48 = vmax.f32 %v1347_v36, 0.0  ;;  %v1350_v49 = vadd.f32 %v2429_v43, %v1274_v32  ;;  %v1881_v52 = vpack.c.bf16 %v1409_v39, %v1408_v38  ;;  %v1351_v55 = vadd.f32 %v2431_v44, %v1275_v37 }
 0x1c4   : > { %v1412_v53 = vmax.f32 %v1348_v40, 0.0  ;;  %v1413_v54 = vmax.f32 %v1349_v41, 0.0  ;;  %1638 = vst [vmem:[%s2292_s30 + $0xc0] sm:$0xff] %v1880_v46  ;;  %v1352_v60 = vadd.f32 %v2429_v43, %v1276_v42  ;;  %v1353_v61 = vadd.f32 %v2431_v44, %v1277_v45 }
 0x1c5   : > { %v1882_v58 = vpack.c.bf16 %v1411_v48, %v1410_v47  ;;  %v1414_v59 = vmax.f32 %v1350_v49, 0.0  ;;  %1639 = vst [vmem:[%s2292_s30 + $0xc8] sm:$0xff] %v1881_v52  ;;  %v1415_v63 = vmax.f32 %v1351_v55, 0.0  ;;  %v1354_v0 = vadd.f32 %v2429_v43, %v1278_v50 }
 0x1c6   : > { %v1883_v62 = vpack.c.bf16 %v1413_v54, %v1412_v53  ;;  %v1355_v1 = vadd.f32 %v2431_v44, %v1279_v51  ;;  %v1416_v2 = vmax.f32 %v1352_v60, 0.0  ;;  %v1417_v3 = vmax.f32 %v1353_v61, 0.0 }
 0x1c7   : > { %1640 = vst [vmem:[%s2292_s30 + $0xd0] sm:$0xff] %v1882_v58  ;;  %v1356_v4 = vadd.f32 %v2429_v43, %v1280_v56  ;;  %v1357_v5 = vadd.f32 %v2431_v44, %v1281_v57  ;;  %v1884_v6 = vpack.c.bf16 %v1415_v63, %v1414_v59  ;;  %v1418_v7 = vmax.f32 %v1354_v0, 0.0 }
 0x1c8   : > { %1641 = vst [vmem:[%s2292_s30 + $0xd8] sm:$0xff] %v1883_v62  ;;  %v1419_v8 = vmax.f32 %v1355_v1, 0.0  ;;  %v1885_v9 = vpack.c.bf16 %v1417_v3, %v1416_v2 }
 0x1c9   : > { %v1420_v10 = vmax.f32 %v1356_v4, 0.0  ;;  %v1421_v11 = vmax.f32 %v1357_v5, 0.0  ;;  %1642 = vst [vmem:[%s2292_s30 + $0xe0] sm:$0xff] %v1884_v6 }
 0x1ca   : > { %v1886_v12 = vpack.c.bf16 %v1419_v8, %v1418_v7  ;;  %1643 = vst [vmem:[%s2292_s30 + $0xe8] sm:$0xff] %v1885_v9 }
 0x1cb   : > { %v1887_v13 = vpack.c.bf16 %v1421_v11, %v1420_v10 }
 0x1cc   : > { %1644 = vst [vmem:[%s2292_s30 + $0xf0] sm:$0xff] %v1886_v12 }
 0x1cd   : > { %1645 = vst [vmem:[%s2292_s30 + $0xf8] sm:$0xff] %v1887_v13 }
 0x1ce PF: > { %s13_s18 = sadd.s32 1, %s2128_s18   ;;  %s2554_s12 = smov %s2108_s13 }
 0x1cf   : > { %p10_p0 = scmp.ge.s32.totalorder %s13_s18, 24   ;;  %s2555_s13 = smov %s2202_s25 }
 0x1d0   : > { %s2556_s14 = smov %s2120_s16  ;;  %s2557_s15 = smov %s2124_s17 }
 0x1d1   : > { %s2558_s16 = smov %s2561_s19  ;;  %s2559_s17 = smov %s2565_s20 }
 0x1d2   :  { %12 = sbr.rel (!%p10_p0) target bundleno = 4 (0x4), region = 116 }

// kernel: deeplab1_forward.7
= control target key start
LH: loop header
LB: loop body
LE: loop exit
PB: predicated region body
PF: predicated region fallthrough
CT: control target
= control target key end

     0   :  { %s2737_s12 = smov 0   ;;  %s2739_s13 = smov 0   ;;  %s3317_s0 = inlined_call_operand.vmem [shape: bf16[512,2304], index: 0, kind: input, shape index: {}]   ;;  %s3318_s1 = inlined_call_operand.vmem [shape: bf16[2304,256], index: 1, kind: input, shape index: {}]   ;;  %s3319_s2 = inlined_call_operand.vmem [shape: f32[1,256], index: 2, kind: input, shape index: {}]   ;;  %s3320_s3 = inlined_call_operand.vmem [shape: bf16[512,256], index: 3, kind: output, shape index: {}]  }
   0x1   :  { %s2741_s14 = smov 0   ;;  %s2743_s15 = smov 0  }
   0x2   :  { %s2745_s16 = smov 0   ;;  %s2747_s17 = smov 0  }
   0x3   :  { %s2749_s18 = smov 0  }
   0x4 LB: > { %s22_s19 = sadd.s32 1, %s2705_s16  ;;  %s25_s20 = sadd.s32 1, %s2709_s17  ;;  %s2713_s18 = sphi %s2749_s18, %s13_s18   ;;  %s2709_s17 = sphi %s2747_s17, %s3326_s17   ;;  %s2705_s16 = sphi %s2745_s16, %s3325_s16   ;;  %s2701_s15 = sphi %s2743_s15, %s3324_s15   ;;  %s2697_s14 = sphi %s2741_s14, %s3323_s14   ;;  %s2693_s13 = sphi %s2739_s13, %s3322_s13   ;;  %s2689_s12 = sphi %s2737_s12, %s3321_s12  }
   0x5   : > { %p23_p0 = scmp.ge.s32.totalorder %s22_s19, 6  ;;  %p41_p1 = scmp.ne.s32.totalorder %s2693_s13, %s2689_s12 }
   0x6   : > { %p42_p2 = scmp.eq.s32.totalorder %s2713_s18, 0  ;;  %s34_s24 = sadd.s32 1, %s2693_s13 }
   0x7   : > { %s3328_s19 = smov (%p23_p0, %s22_s19), 0  ;;  %s3330_s20 = smov (!%p23_p0, %s25_s20), %s2709_s17 }
   0x8   : > { %p43_p3 = por %p42_p2, %p41_p1  ;;  %p27_p4 = scmp.ge.s32.totalorder %s3330_s20, 2 }
   0x9   : > { %s30_s21 = ssub.s32 %s2705_s16, %s3328_s19  ;;  %p2158_p6 = scmp.ge.s32.totalorder %s2713_s18, 12 }
   0xa   : > { %s3332_s20 = smov (%p27_p4, %s3330_s20), 0 }
   0xb   : > { %s29_s22 = ssub.s32 %s2709_s17, %s3332_s20  ;;  %143 = sbr.rel (%p2158_p6) target bundleno = 64 (0x40), region = 20 }
   0xc   : > { %s31_s23 = sor.u32 %s30_s21, %s29_s22 }
   0xd   : > { %p32_p5 = scmp.eq.s32.totalorder %s31_s23, 0 }
   0xf   : > { %s2788_s25 = scalar_select %p32_p5, %s2693_s13, %s34_s24  }
  0x12   : > { %146 = sbr.rel (!%p43_p3) target bundleno = 64 (0x40), region = 24  ;;  %s148_s26 = sand.u32 (%p43_p3), 1, %s2693_s13  }
  0x13   : > { %s152_s27 = smul.u32 (%p43_p3), 3, %s2705_s16 }
  0x14   : > { %s2462_s28 = smul.u32 (%p43_p3), 384, %s148_s26 }
  0x15   : > { %s2463_s29 = smul.u32 (%p43_p3), 576, %s2709_s17 }
  0x16   : > { %s2802_s8 = scalar_lea.vmem (%p43_p3), [#allocation3], %s2462_s28 }
  0x17   : > { %s154_s30 = sadd.s32 (%p43_p3), %s2463_s29, %s152_s27 }
  0x18   : > { %s2161_s4 = sshll.u32 (%p43_p3), %s154_s30, 2 }
  0x19   : > { %s2797_s7 = scalar_lea.vmem %s3317_s0, %s2161_s4 }
  0x1a   : > { %v171_v0 = vld [vmem:[%s2797_s7] sm:$0xff]  ;;  %v173_v1 = vld [vmem:[%s2797_s7 + $0x48] sm:$0xff]  ;;  %v175_v2 = vld [vmem:[%s2797_s7 + $0x90] sm:$0xff] }
  0x1b   : > { %172 = vst [vmem:[%s2802_s8] sm:$0xff] %v171_v0  ;;  %174 = vst [vmem:[%s2802_s8 + $0xc] sm:$0xff] %v173_v1  ;;  %v177_v3 = vld [vmem:[%s2797_s7 + $0xd8] sm:$0xff]  ;;  %v179_v4 = vld [vmem:[%s2797_s7 + $0x120] sm:$0xff] }
  0x1c   : > { %176 = vst [vmem:[%s2802_s8 + $0x18] sm:$0xff] %v175_v2  ;;  %v181_v5 = vld [vmem:[%s2797_s7 + $0x168] sm:$0xff]  ;;  %178 = vst [vmem:[%s2802_s8 + $0x24] sm:$0xff] %v177_v3  ;;  %v183_v6 = vld [vmem:[%s2797_s7 + $0x1b0] sm:$0xff] }
  0x1d   : > { %180 = vst [vmem:[%s2802_s8 + $0x30] sm:$0xff] %v179_v4  ;;  %182 = vst [vmem:[%s2802_s8 + $0x3c] sm:$0xff] %v181_v5  ;;  %v185_v7 = vld [vmem:[%s2797_s7 + $0x1f8] sm:$0xff]  ;;  %v187_v8 = vld [vmem:[%s2797_s7 + $0x240] sm:$0xff] }
  0x1e   : > { %184 = vst [vmem:[%s2802_s8 + $0x48] sm:$0xff] %v183_v6  ;;  %186 = vst [vmem:[%s2802_s8 + $0x54] sm:$0xff] %v185_v7  ;;  %v189_v9 = vld [vmem:[%s2797_s7 + $0x288] sm:$0xff]  ;;  %v191_v10 = vld [vmem:[%s2797_s7 + $0x2d0] sm:$0xff] }
  0x1f   : > { %188 = vst [vmem:[%s2802_s8 + $0x60] sm:$0xff] %v187_v8  ;;  %v193_v11 = vld [vmem:[%s2797_s7 + $0x318] sm:$0xff]  ;;  %190 = vst [vmem:[%s2802_s8 + $0x6c] sm:$0xff] %v189_v9  ;;  %v195_v12 = vld [vmem:[%s2797_s7 + $0x360] sm:$0xff] }
  0x20   : > { %192 = vst [vmem:[%s2802_s8 + $0x78] sm:$0xff] %v191_v10  ;;  %194 = vst [vmem:[%s2802_s8 + $0x84] sm:$0xff] %v193_v11  ;;  %v197_v13 = vld [vmem:[%s2797_s7 + $0x3a8] sm:$0xff]  ;;  %v199_v14 = vld [vmem:[%s2797_s7 + $0x3f0] sm:$0xff] }
  0x21   : > { %196 = vst [vmem:[%s2802_s8 + $0x90] sm:$0xff] %v195_v12  ;;  %198 = vst [vmem:[%s2802_s8 + $0x9c] sm:$0xff] %v197_v13  ;;  %v201_v15 = vld [vmem:[%s2797_s7 + $0x438] sm:$0xff]  ;;  %v203_v16 = vld [vmem:[%s2797_s7 + $0x480] sm:$0xff] }
  0x22   : > { %200 = vst [vmem:[%s2802_s8 + $0xa8] sm:$0xff] %v199_v14  ;;  %v205_v17 = vld [vmem:[%s2797_s7 + $0x4c8] sm:$0xff]  ;;  %202 = vst [vmem:[%s2802_s8 + $0xb4] sm:$0xff] %v201_v15  ;;  %v207_v18 = vld [vmem:[%s2797_s7 + $0x510] sm:$0xff] }
  0x23   : > { %204 = vst [vmem:[%s2802_s8 + $0xc0] sm:$0xff] %v203_v16  ;;  %206 = vst [vmem:[%s2802_s8 + $0xcc] sm:$0xff] %v205_v17  ;;  %v209_v19 = vld [vmem:[%s2797_s7 + $0x558] sm:$0xff]  ;;  %v211_v20 = vld [vmem:[%s2797_s7 + $0x5a0] sm:$0xff] }
  0x24   : > { %208 = vst [vmem:[%s2802_s8 + $0xd8] sm:$0xff] %v207_v18  ;;  %210 = vst [vmem:[%s2802_s8 + $0xe4] sm:$0xff] %v209_v19  ;;  %v213_v21 = vld [vmem:[%s2797_s7 + $0x5e8] sm:$0xff]  ;;  %v215_v22 = vld [vmem:[%s2797_s7 + $0x630] sm:$0xff] }
  0x25   : > { %212 = vst [vmem:[%s2802_s8 + $0xf0] sm:$0xff] %v211_v20  ;;  %v217_v23 = vld [vmem:[%s2797_s7 + $0x678] sm:$0xff]  ;;  %214 = vst [vmem:[%s2802_s8 + $0xfc] sm:$0xff] %v213_v21  ;;  %v219_v24 = vld [vmem:[%s2797_s7 + $0x6c0] sm:$0xff] }
  0x26   : > { %216 = vst [vmem:[%s2802_s8 + $0x108] sm:$0xff] %v215_v22  ;;  %218 = vst [vmem:[%s2802_s8 + $0x114] sm:$0xff] %v217_v23  ;;  %v221_v25 = vld [vmem:[%s2797_s7 + $0x708] sm:$0xff]  ;;  %v223_v26 = vld [vmem:[%s2797_s7 + $0x750] sm:$0xff] }
  0x27   : > { %220 = vst [vmem:[%s2802_s8 + $0x120] sm:$0xff] %v219_v24  ;;  %222 = vst [vmem:[%s2802_s8 + $0x12c] sm:$0xff] %v221_v25  ;;  %v225_v27 = vld [vmem:[%s2797_s7 + $0x798] sm:$0xff]  ;;  %v227_v28 = vld [vmem:[%s2797_s7 + $0x7e0] sm:$0xff] }
  0x28   : > { %224 = vst [vmem:[%s2802_s8 + $0x138] sm:$0xff] %v223_v26  ;;  %v229_v29 = vld [vmem:[%s2797_s7 + $0x828] sm:$0xff]  ;;  %226 = vst [vmem:[%s2802_s8 + $0x144] sm:$0xff] %v225_v27  ;;  %v231_v30 = vld [vmem:[%s2797_s7 + $0x870] sm:$0xff] }
  0x29   : > { %228 = vst [vmem:[%s2802_s8 + $0x150] sm:$0xff] %v227_v28  ;;  %230 = vst [vmem:[%s2802_s8 + $0x15c] sm:$0xff] %v229_v29  ;;  %v233_v31 = vld [vmem:[%s2797_s7 + $0x8b8] sm:$0xff]  ;;  %v2162_v32 = vld [vmem:[%s2797_s7 + $0x8] sm:$0xf] }
  0x2a   : > { %232 = vst [vmem:[%s2802_s8 + $0x168] sm:$0xff] %v231_v30  ;;  %234 = vst [vmem:[%s2802_s8 + $0x174] sm:$0xff] %v233_v31  ;;  %v2164_v33 = vld [vmem:[%s2797_s7 + $0x50] sm:$0xf]  ;;  %v2166_v34 = vld [vmem:[%s2797_s7 + $0x98] sm:$0xf] }
  0x2b   : > { %2163 = vst [vmem:[%s2802_s8 + $0x8] sm:$0xf] %v2162_v32  ;;  %v2168_v35 = vld [vmem:[%s2797_s7 + $0xe0] sm:$0xf]  ;;  %2165 = vst [vmem:[%s2802_s8 + $0x14] sm:$0xf] %v2164_v33 }
  0x2c   : > { %2167 = vst [vmem:[%s2802_s8 + $0x20] sm:$0xf] %v2166_v34  ;;  %2169 = vst [vmem:[%s2802_s8 + $0x2c] sm:$0xf] %v2168_v35  ;;  %v2170_v36 = vld [vmem:[%s2797_s7 + $0x128] sm:$0xf] }
  0x2d   : > { %v2172_v37 = vld [vmem:[%s2797_s7 + $0x170] sm:$0xf]  ;;  %v2174_v38 = vld [vmem:[%s2797_s7 + $0x1b8] sm:$0xf]  ;;  %2171 = vst [vmem:[%s2802_s8 + $0x38] sm:$0xf] %v2170_v36 }
  0x2e   : > { %2173 = vst [vmem:[%s2802_s8 + $0x44] sm:$0xf] %v2172_v37  ;;  %2175 = vst [vmem:[%s2802_s8 + $0x50] sm:$0xf] %v2174_v38  ;;  %v2176_v39 = vld [vmem:[%s2797_s7 + $0x200] sm:$0xf] }
  0x2f   : > { %v2178_v40 = vld [vmem:[%s2797_s7 + $0x248] sm:$0xf]  ;;  %v2180_v41 = vld [vmem:[%s2797_s7 + $0x290] sm:$0xf]  ;;  %2177 = vst [vmem:[%s2802_s8 + $0x5c] sm:$0xf] %v2176_v39 }
  0x30   : > { %2179 = vst [vmem:[%s2802_s8 + $0x68] sm:$0xf] %v2178_v40  ;;  %2181 = vst [vmem:[%s2802_s8 + $0x74] sm:$0xf] %v2180_v41  ;;  %v2182_v42 = vld [vmem:[%s2797_s7 + $0x2d8] sm:$0xf] }
  0x31   : > { %v2184_v43 = vld [vmem:[%s2797_s7 + $0x320] sm:$0xf]  ;;  %v2186_v44 = vld [vmem:[%s2797_s7 + $0x368] sm:$0xf]  ;;  %2183 = vst [vmem:[%s2802_s8 + $0x80] sm:$0xf] %v2182_v42 }
  0x32   : > { %2185 = vst [vmem:[%s2802_s8 + $0x8c] sm:$0xf] %v2184_v43  ;;  %2187 = vst [vmem:[%s2802_s8 + $0x98] sm:$0xf] %v2186_v44  ;;  %v2188_v45 = vld [vmem:[%s2797_s7 + $0x3b0] sm:$0xf] }
  0x33   : > { %v2190_v46 = vld [vmem:[%s2797_s7 + $0x3f8] sm:$0xf]  ;;  %v2192_v47 = vld [vmem:[%s2797_s7 + $0x440] sm:$0xf]  ;;  %2189 = vst [vmem:[%s2802_s8 + $0xa4] sm:$0xf] %v2188_v45 }
  0x34   : > { %2191 = vst [vmem:[%s2802_s8 + $0xb0] sm:$0xf] %v2190_v46  ;;  %2193 = vst [vmem:[%s2802_s8 + $0xbc] sm:$0xf] %v2192_v47  ;;  %v2194_v48 = vld [vmem:[%s2797_s7 + $0x488] sm:$0xf] }
  0x35   : > { %v2196_v49 = vld [vmem:[%s2797_s7 + $0x4d0] sm:$0xf]  ;;  %v2198_v50 = vld [vmem:[%s2797_s7 + $0x518] sm:$0xf]  ;;  %2195 = vst [vmem:[%s2802_s8 + $0xc8] sm:$0xf] %v2194_v48 }
  0x36   : > { %2197 = vst [vmem:[%s2802_s8 + $0xd4] sm:$0xf] %v2196_v49  ;;  %2199 = vst [vmem:[%s2802_s8 + $0xe0] sm:$0xf] %v2198_v50  ;;  %v2200_v51 = vld [vmem:[%s2797_s7 + $0x560] sm:$0xf] }
  0x37   : > { %v2202_v52 = vld [vmem:[%s2797_s7 + $0x5a8] sm:$0xf]  ;;  %v2204_v53 = vld [vmem:[%s2797_s7 + $0x5f0] sm:$0xf]  ;;  %2201 = vst [vmem:[%s2802_s8 + $0xec] sm:$0xf] %v2200_v51 }
  0x38   : > { %2203 = vst [vmem:[%s2802_s8 + $0xf8] sm:$0xf] %v2202_v52  ;;  %2205 = vst [vmem:[%s2802_s8 + $0x104] sm:$0xf] %v2204_v53  ;;  %v2206_v54 = vld [vmem:[%s2797_s7 + $0x638] sm:$0xf] }
  0x39   : > { %v2208_v55 = vld [vmem:[%s2797_s7 + $0x680] sm:$0xf]  ;;  %v2210_v56 = vld [vmem:[%s2797_s7 + $0x6c8] sm:$0xf]  ;;  %2207 = vst [vmem:[%s2802_s8 + $0x110] sm:$0xf] %v2206_v54 }
  0x3a   : > { %2209 = vst [vmem:[%s2802_s8 + $0x11c] sm:$0xf] %v2208_v55  ;;  %2211 = vst [vmem:[%s2802_s8 + $0x128] sm:$0xf] %v2210_v56  ;;  %v2212_v57 = vld [vmem:[%s2797_s7 + $0x710] sm:$0xf] }
  0x3b   : > { %v2214_v58 = vld [vmem:[%s2797_s7 + $0x758] sm:$0xf]  ;;  %v2216_v59 = vld [vmem:[%s2797_s7 + $0x7a0] sm:$0xf]  ;;  %2213 = vst [vmem:[%s2802_s8 + $0x134] sm:$0xf] %v2212_v57 }
  0x3c   : > { %2215 = vst [vmem:[%s2802_s8 + $0x140] sm:$0xf] %v2214_v58  ;;  %2217 = vst [vmem:[%s2802_s8 + $0x14c] sm:$0xf] %v2216_v59  ;;  %v2218_v60 = vld [vmem:[%s2797_s7 + $0x7e8] sm:$0xf] }
  0x3d   : > { %v2220_v61 = vld [vmem:[%s2797_s7 + $0x830] sm:$0xf]  ;;  %v2222_v62 = vld [vmem:[%s2797_s7 + $0x878] sm:$0xf]  ;;  %2219 = vst [vmem:[%s2802_s8 + $0x158] sm:$0xf] %v2218_v60 }
  0x3e   : > { %2221 = vst [vmem:[%s2802_s8 + $0x164] sm:$0xf] %v2220_v61  ;;  %2223 = vst [vmem:[%s2802_s8 + $0x170] sm:$0xf] %v2222_v62  ;;  %v2224_v63 = vld [vmem:[%s2797_s7 + $0x8c0] sm:$0xf] }
  0x3f   : > { %2225 = vst [vmem:[%s2802_s8 + $0x17c] sm:$0xf] %v2224_v63 }
  0x40 PF: > { %p2226_p7 = scmp.ge.s32.totalorder %s2713_s18, 1  ;;  %p320_p8 = scmp.lt.s32.totalorder %s2713_s18, 13 }
  0x42   : > { %p321_p9 = pnand %p2226_p7, %p320_p8 }
  0x43   : > { %s327_s9 = sand.u32 (!%p321_p9), 1, %s2689_s12   ;;  %s359_s10 = smul.u32 (!%p321_p9), 48, %s2697_s14 }
  0x44   : > { %324 = sbr.rel (%p321_p9) target bundleno = 552 (0x228), region = 54  ;;  %s2229_s21 = sshll.u32 (!%p321_p9), %s2701_s15, 5 }
  0x45   : > { %s2464_s11 = smul.u32 (!%p321_p9), 384, %s327_s9  ;;  %p360_p10 = scmp.lt.s32.totalorder (!%p321_p9), %s359_s10, 287 }
  0x46   : > { %p367_p11 = scmp.lt.s32.totalorder (!%p321_p9), %s2229_s21, 63  ;;  %p2232_p12 = scmp.ne.s32.totalorder (!%p321_p9), %s2697_s14, 0 }
  0x47   : > { %s2944_s12 = scalar_lea.vmem (!%p321_p9), [#allocation3], %s2464_s11 }
  0x4b   : > { %s3334_s10 = smov (!%p360_p10, %s359_s10), 287  ;;  %s3336_s21 = smov (!%p367_p11, %s2229_s21), 63 }
  0x4c   : > { %s2364_s22 = sshll.u32 %s3334_s10, 3  ;;  %s2365_s27 = sshll.u32 %s3336_s21, 3  ;;  %v2715_v0 = vmov (!%p2232_p12), 0.0  }
  0x4d   : > { %s2937_s26 = scalar_lea.vmem %s3318_s1, %s2364_s22  ;;  %s2942_s30 = scalar_lea.vmem %s3320_s3, %s2365_s27  ;;  %378 = vst [vmem:[#allocation2] sm:$0xff] (!%p2232_p12), %v2715_v0  ;;  %379 = vst [vmem:[#allocation2 + $0x8] sm:$0xff] (!%p2232_p12), %v2715_v0 }
  0x4e   : > { %377 = sbr.rel (%p2232_p12) target bundleno = 109 (0x6d), region = 62  ;;  %380 = vst [vmem:[#allocation2 + $0x10] sm:$0xff] (!%p2232_p12), %v2715_v0  ;;  %381 = vst [vmem:[#allocation2 + $0x18] sm:$0xff] (!%p2232_p12), %v2715_v0 }
  0x4f   : > { %382 = vst [vmem:[#allocation2 + $0x20] sm:$0xff] (!%p2232_p12), %v2715_v0  ;;  %383 = vst [vmem:[#allocation2 + $0x28] sm:$0xff] (!%p2232_p12), %v2715_v0 }
  0x50   : > { %384 = vst [vmem:[#allocation2 + $0x30] sm:$0xff] (!%p2232_p12), %v2715_v0  ;;  %385 = vst [vmem:[#allocation2 + $0x38] sm:$0xff] (!%p2232_p12), %v2715_v0 }
  0x51   : > { %386 = vst [vmem:[#allocation2 + $0x40] sm:$0xff] (!%p2232_p12), %v2715_v0  ;;  %387 = vst [vmem:[#allocation2 + $0x48] sm:$0xff] (!%p2232_p12), %v2715_v0 }
  0x52   : > { %388 = vst [vmem:[#allocation2 + $0x50] sm:$0xff] (!%p2232_p12), %v2715_v0  ;;  %389 = vst [vmem:[#allocation2 + $0x58] sm:$0xff] (!%p2232_p12), %v2715_v0 }
  0x53   : > { %390 = vst [vmem:[#allocation2 + $0x60] sm:$0xff] (!%p2232_p12), %v2715_v0  ;;  %391 = vst [vmem:[#allocation2 + $0x68] sm:$0xff] (!%p2232_p12), %v2715_v0 }
  0x54   : > { %392 = vst [vmem:[#allocation2 + $0x70] sm:$0xff] (!%p2232_p12), %v2715_v0  ;;  %393 = vst [vmem:[#allocation2 + $0x78] sm:$0xff] (!%p2232_p12), %v2715_v0 }
  0x55   : > { %394 = vst [vmem:[#allocation2 + $0x80] sm:$0xff] %v2715_v0  ;;  %395 = vst [vmem:[#allocation2 + $0x88] sm:$0xff] %v2715_v0 }
  0x56   : > { %396 = vst [vmem:[#allocation2 + $0x90] sm:$0xff] %v2715_v0  ;;  %397 = vst [vmem:[#allocation2 + $0x98] sm:$0xff] %v2715_v0 }
  0x57   : > { %398 = vst [vmem:[#allocation2 + $0xa0] sm:$0xff] %v2715_v0  ;;  %399 = vst [vmem:[#allocation2 + $0xa8] sm:$0xff] %v2715_v0 }
  0x58   : > { %400 = vst [vmem:[#allocation2 + $0xb0] sm:$0xff] %v2715_v0  ;;  %401 = vst [vmem:[#allocation2 + $0xb8] sm:$0xff] %v2715_v0 }
  0x59   : > { %402 = vst [vmem:[#allocation2 + $0xc0] sm:$0xff] %v2715_v0  ;;  %403 = vst [vmem:[#allocation2 + $0xc8] sm:$0xff] %v2715_v0 }
  0x5a   : > { %404 = vst [vmem:[#allocation2 + $0xd0] sm:$0xff] %v2715_v0  ;;  %405 = vst [vmem:[#allocation2 + $0xd8] sm:$0xff] %v2715_v0 }
  0x5b   : > { %406 = vst [vmem:[#allocation2 + $0xe0] sm:$0xff] %v2715_v0  ;;  %407 = vst [vmem:[#allocation2 + $0xe8] sm:$0xff] %v2715_v0 }
  0x5c   : > { %408 = vst [vmem:[#allocation2 + $0xf0] sm:$0xff] %v2715_v0  ;;  %409 = vst [vmem:[#allocation2 + $0xf8] sm:$0xff] %v2715_v0 }
  0x5d   : > { %410 = vst [vmem:[#allocation2 + $0x100] sm:$0xff] %v2715_v0  ;;  %411 = vst [vmem:[#allocation2 + $0x108] sm:$0xff] %v2715_v0 }
  0x5e   : > { %412 = vst [vmem:[#allocation2 + $0x110] sm:$0xff] %v2715_v0  ;;  %413 = vst [vmem:[#allocation2 + $0x118] sm:$0xff] %v2715_v0 }
  0x5f   : > { %414 = vst [vmem:[#allocation2 + $0x120] sm:$0xff] %v2715_v0  ;;  %415 = vst [vmem:[#allocation2 + $0x128] sm:$0xff] %v2715_v0 }
  0x60   : > { %416 = vst [vmem:[#allocation2 + $0x130] sm:$0xff] %v2715_v0  ;;  %417 = vst [vmem:[#allocation2 + $0x138] sm:$0xff] %v2715_v0 }
  0x61   : > { %418 = vst [vmem:[#allocation2 + $0x140] sm:$0xff] %v2715_v0  ;;  %419 = vst [vmem:[#allocation2 + $0x148] sm:$0xff] %v2715_v0 }
  0x62   : > { %420 = vst [vmem:[#allocation2 + $0x150] sm:$0xff] %v2715_v0  ;;  %421 = vst [vmem:[#allocation2 + $0x158] sm:$0xff] %v2715_v0 }
  0x63   : > { %422 = vst [vmem:[#allocation2 + $0x160] sm:$0xff] %v2715_v0  ;;  %423 = vst [vmem:[#allocation2 + $0x168] sm:$0xff] %v2715_v0 }
  0x64   : > { %424 = vst [vmem:[#allocation2 + $0x170] sm:$0xff] %v2715_v0  ;;  %425 = vst [vmem:[#allocation2 + $0x178] sm:$0xff] %v2715_v0 }
  0x65   : > { %426 = vst [vmem:[#allocation2 + $0x180] sm:$0xff] %v2715_v0  ;;  %427 = vst [vmem:[#allocation2 + $0x188] sm:$0xff] %v2715_v0 }
  0x66   : > { %428 = vst [vmem:[#allocation2 + $0x190] sm:$0xff] %v2715_v0  ;;  %429 = vst [vmem:[#allocation2 + $0x198] sm:$0xff] %v2715_v0 }
  0x67   : > { %430 = vst [vmem:[#allocation2 + $0x1a0] sm:$0xff] %v2715_v0  ;;  %431 = vst [vmem:[#allocation2 + $0x1a8] sm:$0xff] %v2715_v0 }
  0x68   : > { %432 = vst [vmem:[#allocation2 + $0x1b0] sm:$0xff] %v2715_v0  ;;  %433 = vst [vmem:[#allocation2 + $0x1b8] sm:$0xff] %v2715_v0 }
  0x69   : > { %434 = vst [vmem:[#allocation2 + $0x1c0] sm:$0xff] %v2715_v0  ;;  %435 = vst [vmem:[#allocation2 + $0x1c8] sm:$0xff] %v2715_v0 }
  0x6a   : > { %436 = vst [vmem:[#allocation2 + $0x1d0] sm:$0xff] %v2715_v0  ;;  %437 = vst [vmem:[#allocation2 + $0x1d8] sm:$0xff] %v2715_v0 }
  0x6b   : > { %438 = vst [vmem:[#allocation2 + $0x1e0] sm:$0xff] %v2715_v0  ;;  %439 = vst [vmem:[#allocation2 + $0x1e8] sm:$0xff] %v2715_v0 }
  0x6c   : > { %440 = vst [vmem:[#allocation2 + $0x1f0] sm:$0xff] %v2715_v0  ;;  %441 = vst [vmem:[#allocation2 + $0x1f8] sm:$0xff] %v2715_v0 }
  0x6d PF: > { %v2523_v1 = vld [vmem:[%s2937_s26 + $0x4] ss:$8 sps:$4 sm:$0xff]   ;;  %v2525_v2 = vld [vmem:[%s2937_s26] ss:$8 sps:$4 sm:$0xff]   ;;  %v2716_v3 = vmov 0   ;;  %p2329_p13 = scmp.ne.s32.totalorder %s2697_s14, 5 }
  0x6e   : > { %1339 = vmatprep.mubr.bf16.mxu0 %v2716_v3  ;;  %1114 = vmatprep.subr.bf16.mxu1 %v2523_v1  ;;  %v2526_v4 = vld [vmem:[%s2937_s26 + $0x14] ss:$8 sps:$4 sm:$0xff]   ;;  %v2528_v5 = vld [vmem:[%s2937_s26 + $0x10] ss:$8 sps:$4 sm:$0xff]   ;;  %v2529_v6 = vld [vmem:[%s2937_s26 + $0x24] ss:$8 sps:$4 sm:$0xff]  }
  0x6f   : > { %1115 = vmatpush1.bf16.msra.mxu1 %v2525_v2  ;;  %v2531_v7 = vld [vmem:[%s2937_s26 + $0x20] ss:$8 sps:$4 sm:$0xff]   ;;  %v2532_v8 = vld [vmem:[%s2937_s26 + $0x34] ss:$8 sps:$4 sm:$0xff]   ;;  %v2534_v9 = vld [vmem:[%s2937_s26 + $0x30] ss:$8 sps:$4 sm:$0xff]  }
  0x70   : > { %1116 = vmatprep.subr.bf16.mxu1 %v2526_v4  ;;  %v2547_v10 = vld [vmem:[%s2937_s26 + $0x104] ss:$8 sps:$4 sm:$0xff]   ;;  %v2549_v11 = vld [vmem:[%s2937_s26 + $0x100] ss:$8 sps:$4 sm:$0xff]   ;;  %v2553_v13 = vld [vmem:[%s2937_s26 + $0x114] ss:$8 sps:$4 sm:$0xff]  }
  0x71   : > { %v2535_v12 = vld [vmem:[%s2937_s26 + $0x44] ss:$8 sps:$4 sm:$0xff]   ;;  %1307 = vmatprep.subr.bf16.mxu0 %v2547_v10  ;;  %v2555_v14 = vld [vmem:[%s2937_s26 + $0x110] ss:$8 sps:$4 sm:$0xff]   ;;  %v2537_v15 = vld [vmem:[%s2937_s26 + $0x40] ss:$8 sps:$4 sm:$0xff]  }
  0x72   : > { %1308 = vmatpush1.bf16.msra.mxu0 %v2549_v11  ;;  %v2538_v16 = vld [vmem:[%s2937_s26 + $0x54] ss:$8 sps:$4 sm:$0xff]   ;;  %v2559_v17 = vld [vmem:[%s2937_s26 + $0x124] ss:$8 sps:$4 sm:$0xff]   ;;  %v2561_v18 = vld [vmem:[%s2937_s26 + $0x120] ss:$8 sps:$4 sm:$0xff]  }
  0x73   : > { %1117 = vmatpush1.bf16.msra.mxu1 %v2528_v5  ;;  %1309 = vmatprep.subr.bf16.mxu0 %v2553_v13  ;;  %v2540_v19 = vld [vmem:[%s2937_s26 + $0x50] ss:$8 sps:$4 sm:$0xff]   ;;  %v2565_v20 = vld [vmem:[%s2937_s26 + $0x134] ss:$8 sps:$4 sm:$0xff]   ;;  %v2541_v21 = vld [vmem:[%s2937_s26 + $0x64] ss:$8 sps:$4 sm:$0xff]  }
  0x74   : > { %1118 = vmatprep.subr.bf16.mxu1 %v2529_v6  ;;  %v2567_v22 = vld [vmem:[%s2937_s26 + $0x130] ss:$8 sps:$4 sm:$0xff]   ;;  %v2543_v23 = vld [vmem:[%s2937_s26 + $0x60] ss:$8 sps:$4 sm:$0xff]   ;;  %v2571_v24 = vld [vmem:[%s2937_s26 + $0x144] ss:$8 sps:$4 sm:$0xff]  }
  0x75   : > { %v2544_v25 = vld [vmem:[%s2937_s26 + $0x74] ss:$8 sps:$4 sm:$0xff]   ;;  %v2573_v26 = vld [vmem:[%s2937_s26 + $0x140] ss:$8 sps:$4 sm:$0xff]   ;;  %v2546_v27 = vld [vmem:[%s2937_s26 + $0x70] ss:$8 sps:$4 sm:$0xff]  }
  0x76   : > { %1310 = vmatpush1.bf16.msra.mxu0 %v2555_v14  ;;  %v2577_v28 = vld [vmem:[%s2937_s26 + $0x154] ss:$8 sps:$4 sm:$0xff]   ;;  %v2550_v29 = vld [vmem:[%s2937_s26 + $0x84] ss:$8 sps:$4 sm:$0xff]   ;;  %v2579_v30 = vld [vmem:[%s2937_s26 + $0x150] ss:$8 sps:$4 sm:$0xff]  }
  0x77   : > { %1119 = vmatpush1.bf16.msra.mxu1 %v2531_v7  ;;  %1311 = vmatprep.subr.bf16.mxu0 %v2559_v17  ;;  %v2552_v31 = vld [vmem:[%s2937_s26 + $0x80] ss:$8 sps:$4 sm:$0xff]   ;;  %v2583_v32 = vld [vmem:[%s2937_s26 + $0x164] ss:$8 sps:$4 sm:$0xff]   ;;  %v2556_v33 = vld [vmem:[%s2937_s26 + $0x94] ss:$8 sps:$4 sm:$0xff]  }
  0x78   : > { %1120 = vmatprep.subr.bf16.mxu1 %v2532_v8  ;;  %v2558_v34 = vld [vmem:[%s2937_s26 + $0x90] ss:$8 sps:$4 sm:$0xff]   ;;  %v2585_v35 = vld [vmem:[%s2937_s26 + $0x160] ss:$8 sps:$4 sm:$0xff]   ;;  %v2589_v37 = vld [vmem:[%s2937_s26 + $0x174] ss:$8 sps:$4 sm:$0xff]  }
  0x79   : > { %v2598_v36 = vld [vmem:[%s2944_s12 + $0x4] ss:$12 sps:$4 sm:$0xff]   ;;  %v2564_v40 = vld [vmem:[%s2937_s26 + $0xa0] ss:$8 sps:$4 sm:$0xff]   ;;  %v2568_v41 = vld [vmem:[%s2937_s26 + $0xb4] ss:$8 sps:$4 sm:$0xff]  }
  0x7a   : > { %1312 = vmatpush1.bf16.msra.mxu0 %v2561_v18  ;;  %v2562_v38 = vld [vmem:[%s2937_s26 + $0xa4] ss:$8 sps:$4 sm:$0xff]   ;;  %1146 = vmatprep.mubr.bf16.mxu1 %v2598_v36  ;;  %v2591_v39 = vld [vmem:[%s2937_s26 + $0x170] ss:$8 sps:$4 sm:$0xff]   ;;  %v2595_v42 = vld [vmem:[%s2944_s12 + $0x8] ss:$12 sps:$4 sm:$0xff]  }
  0x7b   : > { %1121 = vmatpush1.bf16.msra.mxu1 %v2534_v9  ;;  %1313 = vmatprep.subr.bf16.mxu0 %v2565_v20  ;;  %v2570_v43 = vld [vmem:[%s2937_s26 + $0xb0] ss:$8 sps:$4 sm:$0xff]   ;;  %v2574_v44 = vld [vmem:[%s2937_s26 + $0xc4] ss:$8 sps:$4 sm:$0xff]   ;;  %v2576_v45 = vld [vmem:[%s2937_s26 + $0xc0] ss:$8 sps:$4 sm:$0xff]  }
  0x7c   : > { %1122 = vmatprep.subr.bf16.mxu1 %v2535_v12  ;;  %v2580_v46 = vld [vmem:[%s2937_s26 + $0xd4] ss:$8 sps:$4 sm:$0xff]   ;;  %v2599_v47 = vld [vmem:[%s2944_s12 + $0x20] ss:$12 sps:$4 sm:$0xff]   ;;  %v2582_v48 = vld [vmem:[%s2937_s26 + $0xd0] ss:$8 sps:$4 sm:$0xff]  }
  0x7d   : > { %v2586_v49 = vld [vmem:[%s2937_s26 + $0xe4] ss:$8 sps:$4 sm:$0xff]   ;;  %v2588_v50 = vld [vmem:[%s2937_s26 + $0xe0] ss:$8 sps:$4 sm:$0xff]   ;;  %v2592_v51 = vld [vmem:[%s2937_s26 + $0xf4] ss:$8 sps:$4 sm:$0xff]  }
  0x7e   : > { %1314 = vmatpush1.bf16.msra.mxu0 %v2567_v22  ;;  %v2603_v52 = vld [vmem:[%s2944_s12 + $0x38] ss:$12 sps:$4 sm:$0xff]   ;;  %v2596_v54 = vld [vmem:[%s2944_s12] ss:$12 sps:$4 sm:$0xff]   ;;  %v2600_v55 = vld [vmem:[%s2944_s12 + $0x1c] ss:$12 sps:$4 sm:$0xff]  }
  0x7f   : > { %1123 = vmatpush1.bf16.msra.mxu1 %v2537_v15  ;;  %1315 = vmatprep.subr.bf16.mxu0 %v2571_v24  ;;  %v2594_v53 = vld [vmem:[%s2937_s26 + $0xf0] ss:$8 sps:$4 sm:$0xff]   ;;  %v2604_v58 = vld [vmem:[%s2944_s12 + $0x34] ss:$12 sps:$4 sm:$0xff]   ;;  %v2616_v4 = vld [vmem:[%s2944_s12 + $0x7c] ss:$12 sps:$4 sm:$0xff]  }
  0x80   : > { %1124 = vmatprep.subr.bf16.mxu1 %v2538_v16  ;;  %v2607_v56 = vld [vmem:[%s2944_s12 + $0x50] ss:$12 sps:$4 sm:$0xff]   ;;  %v2602_v57 = vld [vmem:[%s2944_s12 + $0x18] ss:$12 sps:$4 sm:$0xff]   ;;  %v2611_v59 = vld [vmem:[%s2944_s12 + $0x68] ss:$12 sps:$4 sm:$0xff]  }
  0x81   : > { %v2606_v60 = vld [vmem:[%s2944_s12 + $0x30] ss:$12 sps:$4 sm:$0xff]   ;;  %v2608_v61 = vld [vmem:[%s2944_s12 + $0x4c] ss:$12 sps:$4 sm:$0xff]   ;;  %v2610_v63 = vld [vmem:[%s2944_s12 + $0x48] ss:$12 sps:$4 sm:$0xff]  }
  0x82   : > { %1316 = vmatpush1.bf16.msra.mxu0 %v2573_v26  ;;  %v2615_v62 = vld [vmem:[%s2944_s12 + $0x80] ss:$12 sps:$4 sm:$0xff]   ;;  %v2612_v0 = vld [vmem:[%s2944_s12 + $0x64] ss:$12 sps:$4 sm:$0xff]   ;;  %v2627_v8 = vld [vmem:[%s2944_s12 + $0xc8] ss:$12 sps:$4 sm:$0xff]  }
  0x83   : > { %1125 = vmatpush1.bf16.msra.mxu1 %v2540_v19  ;;  %1317 = vmatprep.subr.bf16.mxu0 %v2577_v28  ;;  %v2619_v1 = vld [vmem:[%s2944_s12 + $0x98] ss:$12 sps:$4 sm:$0xff]   ;;  %v2614_v2 = vld [vmem:[%s2944_s12 + $0x60] ss:$12 sps:$4 sm:$0xff]   ;;  %v2623_v5 = vld [vmem:[%s2944_s12 + $0xb0] ss:$12 sps:$4 sm:$0xff]  }
  0x84   : > { %1126 = vmatprep.subr.bf16.mxu1 %v2541_v21  ;;  %v2618_v6 = vld [vmem:[%s2944_s12 + $0x78] ss:$12 sps:$4 sm:$0xff]   ;;  %v2620_v7 = vld [vmem:[%s2944_s12 + $0x94] ss:$12 sps:$4 sm:$0xff]   ;;  %v2622_v9 = vld [vmem:[%s2944_s12 + $0x90] ss:$12 sps:$4 sm:$0xff]  }
  0x85   : > { %v2624_v10 = vld [vmem:[%s2944_s12 + $0xac] ss:$12 sps:$4 sm:$0xff]   ;;  %v2626_v12 = vld [vmem:[%s2944_s12 + $0xa8] ss:$12 sps:$4 sm:$0xff]   ;;  %v2628_v13 = vld [vmem:[%s2944_s12 + $0xc4] ss:$12 sps:$4 sm:$0xff]  }
  0x86   : > { %1318 = vmatpush1.bf16.msra.mxu0 %v2579_v30  ;;  %v2631_v11 = vld [vmem:[%s2944_s12 + $0xe0] ss:$12 sps:$4 sm:$0xff]   ;;  %v2635_v14 = vld [vmem:[%s2944_s12 + $0xf8] ss:$12 sps:$4 sm:$0xff]   ;;  %v2632_v16 = vld [vmem:[%s2944_s12 + $0xdc] ss:$12 sps:$4 sm:$0xff]  }
  0x87   : > { %1127 = vmatpush1.bf16.msra.mxu1 %v2543_v23  ;;  %1319 = vmatprep.subr.bf16.mxu0 %v2583_v32  ;;  %v2630_v15 = vld [vmem:[%s2944_s12 + $0xc0] ss:$12 sps:$4 sm:$0xff]   ;;  %v2639_v17 = vld [vmem:[%s2944_s12 + $0x110] ss:$12 sps:$4 sm:$0xff]   ;;  %v2634_v18 = vld [vmem:[%s2944_s12 + $0xd8] ss:$12 sps:$4 sm:$0xff]  }
  0x88   : > { %1128 = vmatprep.subr.bf16.mxu1 %v2544_v25  ;;  %v2636_v19 = vld [vmem:[%s2944_s12 + $0xf4] ss:$12 sps:$4 sm:$0xff]   ;;  %v2638_v21 = vld [vmem:[%s2944_s12 + $0xf0] ss:$12 sps:$4 sm:$0xff]   ;;  %v2640_v22 = vld [vmem:[%s2944_s12 + $0x10c] ss:$12 sps:$4 sm:$0xff]  }
  0x89   : > { %v2643_v20 = vld [vmem:[%s2944_s12 + $0x128] ss:$12 sps:$4 sm:$0xff]   ;;  %v2647_v23 = vld [vmem:[%s2944_s12 + $0x140] ss:$12 sps:$4 sm:$0xff]   ;;  %v2644_v25 = vld [vmem:[%s2944_s12 + $0x124] ss:$12 sps:$4 sm:$0xff]  }
  0x8a   : > { %1320 = vmatpush1.bf16.msra.mxu0 %v2585_v35  ;;  %v2642_v24 = vld [vmem:[%s2944_s12 + $0x108] ss:$12 sps:$4 sm:$0xff]   ;;  %v2651_v26 = vld [vmem:[%s2944_s12 + $0x158] ss:$12 sps:$4 sm:$0xff]   ;;  %v2654_v32 = vld [vmem:[%s2944_s12 + $0x150] ss:$12 sps:$4 sm:$0xff]  }
  0x8b   : > { %1129 = vmatpush1.bf16.msra.mxu1 %v2546_v27  ;;  %1321 = vmatprep.subr.bf16.mxu0 %v2589_v37  ;;  %v2646_v27 = vld [vmem:[%s2944_s12 + $0x120] ss:$12 sps:$4 sm:$0xff]   ;;  %v2648_v28 = vld [vmem:[%s2944_s12 + $0x13c] ss:$12 sps:$4 sm:$0xff]   ;;  %v2650_v30 = vld [vmem:[%s2944_s12 + $0x138] ss:$12 sps:$4 sm:$0xff]  }
  0x8c   : > { %1130 = vmatprep.subr.bf16.mxu1 %v2550_v29  ;;  %v2655_v29 = vld [vmem:[%s2944_s12 + $0x170] ss:$12 sps:$4 sm:$0xff]  }
  0x8e   : > { %1322 = vmatpush1.bf16.msra.mxu0 %v2591_v39 }
  0x8f   : > { %1131 = vmatpush1.bf16.msra.mxu1 %v2552_v31  ;;  %v2652_v31 = vld [vmem:[%s2944_s12 + $0x154] ss:$12 sps:$4 sm:$0xff]  }
  0x90   : > { %1132 = vmatprep.subr.bf16.mxu1 %v2556_v33  ;;  %v2656_v33 = vld [vmem:[%s2944_s12 + $0x16c] ss:$12 sps:$4 sm:$0xff]  }
  0x91   : > { %1340 = vmatmul.mubr.bf16.vlgmr.msra.gmra.mrb[0].mxu0 %v2595_v42 }
  0x92   : > { %1349 = vmatprep.mubr.bf16.mxu0 %v2716_v3 }
  0x93   : > { %1133 = vmatpush1.bf16.msra.mxu1 %v2558_v34  ;;  %v2658_v34 = vld [vmem:[%s2944_s12 + $0x168] ss:$12 sps:$4 sm:$0xff]  }
  0x94   : > { %1134 = vmatprep.subr.bf16.mxu1 %v2562_v38 }
  0x97   : > { %1135 = vmatpush1.bf16.msra.mxu1 %v2564_v40 }
  0x98   : > { %1136 = vmatprep.subr.bf16.mxu1 %v2568_v41 }
  0x99   : > { %1350 = vmatmul.mubr.bf16.gmra.mrb[4].mxu0 %v2599_v47 }
  0x9a   : > { %1359 = vmatprep.mubr.bf16.mxu0 %v2716_v3 }
  0x9b   : > { %1137 = vmatpush1.bf16.msra.mxu1 %v2570_v43 }
  0x9c   : > { %1138 = vmatprep.subr.bf16.mxu1 %v2574_v44 }
  0x9f   : > { %1139 = vmatpush1.bf16.msra.mxu1 %v2576_v45 }
  0xa0   : > { %1140 = vmatprep.subr.bf16.mxu1 %v2580_v46  ;;  %v442_v46 = vld [vmem:[#allocation2] sm:$0xff] }
  0xa1   : > { %1360 = vmatmul.mubr.bf16.gmra.mrb[8].mxu0 %v2603_v52  ;;  %v444_v52 = vld [vmem:[#allocation2 + $0x10] sm:$0xff] }
  0xa2   : > { %1369 = vmatprep.mubr.bf16.mxu0 %v2716_v3 }
  0xa3   : > { %1141 = vmatpush1.bf16.msra.mxu1 %v2582_v48 }
  0xa4   : > { %1142 = vmatprep.subr.bf16.mxu1 %v2586_v49  ;;  %v443_v49 = vld [vmem:[#allocation2 + $0x8] sm:$0xff] }
  0xa7   : > { %1143 = vmatpush1.bf16.msra.mxu1 %v2588_v50 }
  0xa8   : > { %1144 = vmatprep.subr.bf16.mxu1 %v2592_v51 }
  0xa9   : > { %1370 = vmatmul.mubr.bf16.gmra.mrb[12].mxu0 %v2607_v56  ;;  %v445_v56 = vld [vmem:[#allocation2 + $0x18] sm:$0xff] }
  0xaa   : > { %1379 = vmatprep.mubr.bf16.mxu0 %v2716_v3 }
  0xab   : > { %1145 = vmatpush1.bf16.msra.mxu1 %v2594_v53 }
  0xae   : > { %1147 = vmatmul.mubr.bf16.vlgmr.msra.gmra.mrb[0].mxu1 %v2596_v54 }
  0xaf   : > { %1156 = vmatprep.mubr.bf16.mxu1 %v2600_v55 }
  0xb1   : > { %1380 = vmatmul.mubr.bf16.gmra.mrb[16].mxu0 %v2611_v59 }
  0xb2   : > { %1389 = vmatprep.mubr.bf16.mxu0 %v2716_v3 }
  0xb6   : > { %1157 = vmatmul.mubr.bf16.gmra.mrb[4].mxu1 %v2602_v57 }
  0xb7   : > { %1166 = vmatprep.mubr.bf16.mxu1 %v2604_v58 }
  0xb9   : > { %1390 = vmatmul.mubr.bf16.gmra.mrb[20].mxu0 %v2615_v62 }
  0xba   : > { %1399 = vmatprep.mubr.bf16.mxu0 %v2716_v3 }
  0xbe   : > { %1167 = vmatmul.mubr.bf16.gmra.mrb[8].mxu1 %v2606_v60 }
  0xbf   : > { %1176 = vmatprep.mubr.bf16.mxu1 %v2608_v61 }
  0xc1   : > { %1400 = vmatmul.mubr.bf16.gmra.mrb[24].mxu0 %v2619_v1 }
  0xc2   : > { %1409 = vmatprep.mubr.bf16.mxu0 %v2716_v3 }
  0xc6   : > { %1177 = vmatmul.mubr.bf16.gmra.mrb[12].mxu1 %v2610_v63 }
  0xc7   : > { %1186 = vmatprep.mubr.bf16.mxu1 %v2612_v0 }
  0xc9   : > { %1410 = vmatmul.mubr.bf16.gmra.mrb[28].mxu0 %v2623_v5 }
  0xca   : > { %1419 = vmatprep.mubr.bf16.mxu0 %v2716_v3 }
  0xce   : > { %1187 = vmatmul.mubr.bf16.gmra.mrb[16].mxu1 %v2614_v2  ;;  %v446_v2 = vld [vmem:[#allocation2 + $0x20] sm:$0xff] }
  0xcf   : > { %1196 = vmatprep.mubr.bf16.mxu1 %v2616_v4 }
  0xd1   : > { %1420 = vmatmul.mubr.bf16.gmra.mrb[32].mxu0 %v2627_v8 }
  0xd2   : > { %1429 = vmatprep.mubr.bf16.mxu0 %v2716_v3 }
  0xd6   : > { %1197 = vmatmul.mubr.bf16.gmra.mrb[20].mxu1 %v2618_v6  ;;  %v447_v6 = vld [vmem:[#allocation2 + $0x28] sm:$0xff] }
  0xd7   : > { %1206 = vmatprep.mubr.bf16.mxu1 %v2620_v7 }
  0xd9   : > { %1430 = vmatmul.mubr.bf16.gmra.mrb[36].mxu0 %v2631_v11 }
  0xda   : > { %1439 = vmatprep.mubr.bf16.mxu0 %v2716_v3 }
  0xde   : > { %1207 = vmatmul.mubr.bf16.gmra.mrb[24].mxu1 %v2622_v9  ;;  %v448_v9 = vld [vmem:[#allocation2 + $0x30] sm:$0xff] }
  0xdf   : > { %1216 = vmatprep.mubr.bf16.mxu1 %v2624_v10 }
  0xe1   : > { %1440 = vmatmul.mubr.bf16.gmra.mrb[40].mxu0 %v2635_v14 }
  0xe2   : > { %1449 = vmatprep.mubr.bf16.mxu0 %v2716_v3 }
  0xe6   : > { %1217 = vmatmul.mubr.bf16.gmra.mrb[28].mxu1 %v2626_v12 }
  0xe7   : > { %1226 = vmatprep.mubr.bf16.mxu1 %v2628_v13  ;;  %v449_v13 = vld [vmem:[#allocation2 + $0x38] sm:$0xff] }
  0xe9   : > { %1450 = vmatmul.mubr.bf16.gmra.mrb[44].mxu0 %v2639_v17 }
  0xea   : > { %1459 = vmatprep.mubr.bf16.mxu0 %v2716_v3 }
  0xee   : > { %1227 = vmatmul.mubr.bf16.gmra.mrb[32].mxu1 %v2630_v15 }
  0xef   : > { %1236 = vmatprep.mubr.bf16.mxu1 %v2632_v16 }
  0xf1   : > { %1460 = vmatmul.mubr.bf16.gmra.mrb[48].mxu0 %v2643_v20 }
  0xf2   : > { %1469 = vmatprep.mubr.bf16.mxu0 %v2716_v3 }
  0xf6   : > { %1237 = vmatmul.mubr.bf16.gmra.mrb[36].mxu1 %v2634_v18 }
  0xf7   : > { %1246 = vmatprep.mubr.bf16.mxu1 %v2636_v19 }
  0xf9   : > { %1470 = vmatmul.mubr.bf16.gmra.mrb[52].mxu0 %v2647_v23  ;;  %v450_v23 = vld [vmem:[#allocation2 + $0x40] sm:$0xff] }
  0xfa   : > { %1479 = vmatprep.mubr.bf16.mxu0 %v2716_v3 }
  0xfe   : > { %1247 = vmatmul.mubr.bf16.gmra.mrb[40].mxu1 %v2638_v21 }
  0xff   : > { %1256 = vmatprep.mubr.bf16.mxu1 %v2640_v22 }
 0x101   : > { %1480 = vmatmul.mubr.bf16.gmra.mrb[56].mxu0 %v2651_v26  ;;  %v451_v26 = vld [vmem:[#allocation2 + $0x48] sm:$0xff] }
 0x102   : > { %1489 = vmatprep.mubr.bf16.mxu0 %v2716_v3 }
 0x106   : > { %1257 = vmatmul.mubr.bf16.gmra.mrb[44].mxu1 %v2642_v24 }
 0x107   : > { %1266 = vmatprep.mubr.bf16.mxu1 %v2644_v25 }
 0x109   : > { %1490 = vmatmul.mubr.bf16.gmra.mrb[60].mxu0 %v2655_v29  ;;  %v452_v29 = vld [vmem:[#allocation2 + $0x50] sm:$0xff] }
 0x10e   : > { %1267 = vmatmul.mubr.bf16.gmra.mrb[48].mxu1 %v2646_v27 }
 0x10f   : > { %1276 = vmatprep.mubr.bf16.mxu1 %v2648_v28 }
 0x116   : > { %1277 = vmatmul.mubr.bf16.gmra.mrb[52].mxu1 %v2650_v30 }
 0x117   : > { %1286 = vmatprep.mubr.bf16.mxu1 %v2652_v31 }
 0x11e   : > { %1287 = vmatmul.mubr.bf16.gmra.mrb[56].mxu1 %v2654_v32 }
 0x11f   : > { %1296 = vmatprep.mubr.bf16.mxu1 %v2656_v33  ;;  %v453_v33 = vld [vmem:[#allocation2 + $0x58] sm:$0xff] }
 0x126   : > { %1297 = vmatmul.mubr.bf16.gmra.mrb[60].mxu1 %v2658_v34 }
 0x164   : > { %v1341_v35 = vpop.f32.mrb[0].mxu0 }
 0x165   : > { %v1343_v36 = vpop.f32.mrb[1].mxu0 }
 0x166   : > { %v1345_v37 = vpop.f32.mrb[2].mxu0 }
 0x167   : > { %v1347_v38 = vpop.f32.mrb[3].mxu0 }
 0x16c   : > { %v1351_v3 = vpop.f32.mrb[4].mxu0 }
 0x16d   : > { %v1353_v39 = vpop.f32.mrb[5].mxu0 }
 0x16e   : > { %v1355_v40 = vpop.f32.mrb[6].mxu0 }
 0x16f   : > { %v1357_v41 = vpop.f32.mrb[7].mxu0 }
 0x174   : > { %v1361_v42 = vpop.f32.mrb[8].mxu0 }
 0x175   : > { %v1363_v43 = vpop.f32.mrb[9].mxu0 }
 0x176   : > { %v1365_v44 = vpop.f32.mrb[10].mxu0 }
 0x177   : > { %v3123_v45 = vpop.f32.mrb[11].mxu0 }
 0x17c   : > { %v1371_v58 = vpop.f32.mrb[12].mxu0 }
 0x17d   : > { %v1373_v61 = vpop.f32.mrb[13].mxu0 }
 0x17e   : > { %v3125_v63 = vpop.f32.mrb[14].mxu0 }
 0x17f   : > { %v3127_v1 = vpop.f32.mrb[15].mxu0 }
 0x181   : > { %v1148_v47 = vpop.f32.mrb[0].mxu1 }
 0x182   : > { %v1342_v48 = vadd.f32 %v1341_v35, %v1148_v47  ;;  %v1150_v50 = vpop.f32.mrb[1].mxu1 }
 0x183   : > { %v1344_v51 = vadd.f32 %v1343_v36, %v1150_v50  ;;  %v1152_v53 = vpop.f32.mrb[2].mxu1 }
 0x184   : > { %v1500_v54 = vadd.f32 %v1342_v48, %v442_v46  ;;  %v1346_v55 = vadd.f32 %v1345_v37, %v1152_v53  ;;  %v1154_v57 = vpop.f32.mrb[3].mxu1  ;;  %v1381_v15 = vpop.f32.mrb[16].mxu0  ;;  %v455_v46 = vld [vmem:[#allocation2 + $0x68] sm:$0xff] }
 0x185   : > { %v1501_v59 = vadd.f32 %v1344_v51, %v443_v49  ;;  %v1348_v60 = vadd.f32 %v1347_v38, %v1154_v57  ;;  %v1383_v18 = vpop.f32.mrb[17].mxu0  ;;  %v456_v49 = vld [vmem:[#allocation2 + $0x70] sm:$0xff] }
 0x186   : > { %1564 = vst [vmem:[#allocation2] sm:$0xff] %v1500_v54  ;;  %v1502_v62 = vadd.f32 %v1346_v55, %v444_v52  ;;  %v3129_v20 = vpop.f32.mrb[18].mxu0  ;;  %v457_v52 = vld [vmem:[#allocation2 + $0x78] sm:$0xff] }
 0x187   : > { %1565 = vst [vmem:[#allocation2 + $0x8] sm:$0xff] %v1501_v59  ;;  %v1503_v0 = vadd.f32 %v1348_v60, %v445_v56  ;;  %v3131_v22 = vpop.f32.mrb[19].mxu0 }
 0x188   : > { %1566 = vst [vmem:[#allocation2 + $0x10] sm:$0xff] %v1502_v62 }
 0x189   : > { %1567 = vst [vmem:[#allocation2 + $0x18] sm:$0xff] %v1503_v0  ;;  %v1158_v4 = vpop.f32.mrb[4].mxu1 }
 0x18a   : > { %v1352_v5 = vadd.f32 %v1351_v3, %v1158_v4  ;;  %v1160_v7 = vpop.f32.mrb[5].mxu1 }
 0x18b   : > { %v1354_v8 = vadd.f32 %v1353_v39, %v1160_v7  ;;  %v1162_v10 = vpop.f32.mrb[6].mxu1 }
 0x18c   : > { %v1504_v11 = vadd.f32 %v1352_v5, %v446_v2  ;;  %v1356_v12 = vadd.f32 %v1355_v40, %v1162_v10  ;;  %v1164_v14 = vpop.f32.mrb[7].mxu1  ;;  %v1391_v35 = vpop.f32.mrb[20].mxu0  ;;  %v459_v2 = vld [vmem:[#allocation2 + $0x88] sm:$0xff] }
 0x18d   : > { %v1505_v16 = vadd.f32 %v1354_v8, %v447_v6  ;;  %v1358_v17 = vadd.f32 %v1357_v41, %v1164_v14  ;;  %v1393_v38 = vpop.f32.mrb[21].mxu0  ;;  %v460_v6 = vld [vmem:[#allocation2 + $0x90] sm:$0xff] }
 0x18e   : > { %1568 = vst [vmem:[#allocation2 + $0x20] sm:$0xff] %v1504_v11  ;;  %v1506_v19 = vadd.f32 %v1356_v12, %v448_v9  ;;  %v3134_v39 = vpop.f32.mrb[22].mxu0  ;;  %v461_v9 = vld [vmem:[#allocation2 + $0x98] sm:$0xff] }
 0x18f   : > { %1569 = vst [vmem:[#allocation2 + $0x28] sm:$0xff] %v1505_v16  ;;  %v1507_v21 = vadd.f32 %v1358_v17, %v449_v13  ;;  %v3136_v41 = vpop.f32.mrb[23].mxu0 }
 0x190   : > { %1570 = vst [vmem:[#allocation2 + $0x30] sm:$0xff] %v1506_v19 }
 0x191   : > { %1571 = vst [vmem:[#allocation2 + $0x38] sm:$0xff] %v1507_v21  ;;  %v1168_v24 = vpop.f32.mrb[8].mxu1 }
 0x192   : > { %v1362_v25 = vadd.f32 %v1361_v42, %v1168_v24  ;;  %v1170_v27 = vpop.f32.mrb[9].mxu1  ;;  %v454_v42 = vld [vmem:[#allocation2 + $0x60] sm:$0xff] }
 0x193   : > { %v1364_v28 = vadd.f32 %v1363_v43, %v1170_v27  ;;  %v1172_v30 = vpop.f32.mrb[10].mxu1 }
 0x194   : > { %v1508_v31 = vadd.f32 %v1362_v25, %v450_v23  ;;  %v1366_v32 = vadd.f32 %v1365_v44, %v1172_v30  ;;  %v1174_v34 = vpop.f32.mrb[11].mxu1  ;;  %v1401_v54 = vpop.f32.mrb[24].mxu0  ;;  %v463_v23 = vld [vmem:[#allocation2 + $0xa8] sm:$0xff] }
 0x195   : > { %v1509_v36 = vadd.f32 %v1364_v28, %v451_v26  ;;  %v1368_v37 = vadd.f32 %v3123_v45, %v1174_v34  ;;  %v1403_v57 = vpop.f32.mrb[25].mxu0  ;;  %v464_v26 = vld [vmem:[#allocation2 + $0xb0] sm:$0xff] }
 0x196   : > { %1572 = vst [vmem:[#allocation2 + $0x40] sm:$0xff] %v1508_v31  ;;  %v1510_v3 = vadd.f32 %v1366_v32, %v452_v29  ;;  %v3140_v60 = vpop.f32.mrb[26].mxu0  ;;  %v465_v29 = vld [vmem:[#allocation2 + $0xb8] sm:$0xff] }
 0x197   : > { %1573 = vst [vmem:[#allocation2 + $0x48] sm:$0xff] %v1509_v36  ;;  %v1511_v40 = vadd.f32 %v1368_v37, %v453_v33  ;;  %v3142_v62 = vpop.f32.mrb[27].mxu0 }
 0x198   : > { %1574 = vst [vmem:[#allocation2 + $0x50] sm:$0xff] %v1510_v3 }
 0x199   : > { %1575 = vst [vmem:[#allocation2 + $0x58] sm:$0xff] %v1511_v40  ;;  %v1178_v43 = vpop.f32.mrb[12].mxu1 }
 0x19a   : > { %v1372_v44 = vadd.f32 %v1371_v58, %v1178_v43  ;;  %v1180_v47 = vpop.f32.mrb[13].mxu1 }
 0x19b   : > { %v1374_v48 = vadd.f32 %v1373_v61, %v1180_v47  ;;  %v1182_v50 = vpop.f32.mrb[14].mxu1  ;;  %v458_v61 = vld [vmem:[#allocation2 + $0x80] sm:$0xff] }
 0x19c   : > { %v1512_v45 = vadd.f32 %v1372_v44, %v454_v42  ;;  %v1376_v51 = vadd.f32 %v3125_v63, %v1182_v50  ;;  %v1184_v53 = vpop.f32.mrb[15].mxu1  ;;  %v1411_v11 = vpop.f32.mrb[28].mxu0  ;;  %v467_v42 = vld [vmem:[#allocation2 + $0xc8] sm:$0xff] }
 0x19d   : > { %v1513_v55 = vadd.f32 %v1374_v48, %v455_v46  ;;  %v1378_v56 = vadd.f32 %v3127_v1, %v1184_v53  ;;  %v1413_v14 = vpop.f32.mrb[29].mxu0  ;;  %v468_v46 = vld [vmem:[#allocation2 + $0xd0] sm:$0xff] }
 0x19e   : > { %1576 = vst [vmem:[#allocation2 + $0x60] sm:$0xff] %v1512_v45  ;;  %v1514_v59 = vadd.f32 %v1376_v51, %v456_v49  ;;  %v3146_v17 = vpop.f32.mrb[30].mxu0  ;;  %v469_v49 = vld [vmem:[#allocation2 + $0xd8] sm:$0xff] }
 0x19f   : > { %1577 = vst [vmem:[#allocation2 + $0x68] sm:$0xff] %v1513_v55  ;;  %v1515_v58 = vadd.f32 %v1378_v56, %v457_v52  ;;  %v3148_v19 = vpop.f32.mrb[31].mxu0 }
 0x1a0   : > { %1578 = vst [vmem:[#allocation2 + $0x70] sm:$0xff] %v1514_v59 }
 0x1a1   : > { %1579 = vst [vmem:[#allocation2 + $0x78] sm:$0xff] %v1515_v58  ;;  %v1188_v0 = vpop.f32.mrb[16].mxu1 }
 0x1a2   : > { %v1382_v63 = vadd.f32 %v1381_v15, %v1188_v0  ;;  %v1190_v4 = vpop.f32.mrb[17].mxu1 }
 0x1a3   : > { %v1384_v5 = vadd.f32 %v1383_v18, %v1190_v4  ;;  %v1192_v7 = vpop.f32.mrb[18].mxu1  ;;  %v462_v18 = vld [vmem:[#allocation2 + $0xa0] sm:$0xff] }
 0x1a4   : > { %v1516_v1 = vadd.f32 %v1382_v63, %v458_v61  ;;  %v1386_v8 = vadd.f32 %v3129_v20, %v1192_v7  ;;  %v1194_v10 = vpop.f32.mrb[19].mxu1  ;;  %v1421_v31 = vpop.f32.mrb[32].mxu0  ;;  %v471_v61 = vld [vmem:[#allocation2 + $0xe8] sm:$0xff] }
 0x1a5   : > { %v1517_v12 = vadd.f32 %v1384_v5, %v459_v2  ;;  %v1388_v13 = vadd.f32 %v3131_v22, %v1194_v10  ;;  %v1423_v34 = vpop.f32.mrb[33].mxu0  ;;  %v472_v2 = vld [vmem:[#allocation2 + $0xf0] sm:$0xff] }
 0x1a6   : > { %1580 = vst [vmem:[#allocation2 + $0x80] sm:$0xff] %v1516_v1  ;;  %v1518_v16 = vadd.f32 %v1386_v8, %v460_v6  ;;  %v3152_v37 = vpop.f32.mrb[34].mxu0  ;;  %v473_v6 = vld [vmem:[#allocation2 + $0xf8] sm:$0xff] }
 0x1a7   : > { %1581 = vst [vmem:[#allocation2 + $0x88] sm:$0xff] %v1517_v12  ;;  %v1519_v15 = vadd.f32 %v1388_v13, %v461_v9  ;;  %v3154_v3 = vpop.f32.mrb[35].mxu0 }
 0x1a8   : > { %1582 = vst [vmem:[#allocation2 + $0x90] sm:$0xff] %v1518_v16 }
 0x1a9   : > { %1583 = vst [vmem:[#allocation2 + $0x98] sm:$0xff] %v1519_v15  ;;  %v1198_v21 = vpop.f32.mrb[20].mxu1 }
 0x1aa   : > { %v1392_v20 = vadd.f32 %v1391_v35, %v1198_v21  ;;  %v1200_v24 = vpop.f32.mrb[21].mxu1 }
 0x1ab   : > { %v1394_v25 = vadd.f32 %v1393_v38, %v1200_v24  ;;  %v1202_v27 = vpop.f32.mrb[22].mxu1  ;;  %v466_v38 = vld [vmem:[#allocation2 + $0xc0] sm:$0xff] }
 0x1ac   : > { %v1520_v22 = vadd.f32 %v1392_v20, %v462_v18  ;;  %v1396_v28 = vadd.f32 %v3134_v39, %v1202_v27  ;;  %v1204_v30 = vpop.f32.mrb[23].mxu1  ;;  %v1431_v45 = vpop.f32.mrb[36].mxu0  ;;  %v475_v18 = vld [vmem:[#allocation2 + $0x108] sm:$0xff] }
 0x1ad   : > { %v1521_v32 = vadd.f32 %v1394_v25, %v463_v23  ;;  %v1398_v33 = vadd.f32 %v3136_v41, %v1204_v30  ;;  %v1433_v53 = vpop.f32.mrb[37].mxu0  ;;  %v476_v23 = vld [vmem:[#allocation2 + $0x110] sm:$0xff] }
 0x1ae   : > { %1584 = vst [vmem:[#allocation2 + $0xa0] sm:$0xff] %v1520_v22  ;;  %v1522_v36 = vadd.f32 %v1396_v28, %v464_v26  ;;  %v3158_v56 = vpop.f32.mrb[38].mxu0  ;;  %v477_v26 = vld [vmem:[#allocation2 + $0x118] sm:$0xff] }
 0x1af   : > { %1585 = vst [vmem:[#allocation2 + $0xa8] sm:$0xff] %v1521_v32  ;;  %v1523_v35 = vadd.f32 %v1398_v33, %v465_v29  ;;  %v3160_v59 = vpop.f32.mrb[39].mxu0 }
 0x1b0   : > { %1586 = vst [vmem:[#allocation2 + $0xb0] sm:$0xff] %v1522_v36 }
 0x1b1   : > { %1587 = vst [vmem:[#allocation2 + $0xb8] sm:$0xff] %v1523_v35  ;;  %v1208_v40 = vpop.f32.mrb[24].mxu1 }
 0x1b2   : > { %v1402_v39 = vadd.f32 %v1401_v54, %v1208_v40  ;;  %v1210_v43 = vpop.f32.mrb[25].mxu1 }
 0x1b3   : > { %v1404_v44 = vadd.f32 %v1403_v57, %v1210_v43  ;;  %v1212_v47 = vpop.f32.mrb[26].mxu1  ;;  %v470_v57 = vld [vmem:[#allocation2 + $0xe0] sm:$0xff] }
 0x1b4   : > { %v1524_v41 = vadd.f32 %v1402_v39, %v466_v38  ;;  %v1406_v48 = vadd.f32 %v3140_v60, %v1212_v47  ;;  %v1214_v50 = vpop.f32.mrb[27].mxu1  ;;  %v1441_v1 = vpop.f32.mrb[40].mxu0  ;;  %v479_v38 = vld [vmem:[#allocation2 + $0x128] sm:$0xff] }
 0x1b5   : > { %v1525_v51 = vadd.f32 %v1404_v44, %v467_v42  ;;  %v1408_v52 = vadd.f32 %v3142_v62, %v1214_v50  ;;  %v1443_v10 = vpop.f32.mrb[41].mxu0  ;;  %v480_v42 = vld [vmem:[#allocation2 + $0x130] sm:$0xff] }
 0x1b6   : > { %1588 = vst [vmem:[#allocation2 + $0xc0] sm:$0xff] %v1524_v41  ;;  %v1526_v55 = vadd.f32 %v1406_v48, %v468_v46  ;;  %v3164_v13 = vpop.f32.mrb[42].mxu0  ;;  %v481_v46 = vld [vmem:[#allocation2 + $0x138] sm:$0xff] }
 0x1b7   : > { %1589 = vst [vmem:[#allocation2 + $0xc8] sm:$0xff] %v1525_v51  ;;  %v1527_v54 = vadd.f32 %v1408_v52, %v469_v49  ;;  %v3166_v16 = vpop.f32.mrb[43].mxu0 }
 0x1b8   : > { %1590 = vst [vmem:[#allocation2 + $0xd0] sm:$0xff] %v1526_v55 }
 0x1b9   : > { %1591 = vst [vmem:[#allocation2 + $0xd8] sm:$0xff] %v1527_v54  ;;  %v1218_v58 = vpop.f32.mrb[28].mxu1 }
 0x1ba   : > { %v1412_v60 = vadd.f32 %v1411_v11, %v1218_v58  ;;  %v1220_v0 = vpop.f32.mrb[29].mxu1 }
 0x1bb   : > { %v1414_v63 = vadd.f32 %v1413_v14, %v1220_v0  ;;  %v1222_v4 = vpop.f32.mrb[30].mxu1  ;;  %v474_v14 = vld [vmem:[#allocation2 + $0x100] sm:$0xff] }
 0x1bc   : > { %v1528_v62 = vadd.f32 %v1412_v60, %v470_v57  ;;  %v1416_v5 = vadd.f32 %v3146_v17, %v1222_v4  ;;  %v1224_v7 = vpop.f32.mrb[31].mxu1  ;;  %v1451_v22 = vpop.f32.mrb[44].mxu0  ;;  %v483_v57 = vld [vmem:[#allocation2 + $0x148] sm:$0xff] }
 0x1bd   : > { %v1529_v8 = vadd.f32 %v1414_v63, %v471_v61  ;;  %v1418_v9 = vadd.f32 %v3148_v19, %v1224_v7  ;;  %v1453_v30 = vpop.f32.mrb[45].mxu0  ;;  %v484_v61 = vld [vmem:[#allocation2 + $0x150] sm:$0xff] }
 0x1be   : > { %1592 = vst [vmem:[#allocation2 + $0xe0] sm:$0xff] %v1528_v62  ;;  %v1530_v12 = vadd.f32 %v1416_v5, %v472_v2  ;;  %v3170_v33 = vpop.f32.mrb[46].mxu0  ;;  %v485_v2 = vld [vmem:[#allocation2 + $0x158] sm:$0xff] }
 0x1bf   : > { %1593 = vst [vmem:[#allocation2 + $0xe8] sm:$0xff] %v1529_v8  ;;  %v1531_v11 = vadd.f32 %v1418_v9, %v473_v6  ;;  %v3172_v36 = vpop.f32.mrb[47].mxu0 }
 0x1c0   : > { %1594 = vst [vmem:[#allocation2 + $0xf0] sm:$0xff] %v1530_v12 }
 0x1c1   : > { %1595 = vst [vmem:[#allocation2 + $0xf8] sm:$0xff] %v1531_v11  ;;  %v1228_v15 = vpop.f32.mrb[32].mxu1 }
 0x1c2   : > { %v1422_v17 = vadd.f32 %v1421_v31, %v1228_v15  ;;  %v1230_v21 = vpop.f32.mrb[33].mxu1 }
 0x1c3   : > { %v1424_v20 = vadd.f32 %v1423_v34, %v1230_v21  ;;  %v1232_v24 = vpop.f32.mrb[34].mxu1  ;;  %v478_v34 = vld [vmem:[#allocation2 + $0x120] sm:$0xff] }
 0x1c4   : > { %v1532_v19 = vadd.f32 %v1422_v17, %v474_v14  ;;  %v1426_v25 = vadd.f32 %v3152_v37, %v1232_v24  ;;  %v1234_v27 = vpop.f32.mrb[35].mxu1  ;;  %v1461_v41 = vpop.f32.mrb[48].mxu0  ;;  %v487_v14 = vld [vmem:[#allocation2 + $0x168] sm:$0xff] }
 0x1c5   : > { %v1533_v28 = vadd.f32 %v1424_v20, %v475_v18  ;;  %v1428_v29 = vadd.f32 %v3154_v3, %v1234_v27  ;;  %v1463_v50 = vpop.f32.mrb[49].mxu0  ;;  %v488_v18 = vld [vmem:[#allocation2 + $0x170] sm:$0xff] }
 0x1c6   : > { %1596 = vst [vmem:[#allocation2 + $0x100] sm:$0xff] %v1532_v19  ;;  %v1534_v32 = vadd.f32 %v1426_v25, %v476_v23  ;;  %v3176_v52 = vpop.f32.mrb[50].mxu0  ;;  %v489_v23 = vld [vmem:[#allocation2 + $0x178] sm:$0xff] }
 0x1c7   : > { %1597 = vst [vmem:[#allocation2 + $0x108] sm:$0xff] %v1533_v28  ;;  %v1535_v31 = vadd.f32 %v1428_v29, %v477_v26  ;;  %v3178_v55 = vpop.f32.mrb[51].mxu0 }
 0x1c8   : > { %1598 = vst [vmem:[#allocation2 + $0x110] sm:$0xff] %v1534_v32 }
 0x1c9   : > { %1599 = vst [vmem:[#allocation2 + $0x118] sm:$0xff] %v1535_v31  ;;  %v1238_v35 = vpop.f32.mrb[36].mxu1 }
 0x1ca   : > { %v1432_v37 = vadd.f32 %v1431_v45, %v1238_v35  ;;  %v1240_v40 = vpop.f32.mrb[37].mxu1  ;;  %v491_v35 = vld [vmem:[#allocation2 + $0x188] sm:$0xff] }
 0x1cb   : > { %v1434_v39 = vadd.f32 %v1433_v53, %v1240_v40  ;;  %v1242_v43 = vpop.f32.mrb[38].mxu1  ;;  %v482_v53 = vld [vmem:[#allocation2 + $0x140] sm:$0xff] }
 0x1cc   : > { %v1536_v3 = vadd.f32 %v1432_v37, %v478_v34  ;;  %v1436_v44 = vadd.f32 %v3158_v56, %v1242_v43  ;;  %v1244_v47 = vpop.f32.mrb[39].mxu1  ;;  %v1471_v62 = vpop.f32.mrb[52].mxu0 }
 0x1cd   : > { %v1537_v48 = vadd.f32 %v1434_v39, %v479_v38  ;;  %v1438_v49 = vadd.f32 %v3160_v59, %v1244_v47  ;;  %v1473_v7 = vpop.f32.mrb[53].mxu0  ;;  %v492_v38 = vld [vmem:[#allocation2 + $0x190] sm:$0xff] }
 0x1ce   : > { %1600 = vst [vmem:[#allocation2 + $0x120] sm:$0xff] %v1536_v3  ;;  %v1538_v51 = vadd.f32 %v1436_v44, %v480_v42  ;;  %v3182_v9 = vpop.f32.mrb[54].mxu0  ;;  %v493_v42 = vld [vmem:[#allocation2 + $0x198] sm:$0xff] }
 0x1cf   : > { %1601 = vst [vmem:[#allocation2 + $0x128] sm:$0xff] %v1537_v48  ;;  %v1539_v45 = vadd.f32 %v1438_v49, %v481_v46  ;;  %v3184_v12 = vpop.f32.mrb[55].mxu0 }
 0x1d0   : > { %1602 = vst [vmem:[#allocation2 + $0x130] sm:$0xff] %v1538_v51 }
 0x1d1   : > { %1603 = vst [vmem:[#allocation2 + $0x138] sm:$0xff] %v1539_v45  ;;  %v1248_v54 = vpop.f32.mrb[40].mxu1 }
 0x1d2   : > { %v1442_v56 = vadd.f32 %v1441_v1, %v1248_v54  ;;  %v1250_v58 = vpop.f32.mrb[41].mxu1  ;;  %v495_v54 = vld [vmem:[#allocation2 + $0x1a8] sm:$0xff] }
 0x1d3   : > { %v1444_v60 = vadd.f32 %v1443_v10, %v1250_v58  ;;  %v1252_v0 = vpop.f32.mrb[42].mxu1  ;;  %v486_v10 = vld [vmem:[#allocation2 + $0x160] sm:$0xff] }
 0x1d4   : > { %v1540_v59 = vadd.f32 %v1442_v56, %v482_v53  ;;  %v1446_v63 = vadd.f32 %v3164_v13, %v1252_v0  ;;  %v1254_v4 = vpop.f32.mrb[43].mxu1  ;;  %v1481_v19 = vpop.f32.mrb[56].mxu0 }
 0x1d5   : > { %v1541_v5 = vadd.f32 %v1444_v60, %v483_v57  ;;  %v1448_v6 = vadd.f32 %v3166_v16, %v1254_v4  ;;  %v1483_v27 = vpop.f32.mrb[57].mxu0  ;;  %v496_v57 = vld [vmem:[#allocation2 + $0x1b0] sm:$0xff] }
 0x1d6   : > { %1604 = vst [vmem:[#allocation2 + $0x140] sm:$0xff] %v1540_v59  ;;  %v1542_v8 = vadd.f32 %v1446_v63, %v484_v61  ;;  %v1485_v29 = vpop.f32.mrb[58].mxu0  ;;  %v497_v61 = vld [vmem:[#allocation2 + $0x1b8] sm:$0xff] }
 0x1d7   : > { %1605 = vst [vmem:[#allocation2 + $0x148] sm:$0xff] %v1541_v5  ;;  %v1543_v1 = vadd.f32 %v1448_v6, %v485_v2  ;;  %v1487_v32 = vpop.f32.mrb[59].mxu0 }
 0x1d8   : > { %1606 = vst [vmem:[#allocation2 + $0x150] sm:$0xff] %v1542_v8 }
 0x1d9   : > { %1607 = vst [vmem:[#allocation2 + $0x158] sm:$0xff] %v1543_v1  ;;  %v1258_v11 = vpop.f32.mrb[44].mxu1 }
 0x1da   : > { %v1452_v13 = vadd.f32 %v1451_v22, %v1258_v11  ;;  %v1260_v15 = vpop.f32.mrb[45].mxu1 }
 0x1db   : > { %v1454_v17 = vadd.f32 %v1453_v30, %v1260_v15  ;;  %v1262_v21 = vpop.f32.mrb[46].mxu1  ;;  %v490_v30 = vld [vmem:[#allocation2 + $0x180] sm:$0xff] }
 0x1dc   : > { %v1544_v16 = vadd.f32 %v1452_v13, %v486_v10  ;;  %v1456_v20 = vadd.f32 %v3170_v33, %v1262_v21  ;;  %v1264_v24 = vpop.f32.mrb[47].mxu1  ;;  %v1491_v3 = vpop.f32.mrb[60].mxu0  ;;  %v500_v10 = vld [vmem:[#allocation2 + $0x1d0] sm:$0xff] }
 0x1dd   : > { %v1545_v25 = vadd.f32 %v1454_v17, %v487_v14  ;;  %v1458_v26 = vadd.f32 %v3172_v36, %v1264_v24  ;;  %v1493_v47 = vpop.f32.mrb[61].mxu0  ;;  %v501_v14 = vld [vmem:[#allocation2 + $0x1d8] sm:$0xff]  ;;  %v503_v24 = vld [vmem:[#allocation2 + $0x1e8] sm:$0xff] }
 0x1de   : > { %1608 = vst [vmem:[#allocation2 + $0x160] sm:$0xff] %v1544_v16  ;;  %v1546_v28 = vadd.f32 %v1456_v20, %v488_v18  ;;  %v1495_v49 = vpop.f32.mrb[62].mxu0  ;;  %v502_v16 = vld [vmem:[#allocation2 + $0x1e0] sm:$0xff] }
 0x1df   : > { %1609 = vst [vmem:[#allocation2 + $0x168] sm:$0xff] %v1545_v25  ;;  %v1547_v22 = vadd.f32 %v1458_v26, %v489_v23  ;;  %v1497_v51 = vpop.f32.mrb[63].mxu0  ;;  %v504_v26 = vld [vmem:[#allocation2 + $0x1f0] sm:$0xff] }
 0x1e0   : > { %1610 = vst [vmem:[#allocation2 + $0x170] sm:$0xff] %v1546_v28 }
 0x1e1   : > { %1611 = vst [vmem:[#allocation2 + $0x178] sm:$0xff] %v1547_v22  ;;  %v1268_v31 = vpop.f32.mrb[48].mxu1  ;;  %v505_v22 = vld [vmem:[#allocation2 + $0x1f8] sm:$0xff] }
 0x1e2   : > { %v1462_v34 = vadd.f32 %v1461_v41, %v1268_v31  ;;  %v1270_v33 = vpop.f32.mrb[49].mxu1 }
 0x1e3   : > { %v1464_v37 = vadd.f32 %v1463_v50, %v1270_v33  ;;  %v1272_v40 = vpop.f32.mrb[50].mxu1  ;;  %v494_v50 = vld [vmem:[#allocation2 + $0x1a0] sm:$0xff]  ;;  %v1698_v33 = vlaneseq (!%p2329_p13) }
 0x1e4   : > { %v1548_v39 = vadd.f32 %v1462_v34, %v490_v30  ;;  %v1466_v36 = vadd.f32 %v3176_v52, %v1272_v40  ;;  %v1274_v43 = vpop.f32.mrb[51].mxu1  ;;  %v1632_v40 = vld [vmem:[#allocation2] sm:$0xff] (!%p2329_p13) }
 0x1e5   : > { %v1549_v44 = vadd.f32 %v1464_v37, %v491_v35  ;;  %v1468_v46 = vadd.f32 %v3178_v55, %v1274_v43  ;;  %v1699_v37 = vshrl.u32 (!%p2329_p13), %v1698_v33, 7  ;;  %v1634_v43 = vld [vmem:[#allocation2 + $0x10] sm:$0xff] (!%p2329_p13)  ;;  %v1653_v33 = vld [vmem:[#allocation2 + $0xa8] sm:$0xff] (!%p2329_p13) }
 0x1e6   : > { %1612 = vst [vmem:[#allocation2 + $0x180] sm:$0xff] %v1548_v39  ;;  %v1550_v48 = vadd.f32 %v1466_v36, %v492_v38  ;;  %v1696_v38 = vld [vmem:[%s3319_s2] sm:$0x3] (!%p2329_p13)  ;;  %v1633_v39 = vld [vmem:[#allocation2 + $0x8] sm:$0xff] (!%p2329_p13) }
 0x1e7   : > { %1613 = vst [vmem:[#allocation2 + $0x188] sm:$0xff] %v1549_v44  ;;  %v1551_v41 = vadd.f32 %v1468_v46, %v493_v42  ;;  %v1700_v36 = vsub.s32 (!%p2329_p13), 0, %v1699_v37  ;;  %v1704_v42 = vsub.s32 (!%p2329_p13), 1, %v1699_v37  ;;  %v1636_v44 = vld [vmem:[#allocation2 + $0x20] sm:$0xff] (!%p2329_p13) }
 0x1e8   : > { %1614 = vst [vmem:[#allocation2 + $0x190] sm:$0xff] %v1550_v48  ;;  %v1637_v48 = vld [vmem:[#allocation2 + $0x28] sm:$0xff] (!%p2329_p13) }
 0x1e9   : > { %1615 = vst [vmem:[#allocation2 + $0x198] sm:$0xff] %v1551_v41  ;;  %v1278_v45 = vpop.f32.mrb[52].mxu1  ;;  %v3196_v46 = vrot.slane (!%p2329_p13), %v1696_v38, %v1700_v36  ;;  %v1639_v41 = vld [vmem:[#allocation2 + $0x38] sm:$0xff] (!%p2329_p13)  ;;  %v1654_v36 = vld [vmem:[#allocation2 + $0xb0] sm:$0xff] (!%p2329_p13) }
 0x1ea   : > { %v1472_v53 = vadd.f32 %v1471_v62, %v1278_v45  ;;  %v1280_v52 = vpop.f32.mrb[53].mxu1  ;;  %v498_v62 = vld [vmem:[#allocation2 + $0x1c0] sm:$0xff] }
 0x1eb   : > { %v1474_v56 = vadd.f32 %v1473_v7, %v1280_v52  ;;  %v1282_v58 = vpop.f32.mrb[54].mxu1  ;;  %v499_v7 = vld [vmem:[#allocation2 + $0x1c8] sm:$0xff]  ;;  %v1710_v45 = vadd.f32 (!%p2329_p13), %v3196_v46, %v1634_v43 }
 0x1ec   : > { %v1552_v60 = vadd.f32 %v1472_v53, %v494_v50  ;;  %v1476_v55 = vadd.f32 %v3182_v9, %v1282_v58  ;;  %v1284_v0 = vpop.f32.mrb[55].mxu1  ;;  %v1640_v58 = vld [vmem:[#allocation2 + $0x40] sm:$0xff] (!%p2329_p13) }
 0x1ed   : > { %v1553_v59 = vadd.f32 %v1474_v56, %v495_v54  ;;  %v1478_v63 = vadd.f32 %v3184_v12, %v1284_v0  ;;  %v1712_v54 = vadd.f32 (!%p2329_p13), %v3196_v46, %v1636_v44  ;;  %v1774_v0 = vmax.f32 (!%p2329_p13), %v1710_v45, 0.0 }
 0x1ee   : > { %1616 = vst [vmem:[#allocation2 + $0x1a0] sm:$0xff] %v1552_v60  ;;  %v1554_v2 = vadd.f32 %v1476_v55, %v496_v57  ;;  %v1641_v60 = vld [vmem:[#allocation2 + $0x48] sm:$0xff] (!%p2329_p13) }
 0x1ef   : > { %1617 = vst [vmem:[#allocation2 + $0x1a8] sm:$0xff] %v1553_v59  ;;  %v1555_v4 = vadd.f32 %v1478_v63, %v497_v61  ;;  %v1642_v63 = vld [vmem:[#allocation2 + $0x50] sm:$0xff] (!%p2329_p13) }
 0x1f0   : > { %1618 = vst [vmem:[#allocation2 + $0x1b0] sm:$0xff] %v1554_v2  ;;  %v1643_v2 = vld [vmem:[#allocation2 + $0x58] sm:$0xff] (!%p2329_p13) }
 0x1f1   : > { %1619 = vst [vmem:[#allocation2 + $0x1b8] sm:$0xff] %v1555_v4  ;;  %v1288_v5 = vpop.f32.mrb[56].mxu1  ;;  %v1776_v4 = vmax.f32 (!%p2329_p13), %v1712_v54, 0.0 }
 0x1f2   : > { %v1482_v6 = vadd.f32 %v1481_v19, %v1288_v5  ;;  %v1290_v8 = vpop.f32.mrb[57].mxu1 }
 0x1f3   : > { %v1484_v1 = vadd.f32 %v1483_v27, %v1290_v8  ;;  %v1292_v11 = vpop.f32.mrb[58].mxu1  ;;  %v1645_v8 = vld [vmem:[#allocation2 + $0x68] sm:$0xff] (!%p2329_p13) }
 0x1f4   : > { %v1556_v9 = vadd.f32 %v1482_v6, %v498_v62  ;;  %v1486_v13 = vadd.f32 %v1485_v29, %v1292_v11  ;;  %v1294_v15 = vpop.f32.mrb[59].mxu1  ;;  %v1716_v11 = vadd.f32 (!%p2329_p13), %v3196_v46, %v1640_v58  ;;  %v1658_v58 = vld [vmem:[#allocation2 + $0xd0] sm:$0xff] (!%p2329_p13) }
 0x1f5   : > { %v1557_v17 = vadd.f32 %v1484_v1, %v499_v7  ;;  %v1488_v12 = vadd.f32 %v1487_v32, %v1294_v15  ;;  %v1644_v7 = vld [vmem:[#allocation2 + $0x60] sm:$0xff] (!%p2329_p13) }
 0x1f6   : > { %1620 = vst [vmem:[#allocation2 + $0x1c0] sm:$0xff] %v1556_v9  ;;  %v1558_v18 = vadd.f32 %v1486_v13, %v500_v10  ;;  %v1646_v13 = vld [vmem:[#allocation2 + $0x70] sm:$0xff] (!%p2329_p13) }
 0x1f7   : > { %1621 = vst [vmem:[#allocation2 + $0x1c8] sm:$0xff] %v1557_v17  ;;  %v1559_v21 = vadd.f32 %v1488_v12, %v501_v14  ;;  %v1647_v14 = vld [vmem:[#allocation2 + $0x78] sm:$0xff] (!%p2329_p13)  ;;  %v1718_v12 = vadd.f32 (!%p2329_p13), %v3196_v46, %v1642_v63  ;;  %v1660_v63 = vld [vmem:[#allocation2 + $0xe0] sm:$0xff] (!%p2329_p13) }
 0x1f8   : > { %1622 = vst [vmem:[#allocation2 + $0x1d0] sm:$0xff] %v1558_v18 }
 0x1f9   : > { %1623 = vst [vmem:[#allocation2 + $0x1d8] sm:$0xff] %v1559_v21  ;;  %v1298_v20 = vpop.f32.mrb[60].mxu1  ;;  %v1648_v21 = vld [vmem:[#allocation2 + $0x80] sm:$0xff] (!%p2329_p13) }
 0x1fa   : > { %v1492_v23 = vadd.f32 %v1491_v3, %v1298_v20  ;;  %v1300_v19 = vpop.f32.mrb[61].mxu1  ;;  %v1635_v3 = vld [vmem:[#allocation2 + $0x18] sm:$0xff] (!%p2329_p13) }
 0x1fb   : > { %v1494_v25 = vadd.f32 %v1493_v47, %v1300_v19  ;;  %v1302_v27 = vpop.f32.mrb[62].mxu1  ;;  %1631 = sbr.rel (%p2329_p13) target bundleno = 552 (0x228), region = 66  ;;  %v3198_v47 = vrot.slane (!%p2329_p13), %v1696_v38, %v1704_v42  ;;  %v1649_v19 = vld [vmem:[#allocation2 + $0x88] sm:$0xff] (!%p2329_p13)  ;;  %v1655_v42 = vld [vmem:[#allocation2 + $0xb8] sm:$0xff] (!%p2329_p13) }
 0x1fc   : > { %v1560_v28 = vadd.f32 %v1492_v23, %v502_v16  ;;  %v1496_v29 = vadd.f32 %v1495_v49, %v1302_v27  ;;  %v1304_v30 = vpop.f32.mrb[63].mxu1  ;;  %v1638_v49 = vld [vmem:[#allocation2 + $0x30] sm:$0xff] (!%p2329_p13)  ;;  %v1780_v16 = vmax.f32 (!%p2329_p13), %v1716_v11, 0.0  ;;  %v1720_v23 = vadd.f32 (!%p2329_p13), %v3196_v46, %v1644_v7 }
 0x1fd   : > { %v1561_v31 = vadd.f32 %v1494_v25, %v503_v24  ;;  %v1498_v32 = vadd.f32 %v1497_v51, %v1304_v30  ;;  %v1708_v51 = vadd.f32 (!%p2329_p13), %v3196_v46, %v1632_v40  ;;  %v1709_v50 = vadd.f32 (!%p2329_p13), %v3198_v47, %v1633_v39  ;;  %v1662_v7 = vld [vmem:[#allocation2 + $0xf0] sm:$0xff] (!%p2329_p13) }
 0x1fe   : > { %1624 = vst [vmem:[#allocation2 + $0x1e0] sm:$0xff] %v1560_v28  ;;  %v1562_v34 = vadd.f32 %v1496_v29, %v504_v26  ;;  %v1711_v53 = vadd.f32 (!%p2329_p13), %v3198_v47, %v1635_v3  ;;  %v1713_v52 = vadd.f32 (!%p2329_p13), %v3198_v47, %v1637_v48  ;;  %v1714_v56 = vadd.f32 (!%p2329_p13), %v3196_v46, %v1638_v49  ;;  %v1650_v29 = vld [vmem:[#allocation2 + $0x90] sm:$0xff] (!%p2329_p13)  ;;  %v1656_v49 = vld [vmem:[#allocation2 + $0xc0] sm:$0xff] (!%p2329_p13) }
 0x1ff   : > { %1625 = vst [vmem:[#allocation2 + $0x1e8] sm:$0xff] %v1561_v31  ;;  %v1563_v35 = vadd.f32 %v1498_v32, %v505_v22  ;;  %v1715_v57 = vadd.f32 (!%p2329_p13), %v3198_v47, %v1639_v41  ;;  %v1772_v55 = vmax.f32 (!%p2329_p13), %v1708_v51, 0.0  ;;  %v1773_v61 = vmax.f32 (!%p2329_p13), %v1709_v50, 0.0  ;;  %v1651_v22 = vld [vmem:[#allocation2 + $0x98] sm:$0xff] (!%p2329_p13) }
 0x200   : > { %1626 = vst [vmem:[#allocation2 + $0x1f0] sm:$0xff] %v1562_v34  ;;  %v1775_v59 = vmax.f32 (!%p2329_p13), %v1711_v53, 0.0  ;;  %v1777_v62 = vmax.f32 (!%p2329_p13), %v1713_v52, 0.0  ;;  %v1778_v5 = vmax.f32 (!%p2329_p13), %v1714_v56, 0.0  ;;  %v1717_v9 = vadd.f32 (!%p2329_p13), %v3198_v47, %v1641_v60  ;;  %v1657_v53 = vld [vmem:[#allocation2 + $0xc8] sm:$0xff] (!%p2329_p13)  ;;  %v1659_v60 = vld [vmem:[#allocation2 + $0xd8] sm:$0xff] (!%p2329_p13) }
 0x201   : > { %1627 = vst [vmem:[#allocation2 + $0x1f8] sm:$0xff] %v1563_v35  ;;  %v1779_v6 = vmax.f32 (!%p2329_p13), %v1715_v57, 0.0  ;;  %v2366_v1 = vpack.c.bf16 (!%p2329_p13), %v1773_v61, %v1772_v55  ;;  %v1719_v18 = vadd.f32 (!%p2329_p13), %v3198_v47, %v1643_v2  ;;  %v1721_v24 = vadd.f32 (!%p2329_p13), %v3198_v47, %v1645_v8  ;;  %v1652_v35 = vld [vmem:[#allocation2 + $0xa0] sm:$0xff] (!%p2329_p13)  ;;  %v1661_v2 = vld [vmem:[#allocation2 + $0xe8] sm:$0xff] (!%p2329_p13)  ;;  %v1663_v8 = vld [vmem:[#allocation2 + $0xf8] sm:$0xff] (!%p2329_p13) }
 0x202   : > { %v2367_v10 = vpack.c.bf16 %v1775_v59, %v1774_v0  ;;  %v2368_v15 = vpack.c.bf16 %v1777_v62, %v1776_v4  ;;  %v1781_v20 = vmax.f32 %v1717_v9, 0.0  ;;  %v1782_v25 = vmax.f32 %v1718_v12, 0.0 }
 0x203   : > { %v2369_v17 = vpack.c.bf16 %v1779_v6, %v1778_v5  ;;  %2028 = vst [vmem:[%s2942_s30] sm:$0xff] %v2366_v1  ;;  %v1783_v26 = vmax.f32 %v1719_v18, 0.0  ;;  %v1722_v27 = vadd.f32 %v3196_v46, %v1646_v13  ;;  %v1723_v28 = vadd.f32 %v3198_v47, %v1647_v14  ;;  %v1664_v13 = vld [vmem:[#allocation2 + $0x100] sm:$0xff]  ;;  %v1665_v18 = vld [vmem:[#allocation2 + $0x108] sm:$0xff] }
 0x204   : > { %2029 = vst [vmem:[%s2942_s30 + $0x8] sm:$0xff] %v2367_v10  ;;  %2030 = vst [vmem:[%s2942_s30 + $0x10] sm:$0xff] %v2368_v15  ;;  %v2370_v30 = vpack.c.bf16 %v1781_v20, %v1780_v16  ;;  %v1784_v31 = vmax.f32 %v1720_v23, 0.0  ;;  %v1785_v32 = vmax.f32 %v1721_v24, 0.0  ;;  %v1724_v34 = vadd.f32 %v3196_v46, %v1648_v21  ;;  %v1666_v24 = vld [vmem:[#allocation2 + $0x110] sm:$0xff] }
 0x205   : > { %2031 = vst [vmem:[%s2942_s30 + $0x18] sm:$0xff] %v2369_v17  ;;  %v2371_v37 = vpack.c.bf16 %v1783_v26, %v1782_v25  ;;  %v1786_v38 = vmax.f32 %v1722_v27, 0.0  ;;  %v1787_v40 = vmax.f32 %v1723_v28, 0.0  ;;  %v1725_v39 = vadd.f32 %v3198_v47, %v1649_v19  ;;  %v1667_v19 = vld [vmem:[#allocation2 + $0x118] sm:$0xff] }
 0x206   : > { %2032 = vst [vmem:[%s2942_s30 + $0x20] sm:$0xff] %v2370_v30  ;;  %v2372_v43 = vpack.c.bf16 %v1785_v32, %v1784_v31  ;;  %v1788_v3 = vmax.f32 %v1724_v34, 0.0  ;;  %v1726_v44 = vadd.f32 %v3196_v46, %v1650_v29  ;;  %v1727_v48 = vadd.f32 %v3198_v47, %v1651_v22  ;;  %v1668_v29 = vld [vmem:[#allocation2 + $0x120] sm:$0xff]  ;;  %v1669_v22 = vld [vmem:[#allocation2 + $0x128] sm:$0xff] }
 0x207   : > { %2033 = vst [vmem:[%s2942_s30 + $0x28] sm:$0xff] %v2371_v37  ;;  %v2373_v41 = vpack.c.bf16 %v1787_v40, %v1786_v38  ;;  %v1789_v51 = vmax.f32 %v1725_v39, 0.0  ;;  %v1728_v50 = vadd.f32 %v3196_v46, %v1652_v35  ;;  %v1729_v45 = vadd.f32 %v3198_v47, %v1653_v33  ;;  %v1670_v35 = vld [vmem:[#allocation2 + $0x130] sm:$0xff]  ;;  %v1671_v33 = vld [vmem:[#allocation2 + $0x138] sm:$0xff] }
 0x208   : > { %2034 = vst [vmem:[%s2942_s30 + $0x30] sm:$0xff] %v2372_v43  ;;  %v1790_v54 = vmax.f32 %v1726_v44, 0.0  ;;  %v1791_v52 = vmax.f32 %v1727_v48, 0.0  ;;  %v1730_v56 = vadd.f32 %v3196_v46, %v1654_v36  ;;  %v1731_v57 = vadd.f32 %v3198_v47, %v1655_v42  ;;  %v1672_v36 = vld [vmem:[#allocation2 + $0x140] sm:$0xff]  ;;  %v1673_v48 = vld [vmem:[#allocation2 + $0x148] sm:$0xff] }
 0x209   : > { %2035 = vst [vmem:[%s2942_s30 + $0x38] sm:$0xff] %v2373_v41  ;;  %v2374_v55 = vpack.c.bf16 %v1789_v51, %v1788_v3  ;;  %v1792_v61 = vmax.f32 %v1728_v50, 0.0  ;;  %v1793_v0 = vmax.f32 %v1729_v45, 0.0  ;;  %v1732_v59 = vadd.f32 %v3196_v46, %v1656_v49  ;;  %v1674_v45 = vld [vmem:[#allocation2 + $0x150] sm:$0xff] }
 0x20a   : > { %v2375_v4 = vpack.c.bf16 %v1791_v52, %v1790_v54  ;;  %v1794_v62 = vmax.f32 %v1730_v56, 0.0  ;;  %v1795_v5 = vmax.f32 %v1731_v57, 0.0  ;;  %v1733_v6 = vadd.f32 %v3198_v47, %v1657_v53  ;;  %v1675_v53 = vld [vmem:[#allocation2 + $0x158] sm:$0xff] }
 0x20b   : > { %2036 = vst [vmem:[%s2942_s30 + $0x40] sm:$0xff] %v2374_v55  ;;  %v2376_v1 = vpack.c.bf16 %v1793_v0, %v1792_v61  ;;  %v1796_v10 = vmax.f32 %v1732_v59, 0.0  ;;  %v1734_v11 = vadd.f32 %v3196_v46, %v1658_v58  ;;  %v1735_v9 = vadd.f32 %v3198_v47, %v1659_v60  ;;  %v1676_v58 = vld [vmem:[#allocation2 + $0x160] sm:$0xff]  ;;  %v1677_v60 = vld [vmem:[#allocation2 + $0x168] sm:$0xff] }
 0x20c   : > { %2037 = vst [vmem:[%s2942_s30 + $0x48] sm:$0xff] %v2375_v4  ;;  %v2377_v14 = vpack.c.bf16 %v1795_v5, %v1794_v62  ;;  %v1797_v15 = vmax.f32 %v1733_v6, 0.0  ;;  %v1736_v17 = vadd.f32 %v3196_v46, %v1660_v63  ;;  %v1737_v12 = vadd.f32 %v3198_v47, %v1661_v2  ;;  %v1678_v63 = vld [vmem:[#allocation2 + $0x170] sm:$0xff]  ;;  %v1679_v2 = vld [vmem:[#allocation2 + $0x178] sm:$0xff] }
 0x20d   : > { %2038 = vst [vmem:[%s2942_s30 + $0x50] sm:$0xff] %v2376_v1  ;;  %v1798_v21 = vmax.f32 %v1734_v11, 0.0  ;;  %v1799_v16 = vmax.f32 %v1735_v9, 0.0  ;;  %v1738_v20 = vadd.f32 %v3196_v46, %v1662_v7  ;;  %v1739_v23 = vadd.f32 %v3198_v47, %v1663_v8  ;;  %v1680_v7 = vld [vmem:[#allocation2 + $0x180] sm:$0xff]  ;;  %v1681_v9 = vld [vmem:[#allocation2 + $0x188] sm:$0xff] }
 0x20e   : > { %2039 = vst [vmem:[%s2942_s30 + $0x58] sm:$0xff] %v2377_v14  ;;  %v2378_v25 = vpack.c.bf16 %v1797_v15, %v1796_v10  ;;  %v1800_v26 = vmax.f32 %v1736_v17, 0.0  ;;  %v1801_v27 = vmax.f32 %v1737_v12, 0.0  ;;  %v1740_v28 = vadd.f32 %v3196_v46, %v1664_v13  ;;  %v1682_v12 = vld [vmem:[#allocation2 + $0x190] sm:$0xff] }
 0x20f   : > { %v2379_v30 = vpack.c.bf16 %v1799_v16, %v1798_v21  ;;  %v1802_v31 = vmax.f32 %v1738_v20, 0.0  ;;  %v1803_v32 = vmax.f32 %v1739_v23, 0.0  ;;  %v1741_v34 = vadd.f32 %v3198_v47, %v1665_v18  ;;  %v1683_v18 = vld [vmem:[#allocation2 + $0x198] sm:$0xff] }
 0x210   : > { %2040 = vst [vmem:[%s2942_s30 + $0x60] sm:$0xff] %v2378_v25  ;;  %v2380_v37 = vpack.c.bf16 %v1801_v27, %v1800_v26  ;;  %v1804_v38 = vmax.f32 %v1740_v28, 0.0  ;;  %v1742_v40 = vadd.f32 %v3196_v46, %v1666_v24  ;;  %v1743_v39 = vadd.f32 %v3198_v47, %v1667_v19  ;;  %v1684_v24 = vld [vmem:[#allocation2 + $0x1a0] sm:$0xff]  ;;  %v1685_v19 = vld [vmem:[#allocation2 + $0x1a8] sm:$0xff] }
 0x211   : > { %2041 = vst [vmem:[%s2942_s30 + $0x68] sm:$0xff] %v2379_v30  ;;  %v2381_v42 = vpack.c.bf16 %v1803_v32, %v1802_v31  ;;  %v1805_v43 = vmax.f32 %v1741_v34, 0.0  ;;  %v1744_v3 = vadd.f32 %v3196_v46, %v1668_v29  ;;  %v1745_v44 = vadd.f32 %v3198_v47, %v1669_v22  ;;  %v1686_v29 = vld [vmem:[#allocation2 + $0x1b0] sm:$0xff]  ;;  %v1687_v22 = vld [vmem:[#allocation2 + $0x1b8] sm:$0xff] }
 0x212   : > { %2042 = vst [vmem:[%s2942_s30 + $0x70] sm:$0xff] %v2380_v37  ;;  %v1806_v49 = vmax.f32 %v1742_v40, 0.0  ;;  %v1807_v41 = vmax.f32 %v1743_v39, 0.0  ;;  %v1746_v51 = vadd.f32 %v3196_v46, %v1670_v35  ;;  %v1747_v50 = vadd.f32 %v3198_v47, %v1671_v33  ;;  %v1688_v35 = vld [vmem:[#allocation2 + $0x1c0] sm:$0xff]  ;;  %v1689_v39 = vld [vmem:[#allocation2 + $0x1c8] sm:$0xff] }
 0x213   : > { %2043 = vst [vmem:[%s2942_s30 + $0x78] sm:$0xff] %v2381_v42  ;;  %v2382_v54 = vpack.c.bf16 %v1805_v43, %v1804_v38  ;;  %v1808_v52 = vmax.f32 %v1744_v3, 0.0  ;;  %v1809_v56 = vmax.f32 %v1745_v44, 0.0  ;;  %v1748_v57 = vadd.f32 %v3196_v46, %v1672_v36  ;;  %v1690_v44 = vld [vmem:[#allocation2 + $0x1d0] sm:$0xff] }
 0x214   : > { %v2383_v55 = vpack.c.bf16 %v1807_v41, %v1806_v49  ;;  %v1810_v61 = vmax.f32 %v1746_v51, 0.0  ;;  %v1811_v0 = vmax.f32 %v1747_v50, 0.0  ;;  %v1749_v59 = vadd.f32 %v3198_v47, %v1673_v48  ;;  %v1691_v48 = vld [vmem:[#allocation2 + $0x1d8] sm:$0xff] }
 0x215   : > { %2044 = vst [vmem:[%s2942_s30 + $0x80] sm:$0xff] %v2382_v54  ;;  %v2384_v4 = vpack.c.bf16 %v1809_v56, %v1808_v52  ;;  %v1812_v62 = vmax.f32 %v1748_v57, 0.0  ;;  %v1750_v5 = vadd.f32 %v3196_v46, %v1674_v45  ;;  %v1751_v6 = vadd.f32 %v3198_v47, %v1675_v53  ;;  %v1692_v45 = vld [vmem:[#allocation2 + $0x1e0] sm:$0xff]  ;;  %v1693_v53 = vld [vmem:[#allocation2 + $0x1e8] sm:$0xff] }
 0x216   : > { %2045 = vst [vmem:[%s2942_s30 + $0x88] sm:$0xff] %v2383_v55  ;;  %v2385_v8 = vpack.c.bf16 %v1811_v0, %v1810_v61  ;;  %v1813_v1 = vmax.f32 %v1749_v59, 0.0  ;;  %v1752_v10 = vadd.f32 %v3196_v46, %v1676_v58  ;;  %v1753_v11 = vadd.f32 %v3198_v47, %v1677_v60  ;;  %v1694_v58 = vld [vmem:[#allocation2 + $0x1f0] sm:$0xff]  ;;  %v1695_v60 = vld [vmem:[#allocation2 + $0x1f8] sm:$0xff] }
 0x217   : > { %2046 = vst [vmem:[%s2942_s30 + $0x90] sm:$0xff] %v2384_v4  ;;  %v1814_v13 = vmax.f32 %v1750_v5, 0.0  ;;  %v1815_v14 = vmax.f32 %v1751_v6, 0.0  ;;  %v1754_v15 = vadd.f32 %v3196_v46, %v1678_v63  ;;  %v1755_v17 = vadd.f32 %v3198_v47, %v1679_v2 }
 0x218   : > { %2047 = vst [vmem:[%s2942_s30 + $0x98] sm:$0xff] %v2385_v8  ;;  %v2386_v21 = vpack.c.bf16 %v1813_v1, %v1812_v62  ;;  %v1816_v16 = vmax.f32 %v1752_v10, 0.0  ;;  %v1817_v20 = vmax.f32 %v1753_v11, 0.0  ;;  %v1756_v23 = vadd.f32 %v3196_v46, %v1680_v7 }
 0x219   : > { %v2387_v25 = vpack.c.bf16 %v1815_v14, %v1814_v13  ;;  %v1818_v26 = vmax.f32 %v1754_v15, 0.0  ;;  %v1819_v27 = vmax.f32 %v1755_v17, 0.0  ;;  %v1757_v28 = vadd.f32 %v3198_v47, %v1681_v9 }
 0x21a   : > { %2048 = vst [vmem:[%s2942_s30 + $0xa0] sm:$0xff] %v2386_v21  ;;  %v2388_v30 = vpack.c.bf16 %v1817_v20, %v1816_v16  ;;  %v1820_v31 = vmax.f32 %v1756_v23, 0.0  ;;  %v1758_v32 = vadd.f32 %v3196_v46, %v1682_v12  ;;  %v1759_v34 = vadd.f32 %v3198_v47, %v1683_v18 }
 0x21b   : > { %2049 = vst [vmem:[%s2942_s30 + $0xa8] sm:$0xff] %v2387_v25  ;;  %v2389_v33 = vpack.c.bf16 %v1819_v27, %v1818_v26  ;;  %v1821_v37 = vmax.f32 %v1757_v28, 0.0  ;;  %v1760_v38 = vadd.f32 %v3196_v46, %v1684_v24  ;;  %v1761_v40 = vadd.f32 %v3198_v47, %v1685_v19 }
 0x21c   : > { %2050 = vst [vmem:[%s2942_s30 + $0xb0] sm:$0xff] %v2388_v30  ;;  %v1822_v36 = vmax.f32 %v1758_v32, 0.0  ;;  %v1823_v42 = vmax.f32 %v1759_v34, 0.0  ;;  %v1762_v43 = vadd.f32 %v3196_v46, %v1686_v29  ;;  %v1763_v3 = vadd.f32 %v3198_v47, %v1687_v22 }
 0x21d   : > { %2051 = vst [vmem:[%s2942_s30 + $0xb8] sm:$0xff] %v2389_v33  ;;  %v2390_v49 = vpack.c.bf16 %v1821_v37, %v1820_v31  ;;  %v1824_v41 = vmax.f32 %v1760_v38, 0.0  ;;  %v1825_v51 = vmax.f32 %v1761_v40, 0.0  ;;  %v1764_v50 = vadd.f32 %v3196_v46, %v1688_v35 }
 0x21e   : > { %v2391_v54 = vpack.c.bf16 %v1823_v42, %v1822_v36  ;;  %v1826_v52 = vmax.f32 %v1762_v43, 0.0  ;;  %v1827_v56 = vmax.f32 %v1763_v3, 0.0  ;;  %v1765_v57 = vadd.f32 %v3198_v47, %v1689_v39 }
 0x21f   : > { %2052 = vst [vmem:[%s2942_s30 + $0xc0] sm:$0xff] %v2390_v49  ;;  %v2392_v55 = vpack.c.bf16 %v1825_v51, %v1824_v41  ;;  %v1828_v61 = vmax.f32 %v1764_v50, 0.0  ;;  %v1766_v0 = vadd.f32 %v3196_v46, %v1690_v44  ;;  %v1767_v59 = vadd.f32 %v3198_v47, %v1691_v48 }
 0x220   : > { %2053 = vst [vmem:[%s2942_s30 + $0xc8] sm:$0xff] %v2391_v54  ;;  %v2393_v63 = vpack.c.bf16 %v1827_v56, %v1826_v52  ;;  %v1829_v2 = vmax.f32 %v1765_v57, 0.0  ;;  %v1768_v4 = vadd.f32 %v3196_v46, %v1692_v45  ;;  %v1769_v62 = vadd.f32 %v3198_v47, %v1693_v53 }
 0x221   : > { %2054 = vst [vmem:[%s2942_s30 + $0xd0] sm:$0xff] %v2392_v55  ;;  %v1830_v5 = vmax.f32 %v1766_v0, 0.0  ;;  %v1831_v6 = vmax.f32 %v1767_v59, 0.0  ;;  %v1770_v7 = vadd.f32 %v3196_v46, %v1694_v58  ;;  %v1771_v8 = vadd.f32 %v3198_v47, %v1695_v60 }
 0x222   : > { %2055 = vst [vmem:[%s2942_s30 + $0xd8] sm:$0xff] %v2393_v63  ;;  %v2394_v1 = vpack.c.bf16 %v1829_v2, %v1828_v61  ;;  %v1832_v10 = vmax.f32 %v1768_v4, 0.0  ;;  %v1833_v11 = vmax.f32 %v1769_v62, 0.0 }
 0x223   : > { %v2395_v9 = vpack.c.bf16 %v1831_v6, %v1830_v5  ;;  %v1834_v13 = vmax.f32 %v1770_v7, 0.0  ;;  %v1835_v14 = vmax.f32 %v1771_v8, 0.0 }
 0x224   : > { %2056 = vst [vmem:[%s2942_s30 + $0xe0] sm:$0xff] %v2394_v1  ;;  %v2396_v15 = vpack.c.bf16 %v1833_v11, %v1832_v10 }
 0x225   : > { %2057 = vst [vmem:[%s2942_s30 + $0xe8] sm:$0xff] %v2395_v9  ;;  %v2397_v17 = vpack.c.bf16 %v1835_v14, %v1834_v13 }
 0x226   : > { %2058 = vst [vmem:[%s2942_s30 + $0xf0] sm:$0xff] %v2396_v15 }
 0x227   : > { %2059 = vst [vmem:[%s2942_s30 + $0xf8] sm:$0xff] %v2397_v17 }
 0x228 PF: > { %s13_s18 = sadd.s32 1, %s2713_s18   ;;  %s3321_s12 = smov %s2693_s13 }
 0x229   : > { %p10_p0 = scmp.ge.s32.totalorder %s13_s18, 14   ;;  %s3322_s13 = smov %s2788_s25 }
 0x22a   : > { %s3323_s14 = smov %s2705_s16  ;;  %s3324_s15 = smov %s2709_s17 }
 0x22b   : > { %s3325_s16 = smov %s3328_s19  ;;  %s3326_s17 = smov %s3332_s20 }
 0x22c   :  { %12 = sbr.rel (!%p10_p0) target bundleno = 4 (0x4), region = 110 }

</bundles_post_ra>
